<compile_context>
chip_gen: v6e
topology: v6e:2x2x1
jax: 0.10.0
libtpu: 0.0.40
codegen_flags: <defaults>
</compile_context>

<pallas_src>
import jax
import jax.numpy as jnp
from jax.experimental import pallas as pl
from jax.experimental.pallas import tpu as pltpu


def _round_up(x, m):
    return (x + m - 1) // m * m


# ------------------------------- fused kernel --------------------------------
def _gru_model_kernel(x_ref, wih_ref, whh_ref, bih_ref, bhhn_ref,
                      lw_ref, lb_ref, out_ref, h_seq):
    S, Bp, Hp = h_seq.shape
    L = wih_ref.shape[0]
    Op = out_ref.shape[2]

    for layer in range(L):                                    # unrolled over layers
        inp = x_ref[...] if layer == 0 else h_seq[...]        # (S, Bp, Hp) f32

        # Hoisted input projection for ALL timesteps: one bf16 MXU matmul, f32 acc.
        # bih already contains b_ih (all gates) + b_hh (r,z gates).
        gx = (jnp.dot(inp.reshape(S * Bp, Hp).astype(jnp.bfloat16),
                      wih_ref[layer],
                      preferred_element_type=jnp.float32)
              + bih_ref[layer])                               # (S*Bp, 3Hp) f32, a VALUE

        whh = whh_ref[layer]                                  # (Hp, 3Hp) bf16, VMEM-resident
        # hoist the n-gate hidden-bias broadcast: once per layer, not per step
        b_hn = jnp.broadcast_to(bhhn_ref[layer], (Bp, Hp))    # (Bp, Hp) f32

        h = jnp.zeros((Bp, Hp), jnp.float32)
        # S is small & static -> full unroll; only h @ W_hh + gate math are serial.
        for t in range(S):
            gxt = gx[t * Bp:(t + 1) * Bp]                     # static, sublane-aligned slice
            gh = jnp.dot(h.astype(jnp.bfloat16), whh,
                         preferred_element_type=jnp.float32)  # (Bp, 3Hp)
            # gate slices are at 128-aligned lane offsets (Hp % 128 == 0)
            # sigmoid = 1 / (1 + exp(-x)) with the divide on the EUP (approx recip)
            r = pl.reciprocal(1.0 + jnp.exp(-(gxt[:, 0:Hp] + gh[:, 0:Hp])),
                              approx=True)
            z = pl.reciprocal(1.0 + jnp.exp(-(gxt[:, Hp:2 * Hp] + gh[:, Hp:2 * Hp])),
                              approx=True)
            n = jnp.tanh(gxt[:, 2 * Hp:] + r * (gh[:, 2 * Hp:] + b_hn))
            h = n + z * (h - n)                               # == (1-z)*n + z*h_prev
            h_seq[t] = h

    # Fused linear head: (S*Bp, Hp) @ (Hp, Op) + b, lane-dense output.
    y = (jnp.dot(h_seq[...].reshape(S * Bp, Hp).astype(jnp.bfloat16), lw_ref[...],
                 preferred_element_type=jnp.float32) + lb_ref[...])
    out_ref[...] = y.reshape(S, Bp, Op).astype(out_ref.dtype)


# --------------------------- parameter preparation ---------------------------
def _pad_gate_cols(w_t, rows_pad, H, Hp):
    """(in_feat, 3H) with gates [r|z|n] -> (rows_pad, 3Hp), each gate 128-aligned."""
    in_feat = w_t.shape[0]
    out = jnp.zeros((rows_pad, 3 * Hp), jnp.float32)
    for g in range(3):
        out = out.at[:in_feat, g * Hp:g * Hp + H].set(w_t[:, g * H:(g + 1) * H])
    return out


def _pad_gate_vec(b, H, Hp):
    out = jnp.zeros((3 * Hp,), jnp.float32)
    for g in range(3):
        out = out.at[g * Hp:g * Hp + H].set(b[g * H:(g + 1) * H])
    return out


def prepare_params(params):
    """Pad/stack PyTorch-shaped params ONCE (outside the jitted forward).

    Returns bf16 weight slabs (for the MXU) and f32 biases.
    """
    H = params["gru_layers"][0]["w_hh"].shape[1]
    O = params["lin_w"].shape[0]
    Hp = _round_up(H, 128)
    Op = _round_up(O, 128)

    wih, whh, bih, bhhn = [], [], [], []
    for lp in params["gru_layers"]:
        wih.append(_pad_gate_cols(lp["w_ih"].T, Hp, H, Hp))   # (Hp, 3Hp)
        whh.append(_pad_gate_cols(lp["w_hh"].T, Hp, H, Hp))   # (Hp, 3Hp)
        b_ih_p = _pad_gate_vec(lp["b_ih"], H, Hp)
        b_hh_p = _pad_gate_vec(lp["b_hh"], H, Hp)
        # fold b_hh for the r,z gates into the hoisted bias; keep b_hh_n separate
        bih.append((b_ih_p.at[:2 * Hp].add(b_hh_p[:2 * Hp])).reshape(1, 3 * Hp))
        bhhn.append(b_hh_p[2 * Hp:].reshape(1, Hp))

    lw = jnp.zeros((Hp, Op), jnp.float32).at[:H, :O].set(params["lin_w"].T)
    lb = jnp.zeros((1, Op), jnp.float32).at[0, :O].set(params["lin_b"])

    return (jnp.stack(wih).astype(jnp.bfloat16),
            jnp.stack(whh).astype(jnp.bfloat16),
            jnp.stack(bih),                       # f32
            jnp.stack(bhhn),                      # f32
            lw.astype(jnp.bfloat16),
            lb)                                   # f32


# ------------------------------- model wrapper --------------------------------
def make_gru_forward(prepared, output_dim):
    """Builds a jitted forward that closes over the pre-padded weight slabs."""
    wih_all, whh_all, bih_all, bhhn_all, lw, lb = prepared
    Hp = wih_all.shape[1]
    Op = lw.shape[1]

    @jax.jit
    def fwd(x):
        """x: (B, S, input_size), batch_first — same semantics as the PyTorch module."""
        B, S, I = x.shape
        assert I <= Hp, "input_size must fit inside the padded hidden width"
        Bp = _round_up(B, 8)        # sublane alignment (f32)

        # time-major, padded input slab: (S, Bp, Hp); padded rows/cols are zero and
        # stay zero through the recurrence.
        x_pad = jnp.zeros((S, Bp, Hp), jnp.float32)
        x_pad = x_pad.at[:, :B, :I].set(
            jnp.transpose(x, (1, 0, 2)).astype(jnp.float32))

        vmem = pl.BlockSpec(memory_space=pltpu.MemorySpace.VMEM)
        out_pad = pl.pallas_call(
            _gru_model_kernel,
            out_shape=jax.ShapeDtypeStruct((S, Bp, Op), jnp.float32),
            in_specs=[vmem] * 7,
            out_specs=vmem,
            scratch_shapes=[
                pltpu.VMEM((S, Bp, Hp), jnp.float32),   # inter-layer activations
            ],
            compiler_params=pltpu.CompilerParams(
                vmem_limit_bytes=32 * 1024 * 1024),     # explicit budget (v7x-safe)
        )(x_pad, wih_all, whh_all, bih_all, bhhn_all, lw, lb)

        # strip padding, back to batch_first (B, S, O)
        return jnp.transpose(out_pad[:, :B, :output_dim], (1, 0, 2))

    return fwd


# -------------------------------- init params ---------------------------------
def init_params(key, input_size, hidden_size, num_layers, output_dim):
    """PyTorch-shaped parameters (nn.GRU gate order [r, z, n] + nn.Linear)."""
    params = {"gru_layers": []}
    k = 1.0 / jnp.sqrt(hidden_size)
    for layer in range(num_layers):
        in_feat = input_size if layer == 0 else hidden_size
        key, k1, k2, k3, k4 = jax.random.split(key, 5)
        params["gru_layers"].append({
            "w_ih": jax.random.uniform(k1, (3 * hidden_size, in_feat),
                                       minval=-k, maxval=k, dtype=jnp.float32),
            "w_hh": jax.random.uniform(k2, (3 * hidden_size, hidden_size),
                                       minval=-k, maxval=k, dtype=jnp.float32),
            "b_ih": jax.random.uniform(k3, (3 * hidden_size,),
                                       minval=-k, maxval=k, dtype=jnp.float32),
            "b_hh": jax.random.uniform(k4, (3 * hidden_size,),
                                       minval=-k, maxval=k, dtype=jnp.float32),
        })
    key, k5, k6 = jax.random.split(key, 3)
    params["lin_w"] = jax.random.uniform(k5, (output_dim, hidden_size),
                                         minval=-k, maxval=k, dtype=jnp.float32)
    params["lin_b"] = jax.random.uniform(k6, (output_dim,),
                                         minval=-k, maxval=k, dtype=jnp.float32)
    return params


# ----------------------------- pure-JAX reference ------------------------------
def gru_model_reference(x, params):
    x_tm = jnp.transpose(x, (1, 0, 2))
    for lp in params["gru_layers"]:
        H = lp["w_hh"].shape[1]
        wih_t, whh_t = lp["w_ih"].T, lp["w_hh"].T
        b_ih, b_hh = lp["b_ih"], lp["b_hh"]

        def step(h, x_t, wih_t=wih_t, whh_t=whh_t, b_ih=b_ih, b_hh=b_hh, H=H):
            gx = x_t @ wih_t + b_ih
            gh = h @ whh_t + b_hh
            r = jax.nn.sigmoid(gx[:, :H] + gh[:, :H])
            z = jax.nn.sigmoid(gx[:, H:2 * H] + gh[:, H:2 * H])
            n = jnp.tanh(gx[:, 2 * H:] + r * gh[:, 2 * H:])
            h_new = (1.0 - z) * n + z * h
            return h_new, h_new

        h0 = jnp.zeros((x_tm.shape[1], H), jnp.float32)
        _, x_tm = jax.lax.scan(step, h0, x_tm)
    h = jnp.transpose(x_tm, (1, 0, 2))
    b, s, hd = h.shape
    y = h.reshape(b * s, hd) @ params["lin_w"].T + params["lin_b"]
    return y.reshape(b, s, -1)


# ------------------------------------ main -------------------------------------
if __name__ == "__main__":
    batch, seq, input_size = 2, 8, 8
    hidden_size, num_layers, output_dim = 224, 2, 1   # hidden_size per the module spec

    key = jax.random.PRNGKey(0)
    key, kx, kp = jax.random.split(key, 3)
    x = jax.random.normal(kx, (batch, seq, input_size), dtype=jnp.float32)
    params = init_params(kp, input_size, hidden_size, num_layers, output_dim)

    prepared = prepare_params(params)           # one-time padding/stacking (outside jit)
    fwd = make_gru_forward(prepared, output_dim)

    out = jax.block_until_ready(fwd(x))

    ref = jax.block_until_ready(gru_model_reference(x, params))
    assert out.shape == (batch, seq, output_dim), out.shape
    max_err = float(jnp.max(jnp.abs(out - ref)))
    # bf16 MXU operands + approx reciprocal -> loosened tolerance (f32 accumulation).
    assert jnp.allclose(out, ref, atol=2e-2, rtol=2e-2), max_err

    print("KERNEL_OK")
</pallas_src>

<mosaic_0001>
module attributes {stable_mosaic.version = 11 : i64} {
  func.func @_gru_model_kernel(%arg0: memref<8x8x256xf32, #tpu.memory_space<vmem>>, %arg1: memref<2x256x768xbf16, #tpu.memory_space<vmem>>, %arg2: memref<2x256x768xbf16, #tpu.memory_space<vmem>>, %arg3: memref<2x1x768xf32, #tpu.memory_space<vmem>>, %arg4: memref<2x1x256xf32, #tpu.memory_space<vmem>>, %arg5: memref<256x128xbf16, #tpu.memory_space<vmem>>, %arg6: memref<1x128xf32, #tpu.memory_space<vmem>>, %arg7: memref<8x8x128xf32, #tpu.memory_space<vmem>>, %arg8: memref<8x8x256xf32, #tpu.memory_space<vmem>>) attributes {dimension_semantics = [], scalar_prefetch = 0 : i64, scratch_operands = 1 : i64, tpu.core_type = #tpu.core_type<tc>} {
    %c0 = arith.constant 0 : index
    %c0_0 = arith.constant 0 : index
    %c0_1 = arith.constant 0 : index
    %0 = vector.load %arg0[%c0, %c0_0, %c0_1] : memref<8x8x256xf32, #tpu.memory_space<vmem>>, vector<8x8x256xf32>
    %1 = vector.shape_cast %0 : vector<8x8x256xf32> to vector<64x256xf32>
    %2 = arith.truncf %1 : vector<64x256xf32> to vector<64x256xbf16>
    %c0_2 = arith.constant 0 : index
    %c0_3 = arith.constant 0 : index
    %c0_4 = arith.constant 0 : index
    %3 = vector.load %arg1[%c0_2, %c0_3, %c0_4] : memref<2x256x768xbf16, #tpu.memory_space<vmem>>, vector<1x256x768xbf16>
    %4 = vector.shape_cast %3 : vector<1x256x768xbf16> to vector<256x768xbf16>
    %cst = arith.constant dense<0.000000e+00> : vector<64x768xf32>
    %5 = tpu.matmul %2, %4, %cst {dimension_numbers = #tpu.dot_dimension_numbers<[1], [0], [0], [1], [0, 0, 1, 1], [], []>} : vector<64x256xbf16>, vector<256x768xbf16>, vector<64x768xf32> -> vector<64x768xf32>
    %c0_5 = arith.constant 0 : index
    %c0_6 = arith.constant 0 : index
    %c0_7 = arith.constant 0 : index
    %6 = vector.load %arg3[%c0_5, %c0_6, %c0_7] : memref<2x1x768xf32, #tpu.memory_space<vmem>>, vector<1x1x768xf32>
    %7 = vector.shape_cast %6 : vector<1x1x768xf32> to vector<1x768xf32>
    %8 = vector.broadcast %7 : vector<1x768xf32> to vector<64x768xf32>
    %9 = arith.addf %5, %8 : vector<64x768xf32>
    %c0_8 = arith.constant 0 : index
    %c0_9 = arith.constant 0 : index
    %c0_10 = arith.constant 0 : index
    %10 = vector.load %arg2[%c0_8, %c0_9, %c0_10] : memref<2x256x768xbf16, #tpu.memory_space<vmem>>, vector<1x256x768xbf16>
    %11 = vector.shape_cast %10 : vector<1x256x768xbf16> to vector<256x768xbf16>
    %c0_11 = arith.constant 0 : index
    %c0_12 = arith.constant 0 : index
    %c0_13 = arith.constant 0 : index
    %12 = vector.load %arg4[%c0_11, %c0_12, %c0_13] : memref<2x1x256xf32, #tpu.memory_space<vmem>>, vector<1x1x256xf32>
    %13 = vector.shape_cast %12 : vector<1x1x256xf32> to vector<1x256xf32>
    %14 = vector.shape_cast %13 : vector<1x256xf32> to vector<1x256xf32>
    %15 = vector.broadcast %14 : vector<1x256xf32> to vector<8x256xf32>
    %cst_14 = arith.constant 0.000000e+00 : f32
    %16 = vector.broadcast %cst_14 : f32 to vector<8x256xf32>
    %17 = vector.extract_strided_slice %9 {offsets = [0, 0], sizes = [8, 768], strides = [1, 1]} : vector<64x768xf32> to vector<8x768xf32>
    %18 = arith.truncf %16 : vector<8x256xf32> to vector<8x256xbf16>
    %cst_15 = arith.constant dense<0.000000e+00> : vector<8x768xf32>
    %19 = tpu.matmul %18, %11, %cst_15 {dimension_numbers = #tpu.dot_dimension_numbers<[1], [0], [0], [1], [0, 0, 1, 1], [], []>} : vector<8x256xbf16>, vector<256x768xbf16>, vector<8x768xf32> -> vector<8x768xf32>
    %20 = vector.extract_strided_slice %17 {offsets = [0, 0], sizes = [8, 256], strides = [1, 1]} : vector<8x768xf32> to vector<8x256xf32>
    %21 = vector.extract_strided_slice %19 {offsets = [0, 0], sizes = [8, 256], strides = [1, 1]} : vector<8x768xf32> to vector<8x256xf32>
    %22 = arith.addf %20, %21 : vector<8x256xf32>
    %cst_16 = arith.constant 0.000000e+00 : f32
    %23 = vector.broadcast %cst_16 : f32 to vector<8x256xf32>
    %24 = arith.subf %23, %22 : vector<8x256xf32>
    %25 = math.exp %24 : vector<8x256xf32>
    %cst_17 = arith.constant 1.000000e+00 : f32
    %26 = vector.broadcast %cst_17 : f32 to vector<8x256xf32>
    %27 = arith.addf %26, %25 : vector<8x256xf32>
    %28 = tpu.reciprocal %27 {approx = true} : vector<8x256xf32> -> vector<8x256xf32>
    %29 = vector.extract_strided_slice %17 {offsets = [0, 256], sizes = [8, 256], strides = [1, 1]} : vector<8x768xf32> to vector<8x256xf32>
    %30 = vector.extract_strided_slice %19 {offsets = [0, 256], sizes = [8, 256], strides = [1, 1]} : vector<8x768xf32> to vector<8x256xf32>
    %31 = arith.addf %29, %30 : vector<8x256xf32>
    %cst_18 = arith.constant 0.000000e+00 : f32
    %32 = vector.broadcast %cst_18 : f32 to vector<8x256xf32>
    %33 = arith.subf %32, %31 : vector<8x256xf32>
    %34 = math.exp %33 : vector<8x256xf32>
    %cst_19 = arith.constant 1.000000e+00 : f32
    %35 = vector.broadcast %cst_19 : f32 to vector<8x256xf32>
    %36 = arith.addf %35, %34 : vector<8x256xf32>
    %37 = tpu.reciprocal %36 {approx = true} : vector<8x256xf32> -> vector<8x256xf32>
    %38 = vector.extract_strided_slice %17 {offsets = [0, 512], sizes = [8, 256], strides = [1, 1]} : vector<8x768xf32> to vector<8x256xf32>
    %39 = vector.extract_strided_slice %19 {offsets = [0, 512], sizes = [8, 256], strides = [1, 1]} : vector<8x768xf32> to vector<8x256xf32>
    %40 = arith.addf %39, %15 : vector<8x256xf32>
    %41 = arith.mulf %28, %40 : vector<8x256xf32>
    %42 = arith.addf %38, %41 : vector<8x256xf32>
    %43 = math.tanh %42 : vector<8x256xf32>
    %44 = arith.subf %16, %43 : vector<8x256xf32>
    %45 = arith.mulf %37, %44 : vector<8x256xf32>
    %46 = arith.addf %43, %45 : vector<8x256xf32>
    %c0_20 = arith.constant 0 : index
    %c0_21 = arith.constant 0 : index
    %c0_22 = arith.constant 0 : index
    %47 = vector.load %arg8[%c0_20, %c0_21, %c0_22] : memref<8x8x256xf32, #tpu.memory_space<vmem>>, vector<1x8x256xf32>
    %48 = vector.shape_cast %47 : vector<1x8x256xf32> to vector<8x256xf32>
    %49 = vector.shape_cast %46 : vector<8x256xf32> to vector<1x8x256xf32>
    tpu.vector_store %arg8[%c0_20, %c0_21, %c0_22], %49 {strides = array<i32>} : memref<8x8x256xf32, #tpu.memory_space<vmem>>, vector<1x8x256xf32>,
    %50 = vector.extract_strided_slice %9 {offsets = [8, 0], sizes = [8, 768], strides = [1, 1]} : vector<64x768xf32> to vector<8x768xf32>
    %51 = arith.truncf %46 : vector<8x256xf32> to vector<8x256xbf16>
    %cst_23 = arith.constant dense<0.000000e+00> : vector<8x768xf32>
    %52 = tpu.matmul %51, %11, %cst_23 {dimension_numbers = #tpu.dot_dimension_numbers<[1], [0], [0], [1], [0, 0, 1, 1], [], []>} : vector<8x256xbf16>, vector<256x768xbf16>, vector<8x768xf32> -> vector<8x768xf32>
    %53 = vector.extract_strided_slice %50 {offsets = [0, 0], sizes = [8, 256], strides = [1, 1]} : vector<8x768xf32> to vector<8x256xf32>
    %54 = vector.extract_strided_slice %52 {offsets = [0, 0], sizes = [8, 256], strides = [1, 1]} : vector<8x768xf32> to vector<8x256xf32>
    %55 = arith.addf %53, %54 : vector<8x256xf32>
    %cst_24 = arith.constant 0.000000e+00 : f32
    %56 = vector.broadcast %cst_24 : f32 to vector<8x256xf32>
    %57 = arith.subf %56, %55 : vector<8x256xf32>
    %58 = math.exp %57 : vector<8x256xf32>
    %cst_25 = arith.constant 1.000000e+00 : f32
    %59 = vector.broadcast %cst_25 : f32 to vector<8x256xf32>
    %60 = arith.addf %59, %58 : vector<8x256xf32>
    %61 = tpu.reciprocal %60 {approx = true} : vector<8x256xf32> -> vector<8x256xf32>
    %62 = vector.extract_strided_slice %50 {offsets = [0, 256], sizes = [8, 256], strides = [1, 1]} : vector<8x768xf32> to vector<8x256xf32>
    %63 = vector.extract_strided_slice %52 {offsets = [0, 256], sizes = [8, 256], strides = [1, 1]} : vector<8x768xf32> to vector<8x256xf32>
    %64 = arith.addf %62, %63 : vector<8x256xf32>
    %cst_26 = arith.constant 0.000000e+00 : f32
    %65 = vector.broadcast %cst_26 : f32 to vector<8x256xf32>
    %66 = arith.subf %65, %64 : vector<8x256xf32>
    %67 = math.exp %66 : vector<8x256xf32>
    %cst_27 = arith.constant 1.000000e+00 : f32
    %68 = vector.broadcast %cst_27 : f32 to vector<8x256xf32>
    %69 = arith.addf %68, %67 : vector<8x256xf32>
    %70 = tpu.reciprocal %69 {approx = true} : vector<8x256xf32> -> vector<8x256xf32>
    %71 = vector.extract_strided_slice %50 {offsets = [0, 512], sizes = [8, 256], strides = [1, 1]} : vector<8x768xf32> to vector<8x256xf32>
    %72 = vector.extract_strided_slice %52 {offsets = [0, 512], sizes = [8, 256], strides = [1, 1]} : vector<8x768xf32> to vector<8x256xf32>
    %73 = arith.addf %72, %15 : vector<8x256xf32>
    %74 = arith.mulf %61, %73 : vector<8x256xf32>
    %75 = arith.addf %71, %74 : vector<8x256xf32>
    %76 = math.tanh %75 : vector<8x256xf32>
    %77 = arith.subf %46, %76 : vector<8x256xf32>
    %78 = arith.mulf %70, %77 : vector<8x256xf32>
    %79 = arith.addf %76, %78 : vector<8x256xf32>
    %c1 = arith.constant 1 : index
    %c0_28 = arith.constant 0 : index
    %c0_29 = arith.constant 0 : index
    %80 = vector.load %arg8[%c1, %c0_28, %c0_29] : memref<8x8x256xf32, #tpu.memory_space<vmem>>, vector<1x8x256xf32>
    %81 = vector.shape_cast %80 : vector<1x8x256xf32> to vector<8x256xf32>
    %82 = vector.shape_cast %79 : vector<8x256xf32> to vector<1x8x256xf32>
    tpu.vector_store %arg8[%c1, %c0_28, %c0_29], %82 {strides = array<i32>} : memref<8x8x256xf32, #tpu.memory_space<vmem>>, vector<1x8x256xf32>,
    %83 = vector.extract_strided_slice %9 {offsets = [16, 0], sizes = [8, 768], strides = [1, 1]} : vector<64x768xf32> to vector<8x768xf32>
    %84 = arith.truncf %79 : vector<8x256xf32> to vector<8x256xbf16>
    %cst_30 = arith.constant dense<0.000000e+00> : vector<8x768xf32>
    %85 = tpu.matmul %84, %11, %cst_30 {dimension_numbers = #tpu.dot_dimension_numbers<[1], [0], [0], [1], [0, 0, 1, 1], [], []>} : vector<8x256xbf16>, vector<256x768xbf16>, vector<8x768xf32> -> vector<8x768xf32>
    %86 = vector.extract_strided_slice %83 {offsets = [0, 0], sizes = [8, 256], strides = [1, 1]} : vector<8x768xf32> to vector<8x256xf32>
    %87 = vector.extract_strided_slice %85 {offsets = [0, 0], sizes = [8, 256], strides = [1, 1]} : vector<8x768xf32> to vector<8x256xf32>
    %88 = arith.addf %86, %87 : vector<8x256xf32>
    %cst_31 = arith.constant 0.000000e+00 : f32
    %89 = vector.broadcast %cst_31 : f32 to vector<8x256xf32>
    %90 = arith.subf %89, %88 : vector<8x256xf32>
    %91 = math.exp %90 : vector<8x256xf32>
    %cst_32 = arith.constant 1.000000e+00 : f32
    %92 = vector.broadcast %cst_32 : f32 to vector<8x256xf32>
    %93 = arith.addf %92, %91 : vector<8x256xf32>
    %94 = tpu.reciprocal %93 {approx = true} : vector<8x256xf32> -> vector<8x256xf32>
    %95 = vector.extract_strided_slice %83 {offsets = [0, 256], sizes = [8, 256], strides = [1, 1]} : vector<8x768xf32> to vector<8x256xf32>
    %96 = vector.extract_strided_slice %85 {offsets = [0, 256], sizes = [8, 256], strides = [1, 1]} : vector<8x768xf32> to vector<8x256xf32>
    %97 = arith.addf %95, %96 : vector<8x256xf32>
    %cst_33 = arith.constant 0.000000e+00 : f32
    %98 = vector.broadcast %cst_33 : f32 to vector<8x256xf32>
    %99 = arith.subf %98, %97 : vector<8x256xf32>
    %100 = math.exp %99 : vector<8x256xf32>
    %cst_34 = arith.constant 1.000000e+00 : f32
    %101 = vector.broadcast %cst_34 : f32 to vector<8x256xf32>
    %102 = arith.addf %101, %100 : vector<8x256xf32>
    %103 = tpu.reciprocal %102 {approx = true} : vector<8x256xf32> -> vector<8x256xf32>
    %104 = vector.extract_strided_slice %83 {offsets = [0, 512], sizes = [8, 256], strides = [1, 1]} : vector<8x768xf32> to vector<8x256xf32>
    %105 = vector.extract_strided_slice %85 {offsets = [0, 512], sizes = [8, 256], strides = [1, 1]} : vector<8x768xf32> to vector<8x256xf32>
    %106 = arith.addf %105, %15 : vector<8x256xf32>
    %107 = arith.mulf %94, %106 : vector<8x256xf32>
    %108 = arith.addf %104, %107 : vector<8x256xf32>
    %109 = math.tanh %108 : vector<8x256xf32>
    %110 = arith.subf %79, %109 : vector<8x256xf32>
    %111 = arith.mulf %103, %110 : vector<8x256xf32>
    %112 = arith.addf %109, %111 : vector<8x256xf32>
    %c2 = arith.constant 2 : index
    %c0_35 = arith.constant 0 : index
    %c0_36 = arith.constant 0 : index
    %113 = vector.load %arg8[%c2, %c0_35, %c0_36] : memref<8x8x256xf32, #tpu.memory_space<vmem>>, vector<1x8x256xf32>
    %114 = vector.shape_cast %113 : vector<1x8x256xf32> to vector<8x256xf32>
    %115 = vector.shape_cast %112 : vector<8x256xf32> to vector<1x8x256xf32>
    tpu.vector_store %arg8[%c2, %c0_35, %c0_36], %115 {strides = array<i32>} : memref<8x8x256xf32, #tpu.memory_space<vmem>>, vector<1x8x256xf32>,
    %116 = vector.extract_strided_slice %9 {offsets = [24, 0], sizes = [8, 768], strides = [1, 1]} : vector<64x768xf32> to vector<8x768xf32>
    %117 = arith.truncf %112 : vector<8x256xf32> to vector<8x256xbf16>
    %cst_37 = arith.constant dense<0.000000e+00> : vector<8x768xf32>
    %118 = tpu.matmul %117, %11, %cst_37 {dimension_numbers = #tpu.dot_dimension_numbers<[1], [0], [0], [1], [0, 0, 1, 1], [], []>} : vector<8x256xbf16>, vector<256x768xbf16>, vector<8x768xf32> -> vector<8x768xf32>
    %119 = vector.extract_strided_slice %116 {offsets = [0, 0], sizes = [8, 256], strides = [1, 1]} : vector<8x768xf32> to vector<8x256xf32>
    %120 = vector.extract_strided_slice %118 {offsets = [0, 0], sizes = [8, 256], strides = [1, 1]} : vector<8x768xf32> to vector<8x256xf32>
    %121 = arith.addf %119, %120 : vector<8x256xf32>
    %cst_38 = arith.constant 0.000000e+00 : f32
    %122 = vector.broadcast %cst_38 : f32 to vector<8x256xf32>
    %123 = arith.subf %122, %121 : vector<8x256xf32>
    %124 = math.exp %123 : vector<8x256xf32>
    %cst_39 = arith.constant 1.000000e+00 : f32
    %125 = vector.broadcast %cst_39 : f32 to vector<8x256xf32>
    %126 = arith.addf %125, %124 : vector<8x256xf32>
    %127 = tpu.reciprocal %126 {approx = true} : vector<8x256xf32> -> vector<8x256xf32>
    %128 = vector.extract_strided_slice %116 {offsets = [0, 256], sizes = [8, 256], strides = [1, 1]} : vector<8x768xf32> to vector<8x256xf32>
    %129 = vector.extract_strided_slice %118 {offsets = [0, 256], sizes = [8, 256], strides = [1, 1]} : vector<8x768xf32> to vector<8x256xf32>
    %130 = arith.addf %128, %129 : vector<8x256xf32>
    %cst_40 = arith.constant 0.000000e+00 : f32
    %131 = vector.broadcast %cst_40 : f32 to vector<8x256xf32>
    %132 = arith.subf %131, %130 : vector<8x256xf32>
    %133 = math.exp %132 : vector<8x256xf32>
    %cst_41 = arith.constant 1.000000e+00 : f32
    %134 = vector.broadcast %cst_41 : f32 to vector<8x256xf32>
    %135 = arith.addf %134, %133 : vector<8x256xf32>
    %136 = tpu.reciprocal %135 {approx = true} : vector<8x256xf32> -> vector<8x256xf32>
    %137 = vector.extract_strided_slice %116 {offsets = [0, 512], sizes = [8, 256], strides = [1, 1]} : vector<8x768xf32> to vector<8x256xf32>
    %138 = vector.extract_strided_slice %118 {offsets = [0, 512], sizes = [8, 256], strides = [1, 1]} : vector<8x768xf32> to vector<8x256xf32>
    %139 = arith.addf %138, %15 : vector<8x256xf32>
    %140 = arith.mulf %127, %139 : vector<8x256xf32>
    %141 = arith.addf %137, %140 : vector<8x256xf32>
    %142 = math.tanh %141 : vector<8x256xf32>
    %143 = arith.subf %112, %142 : vector<8x256xf32>
    %144 = arith.mulf %136, %143 : vector<8x256xf32>
    %145 = arith.addf %142, %144 : vector<8x256xf32>
    %c3 = arith.constant 3 : index
    %c0_42 = arith.constant 0 : index
    %c0_43 = arith.constant 0 : index
    %146 = vector.load %arg8[%c3, %c0_42, %c0_43] : memref<8x8x256xf32, #tpu.memory_space<vmem>>, vector<1x8x256xf32>
    %147 = vector.shape_cast %146 : vector<1x8x256xf32> to vector<8x256xf32>
    %148 = vector.shape_cast %145 : vector<8x256xf32> to vector<1x8x256xf32>
    tpu.vector_store %arg8[%c3, %c0_42, %c0_43], %148 {strides = array<i32>} : memref<8x8x256xf32, #tpu.memory_space<vmem>>, vector<1x8x256xf32>,
    %149 = vector.extract_strided_slice %9 {offsets = [32, 0], sizes = [8, 768], strides = [1, 1]} : vector<64x768xf32> to vector<8x768xf32>
    %150 = arith.truncf %145 : vector<8x256xf32> to vector<8x256xbf16>
    %cst_44 = arith.constant dense<0.000000e+00> : vector<8x768xf32>
    %151 = tpu.matmul %150, %11, %cst_44 {dimension_numbers = #tpu.dot_dimension_numbers<[1], [0], [0], [1], [0, 0, 1, 1], [], []>} : vector<8x256xbf16>, vector<256x768xbf16>, vector<8x768xf32> -> vector<8x768xf32>
    %152 = vector.extract_strided_slice %149 {offsets = [0, 0], sizes = [8, 256], strides = [1, 1]} : vector<8x768xf32> to vector<8x256xf32>
    %153 = vector.extract_strided_slice %151 {offsets = [0, 0], sizes = [8, 256], strides = [1, 1]} : vector<8x768xf32> to vector<8x256xf32>
    %154 = arith.addf %152, %153 : vector<8x256xf32>
    %cst_45 = arith.constant 0.000000e+00 : f32
    %155 = vector.broadcast %cst_45 : f32 to vector<8x256xf32>
    %156 = arith.subf %155, %154 : vector<8x256xf32>
    %157 = math.exp %156 : vector<8x256xf32>
    %cst_46 = arith.constant 1.000000e+00 : f32
    %158 = vector.broadcast %cst_46 : f32 to vector<8x256xf32>
    %159 = arith.addf %158, %157 : vector<8x256xf32>
    %160 = tpu.reciprocal %159 {approx = true} : vector<8x256xf32> -> vector<8x256xf32>
    %161 = vector.extract_strided_slice %149 {offsets = [0, 256], sizes = [8, 256], strides = [1, 1]} : vector<8x768xf32> to vector<8x256xf32>
    %162 = vector.extract_strided_slice %151 {offsets = [0, 256], sizes = [8, 256], strides = [1, 1]} : vector<8x768xf32> to vector<8x256xf32>
    %163 = arith.addf %161, %162 : vector<8x256xf32>
    %cst_47 = arith.constant 0.000000e+00 : f32
    %164 = vector.broadcast %cst_47 : f32 to vector<8x256xf32>
    %165 = arith.subf %164, %163 : vector<8x256xf32>
    %166 = math.exp %165 : vector<8x256xf32>
    %cst_48 = arith.constant 1.000000e+00 : f32
    %167 = vector.broadcast %cst_48 : f32 to vector<8x256xf32>
    %168 = arith.addf %167, %166 : vector<8x256xf32>
    %169 = tpu.reciprocal %168 {approx = true} : vector<8x256xf32> -> vector<8x256xf32>
    %170 = vector.extract_strided_slice %149 {offsets = [0, 512], sizes = [8, 256], strides = [1, 1]} : vector<8x768xf32> to vector<8x256xf32>
    %171 = vector.extract_strided_slice %151 {offsets = [0, 512], sizes = [8, 256], strides = [1, 1]} : vector<8x768xf32> to vector<8x256xf32>
    %172 = arith.addf %171, %15 : vector<8x256xf32>
    %173 = arith.mulf %160, %172 : vector<8x256xf32>
    %174 = arith.addf %170, %173 : vector<8x256xf32>
    %175 = math.tanh %174 : vector<8x256xf32>
    %176 = arith.subf %145, %175 : vector<8x256xf32>
    %177 = arith.mulf %169, %176 : vector<8x256xf32>
    %178 = arith.addf %175, %177 : vector<8x256xf32>
    %c4 = arith.constant 4 : index
    %c0_49 = arith.constant 0 : index
    %c0_50 = arith.constant 0 : index
    %179 = vector.load %arg8[%c4, %c0_49, %c0_50] : memref<8x8x256xf32, #tpu.memory_space<vmem>>, vector<1x8x256xf32>
    %180 = vector.shape_cast %179 : vector<1x8x256xf32> to vector<8x256xf32>
    %181 = vector.shape_cast %178 : vector<8x256xf32> to vector<1x8x256xf32>
    tpu.vector_store %arg8[%c4, %c0_49, %c0_50], %181 {strides = array<i32>} : memref<8x8x256xf32, #tpu.memory_space<vmem>>, vector<1x8x256xf32>,
    %182 = vector.extract_strided_slice %9 {offsets = [40, 0], sizes = [8, 768], strides = [1, 1]} : vector<64x768xf32> to vector<8x768xf32>
    %183 = arith.truncf %178 : vector<8x256xf32> to vector<8x256xbf16>
    %cst_51 = arith.constant dense<0.000000e+00> : vector<8x768xf32>
    %184 = tpu.matmul %183, %11, %cst_51 {dimension_numbers = #tpu.dot_dimension_numbers<[1], [0], [0], [1], [0, 0, 1, 1], [], []>} : vector<8x256xbf16>, vector<256x768xbf16>, vector<8x768xf32> -> vector<8x768xf32>
    %185 = vector.extract_strided_slice %182 {offsets = [0, 0], sizes = [8, 256], strides = [1, 1]} : vector<8x768xf32> to vector<8x256xf32>
    %186 = vector.extract_strided_slice %184 {offsets = [0, 0], sizes = [8, 256], strides = [1, 1]} : vector<8x768xf32> to vector<8x256xf32>
    %187 = arith.addf %185, %186 : vector<8x256xf32>
    %cst_52 = arith.constant 0.000000e+00 : f32
    %188 = vector.broadcast %cst_52 : f32 to vector<8x256xf32>
    %189 = arith.subf %188, %187 : vector<8x256xf32>
    %190 = math.exp %189 : vector<8x256xf32>
    %cst_53 = arith.constant 1.000000e+00 : f32
    %191 = vector.broadcast %cst_53 : f32 to vector<8x256xf32>
    %192 = arith.addf %191, %190 : vector<8x256xf32>
    %193 = tpu.reciprocal %192 {approx = true} : vector<8x256xf32> -> vector<8x256xf32>
    %194 = vector.extract_strided_slice %182 {offsets = [0, 256], sizes = [8, 256], strides = [1, 1]} : vector<8x768xf32> to vector<8x256xf32>
    %195 = vector.extract_strided_slice %184 {offsets = [0, 256], sizes = [8, 256], strides = [1, 1]} : vector<8x768xf32> to vector<8x256xf32>
    %196 = arith.addf %194, %195 : vector<8x256xf32>
    %cst_54 = arith.constant 0.000000e+00 : f32
    %197 = vector.broadcast %cst_54 : f32 to vector<8x256xf32>
    %198 = arith.subf %197, %196 : vector<8x256xf32>
    %199 = math.exp %198 : vector<8x256xf32>
    %cst_55 = arith.constant 1.000000e+00 : f32
    %200 = vector.broadcast %cst_55 : f32 to vector<8x256xf32>
    %201 = arith.addf %200, %199 : vector<8x256xf32>
    %202 = tpu.reciprocal %201 {approx = true} : vector<8x256xf32> -> vector<8x256xf32>
    %203 = vector.extract_strided_slice %182 {offsets = [0, 512], sizes = [8, 256], strides = [1, 1]} : vector<8x768xf32> to vector<8x256xf32>
    %204 = vector.extract_strided_slice %184 {offsets = [0, 512], sizes = [8, 256], strides = [1, 1]} : vector<8x768xf32> to vector<8x256xf32>
    %205 = arith.addf %204, %15 : vector<8x256xf32>
    %206 = arith.mulf %193, %205 : vector<8x256xf32>
    %207 = arith.addf %203, %206 : vector<8x256xf32>
    %208 = math.tanh %207 : vector<8x256xf32>
    %209 = arith.subf %178, %208 : vector<8x256xf32>
    %210 = arith.mulf %202, %209 : vector<8x256xf32>
    %211 = arith.addf %208, %210 : vector<8x256xf32>
    %c5 = arith.constant 5 : index
    %c0_56 = arith.constant 0 : index
    %c0_57 = arith.constant 0 : index
    %212 = vector.load %arg8[%c5, %c0_56, %c0_57] : memref<8x8x256xf32, #tpu.memory_space<vmem>>, vector<1x8x256xf32>
    %213 = vector.shape_cast %212 : vector<1x8x256xf32> to vector<8x256xf32>
    %214 = vector.shape_cast %211 : vector<8x256xf32> to vector<1x8x256xf32>
    tpu.vector_store %arg8[%c5, %c0_56, %c0_57], %214 {strides = array<i32>} : memref<8x8x256xf32, #tpu.memory_space<vmem>>, vector<1x8x256xf32>,
    %215 = vector.extract_strided_slice %9 {offsets = [48, 0], sizes = [8, 768], strides = [1, 1]} : vector<64x768xf32> to vector<8x768xf32>
    %216 = arith.truncf %211 : vector<8x256xf32> to vector<8x256xbf16>
    %cst_58 = arith.constant dense<0.000000e+00> : vector<8x768xf32>
    %217 = tpu.matmul %216, %11, %cst_58 {dimension_numbers = #tpu.dot_dimension_numbers<[1], [0], [0], [1], [0, 0, 1, 1], [], []>} : vector<8x256xbf16>, vector<256x768xbf16>, vector<8x768xf32> -> vector<8x768xf32>
    %218 = vector.extract_strided_slice %215 {offsets = [0, 0], sizes = [8, 256], strides = [1, 1]} : vector<8x768xf32> to vector<8x256xf32>
    %219 = vector.extract_strided_slice %217 {offsets = [0, 0], sizes = [8, 256], strides = [1, 1]} : vector<8x768xf32> to vector<8x256xf32>
    %220 = arith.addf %218, %219 : vector<8x256xf32>
    %cst_59 = arith.constant 0.000000e+00 : f32
    %221 = vector.broadcast %cst_59 : f32 to vector<8x256xf32>
    %222 = arith.subf %221, %220 : vector<8x256xf32>
    %223 = math.exp %222 : vector<8x256xf32>
    %cst_60 = arith.constant 1.000000e+00 : f32
    %224 = vector.broadcast %cst_60 : f32 to vector<8x256xf32>
    %225 = arith.addf %224, %223 : vector<8x256xf32>
    %226 = tpu.reciprocal %225 {approx = true} : vector<8x256xf32> -> vector<8x256xf32>
    %227 = vector.extract_strided_slice %215 {offsets = [0, 256], sizes = [8, 256], strides = [1, 1]} : vector<8x768xf32> to vector<8x256xf32>
    %228 = vector.extract_strided_slice %217 {offsets = [0, 256], sizes = [8, 256], strides = [1, 1]} : vector<8x768xf32> to vector<8x256xf32>
    %229 = arith.addf %227, %228 : vector<8x256xf32>
    %cst_61 = arith.constant 0.000000e+00 : f32
    %230 = vector.broadcast %cst_61 : f32 to vector<8x256xf32>
    %231 = arith.subf %230, %229 : vector<8x256xf32>
    %232 = math.exp %231 : vector<8x256xf32>
    %cst_62 = arith.constant 1.000000e+00 : f32
    %233 = vector.broadcast %cst_62 : f32 to vector<8x256xf32>
    %234 = arith.addf %233, %232 : vector<8x256xf32>
    %235 = tpu.reciprocal %234 {approx = true} : vector<8x256xf32> -> vector<8x256xf32>
    %236 = vector.extract_strided_slice %215 {offsets = [0, 512], sizes = [8, 256], strides = [1, 1]} : vector<8x768xf32> to vector<8x256xf32>
    %237 = vector.extract_strided_slice %217 {offsets = [0, 512], sizes = [8, 256], strides = [1, 1]} : vector<8x768xf32> to vector<8x256xf32>
    %238 = arith.addf %237, %15 : vector<8x256xf32>
    %239 = arith.mulf %226, %238 : vector<8x256xf32>
    %240 = arith.addf %236, %239 : vector<8x256xf32>
    %241 = math.tanh %240 : vector<8x256xf32>
    %242 = arith.subf %211, %241 : vector<8x256xf32>
    %243 = arith.mulf %235, %242 : vector<8x256xf32>
    %244 = arith.addf %241, %243 : vector<8x256xf32>
    %c6 = arith.constant 6 : index
    %c0_63 = arith.constant 0 : index
    %c0_64 = arith.constant 0 : index
    %245 = vector.load %arg8[%c6, %c0_63, %c0_64] : memref<8x8x256xf32, #tpu.memory_space<vmem>>, vector<1x8x256xf32>
    %246 = vector.shape_cast %245 : vector<1x8x256xf32> to vector<8x256xf32>
    %247 = vector.shape_cast %244 : vector<8x256xf32> to vector<1x8x256xf32>
    tpu.vector_store %arg8[%c6, %c0_63, %c0_64], %247 {strides = array<i32>} : memref<8x8x256xf32, #tpu.memory_space<vmem>>, vector<1x8x256xf32>,
    %248 = vector.extract_strided_slice %9 {offsets = [56, 0], sizes = [8, 768], strides = [1, 1]} : vector<64x768xf32> to vector<8x768xf32>
    %249 = arith.truncf %244 : vector<8x256xf32> to vector<8x256xbf16>
    %cst_65 = arith.constant dense<0.000000e+00> : vector<8x768xf32>
    %250 = tpu.matmul %249, %11, %cst_65 {dimension_numbers = #tpu.dot_dimension_numbers<[1], [0], [0], [1], [0, 0, 1, 1], [], []>} : vector<8x256xbf16>, vector<256x768xbf16>, vector<8x768xf32> -> vector<8x768xf32>
    %251 = vector.extract_strided_slice %248 {offsets = [0, 0], sizes = [8, 256], strides = [1, 1]} : vector<8x768xf32> to vector<8x256xf32>
    %252 = vector.extract_strided_slice %250 {offsets = [0, 0], sizes = [8, 256], strides = [1, 1]} : vector<8x768xf32> to vector<8x256xf32>
    %253 = arith.addf %251, %252 : vector<8x256xf32>
    %cst_66 = arith.constant 0.000000e+00 : f32
    %254 = vector.broadcast %cst_66 : f32 to vector<8x256xf32>
    %255 = arith.subf %254, %253 : vector<8x256xf32>
    %256 = math.exp %255 : vector<8x256xf32>
    %cst_67 = arith.constant 1.000000e+00 : f32
    %257 = vector.broadcast %cst_67 : f32 to vector<8x256xf32>
    %258 = arith.addf %257, %256 : vector<8x256xf32>
    %259 = tpu.reciprocal %258 {approx = true} : vector<8x256xf32> -> vector<8x256xf32>
    %260 = vector.extract_strided_slice %248 {offsets = [0, 256], sizes = [8, 256], strides = [1, 1]} : vector<8x768xf32> to vector<8x256xf32>
    %261 = vector.extract_strided_slice %250 {offsets = [0, 256], sizes = [8, 256], strides = [1, 1]} : vector<8x768xf32> to vector<8x256xf32>
    %262 = arith.addf %260, %261 : vector<8x256xf32>
    %cst_68 = arith.constant 0.000000e+00 : f32
    %263 = vector.broadcast %cst_68 : f32 to vector<8x256xf32>
    %264 = arith.subf %263, %262 : vector<8x256xf32>
    %265 = math.exp %264 : vector<8x256xf32>
    %cst_69 = arith.constant 1.000000e+00 : f32
    %266 = vector.broadcast %cst_69 : f32 to vector<8x256xf32>
    %267 = arith.addf %266, %265 : vector<8x256xf32>
    %268 = tpu.reciprocal %267 {approx = true} : vector<8x256xf32> -> vector<8x256xf32>
    %269 = vector.extract_strided_slice %248 {offsets = [0, 512], sizes = [8, 256], strides = [1, 1]} : vector<8x768xf32> to vector<8x256xf32>
    %270 = vector.extract_strided_slice %250 {offsets = [0, 512], sizes = [8, 256], strides = [1, 1]} : vector<8x768xf32> to vector<8x256xf32>
    %271 = arith.addf %270, %15 : vector<8x256xf32>
    %272 = arith.mulf %259, %271 : vector<8x256xf32>
    %273 = arith.addf %269, %272 : vector<8x256xf32>
    %274 = math.tanh %273 : vector<8x256xf32>
    %275 = arith.subf %244, %274 : vector<8x256xf32>
    %276 = arith.mulf %268, %275 : vector<8x256xf32>
    %277 = arith.addf %274, %276 : vector<8x256xf32>
    %c7 = arith.constant 7 : index
    %c0_70 = arith.constant 0 : index
    %c0_71 = arith.constant 0 : index
    %278 = vector.load %arg8[%c7, %c0_70, %c0_71] : memref<8x8x256xf32, #tpu.memory_space<vmem>>, vector<1x8x256xf32>
    %279 = vector.shape_cast %278 : vector<1x8x256xf32> to vector<8x256xf32>
    %280 = vector.shape_cast %277 : vector<8x256xf32> to vector<1x8x256xf32>
    tpu.vector_store %arg8[%c7, %c0_70, %c0_71], %280 {strides = array<i32>} : memref<8x8x256xf32, #tpu.memory_space<vmem>>, vector<1x8x256xf32>,
    %c0_72 = arith.constant 0 : index
    %c0_73 = arith.constant 0 : index
    %c0_74 = arith.constant 0 : index
    %281 = vector.load %arg8[%c0_72, %c0_73, %c0_74] : memref<8x8x256xf32, #tpu.memory_space<vmem>>, vector<8x8x256xf32>
    %282 = vector.shape_cast %281 : vector<8x8x256xf32> to vector<64x256xf32>
    %283 = arith.truncf %282 : vector<64x256xf32> to vector<64x256xbf16>
    %c1_75 = arith.constant 1 : index
    %c0_76 = arith.constant 0 : index
    %c0_77 = arith.constant 0 : index
    %284 = vector.load %arg1[%c1_75, %c0_76, %c0_77] : memref<2x256x768xbf16, #tpu.memory_space<vmem>>, vector<1x256x768xbf16>
    %285 = vector.shape_cast %284 : vector<1x256x768xbf16> to vector<256x768xbf16>
    %cst_78 = arith.constant dense<0.000000e+00> : vector<64x768xf32>
    %286 = tpu.matmul %283, %285, %cst_78 {dimension_numbers = #tpu.dot_dimension_numbers<[1], [0], [0], [1], [0, 0, 1, 1], [], []>} : vector<64x256xbf16>, vector<256x768xbf16>, vector<64x768xf32> -> vector<64x768xf32>
    %c1_79 = arith.constant 1 : index
    %c0_80 = arith.constant 0 : index
    %c0_81 = arith.constant 0 : index
    %287 = vector.load %arg3[%c1_79, %c0_80, %c0_81] : memref<2x1x768xf32, #tpu.memory_space<vmem>>, vector<1x1x768xf32>
    %288 = vector.shape_cast %287 : vector<1x1x768xf32> to vector<1x768xf32>
    %289 = vector.broadcast %288 : vector<1x768xf32> to vector<64x768xf32>
    %290 = arith.addf %286, %289 : vector<64x768xf32>
    %c1_82 = arith.constant 1 : index
    %c0_83 = arith.constant 0 : index
    %c0_84 = arith.constant 0 : index
    %291 = vector.load %arg2[%c1_82, %c0_83, %c0_84] : memref<2x256x768xbf16, #tpu.memory_space<vmem>>, vector<1x256x768xbf16>
    %292 = vector.shape_cast %291 : vector<1x256x768xbf16> to vector<256x768xbf16>
    %c1_85 = arith.constant 1 : index
    %c0_86 = arith.constant 0 : index
    %c0_87 = arith.constant 0 : index
    %293 = vector.load %arg4[%c1_85, %c0_86, %c0_87] : memref<2x1x256xf32, #tpu.memory_space<vmem>>, vector<1x1x256xf32>
    %294 = vector.shape_cast %293 : vector<1x1x256xf32> to vector<1x256xf32>
    %295 = vector.shape_cast %294 : vector<1x256xf32> to vector<1x256xf32>
    %296 = vector.broadcast %295 : vector<1x256xf32> to vector<8x256xf32>
    %cst_88 = arith.constant 0.000000e+00 : f32
    %297 = vector.broadcast %cst_88 : f32 to vector<8x256xf32>
    %298 = vector.extract_strided_slice %290 {offsets = [0, 0], sizes = [8, 768], strides = [1, 1]} : vector<64x768xf32> to vector<8x768xf32>
    %299 = arith.truncf %297 : vector<8x256xf32> to vector<8x256xbf16>
    %cst_89 = arith.constant dense<0.000000e+00> : vector<8x768xf32>
    %300 = tpu.matmul %299, %292, %cst_89 {dimension_numbers = #tpu.dot_dimension_numbers<[1], [0], [0], [1], [0, 0, 1, 1], [], []>} : vector<8x256xbf16>, vector<256x768xbf16>, vector<8x768xf32> -> vector<8x768xf32>
    %301 = vector.extract_strided_slice %298 {offsets = [0, 0], sizes = [8, 256], strides = [1, 1]} : vector<8x768xf32> to vector<8x256xf32>
    %302 = vector.extract_strided_slice %300 {offsets = [0, 0], sizes = [8, 256], strides = [1, 1]} : vector<8x768xf32> to vector<8x256xf32>
    %303 = arith.addf %301, %302 : vector<8x256xf32>
    %cst_90 = arith.constant 0.000000e+00 : f32
    %304 = vector.broadcast %cst_90 : f32 to vector<8x256xf32>
    %305 = arith.subf %304, %303 : vector<8x256xf32>
    %306 = math.exp %305 : vector<8x256xf32>
    %cst_91 = arith.constant 1.000000e+00 : f32
    %307 = vector.broadcast %cst_91 : f32 to vector<8x256xf32>
    %308 = arith.addf %307, %306 : vector<8x256xf32>
    %309 = tpu.reciprocal %308 {approx = true} : vector<8x256xf32> -> vector<8x256xf32>
    %310 = vector.extract_strided_slice %298 {offsets = [0, 256], sizes = [8, 256], strides = [1, 1]} : vector<8x768xf32> to vector<8x256xf32>
    %311 = vector.extract_strided_slice %300 {offsets = [0, 256], sizes = [8, 256], strides = [1, 1]} : vector<8x768xf32> to vector<8x256xf32>
    %312 = arith.addf %310, %311 : vector<8x256xf32>
    %cst_92 = arith.constant 0.000000e+00 : f32
    %313 = vector.broadcast %cst_92 : f32 to vector<8x256xf32>
    %314 = arith.subf %313, %312 : vector<8x256xf32>
    %315 = math.exp %314 : vector<8x256xf32>
    %cst_93 = arith.constant 1.000000e+00 : f32
    %316 = vector.broadcast %cst_93 : f32 to vector<8x256xf32>
    %317 = arith.addf %316, %315 : vector<8x256xf32>
    %318 = tpu.reciprocal %317 {approx = true} : vector<8x256xf32> -> vector<8x256xf32>
    %319 = vector.extract_strided_slice %298 {offsets = [0, 512], sizes = [8, 256], strides = [1, 1]} : vector<8x768xf32> to vector<8x256xf32>
    %320 = vector.extract_strided_slice %300 {offsets = [0, 512], sizes = [8, 256], strides = [1, 1]} : vector<8x768xf32> to vector<8x256xf32>
    %321 = arith.addf %320, %296 : vector<8x256xf32>
    %322 = arith.mulf %309, %321 : vector<8x256xf32>
    %323 = arith.addf %319, %322 : vector<8x256xf32>
    %324 = math.tanh %323 : vector<8x256xf32>
    %325 = arith.subf %297, %324 : vector<8x256xf32>
    %326 = arith.mulf %318, %325 : vector<8x256xf32>
    %327 = arith.addf %324, %326 : vector<8x256xf32>
    %c0_94 = arith.constant 0 : index
    %c0_95 = arith.constant 0 : index
    %c0_96 = arith.constant 0 : index
    %328 = vector.load %arg8[%c0_94, %c0_95, %c0_96] : memref<8x8x256xf32, #tpu.memory_space<vmem>>, vector<1x8x256xf32>
    %329 = vector.shape_cast %328 : vector<1x8x256xf32> to vector<8x256xf32>
    %330 = vector.shape_cast %327 : vector<8x256xf32> to vector<1x8x256xf32>
    tpu.vector_store %arg8[%c0_94, %c0_95, %c0_96], %330 {strides = array<i32>} : memref<8x8x256xf32, #tpu.memory_space<vmem>>, vector<1x8x256xf32>,
    %331 = vector.extract_strided_slice %290 {offsets = [8, 0], sizes = [8, 768], strides = [1, 1]} : vector<64x768xf32> to vector<8x768xf32>
    %332 = arith.truncf %327 : vector<8x256xf32> to vector<8x256xbf16>
    %cst_97 = arith.constant dense<0.000000e+00> : vector<8x768xf32>
    %333 = tpu.matmul %332, %292, %cst_97 {dimension_numbers = #tpu.dot_dimension_numbers<[1], [0], [0], [1], [0, 0, 1, 1], [], []>} : vector<8x256xbf16>, vector<256x768xbf16>, vector<8x768xf32> -> vector<8x768xf32>
    %334 = vector.extract_strided_slice %331 {offsets = [0, 0], sizes = [8, 256], strides = [1, 1]} : vector<8x768xf32> to vector<8x256xf32>
    %335 = vector.extract_strided_slice %333 {offsets = [0, 0], sizes = [8, 256], strides = [1, 1]} : vector<8x768xf32> to vector<8x256xf32>
    %336 = arith.addf %334, %335 : vector<8x256xf32>
    %cst_98 = arith.constant 0.000000e+00 : f32
    %337 = vector.broadcast %cst_98 : f32 to vector<8x256xf32>
    %338 = arith.subf %337, %336 : vector<8x256xf32>
    %339 = math.exp %338 : vector<8x256xf32>
    %cst_99 = arith.constant 1.000000e+00 : f32
    %340 = vector.broadcast %cst_99 : f32 to vector<8x256xf32>
    %341 = arith.addf %340, %339 : vector<8x256xf32>
    %342 = tpu.reciprocal %341 {approx = true} : vector<8x256xf32> -> vector<8x256xf32>
    %343 = vector.extract_strided_slice %331 {offsets = [0, 256], sizes = [8, 256], strides = [1, 1]} : vector<8x768xf32> to vector<8x256xf32>
    %344 = vector.extract_strided_slice %333 {offsets = [0, 256], sizes = [8, 256], strides = [1, 1]} : vector<8x768xf32> to vector<8x256xf32>
    %345 = arith.addf %343, %344 : vector<8x256xf32>
    %cst_100 = arith.constant 0.000000e+00 : f32
    %346 = vector.broadcast %cst_100 : f32 to vector<8x256xf32>
    %347 = arith.subf %346, %345 : vector<8x256xf32>
    %348 = math.exp %347 : vector<8x256xf32>
    %cst_101 = arith.constant 1.000000e+00 : f32
    %349 = vector.broadcast %cst_101 : f32 to vector<8x256xf32>
    %350 = arith.addf %349, %348 : vector<8x256xf32>
    %351 = tpu.reciprocal %350 {approx = true} : vector<8x256xf32> -> vector<8x256xf32>
    %352 = vector.extract_strided_slice %331 {offsets = [0, 512], sizes = [8, 256], strides = [1, 1]} : vector<8x768xf32> to vector<8x256xf32>
    %353 = vector.extract_strided_slice %333 {offsets = [0, 512], sizes = [8, 256], strides = [1, 1]} : vector<8x768xf32> to vector<8x256xf32>
    %354 = arith.addf %353, %296 : vector<8x256xf32>
    %355 = arith.mulf %342, %354 : vector<8x256xf32>
    %356 = arith.addf %352, %355 : vector<8x256xf32>
    %357 = math.tanh %356 : vector<8x256xf32>
    %358 = arith.subf %327, %357 : vector<8x256xf32>
    %359 = arith.mulf %351, %358 : vector<8x256xf32>
    %360 = arith.addf %357, %359 : vector<8x256xf32>
    %c1_102 = arith.constant 1 : index
    %c0_103 = arith.constant 0 : index
    %c0_104 = arith.constant 0 : index
    %361 = vector.load %arg8[%c1_102, %c0_103, %c0_104] : memref<8x8x256xf32, #tpu.memory_space<vmem>>, vector<1x8x256xf32>
    %362 = vector.shape_cast %361 : vector<1x8x256xf32> to vector<8x256xf32>
    %363 = vector.shape_cast %360 : vector<8x256xf32> to vector<1x8x256xf32>
    tpu.vector_store %arg8[%c1_102, %c0_103, %c0_104], %363 {strides = array<i32>} : memref<8x8x256xf32, #tpu.memory_space<vmem>>, vector<1x8x256xf32>,
    %364 = vector.extract_strided_slice %290 {offsets = [16, 0], sizes = [8, 768], strides = [1, 1]} : vector<64x768xf32> to vector<8x768xf32>
    %365 = arith.truncf %360 : vector<8x256xf32> to vector<8x256xbf16>
    %cst_105 = arith.constant dense<0.000000e+00> : vector<8x768xf32>
    %366 = tpu.matmul %365, %292, %cst_105 {dimension_numbers = #tpu.dot_dimension_numbers<[1], [0], [0], [1], [0, 0, 1, 1], [], []>} : vector<8x256xbf16>, vector<256x768xbf16>, vector<8x768xf32> -> vector<8x768xf32>
    %367 = vector.extract_strided_slice %364 {offsets = [0, 0], sizes = [8, 256], strides = [1, 1]} : vector<8x768xf32> to vector<8x256xf32>
    %368 = vector.extract_strided_slice %366 {offsets = [0, 0], sizes = [8, 256], strides = [1, 1]} : vector<8x768xf32> to vector<8x256xf32>
    %369 = arith.addf %367, %368 : vector<8x256xf32>
    %cst_106 = arith.constant 0.000000e+00 : f32
    %370 = vector.broadcast %cst_106 : f32 to vector<8x256xf32>
    %371 = arith.subf %370, %369 : vector<8x256xf32>
    %372 = math.exp %371 : vector<8x256xf32>
    %cst_107 = arith.constant 1.000000e+00 : f32
    %373 = vector.broadcast %cst_107 : f32 to vector<8x256xf32>
    %374 = arith.addf %373, %372 : vector<8x256xf32>
    %375 = tpu.reciprocal %374 {approx = true} : vector<8x256xf32> -> vector<8x256xf32>
    %376 = vector.extract_strided_slice %364 {offsets = [0, 256], sizes = [8, 256], strides = [1, 1]} : vector<8x768xf32> to vector<8x256xf32>
    %377 = vector.extract_strided_slice %366 {offsets = [0, 256], sizes = [8, 256], strides = [1, 1]} : vector<8x768xf32> to vector<8x256xf32>
    %378 = arith.addf %376, %377 : vector<8x256xf32>
    %cst_108 = arith.constant 0.000000e+00 : f32
    %379 = vector.broadcast %cst_108 : f32 to vector<8x256xf32>
    %380 = arith.subf %379, %378 : vector<8x256xf32>
    %381 = math.exp %380 : vector<8x256xf32>
    %cst_109 = arith.constant 1.000000e+00 : f32
    %382 = vector.broadcast %cst_109 : f32 to vector<8x256xf32>
    %383 = arith.addf %382, %381 : vector<8x256xf32>
    %384 = tpu.reciprocal %383 {approx = true} : vector<8x256xf32> -> vector<8x256xf32>
    %385 = vector.extract_strided_slice %364 {offsets = [0, 512], sizes = [8, 256], strides = [1, 1]} : vector<8x768xf32> to vector<8x256xf32>
    %386 = vector.extract_strided_slice %366 {offsets = [0, 512], sizes = [8, 256], strides = [1, 1]} : vector<8x768xf32> to vector<8x256xf32>
    %387 = arith.addf %386, %296 : vector<8x256xf32>
    %388 = arith.mulf %375, %387 : vector<8x256xf32>
    %389 = arith.addf %385, %388 : vector<8x256xf32>
    %390 = math.tanh %389 : vector<8x256xf32>
    %391 = arith.subf %360, %390 : vector<8x256xf32>
    %392 = arith.mulf %384, %391 : vector<8x256xf32>
    %393 = arith.addf %390, %392 : vector<8x256xf32>
    %c2_110 = arith.constant 2 : index
    %c0_111 = arith.constant 0 : index
    %c0_112 = arith.constant 0 : index
    %394 = vector.load %arg8[%c2_110, %c0_111, %c0_112] : memref<8x8x256xf32, #tpu.memory_space<vmem>>, vector<1x8x256xf32>
    %395 = vector.shape_cast %394 : vector<1x8x256xf32> to vector<8x256xf32>
    %396 = vector.shape_cast %393 : vector<8x256xf32> to vector<1x8x256xf32>
    tpu.vector_store %arg8[%c2_110, %c0_111, %c0_112], %396 {strides = array<i32>} : memref<8x8x256xf32, #tpu.memory_space<vmem>>, vector<1x8x256xf32>,
    %397 = vector.extract_strided_slice %290 {offsets = [24, 0], sizes = [8, 768], strides = [1, 1]} : vector<64x768xf32> to vector<8x768xf32>
    %398 = arith.truncf %393 : vector<8x256xf32> to vector<8x256xbf16>
    %cst_113 = arith.constant dense<0.000000e+00> : vector<8x768xf32>
    %399 = tpu.matmul %398, %292, %cst_113 {dimension_numbers = #tpu.dot_dimension_numbers<[1], [0], [0], [1], [0, 0, 1, 1], [], []>} : vector<8x256xbf16>, vector<256x768xbf16>, vector<8x768xf32> -> vector<8x768xf32>
    %400 = vector.extract_strided_slice %397 {offsets = [0, 0], sizes = [8, 256], strides = [1, 1]} : vector<8x768xf32> to vector<8x256xf32>
    %401 = vector.extract_strided_slice %399 {offsets = [0, 0], sizes = [8, 256], strides = [1, 1]} : vector<8x768xf32> to vector<8x256xf32>
    %402 = arith.addf %400, %401 : vector<8x256xf32>
    %cst_114 = arith.constant 0.000000e+00 : f32
    %403 = vector.broadcast %cst_114 : f32 to vector<8x256xf32>
    %404 = arith.subf %403, %402 : vector<8x256xf32>
    %405 = math.exp %404 : vector<8x256xf32>
    %cst_115 = arith.constant 1.000000e+00 : f32
    %406 = vector.broadcast %cst_115 : f32 to vector<8x256xf32>
    %407 = arith.addf %406, %405 : vector<8x256xf32>
    %408 = tpu.reciprocal %407 {approx = true} : vector<8x256xf32> -> vector<8x256xf32>
    %409 = vector.extract_strided_slice %397 {offsets = [0, 256], sizes = [8, 256], strides = [1, 1]} : vector<8x768xf32> to vector<8x256xf32>
    %410 = vector.extract_strided_slice %399 {offsets = [0, 256], sizes = [8, 256], strides = [1, 1]} : vector<8x768xf32> to vector<8x256xf32>
    %411 = arith.addf %409, %410 : vector<8x256xf32>
    %cst_116 = arith.constant 0.000000e+00 : f32
    %412 = vector.broadcast %cst_116 : f32 to vector<8x256xf32>
    %413 = arith.subf %412, %411 : vector<8x256xf32>
    %414 = math.exp %413 : vector<8x256xf32>
    %cst_117 = arith.constant 1.000000e+00 : f32
    %415 = vector.broadcast %cst_117 : f32 to vector<8x256xf32>
    %416 = arith.addf %415, %414 : vector<8x256xf32>
    %417 = tpu.reciprocal %416 {approx = true} : vector<8x256xf32> -> vector<8x256xf32>
    %418 = vector.extract_strided_slice %397 {offsets = [0, 512], sizes = [8, 256], strides = [1, 1]} : vector<8x768xf32> to vector<8x256xf32>
    %419 = vector.extract_strided_slice %399 {offsets = [0, 512], sizes = [8, 256], strides = [1, 1]} : vector<8x768xf32> to vector<8x256xf32>
    %420 = arith.addf %419, %296 : vector<8x256xf32>
    %421 = arith.mulf %408, %420 : vector<8x256xf32>
    %422 = arith.addf %418, %421 : vector<8x256xf32>
    %423 = math.tanh %422 : vector<8x256xf32>
    %424 = arith.subf %393, %423 : vector<8x256xf32>
    %425 = arith.mulf %417, %424 : vector<8x256xf32>
    %426 = arith.addf %423, %425 : vector<8x256xf32>
    %c3_118 = arith.constant 3 : index
    %c0_119 = arith.constant 0 : index
    %c0_120 = arith.constant 0 : index
    %427 = vector.load %arg8[%c3_118, %c0_119, %c0_120] : memref<8x8x256xf32, #tpu.memory_space<vmem>>, vector<1x8x256xf32>
    %428 = vector.shape_cast %427 : vector<1x8x256xf32> to vector<8x256xf32>
    %429 = vector.shape_cast %426 : vector<8x256xf32> to vector<1x8x256xf32>
    tpu.vector_store %arg8[%c3_118, %c0_119, %c0_120], %429 {strides = array<i32>} : memref<8x8x256xf32, #tpu.memory_space<vmem>>, vector<1x8x256xf32>,
    %430 = vector.extract_strided_slice %290 {offsets = [32, 0], sizes = [8, 768], strides = [1, 1]} : vector<64x768xf32> to vector<8x768xf32>
    %431 = arith.truncf %426 : vector<8x256xf32> to vector<8x256xbf16>
    %cst_121 = arith.constant dense<0.000000e+00> : vector<8x768xf32>
    %432 = tpu.matmul %431, %292, %cst_121 {dimension_numbers = #tpu.dot_dimension_numbers<[1], [0], [0], [1], [0, 0, 1, 1], [], []>} : vector<8x256xbf16>, vector<256x768xbf16>, vector<8x768xf32> -> vector<8x768xf32>
    %433 = vector.extract_strided_slice %430 {offsets = [0, 0], sizes = [8, 256], strides = [1, 1]} : vector<8x768xf32> to vector<8x256xf32>
    %434 = vector.extract_strided_slice %432 {offsets = [0, 0], sizes = [8, 256], strides = [1, 1]} : vector<8x768xf32> to vector<8x256xf32>
    %435 = arith.addf %433, %434 : vector<8x256xf32>
    %cst_122 = arith.constant 0.000000e+00 : f32
    %436 = vector.broadcast %cst_122 : f32 to vector<8x256xf32>
    %437 = arith.subf %436, %435 : vector<8x256xf32>
    %438 = math.exp %437 : vector<8x256xf32>
    %cst_123 = arith.constant 1.000000e+00 : f32
    %439 = vector.broadcast %cst_123 : f32 to vector<8x256xf32>
    %440 = arith.addf %439, %438 : vector<8x256xf32>
    %441 = tpu.reciprocal %440 {approx = true} : vector<8x256xf32> -> vector<8x256xf32>
    %442 = vector.extract_strided_slice %430 {offsets = [0, 256], sizes = [8, 256], strides = [1, 1]} : vector<8x768xf32> to vector<8x256xf32>
    %443 = vector.extract_strided_slice %432 {offsets = [0, 256], sizes = [8, 256], strides = [1, 1]} : vector<8x768xf32> to vector<8x256xf32>
    %444 = arith.addf %442, %443 : vector<8x256xf32>
    %cst_124 = arith.constant 0.000000e+00 : f32
    %445 = vector.broadcast %cst_124 : f32 to vector<8x256xf32>
    %446 = arith.subf %445, %444 : vector<8x256xf32>
    %447 = math.exp %446 : vector<8x256xf32>
    %cst_125 = arith.constant 1.000000e+00 : f32
    %448 = vector.broadcast %cst_125 : f32 to vector<8x256xf32>
    %449 = arith.addf %448, %447 : vector<8x256xf32>
    %450 = tpu.reciprocal %449 {approx = true} : vector<8x256xf32> -> vector<8x256xf32>
    %451 = vector.extract_strided_slice %430 {offsets = [0, 512], sizes = [8, 256], strides = [1, 1]} : vector<8x768xf32> to vector<8x256xf32>
    %452 = vector.extract_strided_slice %432 {offsets = [0, 512], sizes = [8, 256], strides = [1, 1]} : vector<8x768xf32> to vector<8x256xf32>
    %453 = arith.addf %452, %296 : vector<8x256xf32>
    %454 = arith.mulf %441, %453 : vector<8x256xf32>
    %455 = arith.addf %451, %454 : vector<8x256xf32>
    %456 = math.tanh %455 : vector<8x256xf32>
    %457 = arith.subf %426, %456 : vector<8x256xf32>
    %458 = arith.mulf %450, %457 : vector<8x256xf32>
    %459 = arith.addf %456, %458 : vector<8x256xf32>
    %c4_126 = arith.constant 4 : index
    %c0_127 = arith.constant 0 : index
    %c0_128 = arith.constant 0 : index
    %460 = vector.load %arg8[%c4_126, %c0_127, %c0_128] : memref<8x8x256xf32, #tpu.memory_space<vmem>>, vector<1x8x256xf32>
    %461 = vector.shape_cast %460 : vector<1x8x256xf32> to vector<8x256xf32>
    %462 = vector.shape_cast %459 : vector<8x256xf32> to vector<1x8x256xf32>
    tpu.vector_store %arg8[%c4_126, %c0_127, %c0_128], %462 {strides = array<i32>} : memref<8x8x256xf32, #tpu.memory_space<vmem>>, vector<1x8x256xf32>,
    %463 = vector.extract_strided_slice %290 {offsets = [40, 0], sizes = [8, 768], strides = [1, 1]} : vector<64x768xf32> to vector<8x768xf32>
    %464 = arith.truncf %459 : vector<8x256xf32> to vector<8x256xbf16>
    %cst_129 = arith.constant dense<0.000000e+00> : vector<8x768xf32>
    %465 = tpu.matmul %464, %292, %cst_129 {dimension_numbers = #tpu.dot_dimension_numbers<[1], [0], [0], [1], [0, 0, 1, 1], [], []>} : vector<8x256xbf16>, vector<256x768xbf16>, vector<8x768xf32> -> vector<8x768xf32>
    %466 = vector.extract_strided_slice %463 {offsets = [0, 0], sizes = [8, 256], strides = [1, 1]} : vector<8x768xf32> to vector<8x256xf32>
    %467 = vector.extract_strided_slice %465 {offsets = [0, 0], sizes = [8, 256], strides = [1, 1]} : vector<8x768xf32> to vector<8x256xf32>
    %468 = arith.addf %466, %467 : vector<8x256xf32>
    %cst_130 = arith.constant 0.000000e+00 : f32
    %469 = vector.broadcast %cst_130 : f32 to vector<8x256xf32>
    %470 = arith.subf %469, %468 : vector<8x256xf32>
    %471 = math.exp %470 : vector<8x256xf32>
    %cst_131 = arith.constant 1.000000e+00 : f32
    %472 = vector.broadcast %cst_131 : f32 to vector<8x256xf32>
    %473 = arith.addf %472, %471 : vector<8x256xf32>
    %474 = tpu.reciprocal %473 {approx = true} : vector<8x256xf32> -> vector<8x256xf32>
    %475 = vector.extract_strided_slice %463 {offsets = [0, 256], sizes = [8, 256], strides = [1, 1]} : vector<8x768xf32> to vector<8x256xf32>
    %476 = vector.extract_strided_slice %465 {offsets = [0, 256], sizes = [8, 256], strides = [1, 1]} : vector<8x768xf32> to vector<8x256xf32>
    %477 = arith.addf %475, %476 : vector<8x256xf32>
    %cst_132 = arith.constant 0.000000e+00 : f32
    %478 = vector.broadcast %cst_132 : f32 to vector<8x256xf32>
    %479 = arith.subf %478, %477 : vector<8x256xf32>
    %480 = math.exp %479 : vector<8x256xf32>
    %cst_133 = arith.constant 1.000000e+00 : f32
    %481 = vector.broadcast %cst_133 : f32 to vector<8x256xf32>
    %482 = arith.addf %481, %480 : vector<8x256xf32>
    %483 = tpu.reciprocal %482 {approx = true} : vector<8x256xf32> -> vector<8x256xf32>
    %484 = vector.extract_strided_slice %463 {offsets = [0, 512], sizes = [8, 256], strides = [1, 1]} : vector<8x768xf32> to vector<8x256xf32>
    %485 = vector.extract_strided_slice %465 {offsets = [0, 512], sizes = [8, 256], strides = [1, 1]} : vector<8x768xf32> to vector<8x256xf32>
    %486 = arith.addf %485, %296 : vector<8x256xf32>
    %487 = arith.mulf %474, %486 : vector<8x256xf32>
    %488 = arith.addf %484, %487 : vector<8x256xf32>
    %489 = math.tanh %488 : vector<8x256xf32>
    %490 = arith.subf %459, %489 : vector<8x256xf32>
    %491 = arith.mulf %483, %490 : vector<8x256xf32>
    %492 = arith.addf %489, %491 : vector<8x256xf32>
    %c5_134 = arith.constant 5 : index
    %c0_135 = arith.constant 0 : index
    %c0_136 = arith.constant 0 : index
    %493 = vector.load %arg8[%c5_134, %c0_135, %c0_136] : memref<8x8x256xf32, #tpu.memory_space<vmem>>, vector<1x8x256xf32>
    %494 = vector.shape_cast %493 : vector<1x8x256xf32> to vector<8x256xf32>
    %495 = vector.shape_cast %492 : vector<8x256xf32> to vector<1x8x256xf32>
    tpu.vector_store %arg8[%c5_134, %c0_135, %c0_136], %495 {strides = array<i32>} : memref<8x8x256xf32, #tpu.memory_space<vmem>>, vector<1x8x256xf32>,
    %496 = vector.extract_strided_slice %290 {offsets = [48, 0], sizes = [8, 768], strides = [1, 1]} : vector<64x768xf32> to vector<8x768xf32>
    %497 = arith.truncf %492 : vector<8x256xf32> to vector<8x256xbf16>
    %cst_137 = arith.constant dense<0.000000e+00> : vector<8x768xf32>
    %498 = tpu.matmul %497, %292, %cst_137 {dimension_numbers = #tpu.dot_dimension_numbers<[1], [0], [0], [1], [0, 0, 1, 1], [], []>} : vector<8x256xbf16>, vector<256x768xbf16>, vector<8x768xf32> -> vector<8x768xf32>
    %499 = vector.extract_strided_slice %496 {offsets = [0, 0], sizes = [8, 256], strides = [1, 1]} : vector<8x768xf32> to vector<8x256xf32>
    %500 = vector.extract_strided_slice %498 {offsets = [0, 0], sizes = [8, 256], strides = [1, 1]} : vector<8x768xf32> to vector<8x256xf32>
    %501 = arith.addf %499, %500 : vector<8x256xf32>
    %cst_138 = arith.constant 0.000000e+00 : f32
    %502 = vector.broadcast %cst_138 : f32 to vector<8x256xf32>
    %503 = arith.subf %502, %501 : vector<8x256xf32>
    %504 = math.exp %503 : vector<8x256xf32>
    %cst_139 = arith.constant 1.000000e+00 : f32
    %505 = vector.broadcast %cst_139 : f32 to vector<8x256xf32>
    %506 = arith.addf %505, %504 : vector<8x256xf32>
    %507 = tpu.reciprocal %506 {approx = true} : vector<8x256xf32> -> vector<8x256xf32>
    %508 = vector.extract_strided_slice %496 {offsets = [0, 256], sizes = [8, 256], strides = [1, 1]} : vector<8x768xf32> to vector<8x256xf32>
    %509 = vector.extract_strided_slice %498 {offsets = [0, 256], sizes = [8, 256], strides = [1, 1]} : vector<8x768xf32> to vector<8x256xf32>
    %510 = arith.addf %508, %509 : vector<8x256xf32>
    %cst_140 = arith.constant 0.000000e+00 : f32
    %511 = vector.broadcast %cst_140 : f32 to vector<8x256xf32>
    %512 = arith.subf %511, %510 : vector<8x256xf32>
    %513 = math.exp %512 : vector<8x256xf32>
    %cst_141 = arith.constant 1.000000e+00 : f32
    %514 = vector.broadcast %cst_141 : f32 to vector<8x256xf32>
    %515 = arith.addf %514, %513 : vector<8x256xf32>
    %516 = tpu.reciprocal %515 {approx = true} : vector<8x256xf32> -> vector<8x256xf32>
    %517 = vector.extract_strided_slice %496 {offsets = [0, 512], sizes = [8, 256], strides = [1, 1]} : vector<8x768xf32> to vector<8x256xf32>
    %518 = vector.extract_strided_slice %498 {offsets = [0, 512], sizes = [8, 256], strides = [1, 1]} : vector<8x768xf32> to vector<8x256xf32>
    %519 = arith.addf %518, %296 : vector<8x256xf32>
    %520 = arith.mulf %507, %519 : vector<8x256xf32>
    %521 = arith.addf %517, %520 : vector<8x256xf32>
    %522 = math.tanh %521 : vector<8x256xf32>
    %523 = arith.subf %492, %522 : vector<8x256xf32>
    %524 = arith.mulf %516, %523 : vector<8x256xf32>
    %525 = arith.addf %522, %524 : vector<8x256xf32>
    %c6_142 = arith.constant 6 : index
    %c0_143 = arith.constant 0 : index
    %c0_144 = arith.constant 0 : index
    %526 = vector.load %arg8[%c6_142, %c0_143, %c0_144] : memref<8x8x256xf32, #tpu.memory_space<vmem>>, vector<1x8x256xf32>
    %527 = vector.shape_cast %526 : vector<1x8x256xf32> to vector<8x256xf32>
    %528 = vector.shape_cast %525 : vector<8x256xf32> to vector<1x8x256xf32>
    tpu.vector_store %arg8[%c6_142, %c0_143, %c0_144], %528 {strides = array<i32>} : memref<8x8x256xf32, #tpu.memory_space<vmem>>, vector<1x8x256xf32>,
    %529 = vector.extract_strided_slice %290 {offsets = [56, 0], sizes = [8, 768], strides = [1, 1]} : vector<64x768xf32> to vector<8x768xf32>
    %530 = arith.truncf %525 : vector<8x256xf32> to vector<8x256xbf16>
    %cst_145 = arith.constant dense<0.000000e+00> : vector<8x768xf32>
    %531 = tpu.matmul %530, %292, %cst_145 {dimension_numbers = #tpu.dot_dimension_numbers<[1], [0], [0], [1], [0, 0, 1, 1], [], []>} : vector<8x256xbf16>, vector<256x768xbf16>, vector<8x768xf32> -> vector<8x768xf32>
    %532 = vector.extract_strided_slice %529 {offsets = [0, 0], sizes = [8, 256], strides = [1, 1]} : vector<8x768xf32> to vector<8x256xf32>
    %533 = vector.extract_strided_slice %531 {offsets = [0, 0], sizes = [8, 256], strides = [1, 1]} : vector<8x768xf32> to vector<8x256xf32>
    %534 = arith.addf %532, %533 : vector<8x256xf32>
    %cst_146 = arith.constant 0.000000e+00 : f32
    %535 = vector.broadcast %cst_146 : f32 to vector<8x256xf32>
    %536 = arith.subf %535, %534 : vector<8x256xf32>
    %537 = math.exp %536 : vector<8x256xf32>
    %cst_147 = arith.constant 1.000000e+00 : f32
    %538 = vector.broadcast %cst_147 : f32 to vector<8x256xf32>
    %539 = arith.addf %538, %537 : vector<8x256xf32>
    %540 = tpu.reciprocal %539 {approx = true} : vector<8x256xf32> -> vector<8x256xf32>
    %541 = vector.extract_strided_slice %529 {offsets = [0, 256], sizes = [8, 256], strides = [1, 1]} : vector<8x768xf32> to vector<8x256xf32>
    %542 = vector.extract_strided_slice %531 {offsets = [0, 256], sizes = [8, 256], strides = [1, 1]} : vector<8x768xf32> to vector<8x256xf32>
    %543 = arith.addf %541, %542 : vector<8x256xf32>
    %cst_148 = arith.constant 0.000000e+00 : f32
    %544 = vector.broadcast %cst_148 : f32 to vector<8x256xf32>
    %545 = arith.subf %544, %543 : vector<8x256xf32>
    %546 = math.exp %545 : vector<8x256xf32>
    %cst_149 = arith.constant 1.000000e+00 : f32
    %547 = vector.broadcast %cst_149 : f32 to vector<8x256xf32>
    %548 = arith.addf %547, %546 : vector<8x256xf32>
    %549 = tpu.reciprocal %548 {approx = true} : vector<8x256xf32> -> vector<8x256xf32>
    %550 = vector.extract_strided_slice %529 {offsets = [0, 512], sizes = [8, 256], strides = [1, 1]} : vector<8x768xf32> to vector<8x256xf32>
    %551 = vector.extract_strided_slice %531 {offsets = [0, 512], sizes = [8, 256], strides = [1, 1]} : vector<8x768xf32> to vector<8x256xf32>
    %552 = arith.addf %551, %296 : vector<8x256xf32>
    %553 = arith.mulf %540, %552 : vector<8x256xf32>
    %554 = arith.addf %550, %553 : vector<8x256xf32>
    %555 = math.tanh %554 : vector<8x256xf32>
    %556 = arith.subf %525, %555 : vector<8x256xf32>
    %557 = arith.mulf %549, %556 : vector<8x256xf32>
    %558 = arith.addf %555, %557 : vector<8x256xf32>
    %c7_150 = arith.constant 7 : index
    %c0_151 = arith.constant 0 : index
    %c0_152 = arith.constant 0 : index
    %559 = vector.load %arg8[%c7_150, %c0_151, %c0_152] : memref<8x8x256xf32, #tpu.memory_space<vmem>>, vector<1x8x256xf32>
    %560 = vector.shape_cast %559 : vector<1x8x256xf32> to vector<8x256xf32>
    %561 = vector.shape_cast %558 : vector<8x256xf32> to vector<1x8x256xf32>
    tpu.vector_store %arg8[%c7_150, %c0_151, %c0_152], %561 {strides = array<i32>} : memref<8x8x256xf32, #tpu.memory_space<vmem>>, vector<1x8x256xf32>,
    %c0_153 = arith.constant 0 : index
    %c0_154 = arith.constant 0 : index
    %c0_155 = arith.constant 0 : index
    %562 = vector.load %arg8[%c0_153, %c0_154, %c0_155] : memref<8x8x256xf32, #tpu.memory_space<vmem>>, vector<8x8x256xf32>
    %563 = vector.shape_cast %562 : vector<8x8x256xf32> to vector<64x256xf32>
    %564 = arith.truncf %563 : vector<64x256xf32> to vector<64x256xbf16>
    %c0_156 = arith.constant 0 : index
    %c0_157 = arith.constant 0 : index
    %565 = vector.load %arg5[%c0_156, %c0_157] : memref<256x128xbf16, #tpu.memory_space<vmem>>, vector<256x128xbf16>
    %cst_158 = arith.constant dense<0.000000e+00> : vector<64x128xf32>
    %566 = tpu.matmul %564, %565, %cst_158 {dimension_numbers = #tpu.dot_dimension_numbers<[1], [0], [0], [1], [0, 0, 1, 1], [], []>} : vector<64x256xbf16>, vector<256x128xbf16>, vector<64x128xf32> -> vector<64x128xf32>
    %c0_159 = arith.constant 0 : index
    %c0_160 = arith.constant 0 : index
    %567 = vector.load %arg6[%c0_159, %c0_160] : memref<1x128xf32, #tpu.memory_space<vmem>>, vector<1x128xf32>
    %568 = vector.broadcast %567 : vector<1x128xf32> to vector<64x128xf32>
    %569 = arith.addf %566, %568 : vector<64x128xf32>
    %570 = vector.shape_cast %569 : vector<64x128xf32> to vector<8x8x128xf32>
    %c0_161 = arith.constant 0 : index
    %c0_162 = arith.constant 0 : index
    %c0_163 = arith.constant 0 : index
    %571 = vector.load %arg7[%c0_161, %c0_162, %c0_163] : memref<8x8x128xf32, #tpu.memory_space<vmem>>, vector<8x8x128xf32>
    tpu.vector_store %arg7[%c0_161, %c0_162, %c0_163], %570 {strides = array<i32>} : memref<8x8x128xf32, #tpu.memory_space<vmem>>, vector<8x8x128xf32>,
    return
  }
}

</mosaic_0001>

<bundles_post_ra>
// kernel: fwd.1
= control target key start
LH: loop header
LB: loop body
LE: loop exit
PB: predicated region body
PF: predicated region fallthrough
CT: control target
= control target key end

     0   :  { %12 = vsyncpa [#allocation4], 0  ;;  %s10999_s0 = inlined_call_operand.vmem [shape: f32[8,8,256], index: 0, kind: input, shape index: {}]   ;;  %s11000_s1 = inlined_call_operand.hbm [shape: bf16[2,256,768], index: 1, kind: input, shape index: {}]   ;;  %s11001_s2 = inlined_call_operand.hbm [shape: bf16[2,256,768], index: 2, kind: input, shape index: {}]   ;;  %s11002_s3 = inlined_call_operand.vmem [shape: f32[2,1,768], index: 3, kind: input, shape index: {}]   ;;  %s11003_s4 = inlined_call_operand.vmem [shape: f32[2,1,256], index: 4, kind: input, shape index: {}]   ;;  %s11004_s5 = inlined_call_operand.vmem [shape: bf16[256,128], index: 5, kind: input, shape index: {}]   ;;  %s11005_s6 = inlined_call_operand.vmem [shape: f32[1,128], index: 6, kind: input, shape index: {}]   ;;  %s11006_s7 = inlined_call_operand.vmem [shape: f32[8,8,128], index: 7, kind: output, shape index: {}]  }
   0x1   :  { %13 = vsyncpa [#allocation6], 0  ;;  %s7612_s24 = smov [#allocation3]  }
   0x2   :  { %s21_s25 = sshll.u32 %s7612_s24, 4  ;;  %s22_s25 = int_to_ptr.vmem [resolvable:$true] %s21_s25 }
   0x3   :  { %s7576_s26 = scalar_lea.vmem %s22_s25, 24576  ;;  %p7581_p1 = scmp.lt.s32.totalorder %s22_s25, %s22_s25 }
   0x4   :  { %p7577_p0 = scmp.ne.s32.totalorder %s22_s25, %s7576_s26  ;;  %p7582_p2 = scmp.lt.s32.totalorder %s7576_s26, %s7576_s26 }
   0x6   :  { %p7583_p3 = por %p7582_p2, %p7581_p1 }
   0x8   :  { %p7584_p4 = pnand %p7583_p3, %p7577_p0 }
   0xa   :  { %7587 = shalt.err (!%p7584_p4)
}
   0xb   :  { %s7613_s27 = smov 384   ;;  %s7614_s28 = smov 24  }
   0xc   :  { %27 = dma.hbm_to_vmem [thread:$0]  %s11000_s1, 24576, %s22_s25, [#allocation4], %s7613_s27, %s7613_s27, %s7614_s28  }
   0xd   :  { %s7615_s8 = smov [#allocation5]  }
   0xe   :  { %s33_s9 = sshll.u32 %s7615_s8, 4  ;;  %s34_s9 = int_to_ptr.vmem [resolvable:$true] %s33_s9 }
   0xf   :  { %s7596_s10 = scalar_lea.vmem %s34_s9, 24576  ;;  %p7601_p6 = scmp.lt.s32.totalorder %s34_s9, %s34_s9 }
  0x10   :  { %p7597_p5 = scmp.ne.s32.totalorder %s34_s9, %s7596_s10  ;;  %p7602_p7 = scmp.lt.s32.totalorder %s7596_s10, %s7596_s10 }
  0x12   :  { %p7603_p8 = por %p7602_p7, %p7601_p6 }
  0x14   :  { %p7604_p9 = pnand %p7603_p8, %p7597_p5 }
  0x16   :  { %7607 = shalt.err (!%p7604_p9)
}
  0x17   :  { %39 = dma.hbm_to_vmem [thread:$0]  %s11001_s2, 24576, %s34_s9, [#allocation6], %s7613_s27, %s7613_s27, %s7614_s28  }
  0x18   :  { %7608 = dma.done.wait [#allocation4], 24576  }
  0x19   :  { %7609 = vsyncadd [#allocation4], 4294942720 }
  0x1a   :  { %7610 = dma.done.wait [#allocation6], 24576  }
  0x1b   :  { %7611 = vsyncadd [#allocation6], 4294942720  ;;  %v6282_v0 = vld [vmem:[#allocation3 + $0x154] ss:$24 sps:$4 sm:$0xff]   ;;  %v6286_v2 = vld [vmem:[#allocation3 + $0x150] ss:$24 sps:$4 sm:$0xff]  }
  0x1c   :  { %v6284_v1 = vld [vmem:[#allocation3 + $0x15c] ss:$24 sps:$4 sm:$0xff]   ;;  %687 = vmatprep.subr.bf16.mxu0 %v6282_v0  ;;  %v6287_v3 = vld [vmem:[#allocation3 + $0x158] ss:$24 sps:$4 sm:$0xff]   ;;  %v6290_v5 = vld [vmem:[#allocation3 + $0x12c] ss:$24 sps:$4 sm:$0xff]  }
  0x1d   :  { %760 = vmatprep.subr.bf16.mxu1 %v6284_v1  ;;  %v6288_v4 = vld [vmem:[#allocation3 + $0x124] ss:$24 sps:$4 sm:$0xff]   ;;  %688 = vmatpush1.bf16.msra.mxu0 %v6286_v2  ;;  %v6292_v6 = vld [vmem:[#allocation3 + $0x120] ss:$24 sps:$4 sm:$0xff]   ;;  %v6294_v8 = vld [vmem:[#allocation3 + $0xf4] ss:$24 sps:$4 sm:$0xff]  }
  0x1e   :  { %761 = vmatpush1.bf16.msra.mxu1 %v6287_v3  ;;  %689 = vmatprep.subr.bf16.mxu0 %v6288_v4  ;;  %v6293_v7 = vld [vmem:[#allocation3 + $0x128] ss:$24 sps:$4 sm:$0xff]   ;;  %v6296_v9 = vld [vmem:[#allocation3 + $0xfc] ss:$24 sps:$4 sm:$0xff]   ;;  %v6299_v11 = vld [vmem:[#allocation3 + $0xf8] ss:$24 sps:$4 sm:$0xff]  }
  0x1f   :  { %762 = vmatprep.subr.bf16.mxu1 %v6290_v5  ;;  %v6298_v10 = vld [vmem:[#allocation3 + $0xf0] ss:$24 sps:$4 sm:$0xff]   ;;  %v6300_v12 = vld [vmem:[#allocation3 + $0xc4] ss:$24 sps:$4 sm:$0xff]   ;;  %v6304_v14 = vld [vmem:[#allocation3 + $0xc0] ss:$24 sps:$4 sm:$0xff]  }
  0x20   :  { %v6302_v13 = vld [vmem:[#allocation3 + $0xcc] ss:$24 sps:$4 sm:$0xff]   ;;  %v6305_v15 = vld [vmem:[#allocation3 + $0xc8] ss:$24 sps:$4 sm:$0xff]   ;;  %v6308_v17 = vld [vmem:[#allocation3 + $0x9c] ss:$24 sps:$4 sm:$0xff]  }
  0x21   :  { %690 = vmatpush1.bf16.msra.mxu0 %v6292_v6  ;;  %v6306_v16 = vld [vmem:[#allocation3 + $0x94] ss:$24 sps:$4 sm:$0xff]   ;;  %v6310_v18 = vld [vmem:[#allocation3 + $0x90] ss:$24 sps:$4 sm:$0xff]   ;;  %v6312_v20 = vld [vmem:[#allocation3 + $0x64] ss:$24 sps:$4 sm:$0xff]  }
  0x22   :  { %763 = vmatpush1.bf16.msra.mxu1 %v6293_v7  ;;  %691 = vmatprep.subr.bf16.mxu0 %v6294_v8  ;;  %v6311_v19 = vld [vmem:[#allocation3 + $0x98] ss:$24 sps:$4 sm:$0xff]   ;;  %v6314_v21 = vld [vmem:[#allocation3 + $0x6c] ss:$24 sps:$4 sm:$0xff]   ;;  %v6317_v23 = vld [vmem:[#allocation3 + $0x68] ss:$24 sps:$4 sm:$0xff]  }
  0x23   :  { %764 = vmatprep.subr.bf16.mxu1 %v6296_v9  ;;  %v6316_v22 = vld [vmem:[#allocation3 + $0x60] ss:$24 sps:$4 sm:$0xff]   ;;  %v6318_v24 = vld [vmem:[#allocation3 + $0x34] ss:$24 sps:$4 sm:$0xff]   ;;  %v6322_v26 = vld [vmem:[#allocation3 + $0x30] ss:$24 sps:$4 sm:$0xff]  }
  0x24   :  { %v6320_v25 = vld [vmem:[#allocation3 + $0x3c] ss:$24 sps:$4 sm:$0xff]   ;;  %v6323_v27 = vld [vmem:[#allocation3 + $0x38] ss:$24 sps:$4 sm:$0xff]   ;;  %v6326_v29 = vld [vmem:[#allocation3 + $0xc] ss:$24 sps:$4 sm:$0xff]  }
  0x25   :  { %692 = vmatpush1.bf16.msra.mxu0 %v6298_v10  ;;  %v6324_v28 = vld [vmem:[#allocation3 + $0x4] ss:$24 sps:$4 sm:$0xff]   ;;  %v6328_v30 = vld [vmem:[#allocation3] ss:$24 sps:$4 sm:$0xff]   ;;  %v6330_v32 = vld [vmem:[#allocation3 + $0x2d4] ss:$24 sps:$4 sm:$0xff]  }
  0x26   :  { %765 = vmatpush1.bf16.msra.mxu1 %v6299_v11  ;;  %693 = vmatprep.subr.bf16.mxu0 %v6300_v12  ;;  %v6329_v31 = vld [vmem:[#allocation3 + $0x8] ss:$24 sps:$4 sm:$0xff]   ;;  %v6332_v33 = vld [vmem:[#allocation3 + $0x2dc] ss:$24 sps:$4 sm:$0xff]   ;;  %v6335_v35 = vld [vmem:[#allocation3 + $0x2d8] ss:$24 sps:$4 sm:$0xff]  }
  0x27   :  { %766 = vmatprep.subr.bf16.mxu1 %v6302_v13  ;;  %v6334_v34 = vld [vmem:[#allocation3 + $0x2d0] ss:$24 sps:$4 sm:$0xff]   ;;  %v6336_v36 = vld [vmem:[#allocation3 + $0x2a4] ss:$24 sps:$4 sm:$0xff]   ;;  %v6340_v38 = vld [vmem:[#allocation3 + $0x2a0] ss:$24 sps:$4 sm:$0xff]  }
  0x28   :  { %v6338_v37 = vld [vmem:[#allocation3 + $0x2ac] ss:$24 sps:$4 sm:$0xff]   ;;  %v6341_v39 = vld [vmem:[#allocation3 + $0x2a8] ss:$24 sps:$4 sm:$0xff]   ;;  %v6344_v41 = vld [vmem:[#allocation3 + $0x27c] ss:$24 sps:$4 sm:$0xff]  }
  0x29   :  { %694 = vmatpush1.bf16.msra.mxu0 %v6304_v14  ;;  %v6342_v40 = vld [vmem:[#allocation3 + $0x274] ss:$24 sps:$4 sm:$0xff]   ;;  %v6346_v42 = vld [vmem:[#allocation3 + $0x270] ss:$24 sps:$4 sm:$0xff]   ;;  %v6348_v44 = vld [vmem:[#allocation3 + $0x244] ss:$24 sps:$4 sm:$0xff]  }
  0x2a   :  { %767 = vmatpush1.bf16.msra.mxu1 %v6305_v15  ;;  %695 = vmatprep.subr.bf16.mxu0 %v6306_v16  ;;  %v6347_v43 = vld [vmem:[#allocation3 + $0x278] ss:$24 sps:$4 sm:$0xff]   ;;  %v6350_v45 = vld [vmem:[#allocation3 + $0x24c] ss:$24 sps:$4 sm:$0xff]   ;;  %v6353_v48 = vld [vmem:[#allocation3 + $0x248] ss:$24 sps:$4 sm:$0xff]  }
  0x2b   :  { %768 = vmatprep.subr.bf16.mxu1 %v6308_v17  ;;  %v56_v46 = vld [vmem:[%s10999_s0 + $0x8] sm:$0xff]  ;;  %v6352_v47 = vld [vmem:[#allocation3 + $0x240] ss:$24 sps:$4 sm:$0xff]   ;;  %v6356_v52 = vld [vmem:[#allocation3 + $0x21c] ss:$24 sps:$4 sm:$0xff]  }
  0x2c   :  { %v58_v49 = vld [vmem:[%s10999_s0 + $0x18] sm:$0xff]  ;;  %v6354_v50 = vld [vmem:[#allocation3 + $0x214] ss:$24 sps:$4 sm:$0xff]   ;;  %v6358_v53 = vld [vmem:[#allocation3 + $0x210] ss:$24 sps:$4 sm:$0xff]  }
  0x2d   :  { %696 = vmatpush1.bf16.msra.mxu0 %v6310_v18  ;;  %v7669_v51 = vpack.c.bf16 %v58_v49, %v56_v46  ;;  %v6359_v54 = vld [vmem:[#allocation3 + $0x218] ss:$24 sps:$4 sm:$0xff]   ;;  %v6360_v55 = vld [vmem:[#allocation3 + $0x1e4] ss:$24 sps:$4 sm:$0xff]   ;;  %v6365_v58 = vld [vmem:[#allocation3 + $0x1e8] ss:$24 sps:$4 sm:$0xff]  }
  0x2e   :  { %769 = vmatpush1.bf16.msra.mxu1 %v6311_v19  ;;  %697 = vmatprep.subr.bf16.mxu0 %v6312_v20  ;;  %v6362_v56 = vld [vmem:[#allocation3 + $0x1ec] ss:$24 sps:$4 sm:$0xff]   ;;  %v6364_v57 = vld [vmem:[#allocation3 + $0x1e0] ss:$24 sps:$4 sm:$0xff]   ;;  %v6368_v60 = vld [vmem:[#allocation3 + $0x1bc] ss:$24 sps:$4 sm:$0xff]  }
  0x2f   :  { %770 = vmatprep.subr.bf16.mxu1 %v6314_v21  ;;  %719 = vmatprep.mubr.bf16.mxu0 %v7669_v51  ;;  %v6366_v59 = vld [vmem:[#allocation3 + $0x1b4] ss:$24 sps:$4 sm:$0xff]   ;;  %v6370_v61 = vld [vmem:[#allocation3 + $0x1b0] ss:$24 sps:$4 sm:$0xff]   ;;  %v6372_v63 = vld [vmem:[#allocation3 + $0x184] ss:$24 sps:$4 sm:$0xff]  }
  0x30   :  { %792 = vmatprep.mubr.bf16.mxu1 %v7669_v51  ;;  %v6371_v62 = vld [vmem:[#allocation3 + $0x1b8] ss:$24 sps:$4 sm:$0xff]   ;;  %v6374_v0 = vld [vmem:[#allocation3 + $0x18c] ss:$24 sps:$4 sm:$0xff]   ;;  %v6377_v2 = vld [vmem:[#allocation3 + $0x188] ss:$24 sps:$4 sm:$0xff]  }
  0x31   :  { %698 = vmatpush1.bf16.msra.mxu0 %v6316_v22  ;;  %v6376_v1 = vld [vmem:[#allocation3 + $0x180] ss:$24 sps:$4 sm:$0xff]   ;;  %v57_v4 = vld [vmem:[%s10999_s0 + $0x10] sm:$0xff]  ;;  %v6380_v5 = vld [vmem:[#allocation3 + $0x164] ss:$24 sps:$4 sm:$0xff]  }
  0x32   :  { %771 = vmatpush1.bf16.msra.mxu1 %v6317_v23  ;;  %699 = vmatprep.subr.bf16.mxu0 %v6318_v24  ;;  %v55_v3 = vld [vmem:[%s10999_s0] sm:$0xff]  ;;  %v6381_v6 = vld [vmem:[#allocation5 + $0x154] ss:$24 sps:$4 sm:$0xff]   ;;  %v6383_v9 = vld [vmem:[#allocation5 + $0x150] ss:$24 sps:$4 sm:$0xff]  }
  0x33   :  { %772 = vmatprep.subr.bf16.mxu1 %v6320_v25  ;;  %v7679_v7 = vpack.c.bf16 %v57_v4, %v55_v3  ;;  %v6378_v8 = vld [vmem:[#allocation3 + $0x160] ss:$24 sps:$4 sm:$0xff]   ;;  %v6386_v10 = vld [vmem:[#allocation3 + $0x134] ss:$24 sps:$4 sm:$0xff]   ;;  %v6387_v11 = vld [vmem:[#allocation5 + $0x124] ss:$24 sps:$4 sm:$0xff]  }
  0x34   :  { %v6384_v12 = vld [vmem:[#allocation3 + $0x130] ss:$24 sps:$4 sm:$0xff]   ;;  %v6389_v13 = vld [vmem:[#allocation5 + $0x120] ss:$24 sps:$4 sm:$0xff]   ;;  %v6392_v14 = vld [vmem:[#allocation3 + $0x104] ss:$24 sps:$4 sm:$0xff]  }
  0x35   :  { %700 = vmatpush1.bf16.msra.mxu0 %v6322_v26  ;;  %v6393_v15 = vld [vmem:[#allocation5 + $0xf4] ss:$24 sps:$4 sm:$0xff]   ;;  %v62_v17 = vld [vmem:[%s10999_s0 + $0x38] sm:$0xff]  ;;  %v59_v18 = vld [vmem:[%s10999_s0 + $0x20] sm:$0xff] }
  0x36   :  { %773 = vmatpush1.bf16.msra.mxu1 %v6323_v27  ;;  %701 = vmatprep.subr.bf16.mxu0 %v6324_v28  ;;  %v60_v16 = vld [vmem:[%s10999_s0 + $0x28] sm:$0xff]  ;;  %v61_v20 = vld [vmem:[%s10999_s0 + $0x30] sm:$0xff]  ;;  %v6390_v21 = vld [vmem:[#allocation3 + $0x100] ss:$24 sps:$4 sm:$0xff]  }
  0x37   :  { %774 = vmatprep.subr.bf16.mxu1 %v6326_v29  ;;  %v7692_v19 = vpack.c.bf16 %v62_v17, %v60_v16  ;;  %v6395_v22 = vld [vmem:[#allocation5 + $0xf0] ss:$24 sps:$4 sm:$0xff]   ;;  %v7698_v23 = vpack.c.bf16 %v61_v20, %v59_v18  ;;  %v6398_v24 = vld [vmem:[#allocation3 + $0xd4] ss:$24 sps:$4 sm:$0xff]   ;;  %v6399_v25 = vld [vmem:[#allocation5 + $0xc4] ss:$24 sps:$4 sm:$0xff]  }
  0x38   :  { %v6396_v26 = vld [vmem:[#allocation3 + $0xd0] ss:$24 sps:$4 sm:$0xff]   ;;  %v6401_v27 = vld [vmem:[#allocation5 + $0xc0] ss:$24 sps:$4 sm:$0xff]   ;;  %v6404_v29 = vld [vmem:[#allocation3 + $0xa4] ss:$24 sps:$4 sm:$0xff]  }
  0x39   :  { %702 = vmatpush1.bf16.msra.mxu0 %v6328_v30  ;;  %v64_v28 = vld [vmem:[%s10999_s0 + $0x48] sm:$0xff]  ;;  %v66_v30 = vld [vmem:[%s10999_s0 + $0x58] sm:$0xff]  ;;  %v67_v46 = vld [vmem:[%s10999_s0 + $0x60] sm:$0xff] }
  0x3a   :  { %775 = vmatpush1.bf16.msra.mxu1 %v6329_v31  ;;  %703 = vmatprep.subr.bf16.mxu0 %v6330_v32  ;;  %v63_v31 = vld [vmem:[%s10999_s0 + $0x40] sm:$0xff]  ;;  %v7712_v32 = vpack.c.bf16 %v66_v30, %v64_v28  ;;  %v7752_v4 = vld [vmem:[#allocation5 + $0x270] ss:$24 sps:$4 sm:$0xff]   ;;  %v7774_v20 = vld [vmem:[#allocation5 + $0x1b4] ss:$24 sps:$4 sm:$0xff]  }
  0x3b   :  { %776 = vmatprep.subr.bf16.mxu1 %v6332_v33  ;;  %v65_v33 = vld [vmem:[%s10999_s0 + $0x50] sm:$0xff]  ;;  %v6414_v49 = vld [vmem:[#allocation3 + $0x40] ss:$24 sps:$4 sm:$0xff]   ;;  %v6464_v18 = vld [vmem:[#allocation3 + $0x1c4] ss:$24 sps:$4 sm:$0xff]  }
  0x3c   :  { %v6438_v3 = vld [vmem:[#allocation3 + $0x280] ss:$24 sps:$4 sm:$0xff]   ;;  %v6456_v16 = vld [vmem:[#allocation3 + $0x1f0] ss:$24 sps:$4 sm:$0xff]   ;;  %v7785_v28 = vld [vmem:[#allocation5 + $0x15c] ss:$24 sps:$4 sm:$0xff]  }
  0x3d   :  { %704 = vmatpush2.bf16.msra.mxu0 %v6334_v34  ;;  %v6405_v34 = vld [vmem:[#allocation5 + $0x94] ss:$24 sps:$4 sm:$0xff]   ;;  %v7771_v17 = vld [vmem:[#allocation5 + $0x1e0] ss:$24 sps:$4 sm:$0xff]  }
  0x3e   :  { %777 = vmatpush2.bf16.msra.mxu1 %v6335_v35  ;;  %705 = vmatprep.subr.bf16.mxu0 %v6336_v36  ;;  %v6402_v35 = vld [vmem:[#allocation3 + $0xa0] ss:$24 sps:$4 sm:$0xff]   ;;  %v6407_v36 = vld [vmem:[#allocation5 + $0x90] ss:$24 sps:$4 sm:$0xff]  }
  0x3f   :  { %778 = vmatprep.subr.bf16.mxu1 %v6338_v37  ;;  %v7719_v37 = vpack.c.bf16 %v65_v33, %v63_v31  ;;  %v7790_v30 = vld [vmem:[#allocation5 + $0x158] ss:$24 sps:$4 sm:$0xff]   ;;  %v7793_v33 = vld [vmem:[#allocation5 + $0x12c] ss:$24 sps:$4 sm:$0xff]  }
  0x40   :  { %v6479_v31 = vld [vmem:[#allocation5 + $0x160] ss:$24 sps:$4 sm:$0xff]  }
  0x41   :  { %706 = vmatpush2.bf16.msra.mxu0 %v6340_v38  ;;  %v6410_v38 = vld [vmem:[#allocation3 + $0x74] ss:$24 sps:$4 sm:$0xff]  }
  0x42   :  { %779 = vmatpush2.bf16.msra.mxu1 %v6341_v39  ;;  %707 = vmatprep.subr.bf16.mxu0 %v6342_v40  ;;  %v6411_v39 = vld [vmem:[#allocation5 + $0x64] ss:$24 sps:$4 sm:$0xff]   ;;  %v68_v40 = vld [vmem:[%s10999_s0 + $0x68] sm:$0xff] }
  0x43   :  { %780 = vmatprep.subr.bf16.mxu1 %v6344_v41  ;;  %v70_v41 = vld [vmem:[%s10999_s0 + $0x78] sm:$0xff] }
  0x45   :  { %708 = vmatpush2.bf16.msra.mxu0 %v6346_v42  ;;  %v6408_v42 = vld [vmem:[#allocation3 + $0x70] ss:$24 sps:$4 sm:$0xff]  }
  0x46   :  { %781 = vmatpush2.bf16.msra.mxu1 %v6347_v43  ;;  %709 = vmatprep.subr.bf16.mxu0 %v6348_v44  ;;  %v6413_v43 = vld [vmem:[#allocation5 + $0x60] ss:$24 sps:$4 sm:$0xff]   ;;  %v7727_v44 = vpack.c.bf16 %v70_v41, %v68_v40 }
  0x47   :  { %782 = vmatprep.subr.bf16.mxu1 %v6350_v45  ;;  %v6416_v45 = vld [vmem:[#allocation3 + $0x44] ss:$24 sps:$4 sm:$0xff]   ;;  %v7805_v40 = vld [vmem:[#allocation5 + $0xf8] ss:$24 sps:$4 sm:$0xff]  }
  0x48   :  { %v6491_v41 = vld [vmem:[#allocation5 + $0x100] ss:$24 sps:$4 sm:$0xff]  }
  0x49   :  { %710 = vmatpush2.bf16.msra.mxu0 %v6352_v47  ;;  %v69_v47 = vld [vmem:[%s10999_s0 + $0x70] sm:$0xff] }
  0x4a   :  { %783 = vmatpush2.bf16.msra.mxu1 %v6353_v48  ;;  %711 = vmatprep.subr.bf16.mxu0 %v6354_v50  ;;  %v6417_v48 = vld [vmem:[#allocation5 + $0x34] ss:$24 sps:$4 sm:$0xff]   ;;  %v6419_v50 = vld [vmem:[#allocation5 + $0x30] ss:$24 sps:$4 sm:$0xff]  }
  0x4b   :  { %784 = vmatprep.subr.bf16.mxu1 %v6356_v52  ;;  %v7739_v52 = vpack.c.bf16 %v69_v47, %v67_v46  ;;  %v7815_v46 = vld [vmem:[#allocation5 + $0x9c] ss:$24 sps:$4 sm:$0xff]  }
  0x4c   :  { %v6500_v47 = vld [vmem:[#allocation5 + $0xa4] ss:$24 sps:$4 sm:$0xff]  }
  0x4d   :  { %712 = vmatpush2.bf16.msra.mxu0 %v6358_v53  ;;  %v6422_v53 = vld [vmem:[#allocation3 + $0x14] ss:$24 sps:$4 sm:$0xff]  }
  0x4e   :  { %785 = vmatpush2.bf16.msra.mxu1 %v6359_v54  ;;  %713 = vmatprep.subr.bf16.mxu0 %v6360_v55  ;;  %v6423_v54 = vld [vmem:[#allocation5 + $0x4] ss:$24 sps:$4 sm:$0xff]   ;;  %v6420_v55 = vld [vmem:[#allocation3 + $0x10] ss:$24 sps:$4 sm:$0xff]  }
  0x4f   :  { %786 = vmatprep.subr.bf16.mxu1 %v6362_v56  ;;  %v6425_v56 = vld [vmem:[#allocation5] ss:$24 sps:$4 sm:$0xff]  }
  0x51   :  { %714 = vmatpush2.bf16.msra.mxu0 %v6364_v57  ;;  %v6428_v57 = vld [vmem:[#allocation3 + $0x2e4] ss:$24 sps:$4 sm:$0xff]  }
  0x52   :  { %787 = vmatpush2.bf16.msra.mxu1 %v6365_v58  ;;  %715 = vmatprep.subr.bf16.mxu0 %v6366_v59  ;;  %v6429_v58 = vld [vmem:[#allocation5 + $0x2d4] ss:$24 sps:$4 sm:$0xff]   ;;  %v11007_v59 = vmov 0  }
  0x53   :  { %788 = vmatprep.subr.bf16.mxu1 %v6368_v60  ;;  %v6426_v60 = vld [vmem:[#allocation3 + $0x2e0] ss:$24 sps:$4 sm:$0xff]  }
  0x55   :  { %716 = vmatpush2.bf16.msra.mxu0 %v6370_v61  ;;  %v6431_v61 = vld [vmem:[#allocation5 + $0x2d0] ss:$24 sps:$4 sm:$0xff]  }
  0x56   :  { %789 = vmatpush2.bf16.msra.mxu1 %v6371_v62  ;;  %717 = vmatprep.subr.bf16.mxu0 %v6372_v63  ;;  %v6434_v62 = vld [vmem:[#allocation3 + $0x2b4] ss:$24 sps:$4 sm:$0xff]   ;;  %v7745_v63 = vld [vmem:[#allocation5 + $0x2a4] ss:$24 sps:$4 sm:$0xff]  }
  0x57   :  { %790 = vmatprep.subr.bf16.mxu1 %v6374_v0  ;;  %v6432_v0 = vld [vmem:[#allocation3 + $0x2b0] ss:$24 sps:$4 sm:$0xff]  }
  0x59   :  { %718 = vmatpush2.bf16.msra.mxu0 %v6376_v1  ;;  %v7747_v1 = vld [vmem:[#allocation5 + $0x2a0] ss:$24 sps:$4 sm:$0xff]  }
  0x5a   :  { %791 = vmatpush2.bf16.msra.mxu1 %v6377_v2  ;;  %833 = vmatprep.subr.bf16.mxu0 %v6380_v5  ;;  %v6440_v2 = vld [vmem:[#allocation3 + $0x284] ss:$24 sps:$4 sm:$0xff]   ;;  %v6446_v5 = vld [vmem:[#allocation3 + $0x254] ss:$24 sps:$4 sm:$0xff]  }
  0x5b   :  { %1494 = vmatprep.subr.bf16.mxu1 %v6381_v6  ;;  %v7756_v6 = vld [vmem:[#allocation5 + $0x244] ss:$24 sps:$4 sm:$0xff]  }
  0x5c   :  { %720 = vmatmul.mubr.bf16.vlgmr.msra.gmra.mxu0 %v7679_v7 }
  0x5d   :  { %793 = vmatmul.mubr.bf16.vlgmr.msra.gmra.mxu1 %v7679_v7  ;;  %834 = vmatpush1.bf16.msra.mxu0 %v6378_v8  ;;  %v6444_v8 = vld [vmem:[#allocation3 + $0x250] ss:$24 sps:$4 sm:$0xff]  }
  0x5e   :  { %1495 = vmatpush1.bf16.msra.mxu1 %v6383_v9  ;;  %835 = vmatprep.subr.bf16.mxu0 %v6386_v10  ;;  %v7759_v9 = vld [vmem:[#allocation5 + $0x240] ss:$24 sps:$4 sm:$0xff]   ;;  %v6452_v10 = vld [vmem:[#allocation3 + $0x224] ss:$24 sps:$4 sm:$0xff]  }
  0x5f   :  { %1496 = vmatprep.subr.bf16.mxu1 %v6387_v11  ;;  %729 = vmatprep.mubr.bf16.mxu0 %v7692_v19  ;;  %v7762_v11 = vld [vmem:[#allocation5 + $0x214] ss:$24 sps:$4 sm:$0xff]  }
  0x60   :  { %802 = vmatprep.mubr.bf16.mxu1 %v7692_v19 }
  0x61   :  { %836 = vmatpush1.bf16.msra.mxu0 %v6384_v12  ;;  %v6450_v12 = vld [vmem:[#allocation3 + $0x220] ss:$24 sps:$4 sm:$0xff]  }
  0x62   :  { %1497 = vmatpush1.bf16.msra.mxu1 %v6389_v13  ;;  %837 = vmatprep.subr.bf16.mxu0 %v6392_v14  ;;  %v7764_v13 = vld [vmem:[#allocation5 + $0x210] ss:$24 sps:$4 sm:$0xff]   ;;  %v6458_v14 = vld [vmem:[#allocation3 + $0x1f4] ss:$24 sps:$4 sm:$0xff]  }
  0x63   :  { %1498 = vmatprep.subr.bf16.mxu1 %v6393_v15  ;;  %v7768_v15 = vld [vmem:[#allocation5 + $0x1e4] ss:$24 sps:$4 sm:$0xff]  }
  0x64   :  { %730 = vmatmul.mubr.bf16.gmra.mxu0 %v7698_v23 }
  0x65   :  { %803 = vmatmul.mubr.bf16.gmra.mxu1 %v7698_v23  ;;  %838 = vmatpush1.bf16.msra.mxu0 %v6390_v21  ;;  %v6462_v21 = vld [vmem:[#allocation3 + $0x1c0] ss:$24 sps:$4 sm:$0xff]  }
  0x66   :  { %1499 = vmatpush1.bf16.msra.mxu1 %v6395_v22  ;;  %839 = vmatprep.subr.bf16.mxu0 %v6398_v24  ;;  %v7776_v22 = vld [vmem:[#allocation5 + $0x1b0] ss:$24 sps:$4 sm:$0xff]   ;;  %v6470_v24 = vld [vmem:[#allocation3 + $0x194] ss:$24 sps:$4 sm:$0xff]  }
  0x67   :  { %1500 = vmatprep.subr.bf16.mxu1 %v6399_v25  ;;  %739 = vmatprep.mubr.bf16.mxu0 %v7712_v32  ;;  %v7780_v25 = vld [vmem:[#allocation5 + $0x184] ss:$24 sps:$4 sm:$0xff]  }
  0x68   :  { %812 = vmatprep.mubr.bf16.mxu1 %v7712_v32 }
  0x69   :  { %840 = vmatpush1.bf16.msra.mxu0 %v6396_v26  ;;  %v6468_v26 = vld [vmem:[#allocation3 + $0x190] ss:$24 sps:$4 sm:$0xff]  }
  0x6a   :  { %1501 = vmatpush1.bf16.msra.mxu1 %v6401_v27  ;;  %841 = vmatprep.subr.bf16.mxu0 %v6404_v29  ;;  %v7783_v27 = vld [vmem:[#allocation5 + $0x180] ss:$24 sps:$4 sm:$0xff]   ;;  %v7788_v29 = vld [vmem:[#allocation5 + $0x164] ss:$24 sps:$4 sm:$0xff]  }
  0x6b   :  { %1502 = vmatprep.subr.bf16.mxu1 %v6405_v34  ;;  %v6482_v34 = vld [vmem:[#allocation5 + $0x134] ss:$24 sps:$4 sm:$0xff]  }
  0x6c   :  { %740 = vmatmul.mubr.bf16.gmra.mxu0 %v7719_v37 }
  0x6d   :  { %813 = vmatmul.mubr.bf16.gmra.mxu1 %v7719_v37  ;;  %842 = vmatpush1.bf16.msra.mxu0 %v6402_v35  ;;  %v7800_v35 = vld [vmem:[#allocation5 + $0x128] ss:$24 sps:$4 sm:$0xff]  }
  0x6e   :  { %1503 = vmatpush1.bf16.msra.mxu1 %v6407_v36  ;;  %843 = vmatprep.subr.bf16.mxu0 %v6410_v38  ;;  %v6485_v36 = vld [vmem:[#allocation5 + $0x130] ss:$24 sps:$4 sm:$0xff]   ;;  %v7803_v38 = vld [vmem:[#allocation5 + $0xfc] ss:$24 sps:$4 sm:$0xff]  }
  0x6f   :  { %1504 = vmatprep.subr.bf16.mxu1 %v6411_v39  ;;  %749 = vmatprep.mubr.bf16.mxu0 %v7727_v44  ;;  %v6488_v39 = vld [vmem:[#allocation5 + $0x104] ss:$24 sps:$4 sm:$0xff]  }
  0x70   :  { %822 = vmatprep.mubr.bf16.mxu1 %v7727_v44 }
  0x71   :  { %844 = vmatpush1.bf16.msra.mxu0 %v6408_v42  ;;  %v6494_v42 = vld [vmem:[#allocation5 + $0xd4] ss:$24 sps:$4 sm:$0xff]  }
  0x72   :  { %1505 = vmatpush1.bf16.msra.mxu1 %v6413_v43  ;;  %845 = vmatprep.subr.bf16.mxu0 %v6416_v45  ;;  %v7813_v43 = vld [vmem:[#allocation5 + $0xc8] ss:$24 sps:$4 sm:$0xff]  }
  0x73   :  { %1506 = vmatprep.subr.bf16.mxu1 %v6417_v48  ;;  %v6497_v45 = vld [vmem:[#allocation5 + $0xd0] ss:$24 sps:$4 sm:$0xff]   ;;  %v6503_v48 = vld [vmem:[#allocation5 + $0xa0] ss:$24 sps:$4 sm:$0xff]  }
  0x74   :  { %750 = vmatmul.mubr.bf16.gmra.mxu0 %v7739_v52 }
  0x75   :  { %823 = vmatmul.mubr.bf16.gmra.mxu1 %v7739_v52  ;;  %846 = vmatpush1.bf16.msra.mxu0 %v6414_v49  ;;  %v7823_v49 = vld [vmem:[#allocation5 + $0x6c] ss:$24 sps:$4 sm:$0xff]  }
  0x76   :  { %1507 = vmatpush1.bf16.msra.mxu1 %v6419_v50  ;;  %847 = vmatprep.subr.bf16.mxu0 %v6422_v53  ;;  %v6506_v50 = vld [vmem:[#allocation5 + $0x74] ss:$24 sps:$4 sm:$0xff]   ;;  %v6509_v53 = vld [vmem:[#allocation5 + $0x70] ss:$24 sps:$4 sm:$0xff]  }
  0x77   :  { %1508 = vmatprep.subr.bf16.mxu1 %v6423_v54  ;;  %865 = vmatprep.mubr.bf16.mxu0 %v7669_v51  ;;  %v7750_v51 = vld [vmem:[#allocation5 + $0x274] ss:$24 sps:$4 sm:$0xff]  }
  0x78   :  { %1526 = vmatprep.mubr.bf16.mxu1 %v11007_v59  ;;  %v7829_v54 = vld [vmem:[#allocation5 + $0x3c] ss:$24 sps:$4 sm:$0xff]  }
  0x79   :  { %848 = vmatpush1.bf16.msra.mxu0 %v6420_v55  ;;  %v6512_v55 = vld [vmem:[#allocation5 + $0x44] ss:$24 sps:$4 sm:$0xff]  }
  0x7a   :  { %1509 = vmatpush1.bf16.msra.mxu1 %v6425_v56  ;;  %849 = vmatprep.subr.bf16.mxu0 %v6428_v57  ;;  %v6515_v56 = vld [vmem:[#allocation5 + $0x40] ss:$24 sps:$4 sm:$0xff]   ;;  %v7837_v57 = vld [vmem:[#allocation5 + $0xc] ss:$24 sps:$4 sm:$0xff]  }
  0x7b   :  { %1510 = vmatprep.subr.bf16.mxu1 %v6429_v58  ;;  %v6518_v58 = vld [vmem:[#allocation5 + $0x14] ss:$24 sps:$4 sm:$0xff]  }
  0x7d   :  { %850 = vmatpush2.bf16.msra.mxu0 %v6426_v60  ;;  %v7843_v60 = vld [vmem:[#allocation5 + $0x10] ss:$24 sps:$4 sm:$0xff]  }
  0x7e   :  { %1511 = vmatpush2.bf16.msra.mxu1 %v6431_v61  ;;  %851 = vmatprep.subr.bf16.mxu0 %v6434_v62  ;;  %v7845_v61 = vld [vmem:[#allocation5 + $0x2dc] ss:$24 sps:$4 sm:$0xff]  }
  0x7f   :  { %1512 = vmatprep.subr.bf16.mxu1 %v7745_v63  ;;  %v7847_v62 = vld [vmem:[#allocation5 + $0x2e4] ss:$24 sps:$4 sm:$0xff]  }
  0x81   :  { %852 = vmatpush2.bf16.msra.mxu0 %v6432_v0  ;;  %v7854_v0 = vld [vmem:[#allocation5 + $0x2e0] ss:$24 sps:$4 sm:$0xff]  }
  0x82   :  { %1513 = vmatpush2.bf16.msra.mxu1 %v7747_v1  ;;  %853 = vmatprep.subr.bf16.mxu0 %v6440_v2  ;;  %v7857_v2 = vld [vmem:[#allocation5 + $0x2ac] ss:$24 sps:$4 sm:$0xff]  }
  0x83   :  { %1514 = vmatprep.subr.bf16.mxu1 %v7750_v51 }
  0x85   :  { %854 = vmatpush2.bf16.msra.mxu0 %v6438_v3  ;;  %v7859_v3 = vld [vmem:[#allocation5 + $0x2b4] ss:$24 sps:$4 sm:$0xff]  }
  0x86   :  { %1515 = vmatpush2.bf16.msra.mxu1 %v7752_v4  ;;  %855 = vmatprep.subr.bf16.mxu0 %v6446_v5  ;;  %v7867_v5 = vld [vmem:[#allocation5 + $0x2b0] ss:$24 sps:$4 sm:$0xff]  }
  0x87   :  { %1516 = vmatprep.subr.bf16.mxu1 %v7756_v6 }
  0x89   :  { %856 = vmatpush2.bf16.msra.mxu0 %v6444_v8  ;;  %v7869_v8 = vld [vmem:[#allocation5 + $0x27c] ss:$24 sps:$4 sm:$0xff]  }
  0x8a   :  { %1517 = vmatpush2.bf16.msra.mxu1 %v7759_v9  ;;  %857 = vmatprep.subr.bf16.mxu0 %v6452_v10  ;;  %v7871_v10 = vld [vmem:[#allocation5 + $0x284] ss:$24 sps:$4 sm:$0xff]  }
  0x8b   :  { %1518 = vmatprep.subr.bf16.mxu1 %v7762_v11 }
  0x8d   :  { %858 = vmatpush2.bf16.msra.mxu0 %v6450_v12  ;;  %v7877_v12 = vld [vmem:[#allocation5 + $0x278] ss:$24 sps:$4 sm:$0xff]  }
  0x8e   :  { %1519 = vmatpush2.bf16.msra.mxu1 %v7764_v13  ;;  %859 = vmatprep.subr.bf16.mxu0 %v6458_v14  ;;  %v7879_v14 = vld [vmem:[#allocation5 + $0x280] ss:$24 sps:$4 sm:$0xff]  }
  0x8f   :  { %1520 = vmatprep.subr.bf16.mxu1 %v7768_v15 }
  0x91   :  { %860 = vmatpush2.bf16.msra.mxu0 %v6456_v16  ;;  %v7881_v16 = vld [vmem:[#allocation5 + $0x24c] ss:$24 sps:$4 sm:$0xff]  }
  0x92   :  { %1521 = vmatpush2.bf16.msra.mxu1 %v7771_v17  ;;  %861 = vmatprep.subr.bf16.mxu0 %v6464_v18  ;;  %v7883_v18 = vld [vmem:[#allocation5 + $0x254] ss:$24 sps:$4 sm:$0xff]  }
  0x93   :  { %1522 = vmatprep.subr.bf16.mxu1 %v7774_v20 }
  0x95   :  { %862 = vmatpush2.bf16.msra.mxu0 %v6462_v21  ;;  %v7889_v21 = vld [vmem:[#allocation5 + $0x248] ss:$24 sps:$4 sm:$0xff]  }
  0x96   :  { %1523 = vmatpush2.bf16.msra.mxu1 %v7776_v22  ;;  %863 = vmatprep.subr.bf16.mxu0 %v6470_v24  ;;  %v7891_v24 = vld [vmem:[#allocation5 + $0x250] ss:$24 sps:$4 sm:$0xff]  }
  0x97   :  { %1524 = vmatprep.subr.bf16.mxu1 %v7780_v25 }
  0x99   :  { %864 = vmatpush2.bf16.msra.mxu0 %v6468_v26  ;;  %v7893_v26 = vld [vmem:[#allocation5 + $0x21c] ss:$24 sps:$4 sm:$0xff]  }
  0x9a   :  { %1525 = vmatpush2.bf16.msra.mxu1 %v7783_v27  ;;  %1535 = vmatprep.subr.bf16.mxu0 %v7785_v28 }
  0x9b   :  { %1576 = vmatprep.subr.bf16.mxu1 %v7788_v29 }
  0x9c   :  { %866 = vmatmul.mubr.bf16.vlgmr.msra.gmra.mxu0 %v7679_v7  ;;  %v7809_v7 = vld [vmem:[#allocation5 + $0xcc] ss:$24 sps:$4 sm:$0xff]  }
  0x9d   :  { %1527 = vmatmul.mubr.bf16.vlgmr.msra.gmra.mxu1 %v11007_v59  ;;  %1536 = vmatpush1.bf16.msra.mxu0 %v7790_v30 }
  0x9e   :  { %1577 = vmatpush1.bf16.msra.mxu1 %v6479_v31  ;;  %1537 = vmatprep.subr.bf16.mxu0 %v7793_v33  ;;  %v7895_v31 = vld [vmem:[#allocation5 + $0x224] ss:$24 sps:$4 sm:$0xff]  }
  0x9f   :  { %1578 = vmatprep.subr.bf16.mxu1 %v6482_v34  ;;  %875 = vmatprep.mubr.bf16.mxu0 %v7692_v19  ;;  %v7820_v19 = vld [vmem:[#allocation5 + $0x98] ss:$24 sps:$4 sm:$0xff]  }
  0xa0   :  { %1608 = vmatprep.mubr.bf16.mxu1 %v11007_v59  ;;  %v7901_v34 = vld [vmem:[#allocation5 + $0x218] ss:$24 sps:$4 sm:$0xff]  }
  0xa1   :  { %1538 = vmatpush1.bf16.msra.mxu0 %v7800_v35 }
  0xa2   :  { %1579 = vmatpush1.bf16.msra.mxu1 %v6485_v36  ;;  %1539 = vmatprep.subr.bf16.mxu0 %v7803_v38  ;;  %v7903_v36 = vld [vmem:[#allocation5 + $0x220] ss:$24 sps:$4 sm:$0xff]  }
  0xa3   :  { %1580 = vmatprep.subr.bf16.mxu1 %v6488_v39  ;;  %v7905_v39 = vld [vmem:[#allocation5 + $0x1ec] ss:$24 sps:$4 sm:$0xff]  }
  0xa4   :  { %876 = vmatmul.mubr.bf16.gmra.mxu0 %v7698_v23  ;;  %v7827_v23 = vld [vmem:[#allocation5 + $0x68] ss:$24 sps:$4 sm:$0xff]   ;;  %11428 = vst [vmem:[#allocation9_spill] sm:$0xff] %v7905_v39 }
  0xa5   :  { %1540 = vmatpush1.bf16.msra.mxu0 %v7805_v40  ;;  %885 = vmatprep.mubr.bf16.mxu0 %v7712_v32  ;;  %v7834_v32 = vld [vmem:[#allocation5 + $0x38] ss:$24 sps:$4 sm:$0xff]  }
  0xa6   :  { %1581 = vmatpush1.bf16.msra.mxu1 %v6491_v41  ;;  %1541 = vmatprep.subr.bf16.mxu0 %v7809_v7  ;;  %v7907_v41 = vld [vmem:[#allocation5 + $0x1f4] ss:$24 sps:$4 sm:$0xff]  }
  0xa7   :  { %1582 = vmatprep.subr.bf16.mxu1 %v6494_v42  ;;  %11429 = vst [vmem:[#allocation10_spill] sm:$0xff] %v7907_v41  ;;  %v7913_v42 = vld [vmem:[#allocation5 + $0x1e8] ss:$24 sps:$4 sm:$0xff]  }
  0xa8   :  { %11430 = vst [vmem:[#allocation11_spill] sm:$0xff] %v7913_v42 }
  0xa9   :  { %1542 = vmatpush1.bf16.msra.mxu0 %v7813_v43 }
  0xaa   :  { %1583 = vmatpush1.bf16.msra.mxu1 %v6497_v45  ;;  %1543 = vmatprep.subr.bf16.mxu0 %v7815_v46  ;;  %v7915_v45 = vld [vmem:[#allocation5 + $0x1f0] ss:$24 sps:$4 sm:$0xff]  }
  0xab   :  { %1584 = vmatprep.subr.bf16.mxu1 %v6500_v47  ;;  %11431 = vst [vmem:[#allocation12_spill] sm:$0xff] %v7915_v45  ;;  %v7917_v47 = vld [vmem:[#allocation5 + $0x1bc] ss:$24 sps:$4 sm:$0xff]  }
  0xac   :  { %886 = vmatmul.mubr.bf16.gmra.mxu0 %v7719_v37  ;;  %v7841_v37 = vld [vmem:[#allocation5 + $0x8] ss:$24 sps:$4 sm:$0xff]   ;;  %11432 = vst [vmem:[#allocation13_spill] sm:$0xff] %v7917_v47 }
  0xad   :  { %1544 = vmatpush1.bf16.msra.mxu0 %v7820_v19  ;;  %895 = vmatprep.mubr.bf16.mxu0 %v7727_v44  ;;  %v7852_v44 = vld [vmem:[#allocation5 + $0x2d8] ss:$24 sps:$4 sm:$0xff]  }
  0xae   :  { %1585 = vmatpush1.bf16.msra.mxu1 %v6503_v48  ;;  %1545 = vmatprep.subr.bf16.mxu0 %v7823_v49  ;;  %v7919_v48 = vld [vmem:[#allocation5 + $0x1c4] ss:$24 sps:$4 sm:$0xff]  }
  0xaf   :  { %1586 = vmatprep.subr.bf16.mxu1 %v6506_v50  ;;  %11433 = vst [vmem:[#allocation14_spill] sm:$0xff] %v7919_v48  ;;  %v7925_v50 = vld [vmem:[#allocation5 + $0x1b8] ss:$24 sps:$4 sm:$0xff]  }
  0xb0   :  { %11434 = vst [vmem:[#allocation15_spill] sm:$0xff] %v7925_v50 }
  0xb1   :  { %1546 = vmatpush1.bf16.msra.mxu0 %v7827_v23 }
  0xb2   :  { %1587 = vmatpush1.bf16.msra.mxu1 %v6509_v53  ;;  %1547 = vmatprep.subr.bf16.mxu0 %v7829_v54  ;;  %v7927_v53 = vld [vmem:[#allocation5 + $0x1c0] ss:$24 sps:$4 sm:$0xff]  }
  0xb3   :  { %1588 = vmatprep.subr.bf16.mxu1 %v6512_v55  ;;  %v7929_v55 = vld [vmem:[#allocation5 + $0x18c] ss:$24 sps:$4 sm:$0xff]  }
  0xb4   :  { %896 = vmatmul.mubr.bf16.gmra.mxu0 %v7739_v52  ;;  %v7865_v52 = vld [vmem:[#allocation5 + $0x2a8] ss:$24 sps:$4 sm:$0xff]   ;;  %11435 = vst [vmem:[#allocation16_spill] sm:$0xff] %v7929_v55 }
  0xb5   :  { %1548 = vmatpush1.bf16.msra.mxu0 %v7834_v32  ;;  %1567 = vmatprep.mubr.bf16.mxu0 %v11007_v59  ;;  %v7939_v59 = vld [vmem:[#allocation5 + $0x190] ss:$24 sps:$4 sm:$0xff]  }
  0xb6   :  { %1589 = vmatpush1.bf16.msra.mxu1 %v6515_v56  ;;  %1549 = vmatprep.subr.bf16.mxu0 %v7837_v57  ;;  %v7931_v56 = vld [vmem:[#allocation5 + $0x194] ss:$24 sps:$4 sm:$0xff]   ;;  %11438 = vst [vmem:[#allocation19_spill] sm:$0xff] %v7939_v59 }
  0xb7   :  { %1590 = vmatprep.subr.bf16.mxu1 %v6518_v58  ;;  %11436 = vst [vmem:[#allocation17_spill] sm:$0xff] %v7931_v56  ;;  %v7937_v58 = vld [vmem:[#allocation5 + $0x188] ss:$24 sps:$4 sm:$0xff]  }
  0xb8   :  { %11437 = vst [vmem:[#allocation18_spill] sm:$0xff] %v7937_v58 }
  0xb9   :  { %1550 = vmatpush1.bf16.msra.mxu0 %v7841_v37 }
  0xba   :  { %1591 = vmatpush1.bf16.msra.mxu1 %v7843_v60  ;;  %1551 = vmatprep.subr.bf16.mxu0 %v7845_v61 }
  0xbb   :  { %1592 = vmatprep.subr.bf16.mxu1 %v7847_v62 }
  0xbd   :  { %1552 = vmatpush2.bf16.msra.mxu0 %v7852_v44 }
  0xbe   :  { %1593 = vmatpush2.bf16.msra.mxu1 %v7854_v0  ;;  %1553 = vmatprep.subr.bf16.mxu0 %v7857_v2 }
  0xbf   :  { %1594 = vmatprep.subr.bf16.mxu1 %v7859_v3 }
  0xc1   :  { %1554 = vmatpush2.bf16.msra.mxu0 %v7865_v52 }
  0xc2   :  { %1595 = vmatpush2.bf16.msra.mxu1 %v7867_v5  ;;  %1555 = vmatprep.subr.bf16.mxu0 %v7869_v8 }
  0xc3   :  { %1596 = vmatprep.subr.bf16.mxu1 %v7871_v10 }
  0xc5   :  { %1556 = vmatpush2.bf16.msra.mxu0 %v7877_v12 }
  0xc6   :  { %1597 = vmatpush2.bf16.msra.mxu1 %v7879_v14  ;;  %1557 = vmatprep.subr.bf16.mxu0 %v7881_v16 }
  0xc7   :  { %1598 = vmatprep.subr.bf16.mxu1 %v7883_v18 }
  0xc9   :  { %1558 = vmatpush2.bf16.msra.mxu0 %v7889_v21 }
  0xca   :  { %1599 = vmatpush2.bf16.msra.mxu1 %v7891_v24  ;;  %1559 = vmatprep.subr.bf16.mxu0 %v7893_v26 }
  0xcb   :  { %1600 = vmatprep.subr.bf16.mxu1 %v7895_v31 }
  0xcd   :  { %1560 = vmatpush2.bf16.msra.mxu0 %v7901_v34 }
  0xce   :  { %1601 = vmatpush2.bf16.msra.mxu1 %v7903_v36  ;;  %1561 = vmatprep.subr.bf16.mxu0 %v7905_v39 }
  0xcf   :  { %1602 = vmatprep.subr.bf16.mxu1 %v7907_v41  ;;  %v7953_v41 = vld [vmem:[#allocation5 + $0x150] ss:$24 sps:$4 sm:$0xff]  }
  0xd1   :  { %1562 = vmatpush2.bf16.msra.mxu0 %v7913_v42 }
  0xd2   :  { %1603 = vmatpush2.bf16.msra.mxu1 %v7915_v45  ;;  %1563 = vmatprep.subr.bf16.mxu0 %v7917_v47  ;;  %v7947_v45 = vld [vmem:[#allocation5 + $0x154] ss:$24 sps:$4 sm:$0xff]  }
  0xd3   :  { %1604 = vmatprep.subr.bf16.mxu1 %v7919_v48  ;;  %11439 = vst [vmem:[#allocation20_spill] sm:$0xff] %v7947_v45  ;;  %v11440_v48 = vmov 0  }
  0xd5   :  { %1564 = vmatpush2.bf16.msra.mxu0 %v7925_v50 }
  0xd6   :  { %1605 = vmatpush2.bf16.msra.mxu1 %v7927_v53  ;;  %1565 = vmatprep.subr.bf16.mxu0 %v7929_v55 }
  0xd7   :  { %1606 = vmatprep.subr.bf16.mxu1 %v7931_v56  ;;  %v7957_v56 = vld [vmem:[#allocation5 + $0x124] ss:$24 sps:$4 sm:$0xff]  }
  0xd9   :  { %1566 = vmatpush2.bf16.msra.mxu0 %v7937_v58 }
  0xda   :  { %1607 = vmatpush2.bf16.msra.mxu1 %v7939_v59  ;;  %1659 = vmatprep.subr.bf16.mxu0 %v7947_v45  ;;  %v7961_v59 = vld [vmem:[#allocation5 + $0x120] ss:$24 sps:$4 sm:$0xff]  }
  0xdb   :  { %1700 = vmatprep.subr.bf16.mxu1 %v7785_v28  ;;  %v7965_v28 = vld [vmem:[#allocation5 + $0xf4] ss:$24 sps:$4 sm:$0xff]  }
  0xdc   :  { %1568 = vmatmul.mubr.bf16.vlgmr.msra.gmra.mxu0 %v11440_v48 }
  0xdd   :  { %1609 = vmatmul.mubr.bf16.vlgmr.msra.gmra.mxu1 %v11440_v48  ;;  %1660 = vmatpush1.bf16.msra.mxu0 %v7953_v41  ;;  %v7969_v48 = vld [vmem:[#allocation5 + $0xf0] ss:$24 sps:$4 sm:$0xff]  }
  0xde   :  { %1701 = vmatpush1.bf16.msra.mxu1 %v7790_v30  ;;  %1661 = vmatprep.subr.bf16.mxu0 %v7957_v56  ;;  %v7973_v30 = vld [vmem:[#allocation5 + $0xc4] ss:$24 sps:$4 sm:$0xff]  }
  0xdf   :  { %1702 = vmatprep.subr.bf16.mxu1 %v7793_v33  ;;  %v7977_v33 = vld [vmem:[#allocation5 + $0xc0] ss:$24 sps:$4 sm:$0xff]  }
  0xe1   :  { %1662 = vmatpush1.bf16.msra.mxu0 %v7961_v59 }
  0xe2   :  { %1703 = vmatpush1.bf16.msra.mxu1 %v7800_v35  ;;  %1663 = vmatprep.subr.bf16.mxu0 %v7965_v28  ;;  %v7981_v35 = vld [vmem:[#allocation5 + $0x94] ss:$24 sps:$4 sm:$0xff]  }
  0xe3   :  { %1704 = vmatprep.subr.bf16.mxu1 %v7803_v38  ;;  %v7985_v38 = vld [vmem:[#allocation5 + $0x90] ss:$24 sps:$4 sm:$0xff]  }
  0xe5   :  { %1664 = vmatpush1.bf16.msra.mxu0 %v7969_v48 }
  0xe6   :  { %1705 = vmatpush1.bf16.msra.mxu1 %v7805_v40  ;;  %1665 = vmatprep.subr.bf16.mxu0 %v7973_v30  ;;  %v7989_v40 = vld [vmem:[#allocation5 + $0x64] ss:$24 sps:$4 sm:$0xff]  }
  0xe7   :  { %1706 = vmatprep.subr.bf16.mxu1 %v7809_v7  ;;  %v7993_v7 = vld [vmem:[#allocation5 + $0x60] ss:$24 sps:$4 sm:$0xff]  }
  0xe9   :  { %1666 = vmatpush1.bf16.msra.mxu0 %v7977_v33 }
  0xea   :  { %1707 = vmatpush1.bf16.msra.mxu1 %v7813_v43  ;;  %1667 = vmatprep.subr.bf16.mxu0 %v7981_v35  ;;  %v7997_v43 = vld [vmem:[#allocation5 + $0x34] ss:$24 sps:$4 sm:$0xff]  }
  0xeb   :  { %1708 = vmatprep.subr.bf16.mxu1 %v7815_v46  ;;  %v8001_v46 = vld [vmem:[#allocation5 + $0x30] ss:$24 sps:$4 sm:$0xff]  }
  0xed   :  { %1668 = vmatpush1.bf16.msra.mxu0 %v7985_v38 }
  0xee   :  { %1709 = vmatpush1.bf16.msra.mxu1 %v7820_v19  ;;  %1669 = vmatprep.subr.bf16.mxu0 %v7989_v40  ;;  %v8005_v19 = vld [vmem:[#allocation5 + $0x4] ss:$24 sps:$4 sm:$0xff]  }
  0xef   :  { %1710 = vmatprep.subr.bf16.mxu1 %v7823_v49  ;;  %v8009_v49 = vld [vmem:[#allocation5] ss:$24 sps:$4 sm:$0xff]  }
  0xf1   :  { %1670 = vmatpush1.bf16.msra.mxu0 %v7993_v7 }
  0xf2   :  { %1711 = vmatpush1.bf16.msra.mxu1 %v7827_v23  ;;  %1671 = vmatprep.subr.bf16.mxu0 %v7997_v43  ;;  %v8013_v23 = vld [vmem:[#allocation5 + $0x2d4] ss:$24 sps:$4 sm:$0xff]  }
  0xf3   :  { %1712 = vmatprep.subr.bf16.mxu1 %v7829_v54  ;;  %v8017_v54 = vld [vmem:[#allocation5 + $0x2d0] ss:$24 sps:$4 sm:$0xff]  }
  0xf5   :  { %1672 = vmatpush1.bf16.msra.mxu0 %v8001_v46 }
  0xf6   :  { %1713 = vmatpush1.bf16.msra.mxu1 %v7834_v32  ;;  %1673 = vmatprep.subr.bf16.mxu0 %v8005_v19 }
  0xf7   :  { %1714 = vmatprep.subr.bf16.mxu1 %v7837_v57 }
  0xf9   :  { %1674 = vmatpush1.bf16.msra.mxu0 %v8009_v49 }
  0xfa   :  { %1715 = vmatpush1.bf16.msra.mxu1 %v7841_v37  ;;  %1675 = vmatprep.subr.bf16.mxu0 %v8013_v23 }
  0xfb   :  { %1716 = vmatprep.subr.bf16.mxu1 %v7845_v61 }
  0xfd   :  { %1676 = vmatpush2.bf16.msra.mxu0 %v8017_v54 }
  0xfe   :  { %1717 = vmatpush2.bf16.msra.mxu1 %v7852_v44  ;;  %1677 = vmatprep.subr.bf16.mxu0 %v7745_v63  ;;  %v177_v63 = vlaneseq }
  0xff   :  { %1718 = vmatprep.subr.bf16.mxu1 %v7857_v2 }
 0x101   :  { %1678 = vmatpush2.bf16.msra.mxu0 %v7747_v1  ;;  %v8047_v1 = vshrl.u32 %v177_v63, 7 }
 0x102   :  { %1719 = vmatpush2.bf16.msra.mxu1 %v7865_v52  ;;  %1679 = vmatprep.subr.bf16.mxu0 %v7750_v51 }
 0x103   :  { %1720 = vmatprep.subr.bf16.mxu1 %v7869_v8  ;;  %11441 = vst [vmem:[#allocation21_spill] sm:$0xff] %v8047_v1  ;;  %v11015_v51 = vsub.s32 2, %v8047_v1  ;;  %v11018_v32 = vsub.s32 3, %v8047_v1 }
 0x105   :  { %1680 = vmatpush2.bf16.msra.mxu0 %v7752_v4  ;;  %v8055_v4 = vsub.s32 0, %v8047_v1 }
 0x106   :  { %1721 = vmatpush2.bf16.msra.mxu1 %v7877_v12  ;;  %1681 = vmatprep.subr.bf16.mxu0 %v7756_v6  ;;  %v8060_v6 = vld [vmem:[%s11002_s3] sm:$0x3f] }
 0x107   :  { %1722 = vmatprep.subr.bf16.mxu1 %v7881_v16  ;;  %11442 = vst [vmem:[#allocation22_spill] sm:$0xff] %v8055_v4  ;;  %v8100_v63 = vrot.slane %v8060_v6, %v11018_v32 }
 0x109   :  { %1682 = vmatpush2.bf16.msra.mxu0 %v7759_v9  ;;  %11449 = vst [vmem:[#allocation29_spill] sm:$0xff] %v8100_v63 }
 0x10a   :  { %1723 = vmatpush2.bf16.msra.mxu1 %v7889_v21  ;;  %1683 = vmatprep.subr.bf16.mxu0 %v7762_v11 }
 0x10b   :  { %1724 = vmatprep.subr.bf16.mxu1 %v7893_v26 }
 0x10d   :  { %1684 = vmatpush2.bf16.msra.mxu0 %v7764_v13  ;;  %v8069_v13 = vrot.slane %v8060_v6, %v11015_v51 }
 0x10e   :  { %1725 = vmatpush2.bf16.msra.mxu1 %v7901_v34  ;;  %1685 = vmatprep.subr.bf16.mxu0 %v7768_v15 }
 0x10f   :  { %1726 = vmatprep.subr.bf16.mxu1 %v7905_v39 }
 0x111   :  { %1686 = vmatpush2.bf16.msra.mxu0 %v7771_v17 }
 0x112   :  { %1727 = vmatpush2.bf16.msra.mxu1 %v7913_v42  ;;  %1687 = vmatprep.subr.bf16.mxu0 %v7774_v20  ;;  %v8077_v20 = vrot.slane %v8060_v6, %v8055_v4 }
 0x113   :  { %1728 = vmatprep.subr.bf16.mxu1 %v7917_v47 }
 0x115   :  { %1688 = vmatpush2.bf16.msra.mxu0 %v7776_v22 }
 0x116   :  { %1729 = vmatpush2.bf16.msra.mxu1 %v7925_v50  ;;  %1689 = vmatprep.subr.bf16.mxu0 %v7780_v25 }
 0x117   :  { %1730 = vmatprep.subr.bf16.mxu1 %v7929_v55 }
 0x119   :  { %1690 = vmatpush2.bf16.msra.mxu0 %v7783_v27  ;;  %v8080_v27 = vsub.s32 1, %v8047_v1 }
 0x11a   :  { %1731 = vmatpush2.bf16.msra.mxu1 %v7937_v58  ;;  %1741 = vmatprep.subr.bf16.mxu0 %v7788_v29 }
 0x11b   :  { %1825 = vmatprep.subr.bf16.mxu1 %v7947_v45  ;;  %11443 = vst [vmem:[#allocation23_spill] sm:$0xff] %v8080_v27  ;;  %v8095_v52 = vrot.slane %v8060_v6, %v8080_v27 }
 0x11c   :  { %v8062_v9 = vpop.f32.mrf.mxu0 }
 0x11d   :  { %v8064_v11 = vpop.f32.mrf.mxu1  ;;  %11448 = vst [vmem:[#allocation28_spill] sm:$0xff] %v8095_v52 }
 0x11e   :  { %v8071_v15 = vpop.f32.mrf.mxu0 }
 0x11f   :  { %v8073_v17 = vpop.f32.mrf.mxu1 }
 0x120   :  { %v725_v22 = vpop.f32.mrf.mxu0 }
 0x121   :  { %v798_v25 = vpop.f32.mrf.mxu1  ;;  %v8083_v29 = vadd.f32 %v725_v22, %v8077_v20 }
 0x122   :  { %v8087_v57 = vadd.f32 %v798_v25, %v8069_v13  ;;  %v8089_v37 = vpop.f32.mrf.mxu0 }
 0x123   :  { %11444 = vst [vmem:[#allocation24_spill] sm:$0xff] %v8083_v29  ;;  %11446 = vst [vmem:[#allocation26_spill] sm:$0xff] %v8089_v37  ;;  %v8091_v61 = vpop.f32.mrf.mxu1 }
 0x124   :  { %11445 = vst [vmem:[#allocation25_spill] sm:$0xff] %v8087_v57  ;;  %11447 = vst [vmem:[#allocation27_spill] sm:$0xff] %v8091_v61  ;;  %v731_v44 = vpop.f32.mrf.mxu0 }
 0x125   :  { %v804_v2 = vpop.f32.mrf.mxu1  ;;  %v8103_v22 = vadd.f32 %v731_v44, %v8077_v20 }
 0x126   :  { %v8106_v25 = vadd.f32 %v804_v2, %v8069_v13  ;;  %v733_v51 = vpop.f32.mrf.mxu0 }
 0x127   :  { %11450 = vst [vmem:[#allocation30_spill] sm:$0xff] %v8103_v22  ;;  %v806_v57 = vpop.f32.mrf.mxu1  ;;  %v8109_v61 = vadd.f32 %v733_v51, %v8095_v52 }
 0x128   :  { %11451 = vst [vmem:[#allocation31_spill] sm:$0xff] %v8106_v25  ;;  %v8112_v29 = vadd.f32 %v806_v57, %v8100_v63  ;;  %v735_v37 = vpop.f32.mrf.mxu0 }
 0x129   :  { %11452 = vst [vmem:[#allocation32_spill] sm:$0xff] %v8109_v61  ;;  %v808_v45 = vpop.f32.mrf.mxu1  ;;  %v8115_v58 = vadd.f32 %v735_v37, %v8077_v20 }
 0x12a   :  { %11453 = vst [vmem:[#allocation33_spill] sm:$0xff] %v8112_v29  ;;  %v8118_v32 = vadd.f32 %v808_v45, %v8069_v13  ;;  %v8120_v44 = vpop.f32.mrf.mxu0 }
 0x12b   :  { %11454 = vst [vmem:[#allocation34_spill] sm:$0xff] %v8115_v58  ;;  %11456 = vst [vmem:[#allocation36_spill] sm:$0xff] %v8120_v44  ;;  %v8122_v2 = vpop.f32.mrf.mxu1 }
 0x12c   :  { %11455 = vst [vmem:[#allocation35_spill] sm:$0xff] %v8118_v32  ;;  %11457 = vst [vmem:[#allocation37_spill] sm:$0xff] %v8122_v2  ;;  %v741_v25 = vpop.f32.mrf.mxu0 }
 0x12d   :  { %v814_v22 = vpop.f32.mrf.mxu1  ;;  %v8125_v51 = vadd.f32 %v741_v25, %v8077_v20 }
 0x12e   :  { %v8128_v57 = vadd.f32 %v814_v22, %v8069_v13  ;;  %v743_v29 = vpop.f32.mrf.mxu0 }
 0x12f   :  { %11458 = vst [vmem:[#allocation38_spill] sm:$0xff] %v8125_v51  ;;  %v816_v61 = vpop.f32.mrf.mxu1  ;;  %v8131_v37 = vadd.f32 %v743_v29, %v8095_v52 }
 0x130   :  { %11459 = vst [vmem:[#allocation39_spill] sm:$0xff] %v8128_v57  ;;  %v8134_v45 = vadd.f32 %v816_v61, %v8100_v63  ;;  %v745_v32 = vpop.f32.mrf.mxu0 }
 0x131   :  { %11460 = vst [vmem:[#allocation40_spill] sm:$0xff] %v8131_v37  ;;  %v818_v58 = vpop.f32.mrf.mxu1  ;;  %v8137_v2 = vadd.f32 %v745_v32, %v8077_v20 }
 0x132   :  { %11461 = vst [vmem:[#allocation41_spill] sm:$0xff] %v8134_v45  ;;  %v8140_v44 = vadd.f32 %v818_v58, %v8069_v13  ;;  %v8142_v25 = vpop.f32.mrf.mxu0 }
 0x133   :  { %11462 = vst [vmem:[#allocation42_spill] sm:$0xff] %v8137_v2  ;;  %11464 = vst [vmem:[#allocation44_spill] sm:$0xff] %v8142_v25  ;;  %v8144_v22 = vpop.f32.mrf.mxu1 }
 0x134   :  { %11463 = vst [vmem:[#allocation43_spill] sm:$0xff] %v8140_v44  ;;  %11465 = vst [vmem:[#allocation45_spill] sm:$0xff] %v8144_v22  ;;  %v751_v57 = vpop.f32.mrf.mxu0 }
 0x135   :  { %v824_v51 = vpop.f32.mrf.mxu1  ;;  %v8147_v29 = vadd.f32 %v751_v57, %v8077_v20 }
 0x136   :  { %v8150_v61 = vadd.f32 %v824_v51, %v8069_v13  ;;  %v753_v45 = vpop.f32.mrf.mxu0 }
 0x137   :  { %11466 = vst [vmem:[#allocation46_spill] sm:$0xff] %v8147_v29  ;;  %v826_v37 = vpop.f32.mrf.mxu1  ;;  %v8153_v32 = vadd.f32 %v753_v45, %v8095_v52 }
 0x138   :  { %11467 = vst [vmem:[#allocation47_spill] sm:$0xff] %v8150_v61  ;;  %v8156_v58 = vadd.f32 %v826_v37, %v8100_v63  ;;  %v755_v44 = vpop.f32.mrf.mxu0  ;;  %v11022_v61 = vsub.s32 4, %v8047_v1 }
 0x139   :  { %11468 = vst [vmem:[#allocation48_spill] sm:$0xff] %v8153_v32  ;;  %v828_v2 = vpop.f32.mrf.mxu1  ;;  %v8159_v22 = vadd.f32 %v755_v44, %v8077_v20 }
 0x13a   :  { %11469 = vst [vmem:[#allocation49_spill] sm:$0xff] %v8156_v58  ;;  %v8162_v25 = vadd.f32 %v828_v2, %v8069_v13  ;;  %v8166_v51 = vpop.f32.mrf.mxu0  ;;  %v8176_v44 = vrot.slane %v8060_v6, %v11022_v61 }
 0x13b   :  { %11470 = vst [vmem:[#allocation50_spill] sm:$0xff] %v8159_v22  ;;  %v8164_v57 = vpop.f32.mrf.mxu1  ;;  %11473 = vst [vmem:[#allocation53_spill] sm:$0xff] %v8166_v51 }
 0x13c   :  { %11471 = vst [vmem:[#allocation51_spill] sm:$0xff] %v8162_v25  ;;  %11472 = vst [vmem:[#allocation52_spill] sm:$0xff] %v8164_v57  ;;  %v11026_v25 = vsub.s32 5, %v8047_v1 }
 0x13e   :  { %v8187_v50 = vrot.slane %v8060_v6, %v11026_v25 }
 0x140   :  { %11476 = vst [vmem:[#allocation56_spill] sm:$0xff] %v8187_v50 }
 0x15c   :  { %v8169_v29 = vpop.f32.mrf.mxu0 }
 0x15d   :  { %v1528_v45 = vpop.f32.mrf.mxu1 }
 0x15e   :  { %v8171_v32 = vpop.f32.mrf.mxu0 }
 0x15f   :  { %v1530_v37 = vpop.f32.mrf.mxu1 }
 0x160   :  { %v871_v22 = vpop.f32.mrf.mxu0 }
 0x161   :  { %v1532_v2 = vpop.f32.mrf.mxu1  ;;  %v8180_v57 = vadd.f32 %v871_v22, %v8176_v44 }
 0x162   :  { %v8182_v51 = vpop.f32.mrf.mxu0 }
 0x163   :  { %11474 = vst [vmem:[#allocation54_spill] sm:$0xff] %v8180_v57  ;;  %11475 = vst [vmem:[#allocation55_spill] sm:$0xff] %v8182_v51  ;;  %v1533_v58 = vpop.f32.mrf.mxu1 }
 0x164   :  { %v877_v55 = vpop.f32.mrf.mxu0 }
 0x165   :  { %v8190_v47 = vadd.f32 %v877_v55, %v8176_v44 }
 0x166   :  { %v879_v61 = vpop.f32.mrf.mxu0 }
 0x167   :  { %11477 = vst [vmem:[#allocation57_spill] sm:$0xff] %v8190_v47  ;;  %v8193_v2 = vadd.f32 %v879_v61, %v8187_v50 }
 0x168   :  { %v881_v42 = vpop.f32.mrf.mxu0 }
 0x169   :  { %11478 = vst [vmem:[#allocation58_spill] sm:$0xff] %v8193_v2  ;;  %v8196_v22 = vadd.f32 %v881_v42, %v8176_v44 }
 0x16a   :  { %v8198_v57 = vpop.f32.mrf.mxu0 }
 0x16b   :  { %11479 = vst [vmem:[#allocation59_spill] sm:$0xff] %v8196_v22  ;;  %11480 = vst [vmem:[#allocation60_spill] sm:$0xff] %v8198_v57  ;;  %v722_v57 = vadd.f32 %v8062_v9, %v8077_v20 }
 0x16c   :  { %v887_v58 = vpop.f32.mrf.mxu0 }
 0x16d   :  { %v8201_v51 = vadd.f32 %v887_v58, %v8176_v44 }
 0x16e   :  { %v889_v1 = vpop.f32.mrf.mxu0 }
 0x16f   :  { %11481 = vst [vmem:[#allocation61_spill] sm:$0xff] %v8201_v51  ;;  %v8204_v6 = vadd.f32 %v889_v1, %v8187_v50  ;;  %v724_v1 = vadd.f32 %v8071_v15, %v8095_v52  ;;  %v795_v15 = vadd.f32 %v8064_v11, %v8069_v13 }
 0x170   :  { %v891_v55 = vpop.f32.mrf.mxu0 }
 0x171   :  { %11482 = vst [vmem:[#allocation62_spill] sm:$0xff] %v8204_v6  ;;  %v8207_v25 = vadd.f32 %v891_v55, %v8176_v44  ;;  %v1617_v6 = vadd.f32 %v1528_v45, %v722_v57 }
 0x172   :  { %v8209_v61 = vpop.f32.mrf.mxu0 }
 0x173   :  { %11483 = vst [vmem:[#allocation63_spill] sm:$0xff] %v8207_v25  ;;  %11484 = vst [vmem:[#allocation64_spill] sm:$0xff] %v8209_v61  ;;  %v1618_v25 = vadd.f32 %v1530_v37, %v724_v1  ;;  %v1619_v61 = vsub.f32 0.0, %v1617_v6 }
 0x174   :  { %v897_v2 = vpop.f32.mrf.mxu0 }
 0x175   :  { %v8212_v42 = vadd.f32 %v897_v2, %v8176_v44  ;;  %v1620_v47 = vsub.f32 0.0, %v1618_v25  ;;  %v1621_v2 = vmul.f32 1.442695, %v1619_v61  ;;  %v1002_v25 = vld [vmem:[%s11003_s4] sm:$0x3] }
 0x176   :  { %v899_v22 = vpop.f32.mrf.mxu0  ;;  %v8234_v61 = vrot.slane %v1002_v25, %v8055_v4 }
 0x177   :  { %11485 = vst [vmem:[#allocation65_spill] sm:$0xff] %v8212_v42  ;;  %v8217_v58 = vadd.f32 %v899_v22, %v8187_v50  ;;  %v1623_v42 = vmul.f32 1.442695, %v1620_v47  ;;  %6874 = vpow2.f32 %v1621_v2  ;;  %v797_v47 = vadd.f32 %v8073_v17, %v8100_v63 }
 0x178   :  { %v901_v51 = vpop.f32.mrf.mxu0 }
 0x179   :  { %11486 = vst [vmem:[#allocation66_spill] sm:$0xff] %v8217_v58  ;;  %v8222_v55 = vadd.f32 %v901_v51, %v8176_v44  ;;  %6876 = vpow2.f32 %v1623_v42 }
 0x17a   :  { %v8224_v58 = vpop.f32.mrf.mxu0 }
 0x17b   :  { %11487 = vst [vmem:[#allocation67_spill] sm:$0xff] %v8222_v55  ;;  %11488 = vst [vmem:[#allocation68_spill] sm:$0xff] %v8224_v58  ;;  %v8385_v58 = vld [vmem:[#allocation5 + $0x12c] ss:$24 sps:$4 sm:$0xff]  }
 0x17c   :  { %11512 = vst [vmem:[#allocation82_spill] sm:$0xff] %v8385_v58 }
 0x184   :  { %v6875_v39 = vpop.eup %6874 }
 0x185   :  { %v1625_v20 = vadd.f32 1.0, %v6875_v39 }
 0x186   :  { %v6877_v9 = vpop.eup %6876 }
 0x187   :  { %v1626_v22 = vadd.f32 1.0, %v6877_v9  ;;  %6878 = vrcp.f32 %v1625_v20  ;;  %v8237_v9 = vrot.slane %v1002_v25, %v8080_v27  ;;  %v870_v25 = vadd.f32 %v8171_v32, %v8187_v50  ;;  %v8375_v27 = vld [vmem:[#allocation5 + $0x180] ss:$24 sps:$4 sm:$0xff]  }
 0x188   :  { %11509 = vst [vmem:[#allocation79_spill] sm:$0xff] %v8375_v27 }
 0x189   :  { %6880 = vrcp.f32 %v1626_v22 }
 0x19c   :  { %v1569_v57 = vpop.f32.mrf.mxu0 }
 0x19d   :  { %v1610_v51 = vpop.f32.mrf.mxu1  ;;  %v1629_v45 = vadd.f32 %v1569_v57, %v795_v15 }
 0x19e   :  { %v1571_v37 = vpop.f32.mrf.mxu0  ;;  %v1641_v17 = vadd.f32 %v1610_v51, %v8234_v61 }
 0x19f   :  { %v1612_v39 = vpop.f32.mrf.mxu1  ;;  %v1631_v6 = vsub.f32 0.0, %v1629_v45  ;;  %v1630_v42 = vadd.f32 %v1571_v37, %v797_v47  ;;  %v6879_v45 = vpop.eup %6878  ;;  %v868_v47 = vadd.f32 %v8169_v29, %v8176_v44 }
 0x1a0   :  { %v1573_v1 = vpop.f32.mrf.mxu0  ;;  %v1642_v57 = vadd.f32 %v1612_v39, %v8237_v9  ;;  %v1643_v4 = vmul.f32 %v6879_v45, %v1641_v17  ;;  %v6881_v55 = vpop.eup %6880  ;;  %v8257_v45 = vld [vmem:[#allocation5 + $0x160] ss:$24 sps:$4 sm:$0xff]  }
 0x1a1   :  { %v1614_v11 = vpop.f32.mrf.mxu1  ;;  %v1633_v13 = vmul.f32 1.442695, %v1631_v6  ;;  %v1632_v2 = vsub.f32 0.0, %v1630_v42 }
 0x1a2   :  { %v1574_v20 = vpop.f32.mrf.mxu0  ;;  %v1644_v37 = vmul.f32 %v6881_v55, %v1642_v57  ;;  %v1645_v6 = vadd.f32 %v1643_v4, %v868_v47  ;;  %v8260_v47 = vld [vmem:[#allocation5 + $0x134] ss:$24 sps:$4 sm:$0xff]  }
 0x1a3   :  { %v1615_v22 = vpop.f32.mrf.mxu1  ;;  %6882 = vpow2.f32 %v1633_v13  ;;  %v1635_v15 = vmul.f32 1.442695, %v1632_v2 }
 0x1a4   :  { %v1646_v42 = vadd.f32 %v1644_v37, %v870_v25  ;;  %v8265_v37 = vld [vmem:[#allocation5 + $0x130] ss:$24 sps:$4 sm:$0xff]   ;;  %v8268_v25 = vld [vmem:[#allocation5 + $0x104] ss:$24 sps:$4 sm:$0xff]  }
 0x1a5   :  { %6884 = vpow2.f32 %v1635_v15 }
 0x1a6   :  { %6886 = vtanh.f32 %v1645_v6  ;;  %v8273_v6 = vld [vmem:[#allocation5 + $0x100] ss:$24 sps:$4 sm:$0xff]  }
 0x1a7   :  { %6888 = vtanh.f32 %v1646_v42  ;;  %v8276_v42 = vld [vmem:[#allocation5 + $0xd4] ss:$24 sps:$4 sm:$0xff]  }
 0x1b0   :  { %v6883_v1 = vpop.eup %6882 }
 0x1b1   :  { %v1637_v11 = vadd.f32 1.0, %v6883_v1  ;;  %v8281_v1 = vld [vmem:[#allocation5 + $0xd0] ss:$24 sps:$4 sm:$0xff]  }
 0x1b2   :  { %v6885_v51 = vpop.eup %6884 }
 0x1b3   :  { %6890 = vrcp.f32 %v1637_v11  ;;  %v1638_v13 = vadd.f32 1.0, %v6885_v51  ;;  %v6887_v39 = vpop.eup %6886  ;;  %v8284_v11 = vld [vmem:[#allocation5 + $0xa4] ss:$24 sps:$4 sm:$0xff]   ;;  %v8289_v51 = vld [vmem:[#allocation5 + $0xa0] ss:$24 sps:$4 sm:$0xff]  }
 0x1b4   :  { %v6889_v2 = vpop.eup %6888  ;;  %v1649_v20 = vsub.f32 0.0, %v6887_v39 }
 0x1b5   :  { %6892 = vrcp.f32 %v1638_v13  ;;  %v1650_v17 = vsub.f32 0.0, %v6889_v2  ;;  %v8292_v13 = vld [vmem:[#allocation5 + $0x74] ss:$24 sps:$4 sm:$0xff]  }
 0x1c0   :  { %v6891_v22 = vpop.eup %6890 }
 0x1c1   :  { %v1651_v29 = vmul.f32 %v6891_v22, %v1649_v20  ;;  %v8305_v20 = vld [vmem:[#allocation5 + $0x40] ss:$24 sps:$4 sm:$0xff]   ;;  %v8308_v22 = vld [vmem:[#allocation5 + $0x14] ss:$24 sps:$4 sm:$0xff]  }
 0x1c2   :  { %v6893_v44 = vpop.eup %6892 }
 0x1c3   :  { %v1652_v55 = vmul.f32 %v6893_v44, %v1650_v17  ;;  %v8245_v15 = vadd.f32 %v6887_v39, %v1651_v29  ;;  %v8297_v39 = vld [vmem:[#allocation5 + $0x70] ss:$24 sps:$4 sm:$0xff]   ;;  %v8320_v17 = vld [vmem:[#allocation5 + $0x2a4] ss:$24 sps:$4 sm:$0xff]   ;;  %v8357_v44 = vld [vmem:[#allocation5 + $0x1e0] ss:$24 sps:$4 sm:$0xff]  }
 0x1c4   :  { %v8352_v29 = vld [vmem:[#allocation5 + $0x1e4] ss:$24 sps:$4 sm:$0xff]  }
 0x1c5   :  { %11489 = vst [vmem:[#allocation69_spill] sm:$0xff] %v8245_v15  ;;  %v8247_v4 = vadd.f32 %v6889_v2, %v1652_v55  ;;  %v8253_v57 = vpack.c.bf16 %v8245_v15, %v8245_v15  ;;  %v8300_v2 = vld [vmem:[#allocation5 + $0x44] ss:$24 sps:$4 sm:$0xff]   ;;  %11499 = vst [vmem:[#allocation77_spill] sm:$0xff] %v8352_v29  ;;  %v8360_v55 = vld [vmem:[#allocation5 + $0x1b4] ss:$24 sps:$4 sm:$0xff]  }
 0x1c7   :  { %11490 = vst [vmem:[#allocation70_spill] sm:$0xff] %v8247_v4  ;;  %v1658_v32 = vpack.c.bf16 %v8247_v4, %v8247_v4 }
 0x1c9   :  { %1691 = vmatprep.mubr.bf16.mxu0 %v1658_v32  ;;  %1732 = vmatprep.mubr.bf16.mxu1 %v1658_v32 }
 0x1ca   :  { %1692 = vmatmul.mubr.bf16.vlgmr.msra.gmra.mxu0 %v8253_v57  ;;  %1733 = vmatmul.mubr.bf16.vlgmr.msra.gmra.mxu1 %v8253_v57 }
 0x1cb   :  { %1742 = vmatpush1.bf16.msra.mxu0 %v8257_v45  ;;  %1773 = vmatprep.mubr.bf16.mxu0 %v1658_v32  ;;  %v8365_v32 = vld [vmem:[#allocation5 + $0x1b0] ss:$24 sps:$4 sm:$0xff]  }
 0x1cc   :  { %1743 = vmatprep.subr.bf16.mxu0 %v8260_v47  ;;  %1826 = vmatpush1.bf16.msra.mxu1 %v7953_v41 }
 0x1cd   :  { %1827 = vmatprep.subr.bf16.mxu1 %v7957_v56 }
 0x1cf   :  { %1744 = vmatpush1.bf16.msra.mxu0 %v8265_v37 }
 0x1d0   :  { %1745 = vmatprep.subr.bf16.mxu0 %v8268_v25  ;;  %1828 = vmatpush1.bf16.msra.mxu1 %v7961_v59 }
 0x1d1   :  { %1829 = vmatprep.subr.bf16.mxu1 %v7965_v28 }
 0x1d3   :  { %1746 = vmatpush1.bf16.msra.mxu0 %v8273_v6 }
 0x1d4   :  { %1747 = vmatprep.subr.bf16.mxu0 %v8276_v42  ;;  %1830 = vmatpush1.bf16.msra.mxu1 %v7969_v48 }
 0x1d5   :  { %1831 = vmatprep.subr.bf16.mxu1 %v7973_v30 }
 0x1d7   :  { %1748 = vmatpush1.bf16.msra.mxu0 %v8281_v1 }
 0x1d8   :  { %1749 = vmatprep.subr.bf16.mxu0 %v8284_v11  ;;  %1832 = vmatpush1.bf16.msra.mxu1 %v7977_v33 }
 0x1d9   :  { %1833 = vmatprep.subr.bf16.mxu1 %v7981_v35 }
 0x1db   :  { %1750 = vmatpush1.bf16.msra.mxu0 %v8289_v51 }
 0x1dc   :  { %1751 = vmatprep.subr.bf16.mxu0 %v8292_v13  ;;  %1834 = vmatpush1.bf16.msra.mxu1 %v7985_v38 }
 0x1dd   :  { %1835 = vmatprep.subr.bf16.mxu1 %v7989_v40 }
 0x1df   :  { %1752 = vmatpush1.bf16.msra.mxu0 %v8297_v39 }
 0x1e0   :  { %1753 = vmatprep.subr.bf16.mxu0 %v8300_v2  ;;  %1836 = vmatpush1.bf16.msra.mxu1 %v7993_v7 }
 0x1e1   :  { %1837 = vmatprep.subr.bf16.mxu1 %v7997_v43 }
 0x1e3   :  { %1754 = vmatpush1.bf16.msra.mxu0 %v8305_v20 }
 0x1e4   :  { %1755 = vmatprep.subr.bf16.mxu0 %v8308_v22  ;;  %1838 = vmatpush1.bf16.msra.mxu1 %v8001_v46 }
 0x1e5   :  { %1839 = vmatprep.subr.bf16.mxu1 %v8005_v19 }
 0x1e7   :  { %1756 = vmatpush1.bf16.msra.mxu0 %v7843_v60  ;;  %v8325_v60 = vld [vmem:[#allocation5 + $0x2a0] ss:$24 sps:$4 sm:$0xff]  }
 0x1e8   :  { %1757 = vmatprep.subr.bf16.mxu0 %v7847_v62  ;;  %1840 = vmatpush1.bf16.msra.mxu1 %v8009_v49  ;;  %11491 = vst [vmem:[#allocation71_spill] sm:$0xff] %v8325_v60  ;;  %v8328_v62 = vld [vmem:[#allocation5 + $0x274] ss:$24 sps:$4 sm:$0xff]  }
 0x1e9   :  { %1841 = vmatprep.subr.bf16.mxu1 %v8013_v23  ;;  %11492 = vst [vmem:[#allocation72_spill] sm:$0xff] %v8328_v62 }
 0x1eb   :  { %1758 = vmatpush2.bf16.msra.mxu0 %v7854_v0  ;;  %v8333_v0 = vld [vmem:[#allocation5 + $0x270] ss:$24 sps:$4 sm:$0xff]  }
 0x1ec   :  { %1759 = vmatprep.subr.bf16.mxu0 %v7859_v3  ;;  %1842 = vmatpush2.bf16.msra.mxu1 %v8017_v54  ;;  %11493 = vst [vmem:[#allocation73_spill] sm:$0xff] %v8333_v0  ;;  %v8336_v3 = vld [vmem:[#allocation5 + $0x244] ss:$24 sps:$4 sm:$0xff]  }
 0x1ed   :  { %1843 = vmatprep.subr.bf16.mxu1 %v8320_v17  ;;  %11494 = vst [vmem:[#allocation74_spill] sm:$0xff] %v8336_v3 }
 0x1ef   :  { %1760 = vmatpush2.bf16.msra.mxu0 %v7867_v5  ;;  %v8341_v5 = vld [vmem:[#allocation5 + $0x240] ss:$24 sps:$4 sm:$0xff]  }
 0x1f0   :  { %1761 = vmatprep.subr.bf16.mxu0 %v7871_v10  ;;  %1844 = vmatpush2.bf16.msra.mxu1 %v8325_v60  ;;  %11495 = vst [vmem:[#allocation75_spill] sm:$0xff] %v8341_v5  ;;  %v8344_v10 = vld [vmem:[#allocation5 + $0x214] ss:$24 sps:$4 sm:$0xff]  }
 0x1f1   :  { %1845 = vmatprep.subr.bf16.mxu1 %v8328_v62  ;;  %11496 = vst [vmem:[#allocation76_spill] sm:$0xff] %v8344_v10 }
 0x1f3   :  { %1762 = vmatpush2.bf16.msra.mxu0 %v7879_v14  ;;  %v11497_v14 = vld [vmem:[#allocation10_spill] sm:$0xff] }
 0x1f4   :  { %1763 = vmatprep.subr.bf16.mxu0 %v7883_v18  ;;  %1846 = vmatpush2.bf16.msra.mxu1 %v8333_v0  ;;  %v8349_v18 = vld [vmem:[#allocation5 + $0x210] ss:$24 sps:$4 sm:$0xff]  }
 0x1f5   :  { %1847 = vmatprep.subr.bf16.mxu1 %v8336_v3  ;;  %11498 = vst [vmem:[#allocation10_spill] sm:$0xff] %v8349_v18 }
 0x1f7   :  { %1764 = vmatpush2.bf16.msra.mxu0 %v7891_v24  ;;  %v11500_v24 = vld [vmem:[#allocation12_spill] sm:$0xff] }
 0x1f8   :  { %1765 = vmatprep.subr.bf16.mxu0 %v7895_v31  ;;  %1848 = vmatpush2.bf16.msra.mxu1 %v8341_v5  ;;  %v11501_v31 = vld [vmem:[#allocation14_spill] sm:$0xff]  ;;  %11502 = vst [vmem:[#allocation12_spill] sm:$0xff] %v8357_v44 }
 0x1f9   :  { %1849 = vmatprep.subr.bf16.mxu1 %v8344_v10  ;;  %11503 = vst [vmem:[#allocation14_spill] sm:$0xff] %v8360_v55  ;;  %v11540_v10 = vld [vmem:[#allocation25_spill] sm:$0xff] }
 0x1fb   :  { %1766 = vmatpush2.bf16.msra.mxu0 %v7903_v36  ;;  %v11504_v36 = vld [vmem:[#allocation17_spill] sm:$0xff] }
 0x1fc   :  { %1767 = vmatprep.subr.bf16.mxu0 %v11497_v14  ;;  %1850 = vmatpush2.bf16.msra.mxu1 %v8349_v18  ;;  %11505 = vst [vmem:[#allocation17_spill] sm:$0xff] %v8365_v32  ;;  %v8368_v14 = vld [vmem:[#allocation5 + $0x184] ss:$24 sps:$4 sm:$0xff]  }
 0x1fd   :  { %1851 = vmatprep.subr.bf16.mxu1 %v8352_v29  ;;  %11506 = vst [vmem:[#allocation78_spill] sm:$0xff] %v8368_v14 }
 0x1ff   :  { %1768 = vmatpush2.bf16.msra.mxu0 %v11500_v24  ;;  %v11507_v24 = vld [vmem:[#allocation19_spill] sm:$0xff] }
 0x200   :  { %1769 = vmatprep.subr.bf16.mxu0 %v11501_v31  ;;  %1852 = vmatpush2.bf16.msra.mxu1 %v8357_v44  ;;  %v8372_v31 = vld [vmem:[#allocation5 + $0x15c] ss:$24 sps:$4 sm:$0xff]  }
 0x201   :  { %1853 = vmatprep.subr.bf16.mxu1 %v8360_v55  ;;  %11508 = vst [vmem:[#allocation19_spill] sm:$0xff] %v8372_v31 }
 0x203   :  { %1770 = vmatpush2.bf16.msra.mxu0 %v7927_v53  ;;  %v8378_v53 = vld [vmem:[#allocation5 + $0x164] ss:$24 sps:$4 sm:$0xff]  }
 0x204   :  { %1771 = vmatprep.subr.bf16.mxu0 %v11504_v36  ;;  %1854 = vmatpush2.bf16.msra.mxu1 %v8365_v32  ;;  %11510 = vst [vmem:[#allocation80_spill] sm:$0xff] %v8378_v53  ;;  %v8382_v36 = vld [vmem:[#allocation5 + $0x158] ss:$24 sps:$4 sm:$0xff]  }
 0x205   :  { %1855 = vmatprep.subr.bf16.mxu1 %v8368_v14  ;;  %11511 = vst [vmem:[#allocation81_spill] sm:$0xff] %v8382_v36 }
 0x207   :  { %1772 = vmatpush2.bf16.msra.mxu0 %v11507_v24  ;;  %v8388_v24 = vld [vmem:[#allocation5 + $0x128] ss:$24 sps:$4 sm:$0xff]  }
 0x208   :  { %1866 = vmatprep.subr.bf16.mxu0 %v8372_v31  ;;  %1856 = vmatpush2.bf16.msra.mxu1 %v8375_v27  ;;  %11513 = vst [vmem:[#allocation83_spill] sm:$0xff] %v8388_v24  ;;  %v8391_v31 = vld [vmem:[#allocation5 + $0xfc] ss:$24 sps:$4 sm:$0xff]   ;;  %v8394_v27 = vld [vmem:[#allocation5 + $0xf8] ss:$24 sps:$4 sm:$0xff]  }
 0x209   :  { %1907 = vmatprep.subr.bf16.mxu1 %v8378_v53  ;;  %11514 = vst [vmem:[#allocation84_spill] sm:$0xff] %v8391_v31  ;;  %11515 = vst [vmem:[#allocation85_spill] sm:$0xff] %v8394_v27 }
 0x20a   :  { %1774 = vmatmul.mubr.bf16.vlgmr.msra.gmra.mxu0 %v8253_v57  ;;  %v8397_v57 = vld [vmem:[#allocation5 + $0xcc] ss:$24 sps:$4 sm:$0xff]  }
 0x20b   :  { %1867 = vmatpush1.bf16.msra.mxu0 %v8382_v36  ;;  %11516 = vst [vmem:[#allocation86_spill] sm:$0xff] %v8397_v57  ;;  %v8400_v36 = vld [vmem:[#allocation5 + $0xc8] ss:$24 sps:$4 sm:$0xff]  }
 0x20c   :  { %1868 = vmatprep.subr.bf16.mxu0 %v8385_v58  ;;  %11517 = vst [vmem:[#allocation87_spill] sm:$0xff] %v8400_v36  ;;  %v8403_v58 = vld [vmem:[#allocation5 + $0x9c] ss:$24 sps:$4 sm:$0xff]  }
 0x20d   :  { %11518 = vst [vmem:[#allocation88_spill] sm:$0xff] %v8403_v58 }
 0x20f   :  { %1869 = vmatpush1.bf16.msra.mxu0 %v8388_v24  ;;  %v8406_v24 = vld [vmem:[#allocation5 + $0x98] ss:$24 sps:$4 sm:$0xff]  }
 0x210   :  { %1870 = vmatprep.subr.bf16.mxu0 %v8391_v31  ;;  %11519 = vst [vmem:[#allocation89_spill] sm:$0xff] %v8406_v24  ;;  %v8409_v31 = vld [vmem:[#allocation5 + $0x6c] ss:$24 sps:$4 sm:$0xff]  }
 0x211   :  { %11520 = vst [vmem:[#allocation90_spill] sm:$0xff] %v8409_v31 }
 0x213   :  { %1871 = vmatpush1.bf16.msra.mxu0 %v8394_v27  ;;  %v8412_v27 = vld [vmem:[#allocation5 + $0x68] ss:$24 sps:$4 sm:$0xff]  }
 0x214   :  { %1872 = vmatprep.subr.bf16.mxu0 %v8397_v57  ;;  %11521 = vst [vmem:[#allocation91_spill] sm:$0xff] %v8412_v27  ;;  %v8415_v57 = vld [vmem:[#allocation5 + $0x3c] ss:$24 sps:$4 sm:$0xff]  }
 0x215   :  { %11522 = vst [vmem:[#allocation92_spill] sm:$0xff] %v8415_v57 }
 0x217   :  { %1873 = vmatpush1.bf16.msra.mxu0 %v8400_v36  ;;  %v8418_v36 = vld [vmem:[#allocation5 + $0x38] ss:$24 sps:$4 sm:$0xff]  }
 0x218   :  { %1874 = vmatprep.subr.bf16.mxu0 %v8403_v58  ;;  %11523 = vst [vmem:[#allocation93_spill] sm:$0xff] %v8418_v36  ;;  %v8421_v58 = vld [vmem:[#allocation5 + $0xc] ss:$24 sps:$4 sm:$0xff]  }
 0x219   :  { %11524 = vst [vmem:[#allocation94_spill] sm:$0xff] %v8421_v58 }
 0x21b   :  { %1875 = vmatpush1.bf16.msra.mxu0 %v8406_v24  ;;  %v8424_v24 = vld [vmem:[#allocation5 + $0x8] ss:$24 sps:$4 sm:$0xff]  }
 0x21c   :  { %1876 = vmatprep.subr.bf16.mxu0 %v8409_v31  ;;  %11525 = vst [vmem:[#allocation95_spill] sm:$0xff] %v8424_v24  ;;  %v8427_v31 = vld [vmem:[#allocation5 + $0x2dc] ss:$24 sps:$4 sm:$0xff]  }
 0x21d   :  { %11526 = vst [vmem:[#allocation96_spill] sm:$0xff] %v8427_v31 }
 0x21f   :  { %1877 = vmatpush1.bf16.msra.mxu0 %v8412_v27  ;;  %v8430_v27 = vld [vmem:[#allocation5 + $0x2d8] ss:$24 sps:$4 sm:$0xff]  }
 0x220   :  { %1878 = vmatprep.subr.bf16.mxu0 %v8415_v57  ;;  %11527 = vst [vmem:[#allocation97_spill] sm:$0xff] %v8430_v27  ;;  %v8433_v57 = vld [vmem:[#allocation5 + $0x2ac] ss:$24 sps:$4 sm:$0xff]  }
 0x221   :  { %11528 = vst [vmem:[#allocation98_spill] sm:$0xff] %v8433_v57 }
 0x223   :  { %1879 = vmatpush1.bf16.msra.mxu0 %v8418_v36  ;;  %v8436_v36 = vld [vmem:[#allocation5 + $0x2a8] ss:$24 sps:$4 sm:$0xff]  }
 0x224   :  { %1880 = vmatprep.subr.bf16.mxu0 %v8421_v58  ;;  %11529 = vst [vmem:[#allocation99_spill] sm:$0xff] %v8436_v36 }
 0x227   :  { %1881 = vmatpush1.bf16.msra.mxu0 %v8424_v24  ;;  %v11533_v24 = vld [vmem:[#allocation15_spill] sm:$0xff] }
 0x228   :  { %1882 = vmatprep.subr.bf16.mxu0 %v8427_v31  ;;  %v11531_v31 = vld [vmem:[#allocation11_spill] sm:$0xff] }
 0x22b   :  { %1883 = vmatpush2.bf16.msra.mxu0 %v8430_v27  ;;  %v11530_v27 = vld [vmem:[#allocation9_spill] sm:$0xff] }
 0x22c   :  { %1884 = vmatprep.subr.bf16.mxu0 %v8433_v57  ;;  %v11532_v57 = vld [vmem:[#allocation13_spill] sm:$0xff] }
 0x22f   :  { %1885 = vmatpush2.bf16.msra.mxu0 %v8436_v36  ;;  %v11534_v36 = vld [vmem:[#allocation16_spill] sm:$0xff] }
 0x230   :  { %1886 = vmatprep.subr.bf16.mxu0 %v7869_v8  ;;  %v11535_v8 = vld [vmem:[#allocation18_spill] sm:$0xff] }
 0x233   :  { %1887 = vmatpush2.bf16.msra.mxu0 %v7877_v12  ;;  %v11536_v12 = vld [vmem:[#allocation20_spill] sm:$0xff] }
 0x234   :  { %1888 = vmatprep.subr.bf16.mxu0 %v7881_v16 }
 0x237   :  { %1889 = vmatpush2.bf16.msra.mxu0 %v7889_v21 }
 0x238   :  { %1890 = vmatprep.subr.bf16.mxu0 %v7893_v26 }
 0x23b   :  { %1891 = vmatpush2.bf16.msra.mxu0 %v7901_v34 }
 0x23c   :  { %1892 = vmatprep.subr.bf16.mxu0 %v11530_v27 }
 0x23f   :  { %1893 = vmatpush2.bf16.msra.mxu0 %v11531_v31  ;;  %v11537_v31 = vld [vmem:[#allocation26_spill] sm:$0xff] }
 0x240   :  { %1894 = vmatprep.subr.bf16.mxu0 %v11532_v57  ;;  %v728_v32 = vadd.f32 %v11537_v31, %v8095_v52  ;;  %v11538_v57 = vld [vmem:[#allocation24_spill] sm:$0xff] }
 0x243   :  { %1895 = vmatpush2.bf16.msra.mxu0 %v11533_v24 }
 0x244   :  { %1896 = vmatprep.subr.bf16.mxu0 %v11534_v36 }
 0x247   :  { %1897 = vmatpush2.bf16.msra.mxu0 %v11535_v8 }
 0x248   :  { %1991 = vmatprep.subr.bf16.mxu0 %v11536_v12  ;;  %v11539_v12 = vld [vmem:[#allocation27_spill] sm:$0xff] }
 0x249   :  { %v801_v18 = vadd.f32 %v11539_v12, %v8100_v63  ;;  %v11582_v63 = vld [vmem:[#allocation93_spill] sm:$0xff] }
 0x28a   :  { %v1693_v16 = vpop.f32.mrf.mxu0  ;;  %v1734_v21 = vpop.f32.mrf.mxu1 }
 0x28b   :  { %v1782_v55 = vadd.f32 %v1693_v16, %v11538_v57 }
 0x28c   :  { %v1695_v58 = vpop.f32.mrf.mxu0  ;;  %v1736_v26 = vpop.f32.mrf.mxu1 }
 0x28d   :  { %v1783_v24 = vadd.f32 %v1695_v58, %v728_v32  ;;  %v1784_v44 = vsub.f32 0.0, %v1782_v55 }
 0x28e   :  { %v1697_v53 = vpop.f32.mrf.mxu0  ;;  %v1738_v34 = vpop.f32.mrf.mxu1 }
 0x28f   :  { %v1785_v36 = vsub.f32 0.0, %v1783_v24  ;;  %v1786_v29 = vmul.f32 1.442695, %v1784_v44  ;;  %v1794_v53 = vadd.f32 %v1734_v21, %v11540_v10  ;;  %v1795_v34 = vadd.f32 %v1736_v26, %v801_v18 }
 0x290   :  { %v1698_v14 = vpop.f32.mrf.mxu0  ;;  %v1739_v27 = vpop.f32.mrf.mxu1 }
 0x291   :  { %v1788_v8 = vmul.f32 1.442695, %v1785_v36  ;;  %6894 = vpow2.f32 %v1786_v29  ;;  %v1796_v14 = vsub.f32 0.0, %v1794_v53  ;;  %v1797_v5 = vsub.f32 0.0, %v1795_v34 }
 0x293   :  { %6896 = vpow2.f32 %v1788_v8  ;;  %v1798_v31 = vmul.f32 1.442695, %v1796_v14  ;;  %v1800_v16 = vmul.f32 1.442695, %v1797_v5  ;;  %v11541_v5 = vld [vmem:[#allocation55_spill] sm:$0xff]  ;;  %v11542_v8 = vld [vmem:[#allocation54_spill] sm:$0xff] }
 0x295   :  { %6898 = vpow2.f32 %v1798_v31 }
 0x29e   :  { %v6895_v27 = vpop.eup %6894 }
 0x29f   :  { %v1790_v52 = vadd.f32 1.0, %v6895_v27 }
 0x2a0   :  { %v6897_v3 = vpop.eup %6896 }
 0x2a1   :  { %v1791_v58 = vadd.f32 1.0, %v6897_v3  ;;  %6900 = vrcp.f32 %v1790_v52  ;;  %v874_v3 = vadd.f32 %v11541_v5, %v8187_v50  ;;  %v11561_v5 = vld [vmem:[#allocation14_spill] sm:$0xff]  ;;  %v11581_v50 = vld [vmem:[#allocation92_spill] sm:$0xff] }
 0x2a2   :  { %6902 = vpow2.f32 %v1800_v16  ;;  %v6899_v44 = vpop.eup %6898 }
 0x2a3   :  { %6904 = vrcp.f32 %v1791_v58  ;;  %v1802_v24 = vadd.f32 1.0, %v6899_v44 }
 0x2ae   :  { %v6901_v32 = vpop.eup %6900 }
 0x2af   :  { %v6903_v10 = vpop.eup %6902 }
 0x2b0   :  { %v6905_v26 = vpop.eup %6904  ;;  %v1803_v34 = vadd.f32 1.0, %v6903_v10 }
 0x2ca   :  { %v1775_v29 = vpop.f32.mrf.mxu0 }
 0x2cb   :  { %v1806_v55 = vadd.f32 %v1775_v29, %v8234_v61 }
 0x2cc   :  { %v1777_v57 = vpop.f32.mrf.mxu0 }
 0x2cd   :  { %v1808_v18 = vmul.f32 %v6901_v32, %v1806_v55  ;;  %v1807_v21 = vadd.f32 %v1777_v57, %v8237_v9 }
 0x2ce   :  { %v1779_v36 = vpop.f32.mrf.mxu0 }
 0x2cf   :  { %v1810_v52 = vadd.f32 %v1808_v18, %v11542_v8  ;;  %v1809_v12 = vmul.f32 %v6905_v26, %v1807_v21  ;;  %v8553_v26 = vld [vmem:[#allocation5 + $0x1f0] ss:$24 sps:$4 sm:$0xff]   ;;  %v11560_v36 = vld [vmem:[#allocation12_spill] sm:$0xff]  ;;  %v8564_v8 = vld [vmem:[#allocation5 + $0x194] ss:$24 sps:$4 sm:$0xff]  }
 0x2d0   :  { %v1780_v53 = vpop.f32.mrf.mxu0  ;;  %11558 = vst [vmem:[#allocation25_spill] sm:$0xff] %v8553_v26  ;;  %11563 = vst [vmem:[#allocation100_spill] sm:$0xff] %v8564_v8 }
 0x2d1   :  { %6906 = vtanh.f32 %v1810_v52  ;;  %v1811_v14 = vadd.f32 %v1809_v12, %v874_v3  ;;  %v8561_v3 = vld [vmem:[#allocation5 + $0x1c0] ss:$24 sps:$4 sm:$0xff]   ;;  %v11565_v12 = vld [vmem:[#allocation78_spill] sm:$0xff] }
 0x2d2   :  { %6908 = vrcp.f32 %v1802_v24  ;;  %v8556_v24 = vld [vmem:[#allocation5 + $0x1c4] ss:$24 sps:$4 sm:$0xff]   ;;  %11562 = vst [vmem:[#allocation54_spill] sm:$0xff] %v8561_v3  ;;  %v8569_v53 = vld [vmem:[#allocation5 + $0x190] ss:$24 sps:$4 sm:$0xff]  }
 0x2d3   :  { %6910 = vtanh.f32 %v1811_v14  ;;  %11559 = vst [vmem:[#allocation55_spill] sm:$0xff] %v8556_v24  ;;  %v11564_v52 = vld [vmem:[#allocation17_spill] sm:$0xff]  ;;  %11566 = vst [vmem:[#allocation101_spill] sm:$0xff] %v8569_v53  ;;  %v11568_v14 = vld [vmem:[#allocation79_spill] sm:$0xff] }
 0x2d4   :  { %6912 = vrcp.f32 %v1803_v34  ;;  %v11567_v34 = vld [vmem:[#allocation19_spill] sm:$0xff] }
 0x2de   :  { %v6907_v27 = vpop.eup %6906 }
 0x2df   :  { %v6909_v31 = vpop.eup %6908  ;;  %v1814_v16 = vsub.f32 %v8245_v15, %v6907_v27  ;;  %v11578_v15 = vld [vmem:[#allocation89_spill] sm:$0xff] }
 0x2e0   :  { %v6911_v58 = vpop.eup %6910 }
 0x2e1   :  { %v1815_v29 = vsub.f32 %v8247_v4, %v6911_v58  ;;  %v1816_v44 = vmul.f32 %v6909_v31, %v1814_v16  ;;  %v6913_v55 = vpop.eup %6912  ;;  %v11570_v31 = vld [vmem:[#allocation81_spill] sm:$0xff]  ;;  %v11571_v16 = vld [vmem:[#allocation82_spill] sm:$0xff] }
 0x2e2   :  { %v11579_v4 = vld [vmem:[#allocation90_spill] sm:$0xff] }
 0x2e3   :  { %v1817_v32 = vmul.f32 %v6913_v55, %v1815_v29  ;;  %v8465_v57 = vadd.f32 %v6907_v27, %v1816_v44  ;;  %v11569_v27 = vld [vmem:[#allocation80_spill] sm:$0xff]  ;;  %v11574_v44 = vld [vmem:[#allocation85_spill] sm:$0xff]  ;;  %v11575_v55 = vld [vmem:[#allocation86_spill] sm:$0xff] }
 0x2e4   :  { %v11573_v29 = vld [vmem:[#allocation84_spill] sm:$0xff] }
 0x2e5   :  { %11543 = vst [vmem:[#allocation9_spill] sm:$0xff] %v8465_v57  ;;  %v8467_v18 = vadd.f32 %v6911_v58, %v1817_v32  ;;  %v8473_v21 = vpack.c.bf16 %v8465_v57, %v8465_v57  ;;  %v11572_v58 = vld [vmem:[#allocation83_spill] sm:$0xff] }
 0x2e6   :  { %v11576_v32 = vld [vmem:[#allocation87_spill] sm:$0xff] }
 0x2e7   :  { %11544 = vst [vmem:[#allocation11_spill] sm:$0xff] %v8467_v18  ;;  %v1824_v10 = vpack.c.bf16 %v8467_v18, %v8467_v18 }
 0x2e9   :  { %1857 = vmatprep.mubr.bf16.mxu1 %v1824_v10  ;;  %1898 = vmatprep.mubr.bf16.mxu0 %v1824_v10 }
 0x2ea   :  { %1858 = vmatmul.mubr.bf16.vlgmr.msra.gmra.mxu1 %v8473_v21  ;;  %1899 = vmatmul.mubr.bf16.vlgmr.msra.gmra.mxu0 %v8473_v21 }
 0x2eb   :  { %1908 = vmatpush1.bf16.msra.mxu1 %v8257_v45  ;;  %1939 = vmatprep.mubr.bf16.mxu1 %v1824_v10  ;;  %v11577_v10 = vld [vmem:[#allocation88_spill] sm:$0xff] }
 0x2ec   :  { %1909 = vmatprep.subr.bf16.mxu1 %v8260_v47  ;;  %1992 = vmatpush1.bf16.msra.mxu0 %v7953_v41  ;;  %v8508_v41 = vld [vmem:[#allocation5 + $0x2e4] ss:$24 sps:$4 sm:$0xff]  }
 0x2ed   :  { %1993 = vmatprep.subr.bf16.mxu0 %v7957_v56  ;;  %v8516_v56 = vld [vmem:[#allocation5 + $0x2b4] ss:$24 sps:$4 sm:$0xff]  }
 0x2ef   :  { %1910 = vmatpush1.bf16.msra.mxu1 %v8265_v37 }
 0x2f0   :  { %1911 = vmatprep.subr.bf16.mxu1 %v8268_v25  ;;  %1994 = vmatpush1.bf16.msra.mxu0 %v7961_v59  ;;  %v8505_v59 = vld [vmem:[#allocation5 + $0x10] ss:$24 sps:$4 sm:$0xff]  }
 0x2f1   :  { %1995 = vmatprep.subr.bf16.mxu0 %v7965_v28  ;;  %v8521_v28 = vld [vmem:[#allocation5 + $0x2b0] ss:$24 sps:$4 sm:$0xff]  }
 0x2f2   :  { %11545 = vst [vmem:[#allocation13_spill] sm:$0xff] %v8521_v28 }
 0x2f3   :  { %1912 = vmatpush1.bf16.msra.mxu1 %v8273_v6 }
 0x2f4   :  { %1913 = vmatprep.subr.bf16.mxu1 %v8276_v42  ;;  %1996 = vmatpush1.bf16.msra.mxu0 %v7969_v48  ;;  %v8513_v48 = vld [vmem:[#allocation5 + $0x2e0] ss:$24 sps:$4 sm:$0xff]  }
 0x2f5   :  { %1997 = vmatprep.subr.bf16.mxu0 %v7973_v30  ;;  %v8524_v30 = vld [vmem:[#allocation5 + $0x284] ss:$24 sps:$4 sm:$0xff]  }
 0x2f6   :  { %11546 = vst [vmem:[#allocation15_spill] sm:$0xff] %v8524_v30 }
 0x2f7   :  { %1914 = vmatpush1.bf16.msra.mxu1 %v8281_v1 }
 0x2f8   :  { %1915 = vmatprep.subr.bf16.mxu1 %v8284_v11  ;;  %1998 = vmatpush1.bf16.msra.mxu0 %v7977_v33  ;;  %v8529_v33 = vld [vmem:[#allocation5 + $0x280] ss:$24 sps:$4 sm:$0xff]  }
 0x2f9   :  { %1999 = vmatprep.subr.bf16.mxu0 %v7981_v35  ;;  %11547 = vst [vmem:[#allocation16_spill] sm:$0xff] %v8529_v33  ;;  %v8532_v35 = vld [vmem:[#allocation5 + $0x254] ss:$24 sps:$4 sm:$0xff]  }
 0x2fa   :  { %11548 = vst [vmem:[#allocation18_spill] sm:$0xff] %v8532_v35 }
 0x2fb   :  { %1916 = vmatpush1.bf16.msra.mxu1 %v8289_v51 }
 0x2fc   :  { %1917 = vmatprep.subr.bf16.mxu1 %v8292_v13  ;;  %2000 = vmatpush1.bf16.msra.mxu0 %v7985_v38  ;;  %v11549_v38 = vld [vmem:[#allocation74_spill] sm:$0xff] }
 0x2fd   :  { %2001 = vmatprep.subr.bf16.mxu0 %v7989_v40  ;;  %v8537_v40 = vld [vmem:[#allocation5 + $0x250] ss:$24 sps:$4 sm:$0xff]  }
 0x2fe   :  { %11550 = vst [vmem:[#allocation20_spill] sm:$0xff] %v8537_v40 }
 0x2ff   :  { %1918 = vmatpush1.bf16.msra.mxu1 %v8297_v39 }
 0x300   :  { %1919 = vmatprep.subr.bf16.mxu1 %v8300_v2  ;;  %2002 = vmatpush1.bf16.msra.mxu0 %v7993_v7  ;;  %v8540_v7 = vld [vmem:[#allocation5 + $0x224] ss:$24 sps:$4 sm:$0xff]  }
 0x301   :  { %2003 = vmatprep.subr.bf16.mxu0 %v7997_v43  ;;  %11551 = vst [vmem:[#allocation26_spill] sm:$0xff] %v8540_v7  ;;  %v11552_v43 = vld [vmem:[#allocation75_spill] sm:$0xff] }
 0x303   :  { %1920 = vmatpush1.bf16.msra.mxu1 %v8305_v20 }
 0x304   :  { %1921 = vmatprep.subr.bf16.mxu1 %v8308_v22  ;;  %2004 = vmatpush1.bf16.msra.mxu0 %v8001_v46  ;;  %v11553_v46 = vld [vmem:[#allocation76_spill] sm:$0xff] }
 0x305   :  { %2005 = vmatprep.subr.bf16.mxu0 %v8005_v19  ;;  %v8545_v19 = vld [vmem:[#allocation5 + $0x220] ss:$24 sps:$4 sm:$0xff]  }
 0x306   :  { %11554 = vst [vmem:[#allocation24_spill] sm:$0xff] %v8545_v19 }
 0x307   :  { %1922 = vmatpush1.bf16.msra.mxu1 %v8505_v59 }
 0x308   :  { %1923 = vmatprep.subr.bf16.mxu1 %v8508_v41  ;;  %2006 = vmatpush1.bf16.msra.mxu0 %v8009_v49  ;;  %v8548_v49 = vld [vmem:[#allocation5 + $0x1f4] ss:$24 sps:$4 sm:$0xff]  }
 0x309   :  { %2007 = vmatprep.subr.bf16.mxu0 %v8013_v23  ;;  %11555 = vst [vmem:[#allocation27_spill] sm:$0xff] %v8548_v49  ;;  %v11556_v23 = vld [vmem:[#allocation10_spill] sm:$0xff] }
 0x30b   :  { %1924 = vmatpush2.bf16.msra.mxu1 %v8513_v48 }
 0x30c   :  { %1925 = vmatprep.subr.bf16.mxu1 %v8516_v56  ;;  %2008 = vmatpush2.bf16.msra.mxu0 %v8017_v54  ;;  %v11557_v54 = vld [vmem:[#allocation77_spill] sm:$0xff] }
 0x30d   :  { %2009 = vmatprep.subr.bf16.mxu0 %v8320_v17 }
 0x30f   :  { %1926 = vmatpush2.bf16.msra.mxu1 %v8521_v28 }
 0x310   :  { %1927 = vmatprep.subr.bf16.mxu1 %v8524_v30  ;;  %2010 = vmatpush2.bf16.msra.mxu0 %v8325_v60 }
 0x311   :  { %2011 = vmatprep.subr.bf16.mxu0 %v8328_v62 }
 0x313   :  { %1928 = vmatpush2.bf16.msra.mxu1 %v8529_v33 }
 0x314   :  { %1929 = vmatprep.subr.bf16.mxu1 %v8532_v35  ;;  %2012 = vmatpush2.bf16.msra.mxu0 %v8333_v0 }
 0x315   :  { %2013 = vmatprep.subr.bf16.mxu0 %v11549_v38 }
 0x317   :  { %1930 = vmatpush2.bf16.msra.mxu1 %v8537_v40 }
 0x318   :  { %1931 = vmatprep.subr.bf16.mxu1 %v8540_v7  ;;  %2014 = vmatpush2.bf16.msra.mxu0 %v11552_v43 }
 0x319   :  { %2015 = vmatprep.subr.bf16.mxu0 %v11553_v46 }
 0x31b   :  { %1932 = vmatpush2.bf16.msra.mxu1 %v8545_v19 }
 0x31c   :  { %1933 = vmatprep.subr.bf16.mxu1 %v8548_v49  ;;  %2016 = vmatpush2.bf16.msra.mxu0 %v11556_v23 }
 0x31d   :  { %2017 = vmatprep.subr.bf16.mxu0 %v11557_v54 }
 0x31f   :  { %1934 = vmatpush2.bf16.msra.mxu1 %v8553_v26 }
 0x320   :  { %1935 = vmatprep.subr.bf16.mxu1 %v8556_v24  ;;  %2018 = vmatpush2.bf16.msra.mxu0 %v11560_v36 }
 0x321   :  { %2019 = vmatprep.subr.bf16.mxu0 %v11561_v5 }
 0x323   :  { %1936 = vmatpush2.bf16.msra.mxu1 %v8561_v3 }
 0x324   :  { %1937 = vmatprep.subr.bf16.mxu1 %v8564_v8  ;;  %2020 = vmatpush2.bf16.msra.mxu0 %v11564_v52  ;;  %v11605_v52 = vld [vmem:[#allocation33_spill] sm:$0xff] }
 0x325   :  { %2021 = vmatprep.subr.bf16.mxu0 %v11565_v12  ;;  %v11604_v12 = vld [vmem:[#allocation31_spill] sm:$0xff] }
 0x327   :  { %1938 = vmatpush2.bf16.msra.mxu1 %v8569_v53 }
 0x328   :  { %2032 = vmatprep.subr.bf16.mxu1 %v11567_v34  ;;  %2022 = vmatpush2.bf16.msra.mxu0 %v11568_v14 }
 0x329   :  { %2073 = vmatprep.subr.bf16.mxu0 %v11569_v27  ;;  %v11603_v27 = vld [vmem:[#allocation32_spill] sm:$0xff] }
 0x32a   :  { %1940 = vmatmul.mubr.bf16.vlgmr.msra.gmra.mxu1 %v8473_v21  ;;  %v11580_v21 = vld [vmem:[#allocation91_spill] sm:$0xff] }
 0x32b   :  { %2033 = vmatpush1.bf16.msra.mxu1 %v11570_v31 }
 0x32c   :  { %2034 = vmatprep.subr.bf16.mxu1 %v11571_v16  ;;  %v11602_v16 = vld [vmem:[#allocation30_spill] sm:$0xff] }
 0x32f   :  { %2035 = vmatpush1.bf16.msra.mxu1 %v11572_v58  ;;  %v11583_v58 = vld [vmem:[#allocation94_spill] sm:$0xff] }
 0x330   :  { %2036 = vmatprep.subr.bf16.mxu1 %v11573_v29  ;;  %v11584_v29 = vld [vmem:[#allocation95_spill] sm:$0xff] }
 0x333   :  { %2037 = vmatpush1.bf16.msra.mxu1 %v11574_v44  ;;  %v11585_v44 = vld [vmem:[#allocation96_spill] sm:$0xff] }
 0x334   :  { %2038 = vmatprep.subr.bf16.mxu1 %v11575_v55  ;;  %v11586_v55 = vld [vmem:[#allocation97_spill] sm:$0xff] }
 0x337   :  { %2039 = vmatpush1.bf16.msra.mxu1 %v11576_v32  ;;  %v11587_v32 = vld [vmem:[#allocation98_spill] sm:$0xff] }
 0x338   :  { %2040 = vmatprep.subr.bf16.mxu1 %v11577_v10  ;;  %v11588_v10 = vld [vmem:[#allocation99_spill] sm:$0xff] }
 0x33b   :  { %2041 = vmatpush1.bf16.msra.mxu1 %v11578_v15  ;;  %v8595_v15 = vld [vmem:[#allocation5 + $0x27c] ss:$24 sps:$4 sm:$0xff]  }
 0x33c   :  { %2042 = vmatprep.subr.bf16.mxu1 %v11579_v4  ;;  %11589 = vst [vmem:[#allocation102_spill] sm:$0xff] %v8595_v15 }
 0x33f   :  { %2043 = vmatpush1.bf16.msra.mxu1 %v11580_v21  ;;  %v8598_v21 = vld [vmem:[#allocation5 + $0x278] ss:$24 sps:$4 sm:$0xff]  }
 0x340   :  { %2044 = vmatprep.subr.bf16.mxu1 %v11581_v50  ;;  %11590 = vst [vmem:[#allocation103_spill] sm:$0xff] %v8598_v21 }
 0x343   :  { %2045 = vmatpush1.bf16.msra.mxu1 %v11582_v63  ;;  %v8601_v63 = vld [vmem:[#allocation5 + $0x24c] ss:$24 sps:$4 sm:$0xff]  }
 0x344   :  { %2046 = vmatprep.subr.bf16.mxu1 %v11583_v58  ;;  %11591 = vst [vmem:[#allocation104_spill] sm:$0xff] %v8601_v63 }
 0x347   :  { %2047 = vmatpush1.bf16.msra.mxu1 %v11584_v29  ;;  %v8604_v29 = vld [vmem:[#allocation5 + $0x248] ss:$24 sps:$4 sm:$0xff]  }
 0x348   :  { %2048 = vmatprep.subr.bf16.mxu1 %v11585_v44  ;;  %11592 = vst [vmem:[#allocation105_spill] sm:$0xff] %v8604_v29 }
 0x34b   :  { %2049 = vmatpush2.bf16.msra.mxu1 %v11586_v55  ;;  %v8607_v55 = vld [vmem:[#allocation5 + $0x21c] ss:$24 sps:$4 sm:$0xff]  }
 0x34c   :  { %2050 = vmatprep.subr.bf16.mxu1 %v11587_v32  ;;  %11593 = vst [vmem:[#allocation106_spill] sm:$0xff] %v8607_v55 }
 0x34f   :  { %2051 = vmatpush2.bf16.msra.mxu1 %v11588_v10  ;;  %v8610_v10 = vld [vmem:[#allocation5 + $0x218] ss:$24 sps:$4 sm:$0xff]  }
 0x350   :  { %2052 = vmatprep.subr.bf16.mxu1 %v8595_v15  ;;  %11594 = vst [vmem:[#allocation107_spill] sm:$0xff] %v8610_v10  ;;  %v8613_v15 = vld [vmem:[#allocation5 + $0x1ec] ss:$24 sps:$4 sm:$0xff]  }
 0x351   :  { %11595 = vst [vmem:[#allocation108_spill] sm:$0xff] %v8613_v15 }
 0x353   :  { %2053 = vmatpush2.bf16.msra.mxu1 %v8598_v21  ;;  %v8616_v21 = vld [vmem:[#allocation5 + $0x1e8] ss:$24 sps:$4 sm:$0xff]  }
 0x354   :  { %2054 = vmatprep.subr.bf16.mxu1 %v8601_v63  ;;  %11596 = vst [vmem:[#allocation109_spill] sm:$0xff] %v8616_v21  ;;  %v8619_v63 = vld [vmem:[#allocation5 + $0x1bc] ss:$24 sps:$4 sm:$0xff]  }
 0x355   :  { %11597 = vst [vmem:[#allocation110_spill] sm:$0xff] %v8619_v63 }
 0x357   :  { %2055 = vmatpush2.bf16.msra.mxu1 %v8604_v29  ;;  %v8622_v29 = vld [vmem:[#allocation5 + $0x1b8] ss:$24 sps:$4 sm:$0xff]  }
 0x358   :  { %2056 = vmatprep.subr.bf16.mxu1 %v8607_v55  ;;  %11598 = vst [vmem:[#allocation111_spill] sm:$0xff] %v8622_v29  ;;  %v8625_v55 = vld [vmem:[#allocation5 + $0x18c] ss:$24 sps:$4 sm:$0xff]  }
 0x359   :  { %11599 = vst [vmem:[#allocation112_spill] sm:$0xff] %v8625_v55 }
 0x35b   :  { %2057 = vmatpush2.bf16.msra.mxu1 %v8610_v10  ;;  %v8628_v10 = vld [vmem:[#allocation5 + $0x188] ss:$24 sps:$4 sm:$0xff]  }
 0x35c   :  { %2058 = vmatprep.subr.bf16.mxu1 %v8613_v15  ;;  %11600 = vst [vmem:[#allocation113_spill] sm:$0xff] %v8628_v10  ;;  %v8631_v15 = vld [vmem:[#allocation5 + $0x154] ss:$24 sps:$4 sm:$0xff]  }
 0x35d   :  { %11601 = vst [vmem:[#allocation114_spill] sm:$0xff] %v8631_v15 }
 0x35f   :  { %2059 = vmatpush2.bf16.msra.mxu1 %v8616_v21 }
 0x360   :  { %2060 = vmatprep.subr.bf16.mxu1 %v8619_v63 }
 0x363   :  { %2061 = vmatpush2.bf16.msra.mxu1 %v8622_v29 }
 0x364   :  { %2062 = vmatprep.subr.bf16.mxu1 %v8625_v55 }
 0x367   :  { %2063 = vmatpush2.bf16.msra.mxu1 %v8628_v10 }
 0x368   :  { %2157 = vmatprep.subr.bf16.mxu1 %v8631_v15 }
 0x3aa   :  { %v1859_v21 = vpop.f32.mrf.mxu1  ;;  %v1900_v32 = vpop.f32.mrf.mxu0 }
 0x3ab   :  { %v1948_v31 = vadd.f32 %v1859_v21, %v11602_v16  ;;  %v1960_v15 = vadd.f32 %v1900_v32, %v11604_v12 }
 0x3ac   :  { %v1861_v44 = vpop.f32.mrf.mxu1  ;;  %v1902_v63 = vpop.f32.mrf.mxu0 }
 0x3ad   :  { %v1949_v55 = vadd.f32 %v1861_v44, %v11603_v27  ;;  %v1950_v14 = vsub.f32 0.0, %v1948_v31  ;;  %v1961_v8 = vadd.f32 %v1902_v63, %v11605_v52  ;;  %v1962_v3 = vsub.f32 0.0, %v1960_v15 }
 0x3ae   :  { %v1863_v58 = vpop.f32.mrf.mxu1  ;;  %v1904_v50 = vpop.f32.mrf.mxu0 }
 0x3af   :  { %v1951_v34 = vsub.f32 0.0, %v1949_v55  ;;  %v1952_v53 = vmul.f32 1.442695, %v1950_v14  ;;  %v1963_v58 = vsub.f32 0.0, %v1961_v8 }
 0x3b0   :  { %v1864_v4 = vpop.f32.mrf.mxu1  ;;  %v1905_v29 = vpop.f32.mrf.mxu0 }
 0x3b1   :  { %v1954_v10 = vmul.f32 1.442695, %v1951_v34  ;;  %6914 = vpow2.f32 %v1952_v53  ;;  %v1964_v4 = vmul.f32 1.442695, %v1962_v3  ;;  %v1966_v36 = vmul.f32 1.442695, %v1963_v58 }
 0x3b3   :  { %6916 = vpow2.f32 %v1954_v10 }
 0x3b4   :  { %6918 = vpow2.f32 %v1964_v4 }
 0x3be   :  { %v6915_v5 = vpop.eup %6914 }
 0x3bf   :  { %v1956_v29 = vadd.f32 1.0, %v6915_v5  ;;  %v11606_v5 = vld [vmem:[#allocation57_spill] sm:$0xff] }
 0x3c0   :  { %v6917_v50 = vpop.eup %6916 }
 0x3c1   :  { %v1957_v16 = vadd.f32 1.0, %v6917_v50  ;;  %6920 = vrcp.f32 %v1956_v29  ;;  %v6919_v34 = vpop.eup %6918 }
 0x3c2   :  { %6922 = vpow2.f32 %v1966_v36  ;;  %v1968_v52 = vadd.f32 1.0, %v6919_v34  ;;  %v11607_v36 = vld [vmem:[#allocation58_spill] sm:$0xff] }
 0x3c3   :  { %6924 = vrcp.f32 %v1957_v16 }
 0x3ce   :  { %v6921_v27 = vpop.eup %6920 }
 0x3cf   :  { %v6923_v31 = vpop.eup %6922 }
 0x3d0   :  { %v6925_v8 = vpop.eup %6924  ;;  %v1969_v10 = vadd.f32 1.0, %v6923_v31 }
 0x3ea   :  { %v1941_v14 = vpop.f32.mrf.mxu1 }
 0x3eb   :  { %v1972_v53 = vadd.f32 %v1941_v14, %v8234_v61 }
 0x3ec   :  { %v1943_v12 = vpop.f32.mrf.mxu1 }
 0x3ed   :  { %v1974_v63 = vmul.f32 %v6921_v27, %v1972_v53  ;;  %v1973_v15 = vadd.f32 %v1943_v12, %v8237_v9 }
 0x3ee   :  { %v1945_v3 = vpop.f32.mrf.mxu1 }
 0x3ef   :  { %v1976_v44 = vadd.f32 %v1974_v63, %v11606_v5  ;;  %v1975_v55 = vmul.f32 %v6925_v8, %v1973_v15  ;;  %v8658_v15 = vld [vmem:[#allocation5 + $0x150] ss:$24 sps:$4 sm:$0xff]   ;;  %v8661_v8 = vld [vmem:[#allocation5 + $0x124] ss:$24 sps:$4 sm:$0xff]   ;;  %v8669_v3 = vld [vmem:[#allocation5 + $0xf4] ss:$24 sps:$4 sm:$0xff]  }
 0x3f0   :  { %v1946_v32 = vpop.f32.mrf.mxu1  ;;  %v8674_v5 = vld [vmem:[#allocation5 + $0xf0] ss:$24 sps:$4 sm:$0xff]  }
 0x3f1   :  { %6926 = vtanh.f32 %v1976_v44  ;;  %v1977_v21 = vadd.f32 %v1975_v55, %v11607_v36  ;;  %v8677_v44 = vld [vmem:[#allocation5 + $0xc4] ss:$24 sps:$4 sm:$0xff]   ;;  %v8682_v55 = vld [vmem:[#allocation5 + $0xc0] ss:$24 sps:$4 sm:$0xff]   ;;  %v8685_v32 = vld [vmem:[#allocation5 + $0x94] ss:$24 sps:$4 sm:$0xff]  }
 0x3f2   :  { %6928 = vrcp.f32 %v1968_v52  ;;  %v8666_v52 = vld [vmem:[#allocation5 + $0x120] ss:$24 sps:$4 sm:$0xff]   ;;  %v8693_v36 = vld [vmem:[#allocation5 + $0x64] ss:$24 sps:$4 sm:$0xff]  }
 0x3f3   :  { %6930 = vtanh.f32 %v1977_v21  ;;  %v8698_v21 = vld [vmem:[#allocation5 + $0x60] ss:$24 sps:$4 sm:$0xff]  }
 0x3f4   :  { %6932 = vrcp.f32 %v1969_v10  ;;  %v8690_v10 = vld [vmem:[#allocation5 + $0x90] ss:$24 sps:$4 sm:$0xff]  }
 0x3fe   :  { %v6927_v58 = vpop.eup %6926 }
 0x3ff   :  { %v6929_v50 = vpop.eup %6928  ;;  %v1980_v4 = vsub.f32 %v8465_v57, %v6927_v58  ;;  %v11613_v57 = vld [vmem:[#allocation100_spill] sm:$0xff] }
 0x400   :  { %v6931_v29 = vpop.eup %6930 }
 0x401   :  { %v1981_v16 = vsub.f32 %v8467_v18, %v6931_v29  ;;  %v1982_v14 = vmul.f32 %v6929_v50, %v1980_v4  ;;  %v6933_v34 = vpop.eup %6932  ;;  %v8706_v50 = vld [vmem:[#allocation5 + $0x30] ss:$24 sps:$4 sm:$0xff]   ;;  %v8709_v4 = vld [vmem:[#allocation5 + $0x4] ss:$24 sps:$4 sm:$0xff]  }
 0x402   :  { %v11614_v18 = vld [vmem:[#allocation17_spill] sm:$0xff] }
 0x403   :  { %v1983_v53 = vmul.f32 %v6933_v34, %v1981_v16  ;;  %v8644_v27 = vadd.f32 %v6927_v58, %v1982_v14  ;;  %v8701_v58 = vld [vmem:[#allocation5 + $0x34] ss:$24 sps:$4 sm:$0xff]   ;;  %v8722_v14 = vld [vmem:[#allocation5 + $0x2d0] ss:$24 sps:$4 sm:$0xff]   ;;  %v11610_v34 = vld [vmem:[#allocation12_spill] sm:$0xff] }
 0x404   :  { %v8717_v16 = vld [vmem:[#allocation5 + $0x2d4] ss:$24 sps:$4 sm:$0xff]  }
 0x405   :  { %11608 = vst [vmem:[#allocation30_spill] sm:$0xff] %v8644_v27  ;;  %v8646_v12 = vadd.f32 %v6931_v29, %v1983_v53  ;;  %v8652_v63 = vpack.c.bf16 %v8644_v27, %v8644_v27  ;;  %v8714_v29 = vld [vmem:[#allocation5] ss:$24 sps:$4 sm:$0xff]   ;;  %v11611_v53 = vld [vmem:[#allocation14_spill] sm:$0xff] }
 0x407   :  { %11609 = vst [vmem:[#allocation32_spill] sm:$0xff] %v8646_v12  ;;  %v1990_v31 = vpack.c.bf16 %v8646_v12, %v8646_v12 }
 0x409   :  { %2023 = vmatprep.mubr.bf16.mxu0 %v1990_v31  ;;  %2064 = vmatprep.mubr.bf16.mxu1 %v1990_v31 }
 0x40a   :  { %2024 = vmatmul.mubr.bf16.vlgmr.msra.gmra.mxu0 %v8652_v63  ;;  %2065 = vmatmul.mubr.bf16.vlgmr.msra.gmra.mxu1 %v8652_v63 }
 0x40b   :  { %2074 = vmatpush1.bf16.msra.mxu0 %v8257_v45  ;;  %2105 = vmatprep.mubr.bf16.mxu0 %v1990_v31  ;;  %v11612_v31 = vld [vmem:[#allocation54_spill] sm:$0xff] }
 0x40c   :  { %2075 = vmatprep.subr.bf16.mxu0 %v8260_v47  ;;  %2158 = vmatpush1.bf16.msra.mxu1 %v8658_v15 }
 0x40d   :  { %2159 = vmatprep.subr.bf16.mxu1 %v8661_v8 }
 0x40f   :  { %2076 = vmatpush1.bf16.msra.mxu0 %v8265_v37 }
 0x410   :  { %2077 = vmatprep.subr.bf16.mxu0 %v8268_v25  ;;  %2160 = vmatpush1.bf16.msra.mxu1 %v8666_v52 }
 0x411   :  { %2161 = vmatprep.subr.bf16.mxu1 %v8669_v3 }
 0x413   :  { %2078 = vmatpush1.bf16.msra.mxu0 %v8273_v6 }
 0x414   :  { %2079 = vmatprep.subr.bf16.mxu0 %v8276_v42  ;;  %2162 = vmatpush1.bf16.msra.mxu1 %v8674_v5 }
 0x415   :  { %2163 = vmatprep.subr.bf16.mxu1 %v8677_v44 }
 0x417   :  { %2080 = vmatpush1.bf16.msra.mxu0 %v8281_v1 }
 0x418   :  { %2081 = vmatprep.subr.bf16.mxu0 %v8284_v11  ;;  %2164 = vmatpush1.bf16.msra.mxu1 %v8682_v55 }
 0x419   :  { %2165 = vmatprep.subr.bf16.mxu1 %v8685_v32 }
 0x41b   :  { %2082 = vmatpush1.bf16.msra.mxu0 %v8289_v51 }
 0x41c   :  { %2083 = vmatprep.subr.bf16.mxu0 %v8292_v13  ;;  %2166 = vmatpush1.bf16.msra.mxu1 %v8690_v10 }
 0x41d   :  { %2167 = vmatprep.subr.bf16.mxu1 %v8693_v36 }
 0x41f   :  { %2084 = vmatpush1.bf16.msra.mxu0 %v8297_v39 }
 0x420   :  { %2085 = vmatprep.subr.bf16.mxu0 %v8300_v2  ;;  %2168 = vmatpush1.bf16.msra.mxu1 %v8698_v21 }
 0x421   :  { %2169 = vmatprep.subr.bf16.mxu1 %v8701_v58 }
 0x423   :  { %2086 = vmatpush1.bf16.msra.mxu0 %v8305_v20 }
 0x424   :  { %2087 = vmatprep.subr.bf16.mxu0 %v8308_v22  ;;  %2170 = vmatpush1.bf16.msra.mxu1 %v8706_v50 }
 0x425   :  { %2171 = vmatprep.subr.bf16.mxu1 %v8709_v4 }
 0x427   :  { %2088 = vmatpush1.bf16.msra.mxu0 %v8505_v59 }
 0x428   :  { %2089 = vmatprep.subr.bf16.mxu0 %v8508_v41  ;;  %2172 = vmatpush1.bf16.msra.mxu1 %v8714_v29 }
 0x429   :  { %2173 = vmatprep.subr.bf16.mxu1 %v8717_v16 }
 0x42b   :  { %2090 = vmatpush2.bf16.msra.mxu0 %v8513_v48 }
 0x42c   :  { %2091 = vmatprep.subr.bf16.mxu0 %v8516_v56  ;;  %2174 = vmatpush2.bf16.msra.mxu1 %v8722_v14 }
 0x42d   :  { %2175 = vmatprep.subr.bf16.mxu1 %v8320_v17 }
 0x42f   :  { %2092 = vmatpush2.bf16.msra.mxu0 %v8521_v28 }
 0x430   :  { %2093 = vmatprep.subr.bf16.mxu0 %v8524_v30  ;;  %2176 = vmatpush2.bf16.msra.mxu1 %v8325_v60  ;;  %v11657_v60 = vld [vmem:[#allocation35_spill] sm:$0xff] }
 0x431   :  { %2177 = vmatprep.subr.bf16.mxu1 %v8328_v62 }
 0x433   :  { %2094 = vmatpush2.bf16.msra.mxu0 %v8529_v33  ;;  %v11656_v33 = vld [vmem:[#allocation37_spill] sm:$0xff] }
 0x434   :  { %2095 = vmatprep.subr.bf16.mxu0 %v8532_v35  ;;  %2178 = vmatpush2.bf16.msra.mxu1 %v8333_v0 }
 0x435   :  { %2179 = vmatprep.subr.bf16.mxu1 %v11549_v38 }
 0x437   :  { %2096 = vmatpush2.bf16.msra.mxu0 %v8537_v40 }
 0x438   :  { %2097 = vmatprep.subr.bf16.mxu0 %v8540_v7  ;;  %2180 = vmatpush2.bf16.msra.mxu1 %v11552_v43  ;;  %v11652_v7 = vld [vmem:[#allocation28_spill] sm:$0xff] }
 0x439   :  { %2181 = vmatprep.subr.bf16.mxu1 %v11553_v46 }
 0x43b   :  { %2098 = vmatpush2.bf16.msra.mxu0 %v8545_v19  ;;  %v11615_v19 = vld [vmem:[#allocation78_spill] sm:$0xff] }
 0x43c   :  { %2099 = vmatprep.subr.bf16.mxu0 %v8548_v49  ;;  %2182 = vmatpush2.bf16.msra.mxu1 %v11556_v23  ;;  %v11616_v49 = vld [vmem:[#allocation101_spill] sm:$0xff]  ;;  %v11617_v23 = vld [vmem:[#allocation19_spill] sm:$0xff] }
 0x43d   :  { %2183 = vmatprep.subr.bf16.mxu1 %v11557_v54  ;;  %v11618_v54 = vld [vmem:[#allocation79_spill] sm:$0xff] }
 0x43f   :  { %2100 = vmatpush2.bf16.msra.mxu0 %v8553_v26  ;;  %v11619_v26 = vld [vmem:[#allocation80_spill] sm:$0xff] }
 0x440   :  { %2101 = vmatprep.subr.bf16.mxu0 %v8556_v24  ;;  %2184 = vmatpush2.bf16.msra.mxu1 %v11610_v34  ;;  %v11620_v34 = vld [vmem:[#allocation81_spill] sm:$0xff] }
 0x441   :  { %2185 = vmatprep.subr.bf16.mxu1 %v11611_v53  ;;  %v11621_v53 = vld [vmem:[#allocation82_spill] sm:$0xff] }
 0x443   :  { %2102 = vmatpush2.bf16.msra.mxu0 %v11612_v31  ;;  %v11622_v31 = vld [vmem:[#allocation83_spill] sm:$0xff] }
 0x444   :  { %2103 = vmatprep.subr.bf16.mxu0 %v11613_v57  ;;  %2186 = vmatpush2.bf16.msra.mxu1 %v11614_v18  ;;  %v11623_v57 = vld [vmem:[#allocation84_spill] sm:$0xff]  ;;  %v11624_v18 = vld [vmem:[#allocation85_spill] sm:$0xff] }
 0x445   :  { %2187 = vmatprep.subr.bf16.mxu1 %v11615_v19  ;;  %v11625_v19 = vld [vmem:[#allocation86_spill] sm:$0xff] }
 0x447   :  { %2104 = vmatpush2.bf16.msra.mxu0 %v11616_v49  ;;  %v11626_v49 = vld [vmem:[#allocation87_spill] sm:$0xff] }
 0x448   :  { %2198 = vmatprep.subr.bf16.mxu0 %v11617_v23  ;;  %2188 = vmatpush2.bf16.msra.mxu1 %v11618_v54  ;;  %v11627_v23 = vld [vmem:[#allocation88_spill] sm:$0xff]  ;;  %v11628_v54 = vld [vmem:[#allocation89_spill] sm:$0xff] }
 0x449   :  { %2239 = vmatprep.subr.bf16.mxu1 %v11619_v26  ;;  %v11629_v26 = vld [vmem:[#allocation90_spill] sm:$0xff] }
 0x44a   :  { %2106 = vmatmul.mubr.bf16.vlgmr.msra.gmra.mxu0 %v8652_v63  ;;  %v11630_v63 = vld [vmem:[#allocation91_spill] sm:$0xff] }
 0x44b   :  { %2199 = vmatpush1.bf16.msra.mxu0 %v11620_v34  ;;  %v11631_v34 = vld [vmem:[#allocation92_spill] sm:$0xff] }
 0x44c   :  { %2200 = vmatprep.subr.bf16.mxu0 %v11621_v53  ;;  %v11632_v53 = vld [vmem:[#allocation93_spill] sm:$0xff] }
 0x44f   :  { %2201 = vmatpush1.bf16.msra.mxu0 %v11622_v31  ;;  %v11633_v31 = vld [vmem:[#allocation94_spill] sm:$0xff] }
 0x450   :  { %2202 = vmatprep.subr.bf16.mxu0 %v11623_v57  ;;  %v11634_v57 = vld [vmem:[#allocation95_spill] sm:$0xff] }
 0x453   :  { %2203 = vmatpush1.bf16.msra.mxu0 %v11624_v18  ;;  %v11635_v18 = vld [vmem:[#allocation96_spill] sm:$0xff] }
 0x454   :  { %2204 = vmatprep.subr.bf16.mxu0 %v11625_v19  ;;  %v11636_v19 = vld [vmem:[#allocation97_spill] sm:$0xff] }
 0x457   :  { %2205 = vmatpush1.bf16.msra.mxu0 %v11626_v49  ;;  %v11637_v49 = vld [vmem:[#allocation98_spill] sm:$0xff] }
 0x458   :  { %2206 = vmatprep.subr.bf16.mxu0 %v11627_v23  ;;  %v11638_v23 = vld [vmem:[#allocation99_spill] sm:$0xff] }
 0x45b   :  { %2207 = vmatpush1.bf16.msra.mxu0 %v11628_v54  ;;  %v11639_v54 = vld [vmem:[#allocation102_spill] sm:$0xff] }
 0x45c   :  { %2208 = vmatprep.subr.bf16.mxu0 %v11629_v26  ;;  %v11640_v26 = vld [vmem:[#allocation103_spill] sm:$0xff] }
 0x45f   :  { %2209 = vmatpush1.bf16.msra.mxu0 %v11630_v63  ;;  %v11641_v63 = vld [vmem:[#allocation104_spill] sm:$0xff] }
 0x460   :  { %2210 = vmatprep.subr.bf16.mxu0 %v11631_v34  ;;  %v11642_v34 = vld [vmem:[#allocation105_spill] sm:$0xff] }
 0x463   :  { %2211 = vmatpush1.bf16.msra.mxu0 %v11632_v53  ;;  %v11643_v53 = vld [vmem:[#allocation106_spill] sm:$0xff] }
 0x464   :  { %2212 = vmatprep.subr.bf16.mxu0 %v11633_v31  ;;  %v11644_v31 = vld [vmem:[#allocation107_spill] sm:$0xff] }
 0x467   :  { %2213 = vmatpush1.bf16.msra.mxu0 %v11634_v57  ;;  %v11645_v57 = vld [vmem:[#allocation108_spill] sm:$0xff] }
 0x468   :  { %2214 = vmatprep.subr.bf16.mxu0 %v11635_v18  ;;  %v11646_v18 = vld [vmem:[#allocation109_spill] sm:$0xff] }
 0x46b   :  { %2215 = vmatpush2.bf16.msra.mxu0 %v11636_v19  ;;  %v11647_v19 = vld [vmem:[#allocation110_spill] sm:$0xff] }
 0x46c   :  { %2216 = vmatprep.subr.bf16.mxu0 %v11637_v49  ;;  %v11648_v49 = vld [vmem:[#allocation111_spill] sm:$0xff] }
 0x46f   :  { %2217 = vmatpush2.bf16.msra.mxu0 %v11638_v23  ;;  %v11649_v23 = vld [vmem:[#allocation112_spill] sm:$0xff] }
 0x470   :  { %2218 = vmatprep.subr.bf16.mxu0 %v11639_v54  ;;  %v11650_v54 = vld [vmem:[#allocation113_spill] sm:$0xff] }
 0x473   :  { %2219 = vmatpush2.bf16.msra.mxu0 %v11640_v26  ;;  %v11651_v26 = vld [vmem:[#allocation114_spill] sm:$0xff] }
 0x474   :  { %2220 = vmatprep.subr.bf16.mxu0 %v11641_v63 }
 0x477   :  { %2221 = vmatpush2.bf16.msra.mxu0 %v11642_v34 }
 0x478   :  { %2222 = vmatprep.subr.bf16.mxu0 %v11643_v53 }
 0x47b   :  { %2223 = vmatpush2.bf16.msra.mxu0 %v11644_v31 }
 0x47c   :  { %2224 = vmatprep.subr.bf16.mxu0 %v11645_v57 }
 0x47f   :  { %2225 = vmatpush2.bf16.msra.mxu0 %v11646_v18  ;;  %v11653_v18 = vld [vmem:[#allocation36_spill] sm:$0xff] }
 0x480   :  { %2226 = vmatprep.subr.bf16.mxu0 %v11647_v19  ;;  %v738_v40 = vadd.f32 %v11653_v18, %v11652_v7  ;;  %v11654_v19 = vld [vmem:[#allocation34_spill] sm:$0xff] }
 0x483   :  { %2227 = vmatpush2.bf16.msra.mxu0 %v11648_v49 }
 0x484   :  { %2228 = vmatprep.subr.bf16.mxu0 %v11649_v23 }
 0x487   :  { %2229 = vmatpush2.bf16.msra.mxu0 %v11650_v54 }
 0x488   :  { %2323 = vmatprep.subr.bf16.mxu0 %v11651_v26  ;;  %v11655_v26 = vld [vmem:[#allocation29_spill] sm:$0xff] }
 0x489   :  { %v811_v62 = vadd.f32 %v11656_v33, %v11655_v26 }
 0x4ca   :  { %v2025_v63 = vpop.f32.mrf.mxu0  ;;  %v2066_v34 = vpop.f32.mrf.mxu1 }
 0x4cb   :  { %v2114_v38 = vadd.f32 %v2025_v63, %v11654_v19  ;;  %v11660_v63 = vld [vmem:[#allocation59_spill] sm:$0xff] }
 0x4cc   :  { %v2027_v24 = vpop.f32.mrf.mxu0  ;;  %v2068_v53 = vpop.f32.mrf.mxu1 }
 0x4cd   :  { %v2115_v49 = vadd.f32 %v2027_v24, %v738_v40  ;;  %v2116_v0 = vsub.f32 0.0, %v2114_v38 }
 0x4ce   :  { %v2029_v46 = vpop.f32.mrf.mxu0  ;;  %v2070_v31 = vpop.f32.mrf.mxu1 }
 0x4cf   :  { %v2117_v23 = vsub.f32 0.0, %v2115_v49  ;;  %v2118_v35 = vmul.f32 1.442695, %v2116_v0  ;;  %v2126_v46 = vadd.f32 %v2066_v34, %v11657_v60  ;;  %v2127_v31 = vadd.f32 %v2068_v53, %v811_v62  ;;  %v11658_v53 = vld [vmem:[#allocation56_spill] sm:$0xff] }
 0x4d0   :  { %v2030_v43 = vpop.f32.mrf.mxu0  ;;  %v2071_v57 = vpop.f32.mrf.mxu1 }
 0x4d1   :  { %v2120_v54 = vmul.f32 1.442695, %v2117_v23  ;;  %6934 = vpow2.f32 %v2118_v35  ;;  %v2128_v43 = vsub.f32 0.0, %v2126_v46  ;;  %v2129_v30 = vsub.f32 0.0, %v2127_v31 }
 0x4d3   :  { %6936 = vpow2.f32 %v2120_v54  ;;  %v2130_v18 = vmul.f32 1.442695, %v2128_v43  ;;  %v2132_v19 = vmul.f32 1.442695, %v2129_v30  ;;  %v11659_v30 = vld [vmem:[#allocation60_spill] sm:$0xff] }
 0x4d5   :  { %6938 = vpow2.f32 %v2130_v18 }
 0x4de   :  { %v6935_v57 = vpop.eup %6934 }
 0x4df   :  { %v2122_v7 = vadd.f32 1.0, %v6935_v57 }
 0x4e0   :  { %v6937_v28 = vpop.eup %6936 }
 0x4e1   :  { %v2123_v40 = vadd.f32 1.0, %v6937_v28  ;;  %6940 = vrcp.f32 %v2122_v7  ;;  %v884_v28 = vadd.f32 %v11659_v30, %v11658_v53  ;;  %v11680_v30 = vld [vmem:[#allocation55_spill] sm:$0xff] }
 0x4e2   :  { %6942 = vpow2.f32 %v2132_v19  ;;  %v6939_v35 = vpop.eup %6938 }
 0x4e3   :  { %6944 = vrcp.f32 %v2123_v40  ;;  %v2134_v24 = vadd.f32 1.0, %v6939_v35 }
 0x4ee   :  { %v6941_v33 = vpop.eup %6940 }
 0x4ef   :  { %v6943_v60 = vpop.eup %6942 }
 0x4f0   :  { %v6945_v54 = vpop.eup %6944  ;;  %v2135_v43 = vadd.f32 1.0, %v6943_v60 }
 0x50a   :  { %v2107_v0 = vpop.f32.mrf.mxu0 }
 0x50b   :  { %v2138_v38 = vadd.f32 %v2107_v0, %v8234_v61 }
 0x50c   :  { %v2109_v49 = vpop.f32.mrf.mxu0 }
 0x50d   :  { %v2140_v62 = vmul.f32 %v6941_v33, %v2138_v38  ;;  %v2139_v23 = vadd.f32 %v2109_v49, %v8237_v9 }
 0x50e   :  { %v2111_v34 = vpop.f32.mrf.mxu0 }
 0x50f   :  { %v2142_v7 = vadd.f32 %v2140_v62, %v11660_v63  ;;  %v2141_v46 = vmul.f32 %v6945_v54, %v2139_v23  ;;  %v11678_v54 = vld [vmem:[#allocation77_spill] sm:$0xff]  ;;  %v11682_v63 = vld [vmem:[#allocation14_spill] sm:$0xff] }
 0x510   :  { %v2112_v31 = vpop.f32.mrf.mxu0 }
 0x511   :  { %6946 = vtanh.f32 %v2142_v7  ;;  %v2143_v57 = vadd.f32 %v2141_v46, %v884_v28  ;;  %v11681_v28 = vld [vmem:[#allocation12_spill] sm:$0xff]  ;;  %v11683_v7 = vld [vmem:[#allocation54_spill] sm:$0xff]  ;;  %v11685_v31 = vld [vmem:[#allocation17_spill] sm:$0xff] }
 0x512   :  { %6948 = vrcp.f32 %v2134_v24  ;;  %v11679_v24 = vld [vmem:[#allocation25_spill] sm:$0xff]  ;;  %v11684_v46 = vld [vmem:[#allocation100_spill] sm:$0xff] }
 0x513   :  { %6950 = vtanh.f32 %v2143_v57  ;;  %v11687_v57 = vld [vmem:[#allocation101_spill] sm:$0xff] }
 0x514   :  { %6952 = vrcp.f32 %v2135_v43  ;;  %v11686_v43 = vld [vmem:[#allocation78_spill] sm:$0xff] }
 0x51e   :  { %v6947_v18 = vpop.eup %6946 }
 0x51f   :  { %v6949_v19 = vpop.eup %6948  ;;  %v2146_v40 = vsub.f32 %v8644_v27, %v6947_v18 }
 0x520   :  { %v6951_v0 = vpop.eup %6950 }
 0x521   :  { %v2147_v35 = vsub.f32 %v8646_v12, %v6951_v0  ;;  %v2148_v38 = vmul.f32 %v6949_v19, %v2146_v40  ;;  %v6953_v33 = vpop.eup %6952  ;;  %v11689_v19 = vld [vmem:[#allocation79_spill] sm:$0xff]  ;;  %v11690_v40 = vld [vmem:[#allocation80_spill] sm:$0xff] }
 0x522   :  { %v11724_v12 = vld [vmem:[#allocation40_spill] sm:$0xff] }
 0x523   :  { %v2149_v49 = vmul.f32 %v6953_v33, %v2147_v35  ;;  %v8800_v34 = vadd.f32 %v6947_v18, %v2148_v38  ;;  %v11688_v18 = vld [vmem:[#allocation19_spill] sm:$0xff]  ;;  %v11692_v35 = vld [vmem:[#allocation82_spill] sm:$0xff]  ;;  %v11694_v33 = vld [vmem:[#allocation84_spill] sm:$0xff] }
 0x524   :  { %v11693_v38 = vld [vmem:[#allocation83_spill] sm:$0xff] }
 0x525   :  { %11661 = vst [vmem:[#allocation31_spill] sm:$0xff] %v8800_v34  ;;  %v8802_v62 = vadd.f32 %v6951_v0, %v2149_v49  ;;  %v8808_v23 = vpack.c.bf16 %v8800_v34, %v8800_v34  ;;  %v11691_v0 = vld [vmem:[#allocation81_spill] sm:$0xff] }
 0x526   :  { %v11695_v49 = vld [vmem:[#allocation85_spill] sm:$0xff] }
 0x527   :  { %11662 = vst [vmem:[#allocation33_spill] sm:$0xff] %v8802_v62  ;;  %v2156_v60 = vpack.c.bf16 %v8802_v62, %v8802_v62 }
 0x529   :  { %2189 = vmatprep.mubr.bf16.mxu1 %v2156_v60  ;;  %2230 = vmatprep.mubr.bf16.mxu0 %v2156_v60 }
 0x52a   :  { %2190 = vmatmul.mubr.bf16.vlgmr.msra.gmra.mxu1 %v8808_v23  ;;  %2231 = vmatmul.mubr.bf16.vlgmr.msra.gmra.mxu0 %v8808_v23 }
 0x52b   :  { %2240 = vmatpush1.bf16.msra.mxu1 %v8257_v45  ;;  %2271 = vmatprep.mubr.bf16.mxu1 %v2156_v60  ;;  %v11663_v45 = vld [vmem:[#allocation13_spill] sm:$0xff]  ;;  %v11696_v60 = vld [vmem:[#allocation86_spill] sm:$0xff] }
 0x52c   :  { %2241 = vmatprep.subr.bf16.mxu1 %v8260_v47  ;;  %2324 = vmatpush1.bf16.msra.mxu0 %v8658_v15  ;;  %v11664_v47 = vld [vmem:[#allocation15_spill] sm:$0xff] }
 0x52d   :  { %2325 = vmatprep.subr.bf16.mxu0 %v8661_v8 }
 0x52f   :  { %2242 = vmatpush1.bf16.msra.mxu1 %v8265_v37  ;;  %v11665_v37 = vld [vmem:[#allocation71_spill] sm:$0xff] }
 0x530   :  { %2243 = vmatprep.subr.bf16.mxu1 %v8268_v25  ;;  %2326 = vmatpush1.bf16.msra.mxu0 %v8666_v52  ;;  %v11666_v25 = vld [vmem:[#allocation72_spill] sm:$0xff] }
 0x531   :  { %2327 = vmatprep.subr.bf16.mxu0 %v8669_v3 }
 0x533   :  { %2244 = vmatpush1.bf16.msra.mxu1 %v8273_v6  ;;  %v11667_v6 = vld [vmem:[#allocation16_spill] sm:$0xff] }
 0x534   :  { %2245 = vmatprep.subr.bf16.mxu1 %v8276_v42  ;;  %2328 = vmatpush1.bf16.msra.mxu0 %v8674_v5  ;;  %v11668_v42 = vld [vmem:[#allocation18_spill] sm:$0xff] }
 0x535   :  { %2329 = vmatprep.subr.bf16.mxu0 %v8677_v44 }
 0x537   :  { %2246 = vmatpush1.bf16.msra.mxu1 %v8281_v1  ;;  %v11669_v1 = vld [vmem:[#allocation73_spill] sm:$0xff] }
 0x538   :  { %2247 = vmatprep.subr.bf16.mxu1 %v8284_v11  ;;  %2330 = vmatpush1.bf16.msra.mxu0 %v8682_v55  ;;  %v11670_v11 = vld [vmem:[#allocation74_spill] sm:$0xff] }
 0x539   :  { %2331 = vmatprep.subr.bf16.mxu0 %v8685_v32 }
 0x53b   :  { %2248 = vmatpush1.bf16.msra.mxu1 %v8289_v51  ;;  %v11671_v51 = vld [vmem:[#allocation20_spill] sm:$0xff] }
 0x53c   :  { %2249 = vmatprep.subr.bf16.mxu1 %v8292_v13  ;;  %2332 = vmatpush1.bf16.msra.mxu0 %v8690_v10  ;;  %v11672_v13 = vld [vmem:[#allocation26_spill] sm:$0xff] }
 0x53d   :  { %2333 = vmatprep.subr.bf16.mxu0 %v8693_v36 }
 0x53f   :  { %2250 = vmatpush1.bf16.msra.mxu1 %v8297_v39  ;;  %v11673_v39 = vld [vmem:[#allocation75_spill] sm:$0xff] }
 0x540   :  { %2251 = vmatprep.subr.bf16.mxu1 %v8300_v2  ;;  %2334 = vmatpush1.bf16.msra.mxu0 %v8698_v21  ;;  %v11674_v2 = vld [vmem:[#allocation76_spill] sm:$0xff] }
 0x541   :  { %2335 = vmatprep.subr.bf16.mxu0 %v8701_v58 }
 0x543   :  { %2252 = vmatpush1.bf16.msra.mxu1 %v8305_v20  ;;  %v11675_v20 = vld [vmem:[#allocation24_spill] sm:$0xff] }
 0x544   :  { %2253 = vmatprep.subr.bf16.mxu1 %v8308_v22  ;;  %2336 = vmatpush1.bf16.msra.mxu0 %v8706_v50  ;;  %v11676_v22 = vld [vmem:[#allocation27_spill] sm:$0xff] }
 0x545   :  { %2337 = vmatprep.subr.bf16.mxu0 %v8709_v4 }
 0x547   :  { %2254 = vmatpush1.bf16.msra.mxu1 %v8505_v59 }
 0x548   :  { %2255 = vmatprep.subr.bf16.mxu1 %v8508_v41  ;;  %2338 = vmatpush1.bf16.msra.mxu0 %v8714_v29 }
 0x549   :  { %2339 = vmatprep.subr.bf16.mxu0 %v8717_v16 }
 0x54b   :  { %2256 = vmatpush2.bf16.msra.mxu1 %v8513_v48 }
 0x54c   :  { %2257 = vmatprep.subr.bf16.mxu1 %v8516_v56  ;;  %2340 = vmatpush2.bf16.msra.mxu0 %v8722_v14 }
 0x54d   :  { %2341 = vmatprep.subr.bf16.mxu0 %v8320_v17  ;;  %v11677_v17 = vld [vmem:[#allocation10_spill] sm:$0xff] }
 0x54f   :  { %2258 = vmatpush2.bf16.msra.mxu1 %v11663_v45 }
 0x550   :  { %2259 = vmatprep.subr.bf16.mxu1 %v11664_v47  ;;  %2342 = vmatpush2.bf16.msra.mxu0 %v11665_v37  ;;  %v11697_v37 = vld [vmem:[#allocation87_spill] sm:$0xff] }
 0x551   :  { %2343 = vmatprep.subr.bf16.mxu0 %v11666_v25  ;;  %v11698_v25 = vld [vmem:[#allocation88_spill] sm:$0xff] }
 0x553   :  { %2260 = vmatpush2.bf16.msra.mxu1 %v11667_v6 }
 0x554   :  { %2261 = vmatprep.subr.bf16.mxu1 %v11668_v42  ;;  %2344 = vmatpush2.bf16.msra.mxu0 %v11669_v1  ;;  %v11699_v1 = vld [vmem:[#allocation89_spill] sm:$0xff] }
 0x555   :  { %2345 = vmatprep.subr.bf16.mxu0 %v11670_v11  ;;  %v11700_v11 = vld [vmem:[#allocation90_spill] sm:$0xff] }
 0x557   :  { %2262 = vmatpush2.bf16.msra.mxu1 %v11671_v51 }
 0x558   :  { %2263 = vmatprep.subr.bf16.mxu1 %v11672_v13  ;;  %2346 = vmatpush2.bf16.msra.mxu0 %v11673_v39  ;;  %v11702_v39 = vld [vmem:[#allocation92_spill] sm:$0xff] }
 0x559   :  { %2347 = vmatprep.subr.bf16.mxu0 %v11674_v2  ;;  %v11703_v2 = vld [vmem:[#allocation93_spill] sm:$0xff] }
 0x55b   :  { %2264 = vmatpush2.bf16.msra.mxu1 %v11675_v20 }
 0x55c   :  { %2265 = vmatprep.subr.bf16.mxu1 %v11676_v22  ;;  %2348 = vmatpush2.bf16.msra.mxu0 %v11677_v17  ;;  %v11704_v17 = vld [vmem:[#allocation94_spill] sm:$0xff] }
 0x55d   :  { %2349 = vmatprep.subr.bf16.mxu0 %v11678_v54  ;;  %v11705_v54 = vld [vmem:[#allocation95_spill] sm:$0xff] }
 0x55f   :  { %2266 = vmatpush2.bf16.msra.mxu1 %v11679_v24 }
 0x560   :  { %2267 = vmatprep.subr.bf16.mxu1 %v11680_v30  ;;  %2350 = vmatpush2.bf16.msra.mxu0 %v11681_v28  ;;  %v11706_v28 = vld [vmem:[#allocation96_spill] sm:$0xff] }
 0x561   :  { %2351 = vmatprep.subr.bf16.mxu0 %v11682_v63  ;;  %v11707_v63 = vld [vmem:[#allocation97_spill] sm:$0xff] }
 0x563   :  { %2268 = vmatpush2.bf16.msra.mxu1 %v11683_v7 }
 0x564   :  { %2269 = vmatprep.subr.bf16.mxu1 %v11684_v46  ;;  %2352 = vmatpush2.bf16.msra.mxu0 %v11685_v31  ;;  %v11708_v31 = vld [vmem:[#allocation98_spill] sm:$0xff] }
 0x565   :  { %2353 = vmatprep.subr.bf16.mxu0 %v11686_v43  ;;  %v11709_v43 = vld [vmem:[#allocation99_spill] sm:$0xff] }
 0x567   :  { %2270 = vmatpush2.bf16.msra.mxu1 %v11687_v57 }
 0x568   :  { %2364 = vmatprep.subr.bf16.mxu1 %v11688_v18  ;;  %2354 = vmatpush2.bf16.msra.mxu0 %v11689_v19  ;;  %v11710_v18 = vld [vmem:[#allocation102_spill] sm:$0xff]  ;;  %v11711_v19 = vld [vmem:[#allocation103_spill] sm:$0xff] }
 0x569   :  { %2405 = vmatprep.subr.bf16.mxu0 %v11690_v40  ;;  %v11712_v40 = vld [vmem:[#allocation104_spill] sm:$0xff] }
 0x56a   :  { %2272 = vmatmul.mubr.bf16.vlgmr.msra.gmra.mxu1 %v8808_v23  ;;  %v11701_v23 = vld [vmem:[#allocation91_spill] sm:$0xff] }
 0x56b   :  { %2365 = vmatpush1.bf16.msra.mxu1 %v11691_v0  ;;  %v11713_v0 = vld [vmem:[#allocation105_spill] sm:$0xff] }
 0x56c   :  { %2366 = vmatprep.subr.bf16.mxu1 %v11692_v35  ;;  %v11714_v35 = vld [vmem:[#allocation106_spill] sm:$0xff] }
 0x56f   :  { %2367 = vmatpush1.bf16.msra.mxu1 %v11693_v38  ;;  %v11715_v38 = vld [vmem:[#allocation107_spill] sm:$0xff] }
 0x570   :  { %2368 = vmatprep.subr.bf16.mxu1 %v11694_v33  ;;  %v11716_v33 = vld [vmem:[#allocation108_spill] sm:$0xff] }
 0x573   :  { %2369 = vmatpush1.bf16.msra.mxu1 %v11695_v49  ;;  %v11717_v49 = vld [vmem:[#allocation109_spill] sm:$0xff] }
 0x574   :  { %2370 = vmatprep.subr.bf16.mxu1 %v11696_v60  ;;  %v11718_v60 = vld [vmem:[#allocation110_spill] sm:$0xff] }
 0x577   :  { %2371 = vmatpush1.bf16.msra.mxu1 %v11697_v37  ;;  %v11719_v37 = vld [vmem:[#allocation111_spill] sm:$0xff] }
 0x578   :  { %2372 = vmatprep.subr.bf16.mxu1 %v11698_v25  ;;  %v11720_v25 = vld [vmem:[#allocation112_spill] sm:$0xff] }
 0x57b   :  { %2373 = vmatpush1.bf16.msra.mxu1 %v11699_v1  ;;  %v11721_v1 = vld [vmem:[#allocation113_spill] sm:$0xff] }
 0x57c   :  { %2374 = vmatprep.subr.bf16.mxu1 %v11700_v11  ;;  %v11722_v11 = vld [vmem:[#allocation114_spill] sm:$0xff] }
 0x57f   :  { %2375 = vmatpush1.bf16.msra.mxu1 %v11701_v23 }
 0x580   :  { %2376 = vmatprep.subr.bf16.mxu1 %v11702_v39 }
 0x583   :  { %2377 = vmatpush1.bf16.msra.mxu1 %v11703_v2 }
 0x584   :  { %2378 = vmatprep.subr.bf16.mxu1 %v11704_v17 }
 0x587   :  { %2379 = vmatpush1.bf16.msra.mxu1 %v11705_v54 }
 0x588   :  { %2380 = vmatprep.subr.bf16.mxu1 %v11706_v28 }
 0x58b   :  { %2381 = vmatpush2.bf16.msra.mxu1 %v11707_v63 }
 0x58c   :  { %2382 = vmatprep.subr.bf16.mxu1 %v11708_v31 }
 0x58f   :  { %2383 = vmatpush2.bf16.msra.mxu1 %v11709_v43  ;;  %v11723_v43 = vld [vmem:[#allocation38_spill] sm:$0xff] }
 0x590   :  { %2384 = vmatprep.subr.bf16.mxu1 %v11710_v18 }
 0x593   :  { %2385 = vmatpush2.bf16.msra.mxu1 %v11711_v19 }
 0x594   :  { %2386 = vmatprep.subr.bf16.mxu1 %v11712_v40 }
 0x597   :  { %2387 = vmatpush2.bf16.msra.mxu1 %v11713_v0 }
 0x598   :  { %2388 = vmatprep.subr.bf16.mxu1 %v11714_v35 }
 0x59b   :  { %2389 = vmatpush2.bf16.msra.mxu1 %v11715_v38 }
 0x59c   :  { %2390 = vmatprep.subr.bf16.mxu1 %v11716_v33 }
 0x59f   :  { %2391 = vmatpush2.bf16.msra.mxu1 %v11717_v49  ;;  %v11726_v49 = vld [vmem:[#allocation41_spill] sm:$0xff] }
 0x5a0   :  { %2392 = vmatprep.subr.bf16.mxu1 %v11718_v60 }
 0x5a3   :  { %2393 = vmatpush2.bf16.msra.mxu1 %v11719_v37 }
 0x5a4   :  { %2394 = vmatprep.subr.bf16.mxu1 %v11720_v25 }
 0x5a7   :  { %2395 = vmatpush2.bf16.msra.mxu1 %v11721_v1  ;;  %v11725_v1 = vld [vmem:[#allocation39_spill] sm:$0xff] }
 0x5a8   :  { %2489 = vmatprep.subr.bf16.mxu1 %v11722_v11 }
 0x5ea   :  { %v2191_v23 = vpop.f32.mrf.mxu1  ;;  %v2232_v39 = vpop.f32.mrf.mxu0 }
 0x5eb   :  { %v2280_v27 = vadd.f32 %v2191_v23, %v11723_v43  ;;  %v2292_v11 = vadd.f32 %v2232_v39, %v11725_v1 }
 0x5ec   :  { %v2193_v2 = vpop.f32.mrf.mxu1  ;;  %v2234_v17 = vpop.f32.mrf.mxu0 }
 0x5ed   :  { %v2281_v53 = vadd.f32 %v2193_v2, %v11724_v12  ;;  %v2282_v26 = vsub.f32 0.0, %v2280_v27  ;;  %v2293_v33 = vadd.f32 %v2234_v17, %v11726_v49  ;;  %v2294_v38 = vsub.f32 0.0, %v2292_v11 }
 0x5ee   :  { %v2195_v54 = vpop.f32.mrf.mxu1  ;;  %v2236_v28 = vpop.f32.mrf.mxu0 }
 0x5ef   :  { %v2283_v37 = vsub.f32 0.0, %v2281_v53  ;;  %v2284_v60 = vmul.f32 1.442695, %v2282_v26  ;;  %v2295_v54 = vsub.f32 0.0, %v2293_v33 }
 0x5f0   :  { %v2196_v63 = vpop.f32.mrf.mxu1  ;;  %v2237_v31 = vpop.f32.mrf.mxu0 }
 0x5f1   :  { %v2286_v25 = vmul.f32 1.442695, %v2283_v37  ;;  %6954 = vpow2.f32 %v2284_v60  ;;  %v2296_v63 = vmul.f32 1.442695, %v2294_v38  ;;  %v2298_v0 = vmul.f32 1.442695, %v2295_v54 }
 0x5f3   :  { %6956 = vpow2.f32 %v2286_v25 }
 0x5f4   :  { %6958 = vpow2.f32 %v2296_v63 }
 0x5fe   :  { %v6955_v35 = vpop.eup %6954 }
 0x5ff   :  { %v2288_v31 = vadd.f32 1.0, %v6955_v35  ;;  %v11727_v35 = vld [vmem:[#allocation61_spill] sm:$0xff] }
 0x600   :  { %v6957_v28 = vpop.eup %6956 }
 0x601   :  { %v2289_v23 = vadd.f32 1.0, %v6957_v28  ;;  %6960 = vrcp.f32 %v2288_v31  ;;  %v6959_v27 = vpop.eup %6958 }
 0x602   :  { %6962 = vpow2.f32 %v2298_v0  ;;  %v2300_v1 = vadd.f32 1.0, %v6959_v27  ;;  %v11728_v0 = vld [vmem:[#allocation62_spill] sm:$0xff] }
 0x603   :  { %6964 = vrcp.f32 %v2289_v23 }
 0x60e   :  { %v6961_v53 = vpop.eup %6960 }
 0x60f   :  { %v6963_v37 = vpop.eup %6962 }
 0x610   :  { %v6965_v33 = vpop.eup %6964  ;;  %v2301_v17 = vadd.f32 1.0, %v6963_v37 }
 0x62a   :  { %v2273_v26 = vpop.f32.mrf.mxu1 }
 0x62b   :  { %v2304_v12 = vadd.f32 %v2273_v26, %v8234_v61 }
 0x62c   :  { %v2275_v60 = vpop.f32.mrf.mxu1 }
 0x62d   :  { %v2306_v49 = vmul.f32 %v6961_v53, %v2304_v12  ;;  %v2305_v25 = vadd.f32 %v2275_v60, %v8237_v9 }
 0x62e   :  { %v2277_v38 = vpop.f32.mrf.mxu1 }
 0x62f   :  { %v2308_v11 = vadd.f32 %v2306_v49, %v11727_v35  ;;  %v2307_v39 = vmul.f32 %v6965_v33, %v2305_v25  ;;  %v8931_v25 = vld [vmem:[#allocation5 + $0x160] ss:$24 sps:$4 sm:$0xff]   ;;  %v8934_v33 = vld [vmem:[#allocation5 + $0x134] ss:$24 sps:$4 sm:$0xff]   ;;  %v8942_v38 = vld [vmem:[#allocation5 + $0x104] ss:$24 sps:$4 sm:$0xff]  }
 0x630   :  { %v2278_v2 = vpop.f32.mrf.mxu1  ;;  %v8947_v35 = vld [vmem:[#allocation5 + $0x100] ss:$24 sps:$4 sm:$0xff]  }
 0x631   :  { %6966 = vtanh.f32 %v2308_v11  ;;  %v2309_v43 = vadd.f32 %v2307_v39, %v11728_v0  ;;  %v8950_v11 = vld [vmem:[#allocation5 + $0xd4] ss:$24 sps:$4 sm:$0xff]   ;;  %v8955_v39 = vld [vmem:[#allocation5 + $0xd0] ss:$24 sps:$4 sm:$0xff]   ;;  %v8958_v2 = vld [vmem:[#allocation5 + $0xa4] ss:$24 sps:$4 sm:$0xff]  }
 0x632   :  { %6968 = vrcp.f32 %v2300_v1  ;;  %v8939_v1 = vld [vmem:[#allocation5 + $0x130] ss:$24 sps:$4 sm:$0xff]   ;;  %v8966_v0 = vld [vmem:[#allocation5 + $0x74] ss:$24 sps:$4 sm:$0xff]  }
 0x633   :  { %6970 = vtanh.f32 %v2309_v43  ;;  %v8971_v43 = vld [vmem:[#allocation5 + $0x70] ss:$24 sps:$4 sm:$0xff]  }
 0x634   :  { %6972 = vrcp.f32 %v2301_v17  ;;  %v8963_v17 = vld [vmem:[#allocation5 + $0xa0] ss:$24 sps:$4 sm:$0xff]  }
 0x63e   :  { %v6967_v54 = vpop.eup %6966 }
 0x63f   :  { %v6969_v28 = vpop.eup %6968  ;;  %v2312_v63 = vsub.f32 %v8800_v34, %v6967_v54  ;;  %v9080_v34 = vld [vmem:[#allocation5 + $0x98] ss:$24 sps:$4 sm:$0xff]  }
 0x640   :  { %v6971_v31 = vpop.eup %6970  ;;  %11748 = vst [vmem:[#allocation76_spill] sm:$0xff] %v9080_v34 }
 0x641   :  { %v2313_v23 = vsub.f32 %v8802_v62, %v6971_v31  ;;  %v2314_v26 = vmul.f32 %v6969_v28, %v2312_v63  ;;  %v6973_v27 = vpop.eup %6972  ;;  %v8979_v28 = vld [vmem:[#allocation5 + $0x40] ss:$24 sps:$4 sm:$0xff]   ;;  %v8982_v63 = vld [vmem:[#allocation5 + $0x14] ss:$24 sps:$4 sm:$0xff]  }
 0x642   :  { %v9083_v62 = vld [vmem:[#allocation5 + $0x6c] ss:$24 sps:$4 sm:$0xff]  }
 0x643   :  { %v2315_v12 = vmul.f32 %v6973_v27, %v2313_v23  ;;  %v8919_v53 = vadd.f32 %v6967_v54, %v2314_v26  ;;  %v8974_v54 = vld [vmem:[#allocation5 + $0x44] ss:$24 sps:$4 sm:$0xff]   ;;  %v9068_v27 = vld [vmem:[#allocation5 + $0xf8] ss:$24 sps:$4 sm:$0xff]   ;;  %11749 = vst [vmem:[#allocation24_spill] sm:$0xff] %v9083_v62 }
 0x644   :  { %v9059_v23 = vld [vmem:[#allocation5 + $0x12c] ss:$24 sps:$4 sm:$0xff]   ;;  %v9065_v26 = vld [vmem:[#allocation5 + $0xfc] ss:$24 sps:$4 sm:$0xff]   ;;  %11744 = vst [vmem:[#allocation74_spill] sm:$0xff] %v9068_v27 }
 0x645   :  { %v8921_v60 = vadd.f32 %v6971_v31, %v2315_v12  ;;  %v8927_v49 = vpack.c.bf16 %v8919_v53, %v8919_v53  ;;  %v8994_v31 = vld [vmem:[#allocation5 + $0x2a4] ss:$24 sps:$4 sm:$0xff]   ;;  %11741 = vst [vmem:[#allocation16_spill] sm:$0xff] %v9059_v23  ;;  %11743 = vst [vmem:[#allocation73_spill] sm:$0xff] %v9065_v26 }
 0x646   :  { %v9071_v12 = vld [vmem:[#allocation5 + $0xcc] ss:$24 sps:$4 sm:$0xff]  }
 0x647   :  { %v2322_v37 = vpack.c.bf16 %v8921_v60, %v8921_v60  ;;  %11745 = vst [vmem:[#allocation20_spill] sm:$0xff] %v9071_v12 }
 0x649   :  { %2355 = vmatprep.mubr.bf16.mxu0 %v2322_v37  ;;  %2396 = vmatprep.mubr.bf16.mxu1 %v2322_v37 }
 0x64a   :  { %2356 = vmatmul.mubr.bf16.vlgmr.msra.gmra.mxu0 %v8927_v49  ;;  %2397 = vmatmul.mubr.bf16.vlgmr.msra.gmra.mxu1 %v8927_v49 }
 0x64b   :  { %2406 = vmatpush1.bf16.msra.mxu0 %v8931_v25  ;;  %2437 = vmatprep.mubr.bf16.mxu0 %v2322_v37  ;;  %v9074_v37 = vld [vmem:[#allocation5 + $0xc8] ss:$24 sps:$4 sm:$0xff]  }
 0x64c   :  { %2407 = vmatprep.subr.bf16.mxu0 %v8934_v33  ;;  %2490 = vmatpush1.bf16.msra.mxu1 %v8658_v15  ;;  %11746 = vst [vmem:[#allocation26_spill] sm:$0xff] %v9074_v37 }
 0x64d   :  { %2491 = vmatprep.subr.bf16.mxu1 %v8661_v8 }
 0x64f   :  { %2408 = vmatpush1.bf16.msra.mxu0 %v8939_v1 }
 0x650   :  { %2409 = vmatprep.subr.bf16.mxu0 %v8942_v38  ;;  %2492 = vmatpush1.bf16.msra.mxu1 %v8666_v52 }
 0x651   :  { %2493 = vmatprep.subr.bf16.mxu1 %v8669_v3 }
 0x653   :  { %2410 = vmatpush1.bf16.msra.mxu0 %v8947_v35 }
 0x654   :  { %2411 = vmatprep.subr.bf16.mxu0 %v8950_v11  ;;  %2494 = vmatpush1.bf16.msra.mxu1 %v8674_v5 }
 0x655   :  { %2495 = vmatprep.subr.bf16.mxu1 %v8677_v44 }
 0x657   :  { %2412 = vmatpush1.bf16.msra.mxu0 %v8955_v39 }
 0x658   :  { %2413 = vmatprep.subr.bf16.mxu0 %v8958_v2  ;;  %2496 = vmatpush1.bf16.msra.mxu1 %v8682_v55 }
 0x659   :  { %2497 = vmatprep.subr.bf16.mxu1 %v8685_v32 }
 0x65b   :  { %2414 = vmatpush1.bf16.msra.mxu0 %v8963_v17 }
 0x65c   :  { %2415 = vmatprep.subr.bf16.mxu0 %v8966_v0  ;;  %2498 = vmatpush1.bf16.msra.mxu1 %v8690_v10 }
 0x65d   :  { %2499 = vmatprep.subr.bf16.mxu1 %v8693_v36 }
 0x65f   :  { %2416 = vmatpush1.bf16.msra.mxu0 %v8971_v43 }
 0x660   :  { %2417 = vmatprep.subr.bf16.mxu0 %v8974_v54  ;;  %2500 = vmatpush1.bf16.msra.mxu1 %v8698_v21 }
 0x661   :  { %2501 = vmatprep.subr.bf16.mxu1 %v8701_v58 }
 0x663   :  { %2418 = vmatpush1.bf16.msra.mxu0 %v8979_v28 }
 0x664   :  { %2419 = vmatprep.subr.bf16.mxu0 %v8982_v63  ;;  %2502 = vmatpush1.bf16.msra.mxu1 %v8706_v50 }
 0x665   :  { %2503 = vmatprep.subr.bf16.mxu1 %v8709_v4 }
 0x667   :  { %2420 = vmatpush1.bf16.msra.mxu0 %v8505_v59  ;;  %v8999_v59 = vld [vmem:[#allocation5 + $0x2a0] ss:$24 sps:$4 sm:$0xff]  }
 0x668   :  { %2421 = vmatprep.subr.bf16.mxu0 %v8508_v41  ;;  %2504 = vmatpush1.bf16.msra.mxu1 %v8714_v29  ;;  %v9002_v41 = vld [vmem:[#allocation5 + $0x274] ss:$24 sps:$4 sm:$0xff]  }
 0x669   :  { %2505 = vmatprep.subr.bf16.mxu1 %v8717_v16 }
 0x66b   :  { %2422 = vmatpush2.bf16.msra.mxu0 %v8513_v48  ;;  %v9007_v48 = vld [vmem:[#allocation5 + $0x270] ss:$24 sps:$4 sm:$0xff]  }
 0x66c   :  { %2423 = vmatprep.subr.bf16.mxu0 %v8516_v56  ;;  %2506 = vmatpush2.bf16.msra.mxu1 %v8722_v14  ;;  %v9010_v56 = vld [vmem:[#allocation5 + $0x244] ss:$24 sps:$4 sm:$0xff]  }
 0x66d   :  { %2507 = vmatprep.subr.bf16.mxu1 %v8994_v31 }
 0x66f   :  { %2424 = vmatpush2.bf16.msra.mxu0 %v11663_v45  ;;  %v9015_v45 = vld [vmem:[#allocation5 + $0x240] ss:$24 sps:$4 sm:$0xff]  }
 0x670   :  { %2425 = vmatprep.subr.bf16.mxu0 %v11664_v47  ;;  %2508 = vmatpush2.bf16.msra.mxu1 %v8999_v59  ;;  %11729 = vst [vmem:[#allocation57_spill] sm:$0xff] %v9015_v45  ;;  %v9018_v47 = vld [vmem:[#allocation5 + $0x214] ss:$24 sps:$4 sm:$0xff]  }
 0x671   :  { %2509 = vmatprep.subr.bf16.mxu1 %v9002_v41  ;;  %11730 = vst [vmem:[#allocation58_spill] sm:$0xff] %v9018_v47 }
 0x673   :  { %2426 = vmatpush2.bf16.msra.mxu0 %v11667_v6  ;;  %v9023_v6 = vld [vmem:[#allocation5 + $0x210] ss:$24 sps:$4 sm:$0xff]  }
 0x674   :  { %2427 = vmatprep.subr.bf16.mxu0 %v11668_v42  ;;  %2510 = vmatpush2.bf16.msra.mxu1 %v9007_v48  ;;  %11731 = vst [vmem:[#allocation36_spill] sm:$0xff] %v9023_v6  ;;  %v9026_v42 = vld [vmem:[#allocation5 + $0x1e4] ss:$24 sps:$4 sm:$0xff]  }
 0x675   :  { %2511 = vmatprep.subr.bf16.mxu1 %v9010_v56  ;;  %11732 = vst [vmem:[#allocation34_spill] sm:$0xff] %v9026_v42 }
 0x677   :  { %2428 = vmatpush2.bf16.msra.mxu0 %v11671_v51  ;;  %v9031_v51 = vld [vmem:[#allocation5 + $0x1e0] ss:$24 sps:$4 sm:$0xff]  }
 0x678   :  { %2429 = vmatprep.subr.bf16.mxu0 %v11672_v13  ;;  %2512 = vmatpush2.bf16.msra.mxu1 %v9015_v45  ;;  %11733 = vst [vmem:[#allocation37_spill] sm:$0xff] %v9031_v51  ;;  %v9034_v13 = vld [vmem:[#allocation5 + $0x1b4] ss:$24 sps:$4 sm:$0xff]  }
 0x679   :  { %2513 = vmatprep.subr.bf16.mxu1 %v9018_v47  ;;  %11734 = vst [vmem:[#allocation35_spill] sm:$0xff] %v9034_v13 }
 0x67b   :  { %2430 = vmatpush2.bf16.msra.mxu0 %v11675_v20  ;;  %v9039_v20 = vld [vmem:[#allocation5 + $0x1b0] ss:$24 sps:$4 sm:$0xff]  }
 0x67c   :  { %2431 = vmatprep.subr.bf16.mxu0 %v11676_v22  ;;  %2514 = vmatpush2.bf16.msra.mxu1 %v9023_v6  ;;  %11735 = vst [vmem:[#allocation60_spill] sm:$0xff] %v9039_v20  ;;  %v9042_v22 = vld [vmem:[#allocation5 + $0x184] ss:$24 sps:$4 sm:$0xff]   ;;  %v11774_v6 = vld [vmem:[#allocation43_spill] sm:$0xff] }
 0x67d   :  { %2515 = vmatprep.subr.bf16.mxu1 %v9026_v42  ;;  %11736 = vst [vmem:[#allocation59_spill] sm:$0xff] %v9042_v22 }
 0x67f   :  { %2432 = vmatpush2.bf16.msra.mxu0 %v11679_v24  ;;  %v9046_v24 = vld [vmem:[#allocation5 + $0x15c] ss:$24 sps:$4 sm:$0xff]  }
 0x680   :  { %2433 = vmatprep.subr.bf16.mxu0 %v11680_v30  ;;  %2516 = vmatpush2.bf16.msra.mxu1 %v9031_v51  ;;  %11737 = vst [vmem:[#allocation13_spill] sm:$0xff] %v9046_v24  ;;  %v9049_v30 = vld [vmem:[#allocation5 + $0x180] ss:$24 sps:$4 sm:$0xff]  }
 0x681   :  { %2517 = vmatprep.subr.bf16.mxu1 %v9034_v13  ;;  %11738 = vst [vmem:[#allocation15_spill] sm:$0xff] %v9049_v30  ;;  %v11773_v51 = vld [vmem:[#allocation45_spill] sm:$0xff] }
 0x683   :  { %2434 = vmatpush2.bf16.msra.mxu0 %v11683_v7  ;;  %v9052_v7 = vld [vmem:[#allocation5 + $0x164] ss:$24 sps:$4 sm:$0xff]  }
 0x684   :  { %2435 = vmatprep.subr.bf16.mxu0 %v11684_v46  ;;  %2518 = vmatpush2.bf16.msra.mxu1 %v9039_v20  ;;  %11739 = vst [vmem:[#allocation71_spill] sm:$0xff] %v9052_v7  ;;  %v9056_v46 = vld [vmem:[#allocation5 + $0x158] ss:$24 sps:$4 sm:$0xff]  }
 0x685   :  { %2519 = vmatprep.subr.bf16.mxu1 %v9042_v22  ;;  %11740 = vst [vmem:[#allocation72_spill] sm:$0xff] %v9056_v46 }
 0x687   :  { %2436 = vmatpush2.bf16.msra.mxu0 %v11687_v57  ;;  %v9062_v57 = vld [vmem:[#allocation5 + $0x128] ss:$24 sps:$4 sm:$0xff]  }
 0x688   :  { %2530 = vmatprep.subr.bf16.mxu0 %v9046_v24  ;;  %2520 = vmatpush2.bf16.msra.mxu1 %v9049_v30  ;;  %11742 = vst [vmem:[#allocation18_spill] sm:$0xff] %v9062_v57  ;;  %v11769_v30 = vld [vmem:[#allocation28_spill] sm:$0xff] }
 0x689   :  { %2571 = vmatprep.subr.bf16.mxu1 %v9052_v7 }
 0x68a   :  { %2438 = vmatmul.mubr.bf16.vlgmr.msra.gmra.mxu0 %v8927_v49  ;;  %v9077_v49 = vld [vmem:[#allocation5 + $0x9c] ss:$24 sps:$4 sm:$0xff]  }
 0x68b   :  { %2531 = vmatpush1.bf16.msra.mxu0 %v9056_v46  ;;  %11747 = vst [vmem:[#allocation75_spill] sm:$0xff] %v9077_v49 }
 0x68c   :  { %2532 = vmatprep.subr.bf16.mxu0 %v9059_v23 }
 0x68f   :  { %2533 = vmatpush1.bf16.msra.mxu0 %v9062_v57  ;;  %v11765_v57 = vld [vmem:[#allocation111_spill] sm:$0xff] }
 0x690   :  { %2534 = vmatprep.subr.bf16.mxu0 %v9065_v26  ;;  %v11763_v26 = vld [vmem:[#allocation109_spill] sm:$0xff] }
 0x693   :  { %2535 = vmatpush1.bf16.msra.mxu0 %v9068_v27  ;;  %v9086_v27 = vld [vmem:[#allocation5 + $0x68] ss:$24 sps:$4 sm:$0xff]  }
 0x694   :  { %2536 = vmatprep.subr.bf16.mxu0 %v9071_v12  ;;  %11750 = vst [vmem:[#allocation27_spill] sm:$0xff] %v9086_v27  ;;  %v9089_v12 = vld [vmem:[#allocation5 + $0x3c] ss:$24 sps:$4 sm:$0xff]  }
 0x695   :  { %11751 = vst [vmem:[#allocation10_spill] sm:$0xff] %v9089_v12 }
 0x697   :  { %2537 = vmatpush1.bf16.msra.mxu0 %v9074_v37  ;;  %v9092_v37 = vld [vmem:[#allocation5 + $0x38] ss:$24 sps:$4 sm:$0xff]  }
 0x698   :  { %2538 = vmatprep.subr.bf16.mxu0 %v9077_v49  ;;  %11752 = vst [vmem:[#allocation77_spill] sm:$0xff] %v9092_v37  ;;  %v9095_v49 = vld [vmem:[#allocation5 + $0xc] ss:$24 sps:$4 sm:$0xff]  }
 0x699   :  { %11753 = vst [vmem:[#allocation25_spill] sm:$0xff] %v9095_v49 }
 0x69b   :  { %2539 = vmatpush1.bf16.msra.mxu0 %v9080_v34  ;;  %v9098_v34 = vld [vmem:[#allocation5 + $0x8] ss:$24 sps:$4 sm:$0xff]  }
 0x69c   :  { %2540 = vmatprep.subr.bf16.mxu0 %v9083_v62  ;;  %11754 = vst [vmem:[#allocation55_spill] sm:$0xff] %v9098_v34  ;;  %v9101_v62 = vld [vmem:[#allocation5 + $0x2dc] ss:$24 sps:$4 sm:$0xff]  }
 0x69d   :  { %11755 = vst [vmem:[#allocation12_spill] sm:$0xff] %v9101_v62 }
 0x69f   :  { %2541 = vmatpush1.bf16.msra.mxu0 %v9086_v27  ;;  %v9104_v27 = vld [vmem:[#allocation5 + $0x2d8] ss:$24 sps:$4 sm:$0xff]  }
 0x6a0   :  { %2542 = vmatprep.subr.bf16.mxu0 %v9089_v12  ;;  %11756 = vst [vmem:[#allocation14_spill] sm:$0xff] %v9104_v27  ;;  %v9107_v12 = vld [vmem:[#allocation5 + $0x2ac] ss:$24 sps:$4 sm:$0xff]  }
 0x6a1   :  { %11757 = vst [vmem:[#allocation54_spill] sm:$0xff] %v9107_v12 }
 0x6a3   :  { %2543 = vmatpush1.bf16.msra.mxu0 %v9092_v37  ;;  %v9110_v37 = vld [vmem:[#allocation5 + $0x2a8] ss:$24 sps:$4 sm:$0xff]  }
 0x6a4   :  { %2544 = vmatprep.subr.bf16.mxu0 %v9095_v49  ;;  %11758 = vst [vmem:[#allocation100_spill] sm:$0xff] %v9110_v37  ;;  %v11761_v49 = vld [vmem:[#allocation107_spill] sm:$0xff] }
 0x6a7   :  { %2545 = vmatpush1.bf16.msra.mxu0 %v9098_v34  ;;  %v11759_v34 = vld [vmem:[#allocation105_spill] sm:$0xff] }
 0x6a8   :  { %2546 = vmatprep.subr.bf16.mxu0 %v9101_v62  ;;  %v11760_v62 = vld [vmem:[#allocation106_spill] sm:$0xff] }
 0x6ab   :  { %2547 = vmatpush2.bf16.msra.mxu0 %v9104_v27  ;;  %v11762_v27 = vld [vmem:[#allocation108_spill] sm:$0xff] }
 0x6ac   :  { %2548 = vmatprep.subr.bf16.mxu0 %v9107_v12  ;;  %v11764_v12 = vld [vmem:[#allocation110_spill] sm:$0xff] }
 0x6af   :  { %2549 = vmatpush2.bf16.msra.mxu0 %v9110_v37  ;;  %v11766_v37 = vld [vmem:[#allocation112_spill] sm:$0xff] }
 0x6b0   :  { %2550 = vmatprep.subr.bf16.mxu0 %v11710_v18  ;;  %v11767_v18 = vld [vmem:[#allocation113_spill] sm:$0xff] }
 0x6b3   :  { %2551 = vmatpush2.bf16.msra.mxu0 %v11711_v19  ;;  %v11768_v19 = vld [vmem:[#allocation114_spill] sm:$0xff] }
 0x6b4   :  { %2552 = vmatprep.subr.bf16.mxu0 %v11712_v40 }
 0x6b7   :  { %2553 = vmatpush2.bf16.msra.mxu0 %v11759_v34 }
 0x6b8   :  { %2554 = vmatprep.subr.bf16.mxu0 %v11760_v62 }
 0x6bb   :  { %2555 = vmatpush2.bf16.msra.mxu0 %v11761_v49 }
 0x6bc   :  { %2556 = vmatprep.subr.bf16.mxu0 %v11762_v27 }
 0x6bf   :  { %2557 = vmatpush2.bf16.msra.mxu0 %v11763_v26  ;;  %v11770_v26 = vld [vmem:[#allocation44_spill] sm:$0xff] }
 0x6c0   :  { %2558 = vmatprep.subr.bf16.mxu0 %v11764_v12  ;;  %v748_v24 = vadd.f32 %v11770_v26, %v11769_v30  ;;  %v11771_v12 = vld [vmem:[#allocation42_spill] sm:$0xff] }
 0x6c3   :  { %2559 = vmatpush2.bf16.msra.mxu0 %v11765_v57 }
 0x6c4   :  { %2560 = vmatprep.subr.bf16.mxu0 %v11766_v37 }
 0x6c7   :  { %2561 = vmatpush2.bf16.msra.mxu0 %v11767_v18 }
 0x6c8   :  { %2655 = vmatprep.subr.bf16.mxu0 %v11768_v19  ;;  %v11772_v19 = vld [vmem:[#allocation29_spill] sm:$0xff] }
 0x6c9   :  { %v821_v42 = vadd.f32 %v11773_v51, %v11772_v19 }
 0x70a   :  { %v2357_v40 = vpop.f32.mrf.mxu0  ;;  %v2398_v34 = vpop.f32.mrf.mxu1 }
 0x70b   :  { %v2446_v22 = vadd.f32 %v2357_v40, %v11771_v12 }
 0x70c   :  { %v2359_v23 = vpop.f32.mrf.mxu0  ;;  %v2400_v62 = vpop.f32.mrf.mxu1 }
 0x70d   :  { %v2447_v57 = vadd.f32 %v2359_v23, %v748_v24  ;;  %v2448_v20 = vsub.f32 0.0, %v2446_v22 }
 0x70e   :  { %v2361_v46 = vpop.f32.mrf.mxu0  ;;  %v2402_v49 = vpop.f32.mrf.mxu1 }
 0x70f   :  { %v2449_v37 = vsub.f32 0.0, %v2447_v57  ;;  %v2450_v13 = vmul.f32 1.442695, %v2448_v20  ;;  %v2458_v46 = vadd.f32 %v2398_v34, %v11774_v6  ;;  %v2459_v49 = vadd.f32 %v2400_v62, %v821_v42 }
 0x710   :  { %v2362_v7 = vpop.f32.mrf.mxu0  ;;  %v2403_v27 = vpop.f32.mrf.mxu1 }
 0x711   :  { %v2452_v18 = vmul.f32 1.442695, %v2449_v37  ;;  %6974 = vpow2.f32 %v2450_v13  ;;  %v2460_v7 = vsub.f32 0.0, %v2458_v46  ;;  %v2461_v47 = vsub.f32 0.0, %v2459_v49  ;;  %v11775_v37 = vld [vmem:[#allocation56_spill] sm:$0xff] }
 0x713   :  { %6976 = vpow2.f32 %v2452_v18  ;;  %v2462_v26 = vmul.f32 1.442695, %v2460_v7  ;;  %v2464_v40 = vmul.f32 1.442695, %v2461_v47  ;;  %v11776_v47 = vld [vmem:[#allocation64_spill] sm:$0xff]  ;;  %v11777_v18 = vld [vmem:[#allocation63_spill] sm:$0xff] }
 0x715   :  { %6978 = vpow2.f32 %v2462_v26 }
 0x71e   :  { %v6975_v27 = vpop.eup %6974 }
 0x71f   :  { %v2454_v30 = vadd.f32 1.0, %v6975_v27 }
 0x720   :  { %v6977_v45 = vpop.eup %6976 }
 0x721   :  { %v2455_v24 = vadd.f32 1.0, %v6977_v45  ;;  %6980 = vrcp.f32 %v2454_v30  ;;  %v894_v45 = vadd.f32 %v11776_v47, %v11775_v37  ;;  %v9243_v47 = vld [vmem:[#allocation5 + $0x190] ss:$24 sps:$4 sm:$0xff]  }
 0x722   :  { %6982 = vpow2.f32 %v2464_v40  ;;  %v6979_v20 = vpop.eup %6978 }
 0x723   :  { %6984 = vrcp.f32 %v2455_v24  ;;  %v2466_v12 = vadd.f32 1.0, %v6979_v20 }
 0x72e   :  { %v6981_v51 = vpop.eup %6980 }
 0x72f   :  { %v6983_v6 = vpop.eup %6982 }
 0x730   :  { %v6985_v62 = vpop.eup %6984  ;;  %v2467_v7 = vadd.f32 1.0, %v6983_v6 }
 0x74a   :  { %v2439_v13 = vpop.f32.mrf.mxu0 }
 0x74b   :  { %v2470_v22 = vadd.f32 %v2439_v13, %v8234_v61 }
 0x74c   :  { %v2441_v23 = vpop.f32.mrf.mxu0 }
 0x74d   :  { %v2472_v42 = vmul.f32 %v6981_v51, %v2470_v22  ;;  %v2471_v34 = vadd.f32 %v2441_v23, %v8237_v9 }
 0x74e   :  { %v2443_v57 = vpop.f32.mrf.mxu0 }
 0x74f   :  { %v2474_v30 = vadd.f32 %v2472_v42, %v11777_v18  ;;  %v2473_v46 = vmul.f32 %v6985_v62, %v2471_v34  ;;  %v11784_v62 = vld [vmem:[#allocation60_spill] sm:$0xff]  ;;  %v11787_v18 = vld [vmem:[#allocation15_spill] sm:$0xff] }
 0x750   :  { %v2444_v49 = vpop.f32.mrf.mxu0 }
 0x751   :  { %6986 = vtanh.f32 %v2474_v30  ;;  %v2475_v27 = vadd.f32 %v2473_v46, %v894_v45  ;;  %v11786_v45 = vld [vmem:[#allocation13_spill] sm:$0xff]  ;;  %v11788_v30 = vld [vmem:[#allocation71_spill] sm:$0xff]  ;;  %v11789_v46 = vld [vmem:[#allocation72_spill] sm:$0xff] }
 0x752   :  { %6988 = vrcp.f32 %v2466_v12  ;;  %v11785_v12 = vld [vmem:[#allocation59_spill] sm:$0xff]  ;;  %v11790_v49 = vld [vmem:[#allocation16_spill] sm:$0xff] }
 0x753   :  { %6990 = vtanh.f32 %v2475_v27  ;;  %v11792_v27 = vld [vmem:[#allocation73_spill] sm:$0xff] }
 0x754   :  { %6992 = vrcp.f32 %v2467_v7  ;;  %v11791_v7 = vld [vmem:[#allocation18_spill] sm:$0xff] }
 0x75e   :  { %v6987_v26 = vpop.eup %6986 }
 0x75f   :  { %v6989_v40 = vpop.eup %6988  ;;  %v2478_v24 = vsub.f32 %v8919_v53, %v6987_v26 }
 0x760   :  { %v6991_v13 = vpop.eup %6990 }
 0x761   :  { %v2479_v20 = vsub.f32 %v8921_v60, %v6991_v13  ;;  %v2480_v22 = vmul.f32 %v6989_v40, %v2478_v24  ;;  %v6993_v51 = vpop.eup %6992  ;;  %v11794_v40 = vld [vmem:[#allocation20_spill] sm:$0xff]  ;;  %v11795_v24 = vld [vmem:[#allocation26_spill] sm:$0xff] }
 0x763   :  { %v2481_v23 = vmul.f32 %v6993_v51, %v2479_v20  ;;  %v9139_v57 = vadd.f32 %v6987_v26, %v2480_v22  ;;  %v11793_v26 = vld [vmem:[#allocation74_spill] sm:$0xff]  ;;  %v11797_v20 = vld [vmem:[#allocation76_spill] sm:$0xff]  ;;  %v11799_v51 = vld [vmem:[#allocation27_spill] sm:$0xff] }
 0x764   :  { %v11798_v22 = vld [vmem:[#allocation24_spill] sm:$0xff] }
 0x765   :  { %v9141_v42 = vadd.f32 %v6991_v13, %v2481_v23  ;;  %v9147_v34 = vpack.c.bf16 %v9139_v57, %v9139_v57  ;;  %v11796_v13 = vld [vmem:[#allocation75_spill] sm:$0xff]  ;;  %v11800_v23 = vld [vmem:[#allocation10_spill] sm:$0xff] }
 0x767   :  { %v2488_v6 = vpack.c.bf16 %v9141_v42, %v9141_v42 }
 0x769   :  { %2521 = vmatprep.mubr.bf16.mxu1 %v2488_v6  ;;  %2562 = vmatprep.mubr.bf16.mxu0 %v2488_v6 }
 0x76a   :  { %2522 = vmatmul.mubr.bf16.vlgmr.msra.gmra.mxu1 %v9147_v34  ;;  %2563 = vmatmul.mubr.bf16.vlgmr.msra.gmra.mxu0 %v9147_v34 }
 0x76b   :  { %2572 = vmatpush1.bf16.msra.mxu1 %v8931_v25  ;;  %2603 = vmatprep.mubr.bf16.mxu1 %v2488_v6  ;;  %v11801_v6 = vld [vmem:[#allocation77_spill] sm:$0xff] }
 0x76c   :  { %2573 = vmatprep.subr.bf16.mxu1 %v8934_v33  ;;  %2656 = vmatpush1.bf16.msra.mxu0 %v8658_v15  ;;  %v9179_v15 = vld [vmem:[#allocation5 + $0x10] ss:$24 sps:$4 sm:$0xff]  }
 0x76d   :  { %2657 = vmatprep.subr.bf16.mxu0 %v8661_v8  ;;  %v9182_v8 = vld [vmem:[#allocation5 + $0x2e4] ss:$24 sps:$4 sm:$0xff]  }
 0x76f   :  { %2574 = vmatpush1.bf16.msra.mxu1 %v8939_v1 }
 0x770   :  { %2575 = vmatprep.subr.bf16.mxu1 %v8942_v38  ;;  %2658 = vmatpush1.bf16.msra.mxu0 %v8666_v52  ;;  %v9187_v52 = vld [vmem:[#allocation5 + $0x2e0] ss:$24 sps:$4 sm:$0xff]  }
 0x771   :  { %2659 = vmatprep.subr.bf16.mxu0 %v8669_v3  ;;  %v9190_v3 = vld [vmem:[#allocation5 + $0x2b4] ss:$24 sps:$4 sm:$0xff]  }
 0x773   :  { %2576 = vmatpush1.bf16.msra.mxu1 %v8947_v35 }
 0x774   :  { %2577 = vmatprep.subr.bf16.mxu1 %v8950_v11  ;;  %2660 = vmatpush1.bf16.msra.mxu0 %v8674_v5  ;;  %v9195_v5 = vld [vmem:[#allocation5 + $0x2b0] ss:$24 sps:$4 sm:$0xff]  }
 0x775   :  { %2661 = vmatprep.subr.bf16.mxu0 %v8677_v44  ;;  %v9198_v44 = vld [vmem:[#allocation5 + $0x284] ss:$24 sps:$4 sm:$0xff]  }
 0x777   :  { %2578 = vmatpush1.bf16.msra.mxu1 %v8955_v39 }
 0x778   :  { %2579 = vmatprep.subr.bf16.mxu1 %v8958_v2  ;;  %2662 = vmatpush1.bf16.msra.mxu0 %v8682_v55  ;;  %v9203_v55 = vld [vmem:[#allocation5 + $0x280] ss:$24 sps:$4 sm:$0xff]  }
 0x779   :  { %2663 = vmatprep.subr.bf16.mxu0 %v8685_v32  ;;  %v9206_v32 = vld [vmem:[#allocation5 + $0x254] ss:$24 sps:$4 sm:$0xff]  }
 0x77b   :  { %2580 = vmatpush1.bf16.msra.mxu1 %v8963_v17 }
 0x77c   :  { %2581 = vmatprep.subr.bf16.mxu1 %v8966_v0  ;;  %2664 = vmatpush1.bf16.msra.mxu0 %v8690_v10  ;;  %v9211_v10 = vld [vmem:[#allocation5 + $0x250] ss:$24 sps:$4 sm:$0xff]  }
 0x77d   :  { %2665 = vmatprep.subr.bf16.mxu0 %v8693_v36  ;;  %v9214_v36 = vld [vmem:[#allocation5 + $0x224] ss:$24 sps:$4 sm:$0xff]  }
 0x77f   :  { %2582 = vmatpush1.bf16.msra.mxu1 %v8971_v43 }
 0x780   :  { %2583 = vmatprep.subr.bf16.mxu1 %v8974_v54  ;;  %2666 = vmatpush1.bf16.msra.mxu0 %v8698_v21  ;;  %v11778_v21 = vld [vmem:[#allocation57_spill] sm:$0xff] }
 0x781   :  { %2667 = vmatprep.subr.bf16.mxu0 %v8701_v58  ;;  %v11779_v58 = vld [vmem:[#allocation58_spill] sm:$0xff] }
 0x783   :  { %2584 = vmatpush1.bf16.msra.mxu1 %v8979_v28 }
 0x784   :  { %2585 = vmatprep.subr.bf16.mxu1 %v8982_v63  ;;  %2668 = vmatpush1.bf16.msra.mxu0 %v8706_v50  ;;  %v9219_v50 = vld [vmem:[#allocation5 + $0x220] ss:$24 sps:$4 sm:$0xff]  }
 0x785   :  { %2669 = vmatprep.subr.bf16.mxu0 %v8709_v4  ;;  %v9222_v4 = vld [vmem:[#allocation5 + $0x1f4] ss:$24 sps:$4 sm:$0xff]  }
 0x787   :  { %2586 = vmatpush1.bf16.msra.mxu1 %v9179_v15 }
 0x788   :  { %2587 = vmatprep.subr.bf16.mxu1 %v9182_v8  ;;  %2670 = vmatpush1.bf16.msra.mxu0 %v8714_v29  ;;  %v11780_v29 = vld [vmem:[#allocation36_spill] sm:$0xff] }
 0x789   :  { %2671 = vmatprep.subr.bf16.mxu0 %v8717_v16  ;;  %v11781_v16 = vld [vmem:[#allocation34_spill] sm:$0xff] }
 0x78b   :  { %2588 = vmatpush2.bf16.msra.mxu1 %v9187_v52 }
 0x78c   :  { %2589 = vmatprep.subr.bf16.mxu1 %v9190_v3  ;;  %2672 = vmatpush2.bf16.msra.mxu0 %v8722_v14  ;;  %v9227_v14 = vld [vmem:[#allocation5 + $0x1f0] ss:$24 sps:$4 sm:$0xff]  }
 0x78d   :  { %2673 = vmatprep.subr.bf16.mxu0 %v8994_v31  ;;  %v9230_v31 = vld [vmem:[#allocation5 + $0x1c4] ss:$24 sps:$4 sm:$0xff]  }
 0x78f   :  { %2590 = vmatpush2.bf16.msra.mxu1 %v9195_v5 }
 0x790   :  { %2591 = vmatprep.subr.bf16.mxu1 %v9198_v44  ;;  %2674 = vmatpush2.bf16.msra.mxu0 %v8999_v59  ;;  %v11782_v59 = vld [vmem:[#allocation37_spill] sm:$0xff] }
 0x791   :  { %2675 = vmatprep.subr.bf16.mxu0 %v9002_v41  ;;  %v11783_v41 = vld [vmem:[#allocation35_spill] sm:$0xff] }
 0x793   :  { %2592 = vmatpush2.bf16.msra.mxu1 %v9203_v55 }
 0x794   :  { %2593 = vmatprep.subr.bf16.mxu1 %v9206_v32  ;;  %2676 = vmatpush2.bf16.msra.mxu0 %v9007_v48  ;;  %v9235_v48 = vld [vmem:[#allocation5 + $0x1c0] ss:$24 sps:$4 sm:$0xff]  }
 0x795   :  { %2677 = vmatprep.subr.bf16.mxu0 %v9010_v56  ;;  %v9238_v56 = vld [vmem:[#allocation5 + $0x194] ss:$24 sps:$4 sm:$0xff]  }
 0x797   :  { %2594 = vmatpush2.bf16.msra.mxu1 %v9211_v10 }
 0x798   :  { %2595 = vmatprep.subr.bf16.mxu1 %v9214_v36  ;;  %2678 = vmatpush2.bf16.msra.mxu0 %v11778_v21  ;;  %v11803_v21 = vld [vmem:[#allocation55_spill] sm:$0xff] }
 0x799   :  { %2679 = vmatprep.subr.bf16.mxu0 %v11779_v58  ;;  %v11804_v58 = vld [vmem:[#allocation12_spill] sm:$0xff] }
 0x79b   :  { %2596 = vmatpush2.bf16.msra.mxu1 %v9219_v50 }
 0x79c   :  { %2597 = vmatprep.subr.bf16.mxu1 %v9222_v4  ;;  %2680 = vmatpush2.bf16.msra.mxu0 %v11780_v29  ;;  %v11805_v29 = vld [vmem:[#allocation14_spill] sm:$0xff] }
 0x79d   :  { %2681 = vmatprep.subr.bf16.mxu0 %v11781_v16  ;;  %v11806_v16 = vld [vmem:[#allocation54_spill] sm:$0xff] }
 0x79f   :  { %2598 = vmatpush2.bf16.msra.mxu1 %v9227_v14 }
 0x7a0   :  { %2599 = vmatprep.subr.bf16.mxu1 %v9230_v31  ;;  %2682 = vmatpush2.bf16.msra.mxu0 %v11782_v59  ;;  %v11807_v59 = vld [vmem:[#allocation100_spill] sm:$0xff] }
 0x7a1   :  { %2683 = vmatprep.subr.bf16.mxu0 %v11783_v41  ;;  %v7374_v41 = vld [vmem:[#allocation5 + $0x27c] ss:$24 sps:$4 sm:$0xff]  }
 0x7a3   :  { %2600 = vmatpush2.bf16.msra.mxu1 %v9235_v48 }
 0x7a4   :  { %2601 = vmatprep.subr.bf16.mxu1 %v9238_v56  ;;  %2684 = vmatpush2.bf16.msra.mxu0 %v11784_v62  ;;  %v7375_v62 = vld [vmem:[#allocation5 + $0x278] ss:$24 sps:$4 sm:$0xff]  }
 0x7a5   :  { %2685 = vmatprep.subr.bf16.mxu0 %v11785_v12  ;;  %v7376_v12 = vld [vmem:[#allocation5 + $0x24c] ss:$24 sps:$4 sm:$0xff]  }
 0x7a7   :  { %2602 = vmatpush2.bf16.msra.mxu1 %v9243_v47 }
 0x7a8   :  { %2696 = vmatprep.subr.bf16.mxu1 %v11786_v45  ;;  %2686 = vmatpush2.bf16.msra.mxu0 %v11787_v18  ;;  %v7377_v45 = vld [vmem:[#allocation5 + $0x248] ss:$24 sps:$4 sm:$0xff]   ;;  %v7378_v18 = vld [vmem:[#allocation5 + $0x21c] ss:$24 sps:$4 sm:$0xff]  }
 0x7a9   :  { %2737 = vmatprep.subr.bf16.mxu0 %v11788_v30  ;;  %v7379_v30 = vld [vmem:[#allocation5 + $0x218] ss:$24 sps:$4 sm:$0xff]  }
 0x7aa   :  { %2604 = vmatmul.mubr.bf16.vlgmr.msra.gmra.mxu1 %v9147_v34  ;;  %v11802_v34 = vld [vmem:[#allocation25_spill] sm:$0xff] }
 0x7ab   :  { %2697 = vmatpush1.bf16.msra.mxu1 %v11789_v46  ;;  %v7380_v46 = vld [vmem:[#allocation5 + $0x1ec] ss:$24 sps:$4 sm:$0xff]  }
 0x7ac   :  { %2698 = vmatprep.subr.bf16.mxu1 %v11790_v49  ;;  %v7381_v49 = vld [vmem:[#allocation5 + $0x1e8] ss:$24 sps:$4 sm:$0xff]  }
 0x7af   :  { %2699 = vmatpush1.bf16.msra.mxu1 %v11791_v7  ;;  %v7382_v7 = vld [vmem:[#allocation5 + $0x1bc] ss:$24 sps:$4 sm:$0xff]  }
 0x7b0   :  { %2700 = vmatprep.subr.bf16.mxu1 %v11792_v27  ;;  %v7383_v27 = vld [vmem:[#allocation5 + $0x1b8] ss:$24 sps:$4 sm:$0xff]  }
 0x7b3   :  { %2701 = vmatpush1.bf16.msra.mxu1 %v11793_v26  ;;  %v7384_v26 = vld [vmem:[#allocation5 + $0x18c] ss:$24 sps:$4 sm:$0xff]  }
 0x7b4   :  { %2702 = vmatprep.subr.bf16.mxu1 %v11794_v40  ;;  %v7385_v40 = vld [vmem:[#allocation5 + $0x188] ss:$24 sps:$4 sm:$0xff]  }
 0x7b7   :  { %2703 = vmatpush1.bf16.msra.mxu1 %v11795_v24  ;;  %v6572_v24 = vld [vmem:[#allocation3 + $0x454] ss:$24 sps:$4 sm:$0xff]  }
 0x7b8   :  { %2704 = vmatprep.subr.bf16.mxu1 %v11796_v13 }
 0x7bb   :  { %2705 = vmatpush1.bf16.msra.mxu1 %v11797_v20 }
 0x7bc   :  { %2706 = vmatprep.subr.bf16.mxu1 %v11798_v22 }
 0x7bf   :  { %2707 = vmatpush1.bf16.msra.mxu1 %v11799_v51 }
 0x7c0   :  { %2708 = vmatprep.subr.bf16.mxu1 %v11800_v23 }
 0x7c3   :  { %2709 = vmatpush1.bf16.msra.mxu1 %v11801_v6 }
 0x7c4   :  { %2710 = vmatprep.subr.bf16.mxu1 %v11802_v34 }
 0x7c7   :  { %2711 = vmatpush1.bf16.msra.mxu1 %v11803_v21 }
 0x7c8   :  { %2712 = vmatprep.subr.bf16.mxu1 %v11804_v58  ;;  %v11808_v58 = vld [vmem:[#allocation46_spill] sm:$0xff] }
 0x7cb   :  { %2713 = vmatpush2.bf16.msra.mxu1 %v11805_v29 }
 0x7cc   :  { %2714 = vmatprep.subr.bf16.mxu1 %v11806_v16  ;;  %v11809_v16 = vld [vmem:[#allocation48_spill] sm:$0xff] }
 0x7cf   :  { %2715 = vmatpush2.bf16.msra.mxu1 %v11807_v59 }
 0x7d0   :  { %2716 = vmatprep.subr.bf16.mxu1 %v7374_v41 }
 0x7d3   :  { %2717 = vmatpush2.bf16.msra.mxu1 %v7375_v62 }
 0x7d4   :  { %2718 = vmatprep.subr.bf16.mxu1 %v7376_v12 }
 0x7d7   :  { %2719 = vmatpush2.bf16.msra.mxu1 %v7377_v45 }
 0x7d8   :  { %2720 = vmatprep.subr.bf16.mxu1 %v7378_v18  ;;  %v11810_v18 = vld [vmem:[#allocation47_spill] sm:$0xff] }
 0x7db   :  { %2721 = vmatpush2.bf16.msra.mxu1 %v7379_v30 }
 0x7dc   :  { %2722 = vmatprep.subr.bf16.mxu1 %v7380_v46  ;;  %v11811_v46 = vld [vmem:[#allocation49_spill] sm:$0xff] }
 0x7df   :  { %2723 = vmatpush2.bf16.msra.mxu1 %v7381_v49 }
 0x7e0   :  { %2724 = vmatprep.subr.bf16.mxu1 %v7382_v7 }
 0x7e3   :  { %2725 = vmatpush2.bf16.msra.mxu1 %v7383_v27 }
 0x7e4   :  { %2726 = vmatprep.subr.bf16.mxu1 %v7384_v26 }
 0x7e7   :  { %2727 = vmatpush2.bf16.msra.mxu1 %v7385_v40 }
 0x7e8   :  { %3453 = vmatprep.subr.bf16.mxu1 %v6572_v24 }
 0x82a   :  { %v2523_v13 = vpop.f32.mrf.mxu1  ;;  %v2564_v20 = vpop.f32.mrf.mxu0 }
 0x82b   :  { %v2612_v29 = vadd.f32 %v2523_v13, %v11808_v58  ;;  %v2624_v30 = vadd.f32 %v2564_v20, %v11810_v18 }
 0x82c   :  { %v2525_v22 = vpop.f32.mrf.mxu1  ;;  %v2566_v51 = vpop.f32.mrf.mxu0 }
 0x82d   :  { %v2613_v59 = vadd.f32 %v2525_v22, %v11809_v16  ;;  %v2614_v41 = vsub.f32 0.0, %v2612_v29  ;;  %v2625_v49 = vadd.f32 %v2566_v51, %v11811_v46  ;;  %v2626_v7 = vsub.f32 0.0, %v2624_v30 }
 0x82e   :  { %v2527_v23 = vpop.f32.mrf.mxu1  ;;  %v2568_v6 = vpop.f32.mrf.mxu0 }
 0x82f   :  { %v2615_v62 = vsub.f32 0.0, %v2613_v59  ;;  %v2616_v12 = vmul.f32 1.442695, %v2614_v41  ;;  %v2627_v26 = vsub.f32 0.0, %v2625_v49  ;;  %v2628_v24 = vmul.f32 1.442695, %v2626_v7 }
 0x830   :  { %v2528_v34 = vpop.f32.mrf.mxu1  ;;  %v2569_v21 = vpop.f32.mrf.mxu0  ;;  %v11813_v49 = vld [vmem:[#allocation66_spill] sm:$0xff] }
 0x831   :  { %v2618_v45 = vmul.f32 1.442695, %v2615_v62  ;;  %6994 = vpow2.f32 %v2616_v12  ;;  %v2630_v6 = vmul.f32 1.442695, %v2627_v26  ;;  %v11812_v12 = vld [vmem:[#allocation65_spill] sm:$0xff] }
 0x833   :  { %6996 = vpow2.f32 %v2618_v45 }
 0x834   :  { %6998 = vpow2.f32 %v2628_v24 }
 0x83e   :  { %v6995_v27 = vpop.eup %6994 }
 0x83f   :  { %v2620_v23 = vadd.f32 1.0, %v6995_v27 }
 0x840   :  { %v6997_v40 = vpop.eup %6996 }
 0x841   :  { %v2621_v13 = vadd.f32 1.0, %v6997_v40  ;;  %7000 = vrcp.f32 %v2620_v23  ;;  %v6999_v34 = vpop.eup %6998 }
 0x842   :  { %7002 = vpow2.f32 %v2630_v6  ;;  %v2632_v41 = vadd.f32 1.0, %v6999_v34 }
 0x843   :  { %7004 = vrcp.f32 %v2621_v13 }
 0x84e   :  { %v7001_v58 = vpop.eup %7000 }
 0x84f   :  { %v7003_v29 = vpop.eup %7002 }
 0x850   :  { %v7005_v59 = vpop.eup %7004  ;;  %v2633_v46 = vadd.f32 1.0, %v7003_v29 }
 0x86a   :  { %v2605_v22 = vpop.f32.mrf.mxu1 }
 0x86b   :  { %v2636_v21 = vadd.f32 %v2605_v22, %v8234_v61 }
 0x86c   :  { %v2607_v20 = vpop.f32.mrf.mxu1 }
 0x86d   :  { %v2638_v51 = vmul.f32 %v7001_v58, %v2636_v21  ;;  %v2637_v16 = vadd.f32 %v2607_v20, %v8237_v9  ;;  %v6570_v20 = vld [vmem:[#allocation3 + $0x450] ss:$24 sps:$4 sm:$0xff]  }
 0x86e   :  { %v2609_v62 = vpop.f32.mrf.mxu1 }
 0x86f   :  { %v2640_v45 = vadd.f32 %v2638_v51, %v11812_v12  ;;  %v2639_v18 = vmul.f32 %v7005_v59, %v2637_v16  ;;  %v6575_v51 = vld [vmem:[#allocation3 + $0x424] ss:$24 sps:$4 sm:$0xff]   ;;  %v11814_v16 = vld [vmem:[#allocation70_spill] sm:$0xff]  ;;  %v11815_v59 = vld [vmem:[#allocation11_spill] sm:$0xff] }
 0x870   :  { %v2610_v30 = vpop.f32.mrf.mxu1  ;;  %v6573_v62 = vld [vmem:[#allocation3 + $0x420] ss:$24 sps:$4 sm:$0xff]   ;;  %v6578_v12 = vld [vmem:[#allocation3 + $0x3f4] ss:$24 sps:$4 sm:$0xff]  }
 0x871   :  { %7006 = vtanh.f32 %v2640_v45  ;;  %v2641_v7 = vadd.f32 %v2639_v18, %v11813_v49  ;;  %v6576_v45 = vld [vmem:[#allocation3 + $0x3f0] ss:$24 sps:$4 sm:$0xff]   ;;  %v6581_v18 = vld [vmem:[#allocation3 + $0x3c4] ss:$24 sps:$4 sm:$0xff]   ;;  %v6584_v30 = vld [vmem:[#allocation3 + $0x394] ss:$24 sps:$4 sm:$0xff]  }
 0x872   :  { %7008 = vrcp.f32 %v2632_v41  ;;  %v9293_v41 = vpack.c.bf16 %v11815_v59, %v11814_v16  ;;  %v6636_v16 = vld [vmem:[#allocation3 + $0x338] ss:$24 sps:$4 sm:$0xff]   ;;  %v6641_v59 = vld [vmem:[#allocation3 + $0x30c] ss:$24 sps:$4 sm:$0xff]  }
 0x873   :  { %7010 = vtanh.f32 %v2641_v7  ;;  %v11818_v7 = vld [vmem:[#allocation32_spill] sm:$0xff] }
 0x874   :  { %7012 = vrcp.f32 %v2633_v46  ;;  %v11816_v46 = vld [vmem:[#allocation69_spill] sm:$0xff] }
 0x87e   :  { %v7007_v27 = vpop.eup %7006 }
 0x87f   :  { %v7009_v26 = vpop.eup %7008  ;;  %v2644_v40 = vsub.f32 %v9139_v57, %v7007_v27 }
 0x880   :  { %v7011_v24 = vpop.eup %7010 }
 0x881   :  { %v2645_v23 = vsub.f32 %v9141_v42, %v7011_v24  ;;  %v2646_v6 = vmul.f32 %v7009_v26, %v2644_v40  ;;  %v7013_v13 = vpop.eup %7012  ;;  %v11820_v40 = vld [vmem:[#allocation30_spill] sm:$0xff] }
 0x883   :  { %v2647_v22 = vmul.f32 %v7013_v13, %v2645_v23  ;;  %v9279_v34 = vadd.f32 %v7007_v27, %v2646_v6  ;;  %v11819_v27 = vld [vmem:[#allocation33_spill] sm:$0xff]  ;;  %v9345_v13 = vpack.c.bf16 %v9141_v42, %v8921_v60  ;;  %v6638_v42 = vld [vmem:[#allocation3 + $0x33c] ss:$24 sps:$4 sm:$0xff]  }
 0x884   :  { %v9333_v26 = vpack.c.bf16 %v11819_v27, %v11818_v7  ;;  %v6629_v6 = vld [vmem:[#allocation3 + $0x3cc] ss:$24 sps:$4 sm:$0xff]   ;;  %v6633_v60 = vld [vmem:[#allocation3 + $0x368] ss:$24 sps:$4 sm:$0xff]  }
 0x885   :  { %v9281_v21 = vadd.f32 %v7011_v24, %v2647_v22  ;;  %v9287_v29 = vpack.c.bf16 %v9279_v34, %v9279_v34  ;;  %v11821_v24 = vld [vmem:[#allocation31_spill] sm:$0xff]  ;;  %v6627_v22 = vld [vmem:[#allocation3 + $0x3c8] ss:$24 sps:$4 sm:$0xff]  }
 0x886   :  { %v9341_v23 = vpack.c.bf16 %v11821_v24, %v11820_v40  ;;  %v6710_v7 = vld [vmem:[#allocation3 + $0x314] ss:$24 sps:$4 sm:$0xff]   ;;  %v6708_v27 = vld [vmem:[#allocation3 + $0x310] ss:$24 sps:$4 sm:$0xff]   ;;  %v6714_v40 = vld [vmem:[#allocation3 + $0x5e0] ss:$24 sps:$4 sm:$0xff]  }
 0x887   :  { %v2654_v58 = vpack.c.bf16 %v9281_v21, %v9281_v21  ;;  %v9378_v24 = vld [vmem:[#allocation5 + $0x3c0] ss:$24 sps:$4 sm:$0xff]  }
 0x889   :  { %2687 = vmatprep.mubr.bf16.mxu0 %v2654_v58  ;;  %2728 = vmatprep.mubr.bf16.mxu1 %v2654_v58 }
 0x88a   :  { %2688 = vmatmul.mubr.bf16.vlgmr.msra.gmra.mxu0 %v9287_v29  ;;  %2729 = vmatmul.mubr.bf16.vlgmr.msra.gmra.mxu1 %v9287_v29 }
 0x88b   :  { %2738 = vmatpush1.bf16.msra.mxu0 %v8931_v25  ;;  %3454 = vmatpush1.bf16.msra.mxu1 %v6570_v20  ;;  %v6579_v25 = vld [vmem:[#allocation3 + $0x3c0] ss:$24 sps:$4 sm:$0xff]  }
 0x88c   :  { %2769 = vmatprep.mubr.bf16.mxu0 %v2654_v58  ;;  %3485 = vmatprep.mubr.bf16.mxu1 %v9293_v41  ;;  %v6632_v58 = vld [vmem:[#allocation3 + $0x39c] ss:$24 sps:$4 sm:$0xff]   ;;  %v6630_v20 = vld [vmem:[#allocation3 + $0x398] ss:$24 sps:$4 sm:$0xff]  }
 0x88d   :  { %2739 = vmatprep.subr.bf16.mxu0 %v8934_v33  ;;  %3455 = vmatprep.subr.bf16.mxu1 %v6575_v51  ;;  %v6582_v33 = vld [vmem:[#allocation3 + $0x390] ss:$24 sps:$4 sm:$0xff]   ;;  %v6635_v51 = vld [vmem:[#allocation3 + $0x36c] ss:$24 sps:$4 sm:$0xff]  }
 0x88f   :  { %2740 = vmatpush1.bf16.msra.mxu0 %v8939_v1  ;;  %3456 = vmatpush1.bf16.msra.mxu1 %v6573_v62  ;;  %v6587_v1 = vld [vmem:[#allocation3 + $0x364] ss:$24 sps:$4 sm:$0xff]   ;;  %v6639_v62 = vld [vmem:[#allocation3 + $0x308] ss:$24 sps:$4 sm:$0xff]  }
 0x890   :  { %2741 = vmatprep.subr.bf16.mxu0 %v8942_v38  ;;  %3457 = vmatprep.subr.bf16.mxu1 %v6578_v12  ;;  %v6585_v38 = vld [vmem:[#allocation3 + $0x360] ss:$24 sps:$4 sm:$0xff]   ;;  %v6644_v12 = vld [vmem:[#allocation3 + $0x5dc] ss:$24 sps:$4 sm:$0xff]  }
 0x893   :  { %2742 = vmatpush1.bf16.msra.mxu0 %v8947_v35  ;;  %3458 = vmatpush1.bf16.msra.mxu1 %v6576_v45  ;;  %v6590_v35 = vld [vmem:[#allocation3 + $0x334] ss:$24 sps:$4 sm:$0xff]   ;;  %v6666_v45 = vld [vmem:[#allocation3 + $0x460] ss:$24 sps:$4 sm:$0xff]  }
 0x894   :  { %2743 = vmatprep.subr.bf16.mxu0 %v8950_v11  ;;  %3459 = vmatprep.subr.bf16.mxu1 %v6581_v18  ;;  %v6588_v11 = vld [vmem:[#allocation3 + $0x330] ss:$24 sps:$4 sm:$0xff]   ;;  %v6668_v18 = vld [vmem:[#allocation3 + $0x464] ss:$24 sps:$4 sm:$0xff]  }
 0x897   :  { %2744 = vmatpush1.bf16.msra.mxu0 %v8955_v39  ;;  %3460 = vmatpush1.bf16.msra.mxu1 %v6579_v25  ;;  %v6593_v39 = vld [vmem:[#allocation3 + $0x304] ss:$24 sps:$4 sm:$0xff]   ;;  %v6672_v25 = vld [vmem:[#allocation3 + $0x430] ss:$24 sps:$4 sm:$0xff]  }
 0x898   :  { %2745 = vmatprep.subr.bf16.mxu0 %v8958_v2  ;;  %3461 = vmatprep.subr.bf16.mxu1 %v6584_v30  ;;  %v6591_v2 = vld [vmem:[#allocation3 + $0x300] ss:$24 sps:$4 sm:$0xff]   ;;  %v6647_v30 = vld [vmem:[#allocation3 + $0x5ac] ss:$24 sps:$4 sm:$0xff]  }
 0x89b   :  { %2746 = vmatpush1.bf16.msra.mxu0 %v8963_v17  ;;  %3462 = vmatpush1.bf16.msra.mxu1 %v6582_v33  ;;  %v6596_v17 = vld [vmem:[#allocation3 + $0x5d4] ss:$24 sps:$4 sm:$0xff]   ;;  %v6680_v33 = vld [vmem:[#allocation3 + $0x404] ss:$24 sps:$4 sm:$0xff]  }
 0x89c   :  { %2747 = vmatprep.subr.bf16.mxu0 %v8966_v0  ;;  %3463 = vmatprep.subr.bf16.mxu1 %v6587_v1  ;;  %v6594_v0 = vld [vmem:[#allocation3 + $0x5d0] ss:$24 sps:$4 sm:$0xff]  }
 0x89d   :  { %v6645_v1 = vld [vmem:[#allocation3 + $0x5a8] ss:$24 sps:$4 sm:$0xff]  }
 0x89f   :  { %2748 = vmatpush1.bf16.msra.mxu0 %v8971_v43  ;;  %3464 = vmatpush1.bf16.msra.mxu1 %v6585_v38  ;;  %v6599_v43 = vld [vmem:[#allocation3 + $0x5a4] ss:$24 sps:$4 sm:$0xff]   ;;  %v6678_v38 = vld [vmem:[#allocation3 + $0x400] ss:$24 sps:$4 sm:$0xff]  }
 0x8a0   :  { %2749 = vmatprep.subr.bf16.mxu0 %v8974_v54  ;;  %3465 = vmatprep.subr.bf16.mxu1 %v6590_v35  ;;  %v6597_v54 = vld [vmem:[#allocation3 + $0x5a0] ss:$24 sps:$4 sm:$0xff]   ;;  %v6650_v35 = vld [vmem:[#allocation3 + $0x57c] ss:$24 sps:$4 sm:$0xff]  }
 0x8a3   :  { %2750 = vmatpush1.bf16.msra.mxu0 %v8979_v28  ;;  %3466 = vmatpush1.bf16.msra.mxu1 %v6588_v11  ;;  %v6602_v28 = vld [vmem:[#allocation3 + $0x574] ss:$24 sps:$4 sm:$0xff]  }
 0x8a4   :  { %2751 = vmatprep.subr.bf16.mxu0 %v8982_v63  ;;  %3467 = vmatprep.subr.bf16.mxu1 %v6593_v39  ;;  %v6600_v63 = vld [vmem:[#allocation3 + $0x570] ss:$24 sps:$4 sm:$0xff]   ;;  %v6686_v11 = vld [vmem:[#allocation3 + $0x3d4] ss:$24 sps:$4 sm:$0xff]  }
 0x8a5   :  { %v6648_v39 = vld [vmem:[#allocation3 + $0x578] ss:$24 sps:$4 sm:$0xff]  }
 0x8a7   :  { %2752 = vmatpush1.bf16.msra.mxu0 %v9179_v15  ;;  %3468 = vmatpush1.bf16.msra.mxu1 %v6591_v2  ;;  %v6605_v15 = vld [vmem:[#allocation3 + $0x544] ss:$24 sps:$4 sm:$0xff]   ;;  %v6684_v2 = vld [vmem:[#allocation3 + $0x3d0] ss:$24 sps:$4 sm:$0xff]  }
 0x8a8   :  { %2753 = vmatprep.subr.bf16.mxu0 %v9182_v8  ;;  %3469 = vmatprep.subr.bf16.mxu1 %v6596_v17  ;;  %v6603_v8 = vld [vmem:[#allocation3 + $0x540] ss:$24 sps:$4 sm:$0xff]   ;;  %v6653_v17 = vld [vmem:[#allocation3 + $0x54c] ss:$24 sps:$4 sm:$0xff]  }
 0x8ab   :  { %2754 = vmatpush2.bf16.msra.mxu0 %v9187_v52  ;;  %3470 = vmatpush2.bf16.msra.mxu1 %v6594_v0  ;;  %v6608_v52 = vld [vmem:[#allocation3 + $0x514] ss:$24 sps:$4 sm:$0xff]   ;;  %v6692_v0 = vld [vmem:[#allocation3 + $0x3a4] ss:$24 sps:$4 sm:$0xff]  }
 0x8ac   :  { %2755 = vmatprep.subr.bf16.mxu0 %v9190_v3  ;;  %3471 = vmatprep.subr.bf16.mxu1 %v6599_v43  ;;  %v6606_v3 = vld [vmem:[#allocation3 + $0x510] ss:$24 sps:$4 sm:$0xff]  }
 0x8ad   :  { %v6651_v43 = vld [vmem:[#allocation3 + $0x548] ss:$24 sps:$4 sm:$0xff]  }
 0x8af   :  { %2756 = vmatpush2.bf16.msra.mxu0 %v9195_v5  ;;  %3472 = vmatpush2.bf16.msra.mxu1 %v6597_v54  ;;  %v6611_v5 = vld [vmem:[#allocation3 + $0x4e4] ss:$24 sps:$4 sm:$0xff]   ;;  %v6690_v54 = vld [vmem:[#allocation3 + $0x3a0] ss:$24 sps:$4 sm:$0xff]  }
 0x8b0   :  { %2757 = vmatprep.subr.bf16.mxu0 %v9198_v44  ;;  %3473 = vmatprep.subr.bf16.mxu1 %v6602_v28  ;;  %v6609_v44 = vld [vmem:[#allocation3 + $0x4e0] ss:$24 sps:$4 sm:$0xff]   ;;  %v6656_v28 = vld [vmem:[#allocation3 + $0x51c] ss:$24 sps:$4 sm:$0xff]  }
 0x8b3   :  { %2758 = vmatpush2.bf16.msra.mxu0 %v9203_v55  ;;  %3474 = vmatpush2.bf16.msra.mxu1 %v6600_v63  ;;  %v6614_v55 = vld [vmem:[#allocation3 + $0x4b4] ss:$24 sps:$4 sm:$0xff]  }
 0x8b4   :  { %2759 = vmatprep.subr.bf16.mxu0 %v9206_v32  ;;  %3475 = vmatprep.subr.bf16.mxu1 %v6605_v15  ;;  %v6612_v32 = vld [vmem:[#allocation3 + $0x4b0] ss:$24 sps:$4 sm:$0xff]   ;;  %v6698_v63 = vld [vmem:[#allocation3 + $0x374] ss:$24 sps:$4 sm:$0xff]  }
 0x8b5   :  { %v6654_v15 = vld [vmem:[#allocation3 + $0x518] ss:$24 sps:$4 sm:$0xff]  }
 0x8b7   :  { %2760 = vmatpush2.bf16.msra.mxu0 %v9211_v10  ;;  %3476 = vmatpush2.bf16.msra.mxu1 %v6603_v8  ;;  %v6617_v10 = vld [vmem:[#allocation3 + $0x484] ss:$24 sps:$4 sm:$0xff]   ;;  %v6696_v8 = vld [vmem:[#allocation3 + $0x370] ss:$24 sps:$4 sm:$0xff]  }
 0x8b8   :  { %2761 = vmatprep.subr.bf16.mxu0 %v9214_v36  ;;  %3477 = vmatprep.subr.bf16.mxu1 %v6608_v52  ;;  %v6615_v36 = vld [vmem:[#allocation3 + $0x480] ss:$24 sps:$4 sm:$0xff]   ;;  %v6659_v52 = vld [vmem:[#allocation3 + $0x4ec] ss:$24 sps:$4 sm:$0xff]  }
 0x8bb   :  { %2762 = vmatpush2.bf16.msra.mxu0 %v9219_v50  ;;  %3478 = vmatpush2.bf16.msra.mxu1 %v6606_v3  ;;  %v6620_v50 = vld [vmem:[#allocation3 + $0x45c] ss:$24 sps:$4 sm:$0xff]  }
 0x8bc   :  { %2763 = vmatprep.subr.bf16.mxu0 %v9222_v4  ;;  %3479 = vmatprep.subr.bf16.mxu1 %v6611_v5  ;;  %v6618_v4 = vld [vmem:[#allocation3 + $0x458] ss:$24 sps:$4 sm:$0xff]   ;;  %v6704_v3 = vld [vmem:[#allocation3 + $0x344] ss:$24 sps:$4 sm:$0xff]   ;;  %v6657_v5 = vld [vmem:[#allocation3 + $0x4e8] ss:$24 sps:$4 sm:$0xff]  }
 0x8bf   :  { %2764 = vmatpush2.bf16.msra.mxu0 %v9227_v14  ;;  %3480 = vmatpush2.bf16.msra.mxu1 %v6609_v44  ;;  %v11817_v14 = vld [vmem:[#allocation9_spill] sm:$0xff] }
 0x8c0   :  { %2765 = vmatprep.subr.bf16.mxu0 %v9230_v31  ;;  %3481 = vmatprep.subr.bf16.mxu1 %v6614_v55  ;;  %v9329_v49 = vpack.c.bf16 %v11817_v14, %v11816_v46  ;;  %v6623_v31 = vld [vmem:[#allocation3 + $0x42c] ss:$24 sps:$4 sm:$0xff]   ;;  %v6702_v44 = vld [vmem:[#allocation3 + $0x340] ss:$24 sps:$4 sm:$0xff]   ;;  %v6662_v55 = vld [vmem:[#allocation3 + $0x4bc] ss:$24 sps:$4 sm:$0xff]  }
 0x8c1   :  { %v9359_v46 = vld [vmem:[#allocation5 + $0x424] ss:$24 sps:$4 sm:$0xff]   ;;  %v9364_v14 = vld [vmem:[#allocation5 + $0x420] ss:$24 sps:$4 sm:$0xff]  }
 0x8c3   :  { %2766 = vmatpush2.bf16.msra.mxu0 %v9235_v48  ;;  %3482 = vmatpush2.bf16.msra.mxu1 %v6612_v32  ;;  %v6621_v48 = vld [vmem:[#allocation3 + $0x428] ss:$24 sps:$4 sm:$0xff]   ;;  %v6660_v32 = vld [vmem:[#allocation3 + $0x4b8] ss:$24 sps:$4 sm:$0xff]  }
 0x8c4   :  { %2767 = vmatprep.subr.bf16.mxu0 %v9238_v56  ;;  %3483 = vmatprep.subr.bf16.mxu1 %v6617_v10  ;;  %v6626_v56 = vld [vmem:[#allocation3 + $0x3fc] ss:$24 sps:$4 sm:$0xff]   ;;  %v6665_v10 = vld [vmem:[#allocation3 + $0x48c] ss:$24 sps:$4 sm:$0xff]  }
 0x8c7   :  { %2768 = vmatpush2.bf16.msra.mxu0 %v9243_v47  ;;  %3484 = vmatpush2.bf16.msra.mxu1 %v6615_v36  ;;  %v6624_v47 = vld [vmem:[#allocation3 + $0x3f8] ss:$24 sps:$4 sm:$0xff]   ;;  %v6663_v36 = vld [vmem:[#allocation3 + $0x488] ss:$24 sps:$4 sm:$0xff]  }
 0x8c8   :  { %3526 = vmatprep.subr.bf16.mxu0 %v6620_v50  ;;  %3599 = vmatprep.subr.bf16.mxu1 %v6668_v18  ;;  %v9354_v50 = vld [vmem:[#allocation5 + $0x454] ss:$24 sps:$4 sm:$0xff]   ;;  %v9400_v18 = vld [vmem:[#allocation5 + $0x304] ss:$24 sps:$4 sm:$0xff]  }
 0x8ca   :  { %2770 = vmatmul.mubr.bf16.vlgmr.msra.gmra.mxu0 %v9287_v29  ;;  %3486 = vmatmul.mubr.bf16.vlgmr.msra.gmra.mxu1 %v9329_v49  ;;  %v9351_v29 = vpack.c.bf16 %v9139_v57, %v8919_v53  ;;  %v6674_v53 = vld [vmem:[#allocation3 + $0x434] ss:$24 sps:$4 sm:$0xff]   ;;  %v6642_v57 = vld [vmem:[#allocation3 + $0x5d8] ss:$24 sps:$4 sm:$0xff]  }
 0x8cb   :  { %3495 = vmatprep.mubr.bf16.mxu1 %v9333_v26  ;;  %3527 = vmatpush1.bf16.msra.mxu0 %v6618_v4  ;;  %v9356_v4 = vld [vmem:[#allocation5 + $0x450] ss:$24 sps:$4 sm:$0xff]  }
 0x8cc   :  { %3558 = vmatprep.mubr.bf16.mxu0 %v9293_v41  ;;  %3528 = vmatprep.subr.bf16.mxu0 %v6623_v31  ;;  %v9367_v31 = vld [vmem:[#allocation5 + $0x3f4] ss:$24 sps:$4 sm:$0xff]  }
 0x8cd   :  { %3600 = vmatpush1.bf16.msra.mxu1 %v6666_v45  ;;  %v9397_v45 = vld [vmem:[#allocation5 + $0x330] ss:$24 sps:$4 sm:$0xff]  }
 0x8ce   :  { %3601 = vmatprep.subr.bf16.mxu1 %v6674_v53  ;;  %v6740_v53 = vld [vmem:[#allocation3 + $0x524] ss:$24 sps:$4 sm:$0xff]  }
 0x8cf   :  { %3529 = vmatpush1.bf16.msra.mxu0 %v6621_v48  ;;  %v9370_v48 = vld [vmem:[#allocation5 + $0x3f0] ss:$24 sps:$4 sm:$0xff]  }
 0x8d0   :  { %3530 = vmatprep.subr.bf16.mxu0 %v6626_v56  ;;  %v9373_v56 = vld [vmem:[#allocation5 + $0x3c4] ss:$24 sps:$4 sm:$0xff]  }
 0x8d1   :  { %3602 = vmatpush1.bf16.msra.mxu1 %v6672_v25  ;;  %v6746_v25 = vld [vmem:[#allocation3 + $0x4f4] ss:$24 sps:$4 sm:$0xff]  }
 0x8d2   :  { %3496 = vmatmul.mubr.bf16.gmra.mxu1 %v9341_v23  ;;  %3603 = vmatprep.subr.bf16.mxu1 %v6680_v33  ;;  %v9406_v33 = vld [vmem:[#allocation5 + $0x5d4] ss:$24 sps:$4 sm:$0xff]  }
 0x8d3   :  { %3505 = vmatprep.mubr.bf16.mxu1 %v9345_v13  ;;  %3531 = vmatpush1.bf16.msra.mxu0 %v6624_v47  ;;  %v6716_v47 = vld [vmem:[#allocation3 + $0x5e4] ss:$24 sps:$4 sm:$0xff]  }
 0x8d4   :  { %3532 = vmatprep.subr.bf16.mxu0 %v6629_v6  ;;  %v9381_v6 = vld [vmem:[#allocation5 + $0x394] ss:$24 sps:$4 sm:$0xff]  }
 0x8d5   :  { %3604 = vmatpush1.bf16.msra.mxu1 %v6678_v38  ;;  %v9409_v38 = vld [vmem:[#allocation5 + $0x5d0] ss:$24 sps:$4 sm:$0xff]  }
 0x8d6   :  { %3605 = vmatprep.subr.bf16.mxu1 %v6686_v11  ;;  %v6752_v11 = vld [vmem:[#allocation3 + $0x4c4] ss:$24 sps:$4 sm:$0xff]  }
 0x8d7   :  { %3533 = vmatpush1.bf16.msra.mxu0 %v6627_v22  ;;  %v6722_v22 = vld [vmem:[#allocation3 + $0x5b4] ss:$24 sps:$4 sm:$0xff]  }
 0x8d8   :  { %3534 = vmatprep.subr.bf16.mxu0 %v6632_v58  ;;  %v6720_v58 = vld [vmem:[#allocation3 + $0x5b0] ss:$24 sps:$4 sm:$0xff]  }
 0x8d9   :  { %3606 = vmatpush1.bf16.msra.mxu1 %v6684_v2  ;;  %v9415_v2 = vld [vmem:[#allocation5 + $0x5a0] ss:$24 sps:$4 sm:$0xff]  }
 0x8da   :  { %3506 = vmatmul.mubr.bf16.gmra.mxu1 %v9351_v29  ;;  %3607 = vmatprep.subr.bf16.mxu1 %v6692_v0  ;;  %v9418_v0 = vld [vmem:[#allocation5 + $0x574] ss:$24 sps:$4 sm:$0xff]  }
 0x8db   :  { %3535 = vmatpush1.bf16.msra.mxu0 %v6630_v20  ;;  %v9384_v20 = vld [vmem:[#allocation5 + $0x390] ss:$24 sps:$4 sm:$0xff]  }
 0x8dc   :  { %3536 = vmatprep.subr.bf16.mxu0 %v6635_v51  ;;  %v9387_v51 = vld [vmem:[#allocation5 + $0x364] ss:$24 sps:$4 sm:$0xff]  }
 0x8dd   :  { %3608 = vmatpush1.bf16.msra.mxu1 %v6690_v54  ;;  %v9420_v54 = vld [vmem:[#allocation5 + $0x45c] ss:$24 sps:$4 sm:$0xff]  }
 0x8de   :  { %3609 = vmatprep.subr.bf16.mxu1 %v6698_v63  ;;  %v9426_v63 = vld [vmem:[#allocation5 + $0x544] ss:$24 sps:$4 sm:$0xff]  }
 0x8df   :  { %3537 = vmatpush1.bf16.msra.mxu0 %v6633_v60  ;;  %v6728_v60 = vld [vmem:[#allocation3 + $0x584] ss:$24 sps:$4 sm:$0xff]  }
 0x8e0   :  { %3538 = vmatprep.subr.bf16.mxu0 %v6638_v42  ;;  %v6726_v42 = vld [vmem:[#allocation3 + $0x580] ss:$24 sps:$4 sm:$0xff]  }
 0x8e1   :  { %3610 = vmatpush1.bf16.msra.mxu1 %v6696_v8  ;;  %v9433_v8 = vld [vmem:[#allocation5 + $0x514] ss:$24 sps:$4 sm:$0xff]  }
 0x8e2   :  { %3611 = vmatprep.subr.bf16.mxu1 %v6704_v3  ;;  %v9439_v3 = vld [vmem:[#allocation5 + $0x4e4] ss:$24 sps:$4 sm:$0xff]  }
 0x8e3   :  { %3539 = vmatpush1.bf16.msra.mxu0 %v6636_v16  ;;  %v9391_v16 = vld [vmem:[#allocation5 + $0x360] ss:$24 sps:$4 sm:$0xff]  }
 0x8e4   :  { %3540 = vmatprep.subr.bf16.mxu0 %v6641_v59  ;;  %v9394_v59 = vld [vmem:[#allocation5 + $0x334] ss:$24 sps:$4 sm:$0xff]  }
 0x8e5   :  { %3612 = vmatpush1.bf16.msra.mxu1 %v6702_v44  ;;  %v9445_v44 = vld [vmem:[#allocation5 + $0x4b4] ss:$24 sps:$4 sm:$0xff]  }
 0x8e6   :  { %3613 = vmatprep.subr.bf16.mxu1 %v6710_v7  ;;  %11823 = vst [vmem:[#allocation78_spill] sm:$0xff] %v9445_v44 }
 0x8e7   :  { %3541 = vmatpush1.bf16.msra.mxu0 %v6639_v62  ;;  %v6734_v62 = vld [vmem:[#allocation3 + $0x554] ss:$24 sps:$4 sm:$0xff]  }
 0x8e8   :  { %3542 = vmatprep.subr.bf16.mxu0 %v6644_v12  ;;  %v6732_v12 = vld [vmem:[#allocation3 + $0x550] ss:$24 sps:$4 sm:$0xff]  }
 0x8e9   :  { %3614 = vmatpush1.bf16.msra.mxu1 %v6708_v27 }
 0x8ea   :  { %3615 = vmatprep.subr.bf16.mxu1 %v6716_v47 }
 0x8eb   :  { %3543 = vmatpush2.bf16.msra.mxu0 %v6642_v57  ;;  %v6738_v57 = vld [vmem:[#allocation3 + $0x520] ss:$24 sps:$4 sm:$0xff]  }
 0x8ec   :  { %3544 = vmatprep.subr.bf16.mxu0 %v6647_v30  ;;  %v9403_v30 = vld [vmem:[#allocation5 + $0x300] ss:$24 sps:$4 sm:$0xff]  }
 0x8ed   :  { %3616 = vmatpush2.bf16.msra.mxu1 %v6714_v40 }
 0x8ee   :  { %3617 = vmatprep.subr.bf16.mxu1 %v6722_v22 }
 0x8ef   :  { %3545 = vmatpush2.bf16.msra.mxu0 %v6645_v1  ;;  %v6744_v1 = vld [vmem:[#allocation3 + $0x4f0] ss:$24 sps:$4 sm:$0xff]  }
 0x8f0   :  { %3546 = vmatprep.subr.bf16.mxu0 %v6650_v35  ;;  %v9412_v35 = vld [vmem:[#allocation5 + $0x5a4] ss:$24 sps:$4 sm:$0xff]  }
 0x8f1   :  { %3618 = vmatpush2.bf16.msra.mxu1 %v6720_v58 }
 0x8f2   :  { %3619 = vmatprep.subr.bf16.mxu1 %v6728_v60 }
 0x8f3   :  { %3547 = vmatpush2.bf16.msra.mxu0 %v6648_v39  ;;  %v6750_v39 = vld [vmem:[#allocation3 + $0x4c0] ss:$24 sps:$4 sm:$0xff]  }
 0x8f4   :  { %3548 = vmatprep.subr.bf16.mxu0 %v6653_v17  ;;  %v6758_v17 = vld [vmem:[#allocation3 + $0x494] ss:$24 sps:$4 sm:$0xff]  }
 0x8f5   :  { %3620 = vmatpush2.bf16.msra.mxu1 %v6726_v42 }
 0x8f6   :  { %3621 = vmatprep.subr.bf16.mxu1 %v6734_v62  ;;  %v11828_v62 = vld [vmem:[#allocation28_spill] sm:$0xff] }
 0x8f7   :  { %3549 = vmatpush2.bf16.msra.mxu0 %v6651_v43  ;;  %v6756_v43 = vld [vmem:[#allocation3 + $0x490] ss:$24 sps:$4 sm:$0xff]  }
 0x8f8   :  { %3550 = vmatprep.subr.bf16.mxu0 %v6656_v28  ;;  %v9423_v28 = vld [vmem:[#allocation5 + $0x570] ss:$24 sps:$4 sm:$0xff]  }
 0x8f9   :  { %3622 = vmatpush2.bf16.msra.mxu1 %v6732_v12  ;;  %v11829_v12 = vld [vmem:[#allocation53_spill] sm:$0xff] }
 0x8fa   :  { %3623 = vmatprep.subr.bf16.mxu1 %v6740_v53  ;;  %v758_v53 = vadd.f32 %v11829_v12, %v11828_v62 }
 0x8fb   :  { %3551 = vmatpush2.bf16.msra.mxu0 %v6654_v15  ;;  %v9430_v15 = vld [vmem:[#allocation5 + $0x540] ss:$24 sps:$4 sm:$0xff]  }
 0x8fc   :  { %3552 = vmatprep.subr.bf16.mxu0 %v6659_v52  ;;  %v9436_v52 = vld [vmem:[#allocation5 + $0x510] ss:$24 sps:$4 sm:$0xff]  }
 0x8fd   :  { %3624 = vmatpush2.bf16.msra.mxu1 %v6738_v57  ;;  %v11830_v57 = vld [vmem:[#allocation50_spill] sm:$0xff] }
 0x8fe   :  { %3625 = vmatprep.subr.bf16.mxu1 %v6746_v25 }
 0x8ff   :  { %3553 = vmatpush2.bf16.msra.mxu0 %v6657_v5  ;;  %v9442_v5 = vld [vmem:[#allocation5 + $0x4e0] ss:$24 sps:$4 sm:$0xff]  }
 0x900   :  { %3554 = vmatprep.subr.bf16.mxu0 %v6662_v55  ;;  %11822 = vst [vmem:[#allocation17_spill] sm:$0xff] %v9442_v5  ;;  %v9448_v55 = vld [vmem:[#allocation5 + $0x4b0] ss:$24 sps:$4 sm:$0xff]  }
 0x901   :  { %3626 = vmatpush2.bf16.msra.mxu1 %v6744_v1  ;;  %11824 = vst [vmem:[#allocation101_spill] sm:$0xff] %v9448_v55 }
 0x902   :  { %3627 = vmatprep.subr.bf16.mxu1 %v6752_v11 }
 0x903   :  { %3555 = vmatpush2.bf16.msra.mxu0 %v6660_v32  ;;  %v9451_v32 = vld [vmem:[#allocation5 + $0x484] ss:$24 sps:$4 sm:$0xff]  }
 0x904   :  { %3556 = vmatprep.subr.bf16.mxu0 %v6665_v10  ;;  %11825 = vst [vmem:[#allocation19_spill] sm:$0xff] %v9451_v32  ;;  %v9454_v10 = vld [vmem:[#allocation5 + $0x480] ss:$24 sps:$4 sm:$0xff]  }
 0x905   :  { %3628 = vmatpush2.bf16.msra.mxu1 %v6750_v39  ;;  %11826 = vst [vmem:[#allocation79_spill] sm:$0xff] %v9454_v10 }
 0x906   :  { %3629 = vmatprep.subr.bf16.mxu1 %v6758_v17 }
 0x907   :  { %3557 = vmatpush2.bf16.msra.mxu0 %v6663_v36  ;;  %v9457_v36 = vld [vmem:[#allocation5 + $0x464] ss:$24 sps:$4 sm:$0xff]  }
 0x908   :  { %4262 = vmatprep.subr.bf16.mxu0 %v9354_v50  ;;  %11827 = vst [vmem:[#allocation80_spill] sm:$0xff] %v9457_v36 }
 0x909   :  { %3630 = vmatpush2.bf16.msra.mxu1 %v6756_v43 }
 0x90a   :  { %3559 = vmatmul.mubr.bf16.vlgmr.msra.gmra.mxu0 %v9329_v49  ;;  %4303 = vmatprep.subr.bf16.mxu1 %v9420_v54 }
 0x90b   :  { %3568 = vmatprep.mubr.bf16.mxu0 %v9333_v26  ;;  %4263 = vmatpush1.bf16.msra.mxu0 %v9356_v4 }
 0x90c   :  { %4264 = vmatprep.subr.bf16.mxu0 %v9359_v46 }
 0x90f   :  { %4265 = vmatpush1.bf16.msra.mxu0 %v9364_v14 }
 0x910   :  { %4266 = vmatprep.subr.bf16.mxu0 %v9367_v31 }
 0x912   :  { %3569 = vmatmul.mubr.bf16.gmra.mxu0 %v9341_v23 }
 0x913   :  { %3578 = vmatprep.mubr.bf16.mxu0 %v9345_v13  ;;  %4267 = vmatpush1.bf16.msra.mxu0 %v9370_v48 }
 0x914   :  { %4268 = vmatprep.subr.bf16.mxu0 %v9373_v56 }
 0x917   :  { %4269 = vmatpush1.bf16.msra.mxu0 %v9378_v24 }
 0x918   :  { %4270 = vmatprep.subr.bf16.mxu0 %v9381_v6 }
 0x91a   :  { %3579 = vmatmul.mubr.bf16.gmra.mxu0 %v9351_v29 }
 0x91b   :  { %4271 = vmatpush1.bf16.msra.mxu0 %v9384_v20 }
 0x91c   :  { %4272 = vmatprep.subr.bf16.mxu0 %v9387_v51 }
 0x91f   :  { %4273 = vmatpush1.bf16.msra.mxu0 %v9391_v16 }
 0x920   :  { %4274 = vmatprep.subr.bf16.mxu0 %v9394_v59 }
 0x923   :  { %4275 = vmatpush1.bf16.msra.mxu0 %v9397_v45 }
 0x924   :  { %4276 = vmatprep.subr.bf16.mxu0 %v9400_v18 }
 0x927   :  { %4277 = vmatpush1.bf16.msra.mxu0 %v9403_v30 }
 0x928   :  { %4278 = vmatprep.subr.bf16.mxu0 %v9406_v33 }
 0x92b   :  { %4279 = vmatpush2.bf16.msra.mxu0 %v9409_v38 }
 0x92c   :  { %4280 = vmatprep.subr.bf16.mxu0 %v9412_v35 }
 0x92f   :  { %4281 = vmatpush2.bf16.msra.mxu0 %v9415_v2 }
 0x930   :  { %4282 = vmatprep.subr.bf16.mxu0 %v9418_v0 }
 0x933   :  { %4283 = vmatpush2.bf16.msra.mxu0 %v9423_v28 }
 0x934   :  { %4284 = vmatprep.subr.bf16.mxu0 %v9426_v63 }
 0x937   :  { %4285 = vmatpush2.bf16.msra.mxu0 %v9430_v15 }
 0x938   :  { %4286 = vmatprep.subr.bf16.mxu0 %v9433_v8 }
 0x93b   :  { %4287 = vmatpush2.bf16.msra.mxu0 %v9436_v52 }
 0x93c   :  { %4288 = vmatprep.subr.bf16.mxu0 %v9439_v3 }
 0x93f   :  { %4289 = vmatpush2.bf16.msra.mxu0 %v9442_v5  ;;  %v9665_v5 = vld [vmem:[#allocation5 + $0x494] ss:$24 sps:$4 sm:$0xff]  }
 0x940   :  { %4290 = vmatprep.subr.bf16.mxu0 %v9445_v44 }
 0x943   :  { %4291 = vmatpush2.bf16.msra.mxu0 %v9448_v55 }
 0x944   :  { %4292 = vmatprep.subr.bf16.mxu0 %v9451_v32  ;;  %v11832_v32 = vld [vmem:[#allocation51_spill] sm:$0xff] }
 0x947   :  { %4293 = vmatpush2.bf16.msra.mxu0 %v9454_v10 }
 0x948   :  { %4344 = vmatprep.subr.bf16.mxu0 %v9457_v36  ;;  %v11831_v36 = vld [vmem:[#allocation52_spill] sm:$0xff] }
 0x949   :  { %v831_v10 = vadd.f32 %v11831_v36, %v11772_v19 }
 0x94a   :  { %v2689_v7 = vpop.f32.mrf.mxu0  ;;  %v2730_v27 = vpop.f32.mrf.mxu1 }
 0x94b   :  { %v2778_v25 = vadd.f32 %v2689_v7, %v11830_v57 }
 0x94c   :  { %v2691_v47 = vpop.f32.mrf.mxu0  ;;  %v2732_v40 = vpop.f32.mrf.mxu1 }
 0x94d   :  { %v2779_v1 = vadd.f32 %v2691_v47, %v758_v53  ;;  %v2780_v11 = vsub.f32 0.0, %v2778_v25 }
 0x94e   :  { %v2693_v22 = vpop.f32.mrf.mxu0  ;;  %v2734_v58 = vpop.f32.mrf.mxu1 }
 0x94f   :  { %v2781_v39 = vsub.f32 0.0, %v2779_v1  ;;  %v2782_v17 = vmul.f32 1.442695, %v2780_v11  ;;  %v2790_v22 = vadd.f32 %v2730_v27, %v11832_v32  ;;  %v2791_v58 = vadd.f32 %v2732_v40, %v831_v10 }
 0x950   :  { %v2694_v60 = vpop.f32.mrf.mxu0  ;;  %v2735_v42 = vpop.f32.mrf.mxu1 }
 0x951   :  { %v2784_v43 = vmul.f32 1.442695, %v2781_v39  ;;  %7014 = vpow2.f32 %v2782_v17  ;;  %v2792_v60 = vsub.f32 0.0, %v2790_v22  ;;  %v2793_v55 = vsub.f32 0.0, %v2791_v58  ;;  %v11834_v39 = vld [vmem:[#allocation67_spill] sm:$0xff] }
 0x953   :  { %7016 = vpow2.f32 %v2784_v43  ;;  %v2794_v62 = vmul.f32 1.442695, %v2792_v60  ;;  %v2796_v7 = vmul.f32 1.442695, %v2793_v55  ;;  %v11833_v55 = vld [vmem:[#allocation68_spill] sm:$0xff] }
 0x955   :  { %7018 = vpow2.f32 %v2794_v62 }
 0x95e   :  { %v7015_v42 = vpop.eup %7014 }
 0x95f   :  { %v2786_v12 = vadd.f32 1.0, %v7015_v42 }
 0x960   :  { %v7017_v44 = vpop.eup %7016 }
 0x961   :  { %v2787_v47 = vadd.f32 1.0, %v7017_v44  ;;  %7020 = vrcp.f32 %v2786_v12  ;;  %v904_v44 = vadd.f32 %v11833_v55, %v11775_v37  ;;  %v9516_v55 = vld [vmem:[#allocation5 + $0x3d4] ss:$24 sps:$4 sm:$0xff]  }
 0x962   :  { %7022 = vpow2.f32 %v2796_v7  ;;  %v7019_v57 = vpop.eup %7018  ;;  %11841 = vst [vmem:[#allocation86_spill] sm:$0xff] %v9516_v55 }
 0x963   :  { %7024 = vrcp.f32 %v2787_v47  ;;  %v2798_v1 = vadd.f32 1.0, %v7019_v57 }
 0x96e   :  { %v7021_v19 = vpop.eup %7020 }
 0x96f   :  { %v7023_v32 = vpop.eup %7022 }
 0x970   :  { %v7025_v40 = vpop.eup %7024  ;;  %v2799_v58 = vadd.f32 1.0, %v7023_v32  ;;  %v9482_v32 = vld [vmem:[#allocation5 + $0x458] ss:$24 sps:$4 sm:$0xff]  }
 0x98a   :  { %v2771_v53 = vpop.f32.mrf.mxu0 }
 0x98b   :  { %v2802_v25 = vadd.f32 %v2771_v53, %v8234_v61 }
 0x98c   :  { %v2773_v36 = vpop.f32.mrf.mxu0 }
 0x98d   :  { %v2804_v10 = vmul.f32 %v7021_v19, %v2802_v25  ;;  %v2803_v27 = vadd.f32 %v2773_v36, %v8237_v9  ;;  %v11835_v36 = vmov 0  }
 0x98e   :  { %v2775_v11 = vpop.f32.mrf.mxu0 }
 0x98f   :  { %v2806_v17 = vadd.f32 %v2804_v10, %v11834_v39  ;;  %v2805_v43 = vmul.f32 %v7025_v40, %v2803_v27  ;;  %v9484_v10 = vld [vmem:[#allocation5 + $0x460] ss:$24 sps:$4 sm:$0xff]   ;;  %v9486_v27 = vld [vmem:[#allocation5 + $0x42c] ss:$24 sps:$4 sm:$0xff]   ;;  %v9500_v40 = vld [vmem:[#allocation5 + $0x3fc] ss:$24 sps:$4 sm:$0xff]  }
 0x990   :  { %v2776_v22 = vpop.f32.mrf.mxu0  ;;  %11836 = vst [vmem:[#allocation81_spill] sm:$0xff] %v9484_v10  ;;  %v9510_v11 = vld [vmem:[#allocation5 + $0x400] ss:$24 sps:$4 sm:$0xff]   ;;  %v9523_v39 = vld [vmem:[#allocation5 + $0x3d0] ss:$24 sps:$4 sm:$0xff]  }
 0x991   :  { %7026 = vtanh.f32 %v2806_v17  ;;  %v2807_v60 = vadd.f32 %v2805_v43, %v904_v44  ;;  %11840 = vst [vmem:[#allocation85_spill] sm:$0xff] %v9510_v11  ;;  %v9521_v44 = vld [vmem:[#allocation5 + $0x3c8] ss:$24 sps:$4 sm:$0xff]   ;;  %11842 = vst [vmem:[#allocation87_spill] sm:$0xff] %v9523_v39  ;;  %v9527_v17 = vld [vmem:[#allocation5 + $0x39c] ss:$24 sps:$4 sm:$0xff]  }
 0x992   :  { %7028 = vrcp.f32 %v2798_v1  ;;  %v9502_v1 = vld [vmem:[#allocation5 + $0x404] ss:$24 sps:$4 sm:$0xff]   ;;  %11843 = vst [vmem:[#allocation88_spill] sm:$0xff] %v9527_v17  ;;  %v9536_v22 = vld [vmem:[#allocation5 + $0x3a0] ss:$24 sps:$4 sm:$0xff]  }
 0x993   :  { %7030 = vtanh.f32 %v2807_v60  ;;  %11839 = vst [vmem:[#allocation84_spill] sm:$0xff] %v9502_v1  ;;  %v9529_v43 = vld [vmem:[#allocation5 + $0x3a4] ss:$24 sps:$4 sm:$0xff]   ;;  %11846 = vst [vmem:[#allocation91_spill] sm:$0xff] %v9536_v22  ;;  %v9547_v60 = vld [vmem:[#allocation5 + $0x368] ss:$24 sps:$4 sm:$0xff]  }
 0x994   :  { %7032 = vrcp.f32 %v2799_v58  ;;  %11844 = vst [vmem:[#allocation89_spill] sm:$0xff] %v9529_v43  ;;  %v9542_v58 = vld [vmem:[#allocation5 + $0x374] ss:$24 sps:$4 sm:$0xff]   ;;  %11849 = vst [vmem:[#allocation94_spill] sm:$0xff] %v9547_v60 }
 0x995   :  { %11848 = vst [vmem:[#allocation93_spill] sm:$0xff] %v9542_v58 }
 0x99e   :  { %v7027_v61 = vpop.eup %7026 }
 0x99f   :  { %v7029_v42 = vpop.eup %7028  ;;  %v2810_v9 = vsub.f32 %v9279_v34, %v7027_v61 }
 0x9a0   :  { %v7031_v62 = vpop.eup %7030 }
 0x9a1   :  { %v2811_v12 = vsub.f32 %v9281_v21, %v7031_v62  ;;  %v2812_v7 = vmul.f32 %v7029_v42, %v2810_v9  ;;  %v7033_v47 = vpop.eup %7032  ;;  %v9552_v42 = vld [vmem:[#allocation5 + $0x33c] ss:$24 sps:$4 sm:$0xff]  }
 0x9a2   :  { %11851 = vst [vmem:[#allocation96_spill] sm:$0xff] %v9552_v42  ;;  %v9554_v9 = vld [vmem:[#allocation5 + $0x344] ss:$24 sps:$4 sm:$0xff]  }
 0x9a3   :  { %v2813_v37 = vmul.f32 %v7033_v47, %v2811_v12  ;;  %v2814_v53 = vadd.f32 %v7027_v61, %v2812_v7  ;;  %v9549_v61 = vld [vmem:[#allocation5 + $0x370] ss:$24 sps:$4 sm:$0xff]   ;;  %11852 = vst [vmem:[#allocation97_spill] sm:$0xff] %v9554_v9  ;;  %v9565_v12 = vld [vmem:[#allocation5 + $0x30c] ss:$24 sps:$4 sm:$0xff]  }
 0x9a4   :  { %11850 = vst [vmem:[#allocation95_spill] sm:$0xff] %v9549_v61  ;;  %11855 = vst [vmem:[#allocation102_spill] sm:$0xff] %v9565_v12  ;;  %v9567_v7 = vld [vmem:[#allocation5 + $0x314] ss:$24 sps:$4 sm:$0xff]   ;;  %v9572_v47 = vld [vmem:[#allocation5 + $0x308] ss:$24 sps:$4 sm:$0xff]  }
 0x9a5   :  { %v2815_v57 = vadd.f32 %v7031_v62, %v2813_v37  ;;  %v9476_v19 = vpack.c.bf16 %v2814_v53, %v9279_v34  ;;  %v9494_v34 = vld [vmem:[#allocation5 + $0x428] ss:$24 sps:$4 sm:$0xff]   ;;  %11856 = vst [vmem:[#allocation103_spill] sm:$0xff] %v9567_v7  ;;  %11857 = vst [vmem:[#allocation104_spill] sm:$0xff] %v9572_v47  ;;  %v9578_v53 = vld [vmem:[#allocation5 + $0x5dc] ss:$24 sps:$4 sm:$0xff]  }
 0x9a6   :  { %v9561_v62 = vld [vmem:[#allocation5 + $0x340] ss:$24 sps:$4 sm:$0xff]   ;;  %v9574_v37 = vld [vmem:[#allocation5 + $0x310] ss:$24 sps:$4 sm:$0xff]   ;;  %11859 = vst [vmem:[#allocation40_spill] sm:$0xff] %v9578_v53 }
 0x9a7   :  { %v2842_v25 = vpack.c.bf16 %v2815_v57, %v9281_v21  ;;  %v9488_v21 = vld [vmem:[#allocation5 + $0x434] ss:$24 sps:$4 sm:$0xff]   ;;  %11854 = vst [vmem:[#allocation99_spill] sm:$0xff] %v9561_v62  ;;  %11858 = vst [vmem:[#allocation38_spill] sm:$0xff] %v9574_v37  ;;  %v9580_v57 = vld [vmem:[#allocation5 + $0x5e4] ss:$24 sps:$4 sm:$0xff]  }
 0x9a8   :  { %11837 = vst [vmem:[#allocation82_spill] sm:$0xff] %v9488_v21  ;;  %11860 = vst [vmem:[#allocation39_spill] sm:$0xff] %v9580_v57 }
 0x9a9   :  { %3515 = vmatprep.mubr.bf16.mxu1 %v2842_v25  ;;  %3588 = vmatprep.mubr.bf16.mxu0 %v2842_v25 }
 0x9aa   :  { %3516 = vmatmul.mubr.bf16.gmra.mxu1 %v9476_v19  ;;  %3589 = vmatmul.mubr.bf16.gmra.mxu0 %v9476_v19 }
 0x9ab   :  { %3631 = vmatprep.mubr.bf16.mxu1 %v9293_v41  ;;  %4294 = vmatprep.mubr.bf16.mxu0 %v11835_v36  ;;  %v9496_v41 = vld [vmem:[#allocation5 + $0x430] ss:$24 sps:$4 sm:$0xff]  }
 0x9ac   :  { %11838 = vst [vmem:[#allocation83_spill] sm:$0xff] %v9496_v41 }
 0x9b2   :  { %3632 = vmatmul.mubr.bf16.vlgmr.msra.gmra.mxu1 %v9329_v49  ;;  %4295 = vmatmul.mubr.bf16.vlgmr.msra.gmra.mxu0 %v11835_v36  ;;  %v9508_v49 = vld [vmem:[#allocation5 + $0x3f8] ss:$24 sps:$4 sm:$0xff]  }
 0x9b3   :  { %4304 = vmatpush1.bf16.msra.mxu1 %v9482_v32  ;;  %4345 = vmatpush1.bf16.msra.mxu0 %v9484_v10  ;;  %v9659_v10 = vld [vmem:[#allocation5 + $0x4c0] ss:$24 sps:$4 sm:$0xff]  }
 0x9b4   :  { %3641 = vmatprep.mubr.bf16.mxu1 %v9333_v26  ;;  %4305 = vmatprep.subr.bf16.mxu1 %v9486_v27  ;;  %v9514_v26 = vld [vmem:[#allocation5 + $0x3cc] ss:$24 sps:$4 sm:$0xff]  }
 0x9b5   :  { %4346 = vmatprep.subr.bf16.mxu0 %v9488_v21  ;;  %4376 = vmatprep.mubr.bf16.mxu0 %v11835_v36  ;;  %v9653_v21 = vld [vmem:[#allocation5 + $0x4c4] ss:$24 sps:$4 sm:$0xff]  }
 0x9b7   :  { %4306 = vmatpush1.bf16.msra.mxu1 %v9494_v34  ;;  %4347 = vmatpush1.bf16.msra.mxu0 %v9496_v41  ;;  %v9647_v41 = vld [vmem:[#allocation5 + $0x4f0] ss:$24 sps:$4 sm:$0xff]  }
 0x9b8   :  { %4307 = vmatprep.subr.bf16.mxu1 %v9500_v40  ;;  %4348 = vmatprep.subr.bf16.mxu0 %v9502_v1  ;;  %v9641_v1 = vld [vmem:[#allocation5 + $0x4f4] ss:$24 sps:$4 sm:$0xff]  }
 0x9b9   :  { %11880 = vst [vmem:[#allocation64_spill] sm:$0xff] %v9641_v1 }
 0x9ba   :  { %3642 = vmatmul.mubr.bf16.gmra.mxu1 %v9341_v23  ;;  %v9534_v23 = vld [vmem:[#allocation5 + $0x398] ss:$24 sps:$4 sm:$0xff]  }
 0x9bb   :  { %4308 = vmatpush1.bf16.msra.mxu1 %v9508_v49  ;;  %4349 = vmatpush1.bf16.msra.mxu0 %v9510_v11  ;;  %11845 = vst [vmem:[#allocation90_spill] sm:$0xff] %v9534_v23  ;;  %v9635_v11 = vld [vmem:[#allocation5 + $0x520] ss:$24 sps:$4 sm:$0xff]  }
 0x9bc   :  { %3651 = vmatprep.mubr.bf16.mxu1 %v9345_v13  ;;  %4309 = vmatprep.subr.bf16.mxu1 %v9514_v26  ;;  %v9540_v13 = vld [vmem:[#allocation5 + $0x36c] ss:$24 sps:$4 sm:$0xff]   ;;  %11878 = vst [vmem:[#allocation43_spill] sm:$0xff] %v9635_v11 }
 0x9bd   :  { %4350 = vmatprep.subr.bf16.mxu0 %v9516_v55  ;;  %11847 = vst [vmem:[#allocation92_spill] sm:$0xff] %v9540_v13  ;;  %v9629_v55 = vld [vmem:[#allocation5 + $0x524] ss:$24 sps:$4 sm:$0xff]  }
 0x9be   :  { %11876 = vst [vmem:[#allocation29_spill] sm:$0xff] %v9629_v55 }
 0x9bf   :  { %4310 = vmatpush1.bf16.msra.mxu1 %v9521_v44  ;;  %4351 = vmatpush1.bf16.msra.mxu0 %v9523_v39  ;;  %v9623_v39 = vld [vmem:[#allocation5 + $0x550] ss:$24 sps:$4 sm:$0xff]  }
 0x9c0   :  { %4311 = vmatprep.subr.bf16.mxu1 %v9527_v17  ;;  %4352 = vmatprep.subr.bf16.mxu0 %v9529_v43  ;;  %v9617_v43 = vld [vmem:[#allocation5 + $0x554] ss:$24 sps:$4 sm:$0xff]   ;;  %11874 = vst [vmem:[#allocation44_spill] sm:$0xff] %v9623_v39 }
 0x9c1   :  { %11872 = vst [vmem:[#allocation113_spill] sm:$0xff] %v9617_v43 }
 0x9c2   :  { %3652 = vmatmul.mubr.bf16.gmra.mxu1 %v9351_v29  ;;  %v9559_v29 = vld [vmem:[#allocation5 + $0x338] ss:$24 sps:$4 sm:$0xff]  }
 0x9c3   :  { %4312 = vmatpush1.bf16.msra.mxu1 %v9534_v23  ;;  %4353 = vmatpush1.bf16.msra.mxu0 %v9536_v22  ;;  %11853 = vst [vmem:[#allocation98_spill] sm:$0xff] %v9559_v29  ;;  %v9611_v22 = vld [vmem:[#allocation5 + $0x580] ss:$24 sps:$4 sm:$0xff]  }
 0x9c4   :  { %3661 = vmatprep.mubr.bf16.mxu1 %v2842_v25  ;;  %4313 = vmatprep.subr.bf16.mxu1 %v9540_v13  ;;  %v9585_v25 = vld [vmem:[#allocation5 + $0x5d8] ss:$24 sps:$4 sm:$0xff]   ;;  %11870 = vst [vmem:[#allocation111_spill] sm:$0xff] %v9611_v22 }
 0x9c5   :  { %4354 = vmatprep.subr.bf16.mxu0 %v9542_v58  ;;  %11861 = vst [vmem:[#allocation41_spill] sm:$0xff] %v9585_v25  ;;  %v9605_v58 = vld [vmem:[#allocation5 + $0x584] ss:$24 sps:$4 sm:$0xff]  }
 0x9c6   :  { %11868 = vst [vmem:[#allocation109_spill] sm:$0xff] %v9605_v58 }
 0x9c7   :  { %4314 = vmatpush1.bf16.msra.mxu1 %v9547_v60  ;;  %4355 = vmatpush1.bf16.msra.mxu0 %v9549_v61  ;;  %v9599_v61 = vld [vmem:[#allocation5 + $0x5b0] ss:$24 sps:$4 sm:$0xff]  }
 0x9c8   :  { %4315 = vmatprep.subr.bf16.mxu1 %v9552_v42  ;;  %4356 = vmatprep.subr.bf16.mxu0 %v9554_v9  ;;  %v9597_v9 = vld [vmem:[#allocation5 + $0x5a8] ss:$24 sps:$4 sm:$0xff]   ;;  %11866 = vst [vmem:[#allocation107_spill] sm:$0xff] %v9599_v61 }
 0x9c9   :  { %11865 = vst [vmem:[#allocation106_spill] sm:$0xff] %v9597_v9 }
 0x9ca   :  { %3662 = vmatmul.mubr.bf16.gmra.mxu1 %v9476_v19  ;;  %v9587_v19 = vld [vmem:[#allocation5 + $0x5e0] ss:$24 sps:$4 sm:$0xff]  }
 0x9cb   :  { %4316 = vmatpush1.bf16.msra.mxu1 %v9559_v29  ;;  %4357 = vmatpush1.bf16.msra.mxu0 %v9561_v62  ;;  %11862 = vst [vmem:[#allocation61_spill] sm:$0xff] %v9587_v19  ;;  %v9591_v62 = vld [vmem:[#allocation5 + $0x5ac] ss:$24 sps:$4 sm:$0xff]  }
 0x9cc   :  { %4317 = vmatprep.subr.bf16.mxu1 %v9565_v12  ;;  %4358 = vmatprep.subr.bf16.mxu0 %v9567_v7  ;;  %11863 = vst [vmem:[#allocation62_spill] sm:$0xff] %v9591_v62  ;;  %v9593_v7 = vld [vmem:[#allocation5 + $0x5b4] ss:$24 sps:$4 sm:$0xff]  }
 0x9cd   :  { %4335 = vmatprep.mubr.bf16.mxu1 %v11835_v36  ;;  %11864 = vst [vmem:[#allocation105_spill] sm:$0xff] %v9593_v7 }
 0x9cf   :  { %4318 = vmatpush1.bf16.msra.mxu1 %v9572_v47  ;;  %4359 = vmatpush1.bf16.msra.mxu0 %v9574_v37  ;;  %v9603_v37 = vld [vmem:[#allocation5 + $0x57c] ss:$24 sps:$4 sm:$0xff]  }
 0x9d0   :  { %4319 = vmatprep.subr.bf16.mxu1 %v9578_v53  ;;  %4360 = vmatprep.subr.bf16.mxu0 %v9580_v57  ;;  %11867 = vst [vmem:[#allocation108_spill] sm:$0xff] %v9603_v37  ;;  %v9609_v57 = vld [vmem:[#allocation5 + $0x578] ss:$24 sps:$4 sm:$0xff]  }
 0x9d1   :  { %11869 = vst [vmem:[#allocation110_spill] sm:$0xff] %v9609_v57 }
 0x9d3   :  { %4320 = vmatpush2.bf16.msra.mxu1 %v9585_v25  ;;  %4361 = vmatpush2.bf16.msra.mxu0 %v9587_v19  ;;  %v9615_v19 = vld [vmem:[#allocation5 + $0x54c] ss:$24 sps:$4 sm:$0xff]  }
 0x9d4   :  { %4321 = vmatprep.subr.bf16.mxu1 %v9591_v62  ;;  %4362 = vmatprep.subr.bf16.mxu0 %v9593_v7  ;;  %11871 = vst [vmem:[#allocation112_spill] sm:$0xff] %v9615_v19  ;;  %v9621_v7 = vld [vmem:[#allocation5 + $0x548] ss:$24 sps:$4 sm:$0xff]  }
 0x9d5   :  { %11873 = vst [vmem:[#allocation114_spill] sm:$0xff] %v9621_v7 }
 0x9d7   :  { %4322 = vmatpush2.bf16.msra.mxu1 %v9597_v9  ;;  %4363 = vmatpush2.bf16.msra.mxu0 %v9599_v61  ;;  %v9627_v61 = vld [vmem:[#allocation5 + $0x51c] ss:$24 sps:$4 sm:$0xff]  }
 0x9d8   :  { %4323 = vmatprep.subr.bf16.mxu1 %v9603_v37  ;;  %4364 = vmatprep.subr.bf16.mxu0 %v9605_v58  ;;  %11875 = vst [vmem:[#allocation42_spill] sm:$0xff] %v9627_v61  ;;  %v9633_v58 = vld [vmem:[#allocation5 + $0x518] ss:$24 sps:$4 sm:$0xff]  }
 0x9d9   :  { %11877 = vst [vmem:[#allocation45_spill] sm:$0xff] %v9633_v58 }
 0x9db   :  { %4324 = vmatpush2.bf16.msra.mxu1 %v9609_v57  ;;  %4365 = vmatpush2.bf16.msra.mxu0 %v9611_v22  ;;  %v9639_v22 = vld [vmem:[#allocation5 + $0x4ec] ss:$24 sps:$4 sm:$0xff]  }
 0x9dc   :  { %4325 = vmatprep.subr.bf16.mxu1 %v9615_v19  ;;  %4366 = vmatprep.subr.bf16.mxu0 %v9617_v43  ;;  %11879 = vst [vmem:[#allocation56_spill] sm:$0xff] %v9639_v22  ;;  %v9645_v43 = vld [vmem:[#allocation5 + $0x4e8] ss:$24 sps:$4 sm:$0xff]  }
 0x9dd   :  { %11881 = vst [vmem:[#allocation63_spill] sm:$0xff] %v9645_v43 }
 0x9df   :  { %4326 = vmatpush2.bf16.msra.mxu1 %v9621_v7  ;;  %4367 = vmatpush2.bf16.msra.mxu0 %v9623_v39  ;;  %v9651_v39 = vld [vmem:[#allocation5 + $0x4bc] ss:$24 sps:$4 sm:$0xff]  }
 0x9e0   :  { %4327 = vmatprep.subr.bf16.mxu1 %v9627_v61  ;;  %4368 = vmatprep.subr.bf16.mxu0 %v9629_v55  ;;  %11882 = vst [vmem:[#allocation57_spill] sm:$0xff] %v9651_v39  ;;  %v9657_v55 = vld [vmem:[#allocation5 + $0x4b8] ss:$24 sps:$4 sm:$0xff]  }
 0x9e1   :  { %11883 = vst [vmem:[#allocation58_spill] sm:$0xff] %v9657_v55 }
 0x9e3   :  { %4328 = vmatpush2.bf16.msra.mxu1 %v9633_v58  ;;  %4369 = vmatpush2.bf16.msra.mxu0 %v9635_v11  ;;  %v9663_v11 = vld [vmem:[#allocation5 + $0x48c] ss:$24 sps:$4 sm:$0xff]  }
 0x9e4   :  { %4329 = vmatprep.subr.bf16.mxu1 %v9639_v22  ;;  %4370 = vmatprep.subr.bf16.mxu0 %v9641_v1  ;;  %11884 = vst [vmem:[#allocation36_spill] sm:$0xff] %v9663_v11  ;;  %v9669_v1 = vld [vmem:[#allocation5 + $0x488] ss:$24 sps:$4 sm:$0xff]  }
 0x9e5   :  { %11885 = vst [vmem:[#allocation34_spill] sm:$0xff] %v9669_v1 }
 0x9e7   :  { %4330 = vmatpush2.bf16.msra.mxu1 %v9645_v43  ;;  %4371 = vmatpush2.bf16.msra.mxu0 %v9647_v41  ;;  %v9671_v43 = vld [vmem:[#allocation5 + $0x490] ss:$24 sps:$4 sm:$0xff]  }
 0x9e8   :  { %4331 = vmatprep.subr.bf16.mxu1 %v9651_v39  ;;  %4372 = vmatprep.subr.bf16.mxu0 %v9653_v21 }
 0x9eb   :  { %4332 = vmatpush2.bf16.msra.mxu1 %v9657_v55  ;;  %4373 = vmatpush2.bf16.msra.mxu0 %v9659_v10 }
 0x9ec   :  { %4333 = vmatprep.subr.bf16.mxu1 %v9663_v11  ;;  %4374 = vmatprep.subr.bf16.mxu0 %v9665_v5 }
 0x9ef   :  { %4334 = vmatpush2.bf16.msra.mxu1 %v9669_v1  ;;  %4375 = vmatpush2.bf16.msra.mxu0 %v9671_v43 }
 0x9f0   :  { %4427 = vmatprep.subr.bf16.mxu1 %v9354_v50  ;;  %4468 = vmatprep.subr.bf16.mxu0 %v9420_v54 }
 0x9f2   :  { %4336 = vmatmul.mubr.bf16.vlgmr.msra.gmra.mxu1 %v11835_v36  ;;  %4377 = vmatmul.mubr.bf16.vlgmr.msra.gmra.mxu0 %v11835_v36 }
 0x9f3   :  { %4428 = vmatpush1.bf16.msra.mxu1 %v9356_v4  ;;  %4469 = vmatpush1.bf16.msra.mxu0 %v9482_v32  ;;  %v11886_v4 = vld [vmem:[#allocation17_spill] sm:$0xff] }
 0x9f4   :  { %4429 = vmatprep.subr.bf16.mxu1 %v9359_v46  ;;  %4470 = vmatprep.subr.bf16.mxu0 %v9486_v27  ;;  %v11887_v46 = vld [vmem:[#allocation63_spill] sm:$0xff] }
 0x9f7   :  { %4430 = vmatpush1.bf16.msra.mxu1 %v9364_v14  ;;  %4471 = vmatpush1.bf16.msra.mxu0 %v9494_v34  ;;  %v11888_v14 = vld [vmem:[#allocation78_spill] sm:$0xff] }
 0x9f8   :  { %4431 = vmatprep.subr.bf16.mxu1 %v9367_v31  ;;  %4472 = vmatprep.subr.bf16.mxu0 %v9500_v40  ;;  %v11889_v31 = vld [vmem:[#allocation101_spill] sm:$0xff] }
 0x9fb   :  { %4432 = vmatpush1.bf16.msra.mxu1 %v9370_v48  ;;  %4473 = vmatpush1.bf16.msra.mxu0 %v9508_v49  ;;  %v11890_v48 = vld [vmem:[#allocation19_spill] sm:$0xff] }
 0x9fc   :  { %4433 = vmatprep.subr.bf16.mxu1 %v9373_v56  ;;  %4474 = vmatprep.subr.bf16.mxu0 %v9514_v26  ;;  %v11891_v56 = vld [vmem:[#allocation79_spill] sm:$0xff] }
 0x9ff   :  { %4434 = vmatpush1.bf16.msra.mxu1 %v9378_v24  ;;  %4475 = vmatpush1.bf16.msra.mxu0 %v9521_v44  ;;  %v11892_v24 = vld [vmem:[#allocation80_spill] sm:$0xff] }
 0xa00   :  { %4435 = vmatprep.subr.bf16.mxu1 %v9381_v6  ;;  %4476 = vmatprep.subr.bf16.mxu0 %v9527_v17  ;;  %v9745_v6 = vpop.f32.mrf.mxu1 }
 0xa03   :  { %4436 = vmatpush1.bf16.msra.mxu1 %v9384_v20  ;;  %4477 = vmatpush1.bf16.msra.mxu0 %v9534_v23  ;;  %v9747_v20 = vpop.f32.mrf.mxu0 }
 0xa04   :  { %4437 = vmatprep.subr.bf16.mxu1 %v9387_v51  ;;  %4478 = vmatprep.subr.bf16.mxu0 %v9540_v13  ;;  %v9749_v51 = vpop.f32.mrf.mxu1 }
 0xa05   :  { %v9751_v36 = vpop.f32.mrf.mxu0 }
 0xa07   :  { %4438 = vmatpush1.bf16.msra.mxu1 %v9391_v16  ;;  %4479 = vmatpush1.bf16.msra.mxu0 %v9547_v60 }
 0xa08   :  { %4439 = vmatprep.subr.bf16.mxu1 %v9394_v59  ;;  %4480 = vmatprep.subr.bf16.mxu0 %v9552_v42 }
 0xa0b   :  { %4440 = vmatpush1.bf16.msra.mxu1 %v9397_v45  ;;  %4481 = vmatpush1.bf16.msra.mxu0 %v9559_v29 }
 0xa0c   :  { %4441 = vmatprep.subr.bf16.mxu1 %v9400_v18  ;;  %4482 = vmatprep.subr.bf16.mxu0 %v9565_v12 }
 0xa0f   :  { %4442 = vmatpush1.bf16.msra.mxu1 %v9403_v30  ;;  %4483 = vmatpush1.bf16.msra.mxu0 %v9572_v47 }
 0xa10   :  { %4443 = vmatprep.subr.bf16.mxu1 %v9406_v33  ;;  %4484 = vmatprep.subr.bf16.mxu0 %v9578_v53 }
 0xa13   :  { %4444 = vmatpush2.bf16.msra.mxu1 %v9409_v38  ;;  %4485 = vmatpush2.bf16.msra.mxu0 %v9585_v25 }
 0xa14   :  { %4445 = vmatprep.subr.bf16.mxu1 %v9412_v35  ;;  %4486 = vmatprep.subr.bf16.mxu0 %v9591_v62 }
 0xa17   :  { %4446 = vmatpush2.bf16.msra.mxu1 %v9415_v2  ;;  %4487 = vmatpush2.bf16.msra.mxu0 %v9597_v9 }
 0xa18   :  { %4447 = vmatprep.subr.bf16.mxu1 %v9418_v0  ;;  %4488 = vmatprep.subr.bf16.mxu0 %v9603_v37 }
 0xa1b   :  { %4448 = vmatpush2.bf16.msra.mxu1 %v9423_v28  ;;  %4489 = vmatpush2.bf16.msra.mxu0 %v9609_v57 }
 0xa1c   :  { %4449 = vmatprep.subr.bf16.mxu1 %v9426_v63  ;;  %4490 = vmatprep.subr.bf16.mxu0 %v9615_v19 }
 0xa1f   :  { %4450 = vmatpush2.bf16.msra.mxu1 %v9430_v15  ;;  %4491 = vmatpush2.bf16.msra.mxu0 %v9621_v7 }
 0xa20   :  { %4451 = vmatprep.subr.bf16.mxu1 %v9433_v8  ;;  %4492 = vmatprep.subr.bf16.mxu0 %v9627_v61 }
 0xa23   :  { %4452 = vmatpush2.bf16.msra.mxu1 %v9436_v52  ;;  %4493 = vmatpush2.bf16.msra.mxu0 %v9633_v58 }
 0xa24   :  { %4453 = vmatprep.subr.bf16.mxu1 %v9439_v3  ;;  %4494 = vmatprep.subr.bf16.mxu0 %v9639_v22 }
 0xa27   :  { %4454 = vmatpush2.bf16.msra.mxu1 %v11886_v4  ;;  %4495 = vmatpush2.bf16.msra.mxu0 %v11887_v46 }
 0xa28   :  { %4455 = vmatprep.subr.bf16.mxu1 %v11888_v14  ;;  %4496 = vmatprep.subr.bf16.mxu0 %v9651_v39  ;;  %v9755_v39 = vpop.f32.mrf.mxu0 }
 0xa29   :  { %11894 = vst [vmem:[#allocation35_spill] sm:$0xff] %v9755_v39 }
 0xa2a   :  { %v9759_v46 = vpop.f32.mrf.mxu0 }
 0xa2b   :  { %4456 = vmatpush2.bf16.msra.mxu1 %v11889_v31  ;;  %4497 = vmatpush2.bf16.msra.mxu0 %v9657_v55  ;;  %v9753_v55 = vpop.f32.mrf.mxu1  ;;  %11896 = vst [vmem:[#allocation59_spill] sm:$0xff] %v9759_v46 }
 0xa2c   :  { %4457 = vmatprep.subr.bf16.mxu1 %v11890_v48  ;;  %4498 = vmatprep.subr.bf16.mxu0 %v9663_v11  ;;  %11893 = vst [vmem:[#allocation37_spill] sm:$0xff] %v9753_v55  ;;  %v9763_v22 = vpop.f32.mrf.mxu0 }
 0xa2d   :  { %v9757_v11 = vpop.f32.mrf.mxu1  ;;  %11898 = vst [vmem:[#allocation15_spill] sm:$0xff] %v9763_v22 }
 0xa2e   :  { %11895 = vst [vmem:[#allocation60_spill] sm:$0xff] %v9757_v11  ;;  %v9767_v58 = vpop.f32.mrf.mxu0 }
 0xa2f   :  { %4458 = vmatpush2.bf16.msra.mxu1 %v11891_v56  ;;  %4499 = vmatpush2.bf16.msra.mxu0 %v9669_v1  ;;  %v9761_v1 = vpop.f32.mrf.mxu1  ;;  %11900 = vst [vmem:[#allocation72_spill] sm:$0xff] %v9767_v58 }
 0xa30   :  { %4509 = vmatprep.subr.bf16.mxu1 %v11892_v24  ;;  %4592 = vmatprep.subr.bf16.mxu0 %v9354_v50  ;;  %11897 = vst [vmem:[#allocation13_spill] sm:$0xff] %v9761_v1  ;;  %v9771_v7 = vpop.f32.mrf.mxu0 }
 0xa31   :  { %v9765_v50 = vpop.f32.mrf.mxu1  ;;  %11902 = vst [vmem:[#allocation18_spill] sm:$0xff] %v9771_v7 }
 0xa32   :  { %11899 = vst [vmem:[#allocation71_spill] sm:$0xff] %v9765_v50  ;;  %v9775_v55 = vpop.f32.mrf.mxu0 }
 0xa33   :  { %v9769_v61 = vpop.f32.mrf.mxu1  ;;  %11904 = vst [vmem:[#allocation74_spill] sm:$0xff] %v9775_v55 }
 0xa34   :  { %11901 = vst [vmem:[#allocation16_spill] sm:$0xff] %v9769_v61  ;;  %v9779_v11 = vpop.f32.mrf.mxu0 }
 0xa35   :  { %v9773_v19 = vpop.f32.mrf.mxu1  ;;  %11906 = vst [vmem:[#allocation26_spill] sm:$0xff] %v9779_v11 }
 0xa36   :  { %11903 = vst [vmem:[#allocation73_spill] sm:$0xff] %v9773_v19  ;;  %v9783_v1 = vpop.f32.mrf.mxu0 }
 0xa37   :  { %v9777_v39 = vpop.f32.mrf.mxu1  ;;  %11908 = vst [vmem:[#allocation76_spill] sm:$0xff] %v9783_v1 }
 0xa38   :  { %11905 = vst [vmem:[#allocation20_spill] sm:$0xff] %v9777_v39  ;;  %v9787_v50 = vpop.f32.mrf.mxu0 }
 0xa39   :  { %v9781_v46 = vpop.f32.mrf.mxu1  ;;  %11910 = vst [vmem:[#allocation27_spill] sm:$0xff] %v9787_v50 }
 0xa3a   :  { %11907 = vst [vmem:[#allocation75_spill] sm:$0xff] %v9781_v46  ;;  %v9791_v61 = vpop.f32.mrf.mxu0 }
 0xa3b   :  { %v9785_v22 = vpop.f32.mrf.mxu1  ;;  %11912 = vst [vmem:[#allocation77_spill] sm:$0xff] %v9791_v61  ;;  %v11921_v61 = vld [vmem:[#allocation21_spill] sm:$0xff] }
 0xa3c   :  { %11909 = vst [vmem:[#allocation24_spill] sm:$0xff] %v9785_v22 }
 0xa3d   :  { %v9789_v58 = vpop.f32.mrf.mxu1 }
 0xa3e   :  { %11911 = vst [vmem:[#allocation10_spill] sm:$0xff] %v9789_v58 }
 0xa6a   :  { %v9793_v7 = vpop.f32.mrf.mxu1  ;;  %v9795_v19 = vpop.f32.mrf.mxu0 }
 0xa6b   :  { %11913 = vst [vmem:[#allocation25_spill] sm:$0xff] %v9793_v7  ;;  %11914 = vst [vmem:[#allocation55_spill] sm:$0xff] %v9795_v19  ;;  %v6010_v7 = vld [vmem:[%s11002_s3 + $0x6] sm:$0x3f] }
 0xa6c   :  { %v9797_v55 = vpop.f32.mrf.mxu1  ;;  %v9799_v39 = vpop.f32.mrf.mxu0 }
 0xa6d   :  { %11915 = vst [vmem:[#allocation12_spill] sm:$0xff] %v9797_v55  ;;  %11916 = vst [vmem:[#allocation14_spill] sm:$0xff] %v9799_v39  ;;  %v11922_v39 = vsub.s32 4, %v11921_v61 }
 0xa6e   :  { %v9801_v11 = vpop.f32.mrf.mxu1  ;;  %v9803_v46 = vpop.f32.mrf.mxu0 }
 0xa6f   :  { %11917 = vst [vmem:[#allocation54_spill] sm:$0xff] %v9801_v11  ;;  %11918 = vst [vmem:[#allocation100_spill] sm:$0xff] %v9803_v46  ;;  %v9818_v57 = vrot.slane %v6010_v7, %v11922_v39 }
 0xa70   :  { %v9805_v1 = vpop.f32.mrf.mxu1  ;;  %v9807_v22 = vpop.f32.mrf.mxu0 }
 0xa71   :  { %11919 = vst [vmem:[#allocation46_spill] sm:$0xff] %v9805_v1  ;;  %11920 = vst [vmem:[#allocation48_spill] sm:$0xff] %v9807_v22  ;;  %v11923_v1 = vsub.s32 5, %v11921_v61 }
 0xa72   :  { %v9809_v50 = vpop.f32.mrf.mxu1  ;;  %v4296_v58 = vpop.f32.mrf.mxu0 }
 0xa73   :  { %v9822_v37 = vrot.slane %v6010_v7, %v11923_v1 }
 0xa74   :  { %v9814_v19 = vpop.f32.mrf.mxu1  ;;  %v4298_v55 = vpop.f32.mrf.mxu0 }
 0xa76   :  { %v3637_v11 = vpop.f32.mrf.mxu1  ;;  %v4300_v46 = vpop.f32.mrf.mxu0 }
 0xa77   :  { %v9825_v22 = vadd.f32 %v3637_v11, %v9818_v57 }
 0xa78   :  { %v3639_v9 = vpop.f32.mrf.mxu1  ;;  %v4301_v62 = vpop.f32.mrf.mxu0 }
 0xa79   :  { %11924 = vst [vmem:[#allocation47_spill] sm:$0xff] %v9825_v22  ;;  %v9828_v25 = vadd.f32 %v3639_v9, %v9822_v37  ;;  %v11933_v22 = vld [vmem:[#allocation22_spill] sm:$0xff] }
 0xa7a   :  { %v3643_v53 = vpop.f32.mrf.mxu1 }
 0xa7b   :  { %11925 = vst [vmem:[#allocation49_spill] sm:$0xff] %v9828_v25  ;;  %v9831_v47 = vadd.f32 %v3643_v53, %v9818_v57 }
 0xa7c   :  { %v3645_v39 = vpop.f32.mrf.mxu1 }
 0xa7d   :  { %11926 = vst [vmem:[#allocation65_spill] sm:$0xff] %v9831_v47  ;;  %v9834_v12 = vadd.f32 %v3645_v39, %v9822_v37 }
 0xa7e   :  { %v3647_v46 = vpop.f32.mrf.mxu1 }
 0xa7f   :  { %11927 = vst [vmem:[#allocation66_spill] sm:$0xff] %v9834_v12  ;;  %v9837_v1 = vadd.f32 %v3647_v46, %v9818_v57  ;;  %v9852_v46 = vrot.slane %v6010_v7, %v11933_v22 }
 0xa80   :  { %v3649_v29 = vpop.f32.mrf.mxu1 }
 0xa81   :  { %11928 = vst [vmem:[#allocation70_spill] sm:$0xff] %v9837_v1  ;;  %v9840_v11 = vadd.f32 %v3649_v29, %v9822_v37  ;;  %11934 = vst [vmem:[#allocation33_spill] sm:$0xff] %v9852_v46 }
 0xa82   :  { %v3653_v62 = vpop.f32.mrf.mxu1 }
 0xa83   :  { %11929 = vst [vmem:[#allocation11_spill] sm:$0xff] %v9840_v11  ;;  %v9843_v9 = vadd.f32 %v3653_v62, %v9818_v57  ;;  %v11936_v11 = vld [vmem:[#allocation23_spill] sm:$0xff] }
 0xa84   :  { %v3655_v25 = vpop.f32.mrf.mxu1  ;;  %v9858_v42 = vrot.slane %v6010_v7, %v11936_v11 }
 0xa85   :  { %11930 = vst [vmem:[#allocation69_spill] sm:$0xff] %v9843_v9  ;;  %v9846_v53 = vadd.f32 %v3655_v25, %v9822_v37 }
 0xa86   :  { %v3657_v47 = vpop.f32.mrf.mxu1  ;;  %v3490_v9 = vadd.f32 %v9749_v51, %v9858_v42  ;;  %v11941_v51 = vsub.s32 2, %v11921_v61 }
 0xa87   :  { %11931 = vst [vmem:[#allocation9_spill] sm:$0xff] %v9846_v53  ;;  %v9849_v39 = vadd.f32 %v3657_v47, %v9818_v57  ;;  %v3488_v53 = vadd.f32 %v9745_v6, %v9852_v46 }
 0xa88   :  { %v3659_v12 = vpop.f32.mrf.mxu1  ;;  %v4386_v13 = vadd.f32 %v4298_v55, %v3490_v9 }
 0xa89   :  { %11932 = vst [vmem:[#allocation32_spill] sm:$0xff] %v9849_v39  ;;  %v9855_v1 = vadd.f32 %v3659_v12, %v9822_v37  ;;  %v4385_v12 = vadd.f32 %v4296_v58, %v3488_v53  ;;  %v9878_v58 = vrot.slane %v6010_v7, %v11941_v51 }
 0xa8a   :  { %v3663_v29 = vpop.f32.mrf.mxu1  ;;  %v4388_v23 = vsub.f32 0.0, %v4386_v13 }
 0xa8b   :  { %11935 = vst [vmem:[#allocation30_spill] sm:$0xff] %v9855_v1  ;;  %v9861_v62 = vadd.f32 %v3663_v29, %v9818_v57  ;;  %v3561_v13 = vadd.f32 %v9747_v20, %v9878_v58 }
 0xa8c   :  { %v3665_v25 = vpop.f32.mrf.mxu1  ;;  %v4391_v6 = vmul.f32 1.442695, %v4388_v23 }
 0xa8d   :  { %11937 = vst [vmem:[#allocation31_spill] sm:$0xff] %v9861_v62  ;;  %v9866_v47 = vadd.f32 %v3665_v25, %v9822_v37  ;;  %v4387_v62 = vsub.f32 0.0, %v4385_v12 }
 0xa8e   :  { %v3667_v39 = vpop.f32.mrf.mxu1 }
 0xa8f   :  { %11938 = vst [vmem:[#allocation28_spill] sm:$0xff] %v9866_v47  ;;  %v9871_v1 = vadd.f32 %v3667_v39, %v9818_v57  ;;  %v4389_v17 = vmul.f32 1.442695, %v4387_v62  ;;  %v11942_v39 = vsub.s32 3, %v11921_v61 }
 0xa90   :  { %v3669_v60 = vpop.f32.mrf.mxu1 }
 0xa91   :  { %11939 = vst [vmem:[#allocation53_spill] sm:$0xff] %v9871_v1  ;;  %v9874_v29 = vadd.f32 %v3669_v60, %v9822_v37  ;;  %7034 = vpow2.f32 %v4389_v17  ;;  %v9882_v55 = vrot.slane %v6010_v7, %v11942_v39  ;;  %v6107_v17 = vld [vmem:[%s11003_s4 + $0x2] sm:$0x3] }
 0xa92   :  { %7036 = vpow2.f32 %v4391_v6  ;;  %v9892_v7 = vrot.slane %v6107_v17, %v11933_v22 }
 0xa93   :  { %11940 = vst [vmem:[#allocation50_spill] sm:$0xff] %v9874_v29  ;;  %v3563_v9 = vadd.f32 %v9751_v36, %v9882_v55 }
 0xa9e   :  { %v7035_v25 = vpop.eup %7034 }
 0xa9f   :  { %v7037_v47 = vpop.eup %7036  ;;  %v4393_v46 = vadd.f32 1.0, %v7035_v25 }
 0xaa0   :  { %v4394_v53 = vadd.f32 1.0, %v7037_v47 }
 0xaa1   :  { %7038 = vrcp.f32 %v4393_v46 }
 0xaa2   :  { %7040 = vrcp.f32 %v4394_v53  ;;  %v9895_v53 = vrot.slane %v6107_v17, %v11936_v11  ;;  %v3636_v11 = vadd.f32 %v9814_v19, %v9822_v37 }
 0xab2   :  { %v4337_v23 = vpop.f32.mrf.mxu1  ;;  %v4378_v60 = vpop.f32.mrf.mxu0 }
 0xab3   :  { %v4397_v62 = vadd.f32 %v4337_v23, %v3561_v13  ;;  %v4409_v36 = vadd.f32 %v4378_v60, %v9892_v7 }
 0xab4   :  { %v4339_v47 = vpop.f32.mrf.mxu1  ;;  %v4380_v12 = vpop.f32.mrf.mxu0 }
 0xab5   :  { %v4399_v61 = vsub.f32 0.0, %v4397_v62  ;;  %v4398_v46 = vadd.f32 %v4339_v47, %v3563_v9  ;;  %v4410_v23 = vadd.f32 %v4380_v12, %v9895_v53  ;;  %v7039_v62 = vpop.eup %7038  ;;  %v3634_v9 = vadd.f32 %v9809_v50, %v9818_v57 }
 0xab6   :  { %v4341_v6 = vpop.f32.mrf.mxu1  ;;  %v4382_v20 = vpop.f32.mrf.mxu0  ;;  %v4411_v22 = vmul.f32 %v7039_v62, %v4409_v36  ;;  %v11946_v62 = vld [vmem:[#allocation82_spill] sm:$0xff] }
 0xab7   :  { %v4401_v25 = vmul.f32 1.442695, %v4399_v61  ;;  %v4400_v51 = vsub.f32 0.0, %v4398_v46  ;;  %v7041_v1 = vpop.eup %7040 }
 0xab8   :  { %v4342_v39 = vpop.f32.mrf.mxu1  ;;  %v4383_v29 = vpop.f32.mrf.mxu0  ;;  %v4412_v47 = vmul.f32 %v7041_v1, %v4410_v23  ;;  %v4413_v17 = vadd.f32 %v4411_v22, %v3634_v9  ;;  %v11945_v23 = vld [vmem:[#allocation81_spill] sm:$0xff]  ;;  %v9917_v22 = vld [vmem:[#allocation5 + $0x450] ss:$24 sps:$4 sm:$0xff]  }
 0xab9   :  { %7042 = vpow2.f32 %v4401_v25  ;;  %v4403_v13 = vmul.f32 1.442695, %v4400_v51  ;;  %v9920_v9 = vld [vmem:[#allocation5 + $0x424] ss:$24 sps:$4 sm:$0xff]  }
 0xaba   :  { %v4414_v61 = vadd.f32 %v4412_v47, %v3636_v11  ;;  %v11947_v47 = vld [vmem:[#allocation83_spill] sm:$0xff]  ;;  %v11948_v11 = vld [vmem:[#allocation84_spill] sm:$0xff] }
 0xabb   :  { %7044 = vpow2.f32 %v4403_v13 }
 0xabc   :  { %7046 = vtanh.f32 %v4413_v17  ;;  %v9925_v17 = vld [vmem:[#allocation5 + $0x420] ss:$24 sps:$4 sm:$0xff]  }
 0xabd   :  { %7048 = vtanh.f32 %v4414_v61  ;;  %v9928_v61 = vld [vmem:[#allocation5 + $0x3f4] ss:$24 sps:$4 sm:$0xff]  }
 0xac6   :  { %v7043_v29 = vpop.eup %7042 }
 0xac7   :  { %v4405_v46 = vadd.f32 1.0, %v7043_v29  ;;  %v11949_v29 = vld [vmem:[#allocation85_spill] sm:$0xff] }
 0xac8   :  { %v7045_v60 = vpop.eup %7044 }
 0xac9   :  { %7050 = vrcp.f32 %v4405_v46  ;;  %v4406_v6 = vadd.f32 1.0, %v7045_v60  ;;  %v7047_v12 = vpop.eup %7046  ;;  %v11950_v46 = vld [vmem:[#allocation86_spill] sm:$0xff] }
 0xaca   :  { %v7049_v20 = vpop.eup %7048  ;;  %v4417_v25 = vsub.f32 0.0, %v7047_v12  ;;  %v9933_v60 = vld [vmem:[#allocation5 + $0x3f0] ss:$24 sps:$4 sm:$0xff]  }
 0xacb   :  { %7052 = vrcp.f32 %v4406_v6  ;;  %v4418_v39 = vsub.f32 0.0, %v7049_v20  ;;  %v9936_v6 = vld [vmem:[#allocation5 + $0x3c4] ss:$24 sps:$4 sm:$0xff]  }
 0xad6   :  { %v7051_v51 = vpop.eup %7050 }
 0xad7   :  { %v4419_v57 = vmul.f32 %v7051_v51, %v4417_v25  ;;  %v9941_v25 = vld [vmem:[#allocation5 + $0x3c0] ss:$24 sps:$4 sm:$0xff]   ;;  %v9944_v51 = vld [vmem:[#allocation5 + $0x394] ss:$24 sps:$4 sm:$0xff]  }
 0xad8   :  { %v7053_v50 = vpop.eup %7052 }
 0xad9   :  { %v4420_v1 = vmul.f32 %v7053_v50, %v4418_v39  ;;  %v9903_v36 = vadd.f32 %v7047_v12, %v4419_v57  ;;  %v11951_v12 = vld [vmem:[#allocation87_spill] sm:$0xff]  ;;  %v11954_v57 = vld [vmem:[#allocation93_spill] sm:$0xff] }
 0xada   :  { %v11953_v39 = vld [vmem:[#allocation91_spill] sm:$0xff] }
 0xadb   :  { %11943 = vst [vmem:[#allocation52_spill] sm:$0xff] %v9903_v36  ;;  %v9905_v37 = vadd.f32 %v7049_v20, %v4420_v1  ;;  %v9911_v13 = vpack.c.bf16 %v9903_v36, %v9903_v36  ;;  %v11952_v20 = vld [vmem:[#allocation89_spill] sm:$0xff]  ;;  %v9949_v50 = vld [vmem:[#allocation5 + $0x390] ss:$24 sps:$4 sm:$0xff]  }
 0xadc   :  { %11955 = vst [vmem:[#allocation68_spill] sm:$0xff] %v9949_v50  ;;  %v9952_v1 = vld [vmem:[#allocation5 + $0x364] ss:$24 sps:$4 sm:$0xff]  }
 0xadd   :  { %11944 = vst [vmem:[#allocation51_spill] sm:$0xff] %v9905_v37  ;;  %v4426_v19 = vpack.c.bf16 %v9905_v37, %v9905_v37 }
 0xadf   :  { %4459 = vmatprep.mubr.bf16.mxu1 %v4426_v19  ;;  %4500 = vmatprep.mubr.bf16.mxu0 %v4426_v19 }
 0xae0   :  { %4460 = vmatmul.mubr.bf16.vlgmr.msra.gmra.mxu1 %v9911_v13  ;;  %4501 = vmatmul.mubr.bf16.vlgmr.msra.gmra.mxu0 %v9911_v13 }
 0xae1   :  { %4510 = vmatpush1.bf16.msra.mxu1 %v11945_v23  ;;  %4541 = vmatprep.mubr.bf16.mxu1 %v4426_v19  ;;  %v11956_v19 = vld [vmem:[#allocation95_spill] sm:$0xff]  ;;  %v11957_v23 = vld [vmem:[#allocation97_spill] sm:$0xff] }
 0xae2   :  { %4511 = vmatprep.subr.bf16.mxu1 %v11946_v62  ;;  %4593 = vmatpush1.bf16.msra.mxu0 %v9917_v22  ;;  %v11958_v62 = vld [vmem:[#allocation99_spill] sm:$0xff] }
 0xae3   :  { %4594 = vmatprep.subr.bf16.mxu0 %v9920_v9 }
 0xae5   :  { %4512 = vmatpush1.bf16.msra.mxu1 %v11947_v47 }
 0xae6   :  { %4513 = vmatprep.subr.bf16.mxu1 %v11948_v11  ;;  %4595 = vmatpush1.bf16.msra.mxu0 %v9925_v17 }
 0xae7   :  { %4596 = vmatprep.subr.bf16.mxu0 %v9928_v61 }
 0xae9   :  { %4514 = vmatpush1.bf16.msra.mxu1 %v11949_v29 }
 0xaea   :  { %4515 = vmatprep.subr.bf16.mxu1 %v11950_v46  ;;  %4597 = vmatpush1.bf16.msra.mxu0 %v9933_v60 }
 0xaeb   :  { %4598 = vmatprep.subr.bf16.mxu0 %v9936_v6 }
 0xaed   :  { %4516 = vmatpush1.bf16.msra.mxu1 %v11951_v12 }
 0xaee   :  { %4517 = vmatprep.subr.bf16.mxu1 %v11952_v20  ;;  %4599 = vmatpush1.bf16.msra.mxu0 %v9941_v25 }
 0xaef   :  { %4600 = vmatprep.subr.bf16.mxu0 %v9944_v51 }
 0xaf1   :  { %4518 = vmatpush1.bf16.msra.mxu1 %v11953_v39  ;;  %v11959_v39 = vld [vmem:[#allocation103_spill] sm:$0xff] }
 0xaf2   :  { %4519 = vmatprep.subr.bf16.mxu1 %v11954_v57  ;;  %4601 = vmatpush1.bf16.msra.mxu0 %v9949_v50  ;;  %v11960_v50 = vld [vmem:[#allocation38_spill] sm:$0xff]  ;;  %v11961_v57 = vld [vmem:[#allocation39_spill] sm:$0xff] }
 0xaf3   :  { %4602 = vmatprep.subr.bf16.mxu0 %v9952_v1 }
 0xaf5   :  { %4520 = vmatpush1.bf16.msra.mxu1 %v11956_v19 }
 0xaf6   :  { %4521 = vmatprep.subr.bf16.mxu1 %v11957_v23  ;;  %4603 = vmatpush1.bf16.msra.mxu0 %v9391_v16  ;;  %v11962_v23 = vld [vmem:[#allocation61_spill] sm:$0xff] }
 0xaf7   :  { %4604 = vmatprep.subr.bf16.mxu0 %v9394_v59  ;;  %v11963_v16 = vld [vmem:[#allocation105_spill] sm:$0xff]  ;;  %v11964_v59 = vld [vmem:[#allocation107_spill] sm:$0xff] }
 0xaf9   :  { %4522 = vmatpush1.bf16.msra.mxu1 %v11958_v62 }
 0xafa   :  { %4523 = vmatprep.subr.bf16.mxu1 %v11959_v39  ;;  %4605 = vmatpush1.bf16.msra.mxu0 %v9397_v45  ;;  %v11965_v45 = vld [vmem:[#allocation109_spill] sm:$0xff] }
 0xafb   :  { %4606 = vmatprep.subr.bf16.mxu0 %v9400_v18  ;;  %v11966_v18 = vld [vmem:[#allocation111_spill] sm:$0xff] }
 0xafd   :  { %4524 = vmatpush1.bf16.msra.mxu1 %v11960_v50 }
 0xafe   :  { %4525 = vmatprep.subr.bf16.mxu1 %v11961_v57  ;;  %4607 = vmatpush1.bf16.msra.mxu0 %v9403_v30  ;;  %v11967_v30 = vld [vmem:[#allocation113_spill] sm:$0xff] }
 0xaff   :  { %4608 = vmatprep.subr.bf16.mxu0 %v9406_v33  ;;  %v11968_v33 = vld [vmem:[#allocation44_spill] sm:$0xff] }
 0xb01   :  { %4526 = vmatpush2.bf16.msra.mxu1 %v11962_v23 }
 0xb02   :  { %4527 = vmatprep.subr.bf16.mxu1 %v11963_v16  ;;  %4609 = vmatpush2.bf16.msra.mxu0 %v9409_v38  ;;  %v11969_v38 = vld [vmem:[#allocation29_spill] sm:$0xff] }
 0xb03   :  { %4610 = vmatprep.subr.bf16.mxu0 %v9412_v35  ;;  %v11970_v35 = vld [vmem:[#allocation43_spill] sm:$0xff] }
 0xb05   :  { %4528 = vmatpush2.bf16.msra.mxu1 %v11964_v59 }
 0xb06   :  { %4529 = vmatprep.subr.bf16.mxu1 %v11965_v45  ;;  %4611 = vmatpush2.bf16.msra.mxu0 %v9415_v2  ;;  %v11971_v2 = vld [vmem:[#allocation64_spill] sm:$0xff] }
 0xb07   :  { %4612 = vmatprep.subr.bf16.mxu0 %v9418_v0  ;;  %v11972_v0 = vld [vmem:[#allocation88_spill] sm:$0xff] }
 0xb09   :  { %4530 = vmatpush2.bf16.msra.mxu1 %v11966_v18 }
 0xb0a   :  { %4531 = vmatprep.subr.bf16.mxu1 %v11967_v30  ;;  %4613 = vmatpush2.bf16.msra.mxu0 %v9423_v28  ;;  %v11974_v28 = vld [vmem:[#allocation92_spill] sm:$0xff] }
 0xb0b   :  { %4614 = vmatprep.subr.bf16.mxu0 %v9426_v63  ;;  %v11975_v63 = vld [vmem:[#allocation94_spill] sm:$0xff] }
 0xb0d   :  { %4532 = vmatpush2.bf16.msra.mxu1 %v11968_v33 }
 0xb0e   :  { %4533 = vmatprep.subr.bf16.mxu1 %v11969_v38  ;;  %4615 = vmatpush2.bf16.msra.mxu0 %v9430_v15  ;;  %v11976_v15 = vld [vmem:[#allocation96_spill] sm:$0xff] }
 0xb0f   :  { %4616 = vmatprep.subr.bf16.mxu0 %v9433_v8  ;;  %v11977_v8 = vld [vmem:[#allocation98_spill] sm:$0xff] }
 0xb11   :  { %4534 = vmatpush2.bf16.msra.mxu1 %v11970_v35 }
 0xb12   :  { %4535 = vmatprep.subr.bf16.mxu1 %v11971_v2  ;;  %4617 = vmatpush2.bf16.msra.mxu0 %v9436_v52  ;;  %v11978_v52 = vld [vmem:[#allocation102_spill] sm:$0xff] }
 0xb13   :  { %4618 = vmatprep.subr.bf16.mxu0 %v9439_v3  ;;  %v11979_v3 = vld [vmem:[#allocation104_spill] sm:$0xff] }
 0xb15   :  { %4536 = vmatpush2.bf16.msra.mxu1 %v9647_v41 }
 0xb16   :  { %4537 = vmatprep.subr.bf16.mxu1 %v9653_v21  ;;  %4619 = vmatpush2.bf16.msra.mxu0 %v11886_v4  ;;  %v11987_v4 = vld [vmem:[#allocation114_spill] sm:$0xff] }
 0xb17   :  { %4620 = vmatprep.subr.bf16.mxu0 %v11888_v14  ;;  %v11988_v14 = vld [vmem:[#allocation42_spill] sm:$0xff] }
 0xb19   :  { %4538 = vmatpush2.bf16.msra.mxu1 %v9659_v10 }
 0xb1a   :  { %4539 = vmatprep.subr.bf16.mxu1 %v9665_v5  ;;  %4621 = vmatpush2.bf16.msra.mxu0 %v11889_v31  ;;  %v11989_v31 = vld [vmem:[#allocation45_spill] sm:$0xff] }
 0xb1b   :  { %4622 = vmatprep.subr.bf16.mxu0 %v11890_v48  ;;  %v11990_v48 = vld [vmem:[#allocation56_spill] sm:$0xff] }
 0xb1d   :  { %4540 = vmatpush2.bf16.msra.mxu1 %v9671_v43 }
 0xb1e   :  { %4633 = vmatprep.subr.bf16.mxu1 %v9420_v54  ;;  %4623 = vmatpush2.bf16.msra.mxu0 %v11891_v56  ;;  %v11973_v54 = vld [vmem:[#allocation90_spill] sm:$0xff]  ;;  %v11991_v56 = vld [vmem:[#allocation63_spill] sm:$0xff] }
 0xb1f   :  { %4674 = vmatprep.subr.bf16.mxu0 %v11892_v24  ;;  %v11992_v24 = vld [vmem:[#allocation57_spill] sm:$0xff] }
 0xb20   :  { %4542 = vmatmul.mubr.bf16.vlgmr.msra.gmra.mxu1 %v9911_v13  ;;  %v11993_v13 = vld [vmem:[#allocation58_spill] sm:$0xff] }
 0xb21   :  { %4634 = vmatpush1.bf16.msra.mxu1 %v9482_v32  ;;  %v11980_v32 = vld [vmem:[#allocation40_spill] sm:$0xff] }
 0xb22   :  { %4635 = vmatprep.subr.bf16.mxu1 %v9486_v27  ;;  %v11981_v27 = vld [vmem:[#allocation41_spill] sm:$0xff] }
 0xb25   :  { %4636 = vmatpush1.bf16.msra.mxu1 %v9494_v34  ;;  %v11982_v34 = vld [vmem:[#allocation62_spill] sm:$0xff] }
 0xb26   :  { %4637 = vmatprep.subr.bf16.mxu1 %v9500_v40  ;;  %v11983_v40 = vld [vmem:[#allocation106_spill] sm:$0xff] }
 0xb29   :  { %4638 = vmatpush1.bf16.msra.mxu1 %v9508_v49  ;;  %v11984_v49 = vld [vmem:[#allocation108_spill] sm:$0xff] }
 0xb2a   :  { %4639 = vmatprep.subr.bf16.mxu1 %v9514_v26  ;;  %v11985_v26 = vld [vmem:[#allocation110_spill] sm:$0xff] }
 0xb2d   :  { %4640 = vmatpush1.bf16.msra.mxu1 %v9521_v44  ;;  %v11986_v44 = vld [vmem:[#allocation112_spill] sm:$0xff] }
 0xb2e   :  { %4641 = vmatprep.subr.bf16.mxu1 %v11972_v0  ;;  %v11994_v0 = vld [vmem:[#allocation36_spill] sm:$0xff] }
 0xb31   :  { %4642 = vmatpush1.bf16.msra.mxu1 %v11973_v54  ;;  %v11995_v54 = vld [vmem:[#allocation34_spill] sm:$0xff] }
 0xb32   :  { %4643 = vmatprep.subr.bf16.mxu1 %v11974_v28  ;;  %v10031_v28 = vld [vmem:[#allocation5 + $0x454] ss:$24 sps:$4 sm:$0xff]  }
 0xb33   :  { %11996 = vst [vmem:[#allocation67_spill] sm:$0xff] %v10031_v28 }
 0xb35   :  { %4644 = vmatpush1.bf16.msra.mxu1 %v11975_v63 }
 0xb36   :  { %4645 = vmatprep.subr.bf16.mxu1 %v11976_v15 }
 0xb39   :  { %4646 = vmatpush1.bf16.msra.mxu1 %v11977_v8 }
 0xb3a   :  { %4647 = vmatprep.subr.bf16.mxu1 %v11978_v52 }
 0xb3d   :  { %4648 = vmatpush1.bf16.msra.mxu1 %v11979_v3 }
 0xb3e   :  { %4649 = vmatprep.subr.bf16.mxu1 %v11980_v32 }
 0xb41   :  { %4650 = vmatpush2.bf16.msra.mxu1 %v11981_v27 }
 0xb42   :  { %4651 = vmatprep.subr.bf16.mxu1 %v11982_v34 }
 0xb45   :  { %4652 = vmatpush2.bf16.msra.mxu1 %v11983_v40  ;;  %v11997_v40 = vld [vmem:[#allocation33_spill] sm:$0xff] }
 0xb46   :  { %4653 = vmatprep.subr.bf16.mxu1 %v11984_v49  ;;  %v11998_v49 = vld [vmem:[#allocation37_spill] sm:$0xff] }
 0xb49   :  { %4654 = vmatpush2.bf16.msra.mxu1 %v11985_v26  ;;  %v3492_v26 = vadd.f32 %v11998_v49, %v11997_v40 }
 0xb4a   :  { %4655 = vmatprep.subr.bf16.mxu1 %v11986_v44 }
 0xb4d   :  { %4656 = vmatpush2.bf16.msra.mxu1 %v11987_v4 }
 0xb4e   :  { %4657 = vmatprep.subr.bf16.mxu1 %v11988_v14  ;;  %v12000_v14 = vld [vmem:[#allocation35_spill] sm:$0xff] }
 0xb51   :  { %4658 = vmatpush2.bf16.msra.mxu1 %v11989_v31 }
 0xb52   :  { %4659 = vmatprep.subr.bf16.mxu1 %v11990_v48 }
 0xb55   :  { %4660 = vmatpush2.bf16.msra.mxu1 %v11991_v56 }
 0xb56   :  { %4661 = vmatprep.subr.bf16.mxu1 %v11992_v24 }
 0xb59   :  { %4662 = vmatpush2.bf16.msra.mxu1 %v11993_v13  ;;  %v11999_v13 = vld [vmem:[#allocation60_spill] sm:$0xff] }
 0xb5a   :  { %4663 = vmatprep.subr.bf16.mxu1 %v11994_v0  ;;  %v3494_v0 = vadd.f32 %v11999_v13, %v9858_v42 }
 0xb5d   :  { %4664 = vmatpush2.bf16.msra.mxu1 %v11995_v54 }
 0xb5e   :  { %4757 = vmatprep.subr.bf16.mxu1 %v10031_v28 }
 0xba0   :  { %v4461_v63 = vpop.f32.mrf.mxu1  ;;  %v4502_v15 = vpop.f32.mrf.mxu0 }
 0xba1   :  { %v4550_v24 = vadd.f32 %v4461_v63, %v3492_v26 }
 0xba2   :  { %v4463_v8 = vpop.f32.mrf.mxu1  ;;  %v4504_v52 = vpop.f32.mrf.mxu0 }
 0xba3   :  { %v4551_v54 = vadd.f32 %v4463_v8, %v3494_v0  ;;  %v4552_v56 = vsub.f32 0.0, %v4550_v24 }
 0xba4   :  { %v4465_v3 = vpop.f32.mrf.mxu1  ;;  %v4506_v32 = vpop.f32.mrf.mxu0 }
 0xba5   :  { %v4553_v48 = vsub.f32 0.0, %v4551_v54  ;;  %v4554_v31 = vmul.f32 1.442695, %v4552_v56  ;;  %v3565_v3 = vadd.f32 %v12000_v14, %v9878_v58  ;;  %v12001_v32 = vld [vmem:[#allocation59_spill] sm:$0xff] }
 0xba6   :  { %v4466_v27 = vpop.f32.mrf.mxu1  ;;  %v4507_v34 = vpop.f32.mrf.mxu0 }
 0xba7   :  { %v4556_v28 = vmul.f32 1.442695, %v4553_v48  ;;  %7054 = vpow2.f32 %v4554_v31  ;;  %v3567_v27 = vadd.f32 %v12001_v32, %v9882_v55  ;;  %v4562_v34 = vadd.f32 %v4502_v15, %v3565_v3 }
 0xba9   :  { %7056 = vpow2.f32 %v4556_v28  ;;  %v4563_v4 = vadd.f32 %v4504_v52, %v3567_v27  ;;  %v4564_v49 = vsub.f32 0.0, %v4562_v34 }
 0xbab   :  { %v4565_v44 = vsub.f32 0.0, %v4563_v4  ;;  %v4566_v63 = vmul.f32 1.442695, %v4564_v49  ;;  %v12003_v49 = vld [vmem:[#allocation49_spill] sm:$0xff] }
 0xbad   :  { %v4568_v24 = vmul.f32 1.442695, %v4565_v44  ;;  %7058 = vpow2.f32 %v4566_v63 }
 0xbb4   :  { %v7055_v40 = vpop.eup %7054 }
 0xbb5   :  { %v4558_v0 = vadd.f32 1.0, %v7055_v40  ;;  %v12002_v40 = vld [vmem:[#allocation47_spill] sm:$0xff] }
 0xbb6   :  { %v7057_v13 = vpop.eup %7056 }
 0xbb7   :  { %v4559_v54 = vadd.f32 1.0, %v7057_v13  ;;  %7060 = vrcp.f32 %v4558_v0 }
 0xbb8   :  { %7062 = vpow2.f32 %v4568_v24 }
 0xbb9   :  { %7064 = vrcp.f32 %v4559_v54 }
 0xbba   :  { %v7059_v48 = vpop.eup %7058 }
 0xbbb   :  { %v4570_v26 = vadd.f32 1.0, %v7059_v48 }
 0xbc4   :  { %v7061_v56 = vpop.eup %7060 }
 0xbc5   :  { %v7063_v15 = vpop.eup %7062 }
 0xbc6   :  { %v7065_v4 = vpop.eup %7064  ;;  %v4571_v34 = vadd.f32 1.0, %v7063_v15 }
 0xbe0   :  { %v4543_v31 = vpop.f32.mrf.mxu1 }
 0xbe1   :  { %v4574_v14 = vadd.f32 %v4543_v31, %v9892_v7 }
 0xbe2   :  { %v4545_v28 = vpop.f32.mrf.mxu1 }
 0xbe3   :  { %v4576_v8 = vmul.f32 %v7061_v56, %v4574_v14  ;;  %v4575_v52 = vadd.f32 %v4545_v28, %v9895_v53 }
 0xbe4   :  { %v4547_v3 = vpop.f32.mrf.mxu1 }
 0xbe5   :  { %v4578_v44 = vadd.f32 %v4576_v8, %v12002_v40  ;;  %v4577_v32 = vmul.f32 %v7065_v4, %v4575_v52  ;;  %v10060_v4 = vld [vmem:[#allocation5 + $0x460] ss:$24 sps:$4 sm:$0xff]   ;;  %v10097_v40 = vld [vmem:[#allocation5 + $0x304] ss:$24 sps:$4 sm:$0xff]  }
 0xbe6   :  { %v4548_v27 = vpop.f32.mrf.mxu1  ;;  %v12008_v3 = vld [vmem:[#allocation68_spill] sm:$0xff] }
 0xbe7   :  { %7066 = vtanh.f32 %v4578_v44  ;;  %v4579_v13 = vadd.f32 %v4577_v32, %v12003_v49  ;;  %v10105_v44 = vld [vmem:[#allocation5 + $0x5d4] ss:$24 sps:$4 sm:$0xff]  }
 0xbe8   :  { %7068 = vrcp.f32 %v4570_v26  ;;  %v10063_v26 = vld [vmem:[#allocation5 + $0x434] ss:$24 sps:$4 sm:$0xff]  }
 0xbe9   :  { %7070 = vtanh.f32 %v4579_v13  ;;  %v10178_v32 = vld [vmem:[#allocation5 + $0x42c] ss:$24 sps:$4 sm:$0xff]   ;;  %v10184_v27 = vld [vmem:[#allocation5 + $0x3fc] ss:$24 sps:$4 sm:$0xff]   ;;  %v10193_v13 = vld [vmem:[#allocation5 + $0x3c8] ss:$24 sps:$4 sm:$0xff]  }
 0xbea   :  { %7072 = vrcp.f32 %v4571_v34  ;;  %12027 = vst [vmem:[#allocation103_spill] sm:$0xff] %v10178_v32  ;;  %12029 = vst [vmem:[#allocation39_spill] sm:$0xff] %v10184_v27  ;;  %v10187_v34 = vld [vmem:[#allocation5 + $0x3f8] ss:$24 sps:$4 sm:$0xff]   ;;  %v10190_v49 = vld [vmem:[#allocation5 + $0x3cc] ss:$24 sps:$4 sm:$0xff]  }
 0xbeb   :  { %12030 = vst [vmem:[#allocation61_spill] sm:$0xff] %v10187_v34  ;;  %12031 = vst [vmem:[#allocation105_spill] sm:$0xff] %v10190_v49 }
 0xbec   :  { %12032 = vst [vmem:[#allocation107_spill] sm:$0xff] %v10193_v13 }
 0xbf4   :  { %v7067_v63 = vpop.eup %7066 }
 0xbf5   :  { %v7069_v0 = vpop.eup %7068  ;;  %v4582_v24 = vsub.f32 %v9903_v36, %v7067_v63  ;;  %v10235_v36 = vld [vmem:[#allocation5 + $0x578] ss:$24 sps:$4 sm:$0xff]  }
 0xbf6   :  { %v7071_v54 = vpop.eup %7070  ;;  %12046 = vst [vmem:[#allocation102_spill] sm:$0xff] %v10235_v36 }
 0xbf7   :  { %v4583_v31 = vsub.f32 %v9905_v37, %v7071_v54  ;;  %v4584_v48 = vmul.f32 %v7069_v0, %v4582_v24  ;;  %v7073_v14 = vpop.eup %7072  ;;  %v10199_v0 = vld [vmem:[#allocation5 + $0x398] ss:$24 sps:$4 sm:$0xff]   ;;  %v10202_v24 = vld [vmem:[#allocation5 + $0x36c] ss:$24 sps:$4 sm:$0xff]  }
 0xbf8   :  { %12034 = vst [vmem:[#allocation111_spill] sm:$0xff] %v10199_v0  ;;  %12035 = vst [vmem:[#allocation113_spill] sm:$0xff] %v10202_v24  ;;  %v12047_v37 = vld [vmem:[#allocation112_spill] sm:$0xff] }
 0xbf9   :  { %v4585_v56 = vmul.f32 %v7073_v14, %v4583_v31  ;;  %v10048_v28 = vadd.f32 %v7067_v63, %v4584_v48  ;;  %v10196_v63 = vld [vmem:[#allocation5 + $0x39c] ss:$24 sps:$4 sm:$0xff]   ;;  %v10211_v48 = vld [vmem:[#allocation5 + $0x338] ss:$24 sps:$4 sm:$0xff]   ;;  %v10214_v14 = vld [vmem:[#allocation5 + $0x30c] ss:$24 sps:$4 sm:$0xff]  }
 0xbfa   :  { %12033 = vst [vmem:[#allocation109_spill] sm:$0xff] %v10196_v63  ;;  %v10208_v31 = vld [vmem:[#allocation5 + $0x33c] ss:$24 sps:$4 sm:$0xff]   ;;  %12038 = vst [vmem:[#allocation43_spill] sm:$0xff] %v10211_v48 }
 0xbfb   :  { %12004 = vst [vmem:[#allocation17_spill] sm:$0xff] %v10048_v28  ;;  %v10050_v8 = vadd.f32 %v7071_v54, %v4585_v56  ;;  %v10056_v52 = vpack.c.bf16 %v10048_v28, %v10048_v28  ;;  %v10205_v54 = vld [vmem:[#allocation5 + $0x368] ss:$24 sps:$4 sm:$0xff]   ;;  %12037 = vst [vmem:[#allocation29_spill] sm:$0xff] %v10208_v31 }
 0xbfc   :  { %12036 = vst [vmem:[#allocation44_spill] sm:$0xff] %v10205_v54  ;;  %12039 = vst [vmem:[#allocation64_spill] sm:$0xff] %v10214_v14  ;;  %v10217_v56 = vld [vmem:[#allocation5 + $0x308] ss:$24 sps:$4 sm:$0xff]  }
 0xbfd   :  { %12005 = vst [vmem:[#allocation78_spill] sm:$0xff] %v10050_v8  ;;  %v4591_v15 = vpack.c.bf16 %v10050_v8, %v10050_v8  ;;  %12040 = vst [vmem:[#allocation88_spill] sm:$0xff] %v10217_v56 }
 0xbff   :  { %4624 = vmatprep.mubr.bf16.mxu0 %v4591_v15  ;;  %4665 = vmatprep.mubr.bf16.mxu1 %v4591_v15 }
 0xc00   :  { %4625 = vmatmul.mubr.bf16.vlgmr.msra.gmra.mxu0 %v10056_v52  ;;  %4666 = vmatmul.mubr.bf16.vlgmr.msra.gmra.mxu1 %v10056_v52 }
 0xc01   :  { %4675 = vmatpush1.bf16.msra.mxu0 %v10060_v4  ;;  %4706 = vmatprep.mubr.bf16.mxu0 %v4591_v15  ;;  %v10220_v15 = vld [vmem:[#allocation5 + $0x5dc] ss:$24 sps:$4 sm:$0xff]  }
 0xc02   :  { %4676 = vmatprep.subr.bf16.mxu0 %v10063_v26  ;;  %4758 = vmatpush1.bf16.msra.mxu1 %v9917_v22  ;;  %12041 = vst [vmem:[#allocation90_spill] sm:$0xff] %v10220_v15 }
 0xc03   :  { %4759 = vmatprep.subr.bf16.mxu1 %v9920_v9 }
 0xc05   :  { %4677 = vmatpush1.bf16.msra.mxu0 %v11947_v47  ;;  %v12006_v47 = vld [vmem:[#allocation91_spill] sm:$0xff] }
 0xc06   :  { %4678 = vmatprep.subr.bf16.mxu0 %v11948_v11  ;;  %4760 = vmatpush1.bf16.msra.mxu1 %v9925_v17  ;;  %v12007_v11 = vld [vmem:[#allocation93_spill] sm:$0xff] }
 0xc07   :  { %4761 = vmatprep.subr.bf16.mxu1 %v9928_v61 }
 0xc09   :  { %4679 = vmatpush1.bf16.msra.mxu0 %v11949_v29  ;;  %v12009_v29 = vld [vmem:[#allocation97_spill] sm:$0xff] }
 0xc0a   :  { %4680 = vmatprep.subr.bf16.mxu0 %v11950_v46  ;;  %4762 = vmatpush1.bf16.msra.mxu1 %v9933_v60  ;;  %v10086_v46 = vld [vmem:[#allocation5 + $0x360] ss:$24 sps:$4 sm:$0xff]  }
 0xc0b   :  { %4763 = vmatprep.subr.bf16.mxu1 %v9936_v6 }
 0xc0d   :  { %4681 = vmatpush1.bf16.msra.mxu0 %v11951_v12  ;;  %v10089_v12 = vld [vmem:[#allocation5 + $0x334] ss:$24 sps:$4 sm:$0xff]  }
 0xc0e   :  { %4682 = vmatprep.subr.bf16.mxu0 %v11952_v20  ;;  %4764 = vmatpush1.bf16.msra.mxu1 %v9941_v25  ;;  %v10094_v20 = vld [vmem:[#allocation5 + $0x330] ss:$24 sps:$4 sm:$0xff]  }
 0xc0f   :  { %4765 = vmatprep.subr.bf16.mxu1 %v9944_v51 }
 0xc11   :  { %4683 = vmatpush1.bf16.msra.mxu0 %v12006_v47  ;;  %v10226_v47 = vld [vmem:[#allocation5 + $0x5ac] ss:$24 sps:$4 sm:$0xff]  }
 0xc12   :  { %4684 = vmatprep.subr.bf16.mxu0 %v12007_v11  ;;  %4766 = vmatpush1.bf16.msra.mxu1 %v12008_v3  ;;  %12043 = vst [vmem:[#allocation94_spill] sm:$0xff] %v10226_v47  ;;  %v10229_v11 = vld [vmem:[#allocation5 + $0x5a8] ss:$24 sps:$4 sm:$0xff]  }
 0xc13   :  { %4767 = vmatprep.subr.bf16.mxu1 %v9952_v1  ;;  %12044 = vst [vmem:[#allocation96_spill] sm:$0xff] %v10229_v11 }
 0xc15   :  { %4685 = vmatpush1.bf16.msra.mxu0 %v11956_v19  ;;  %v10102_v19 = vld [vmem:[#allocation5 + $0x300] ss:$24 sps:$4 sm:$0xff]  }
 0xc16   :  { %4686 = vmatprep.subr.bf16.mxu0 %v12009_v29  ;;  %4768 = vmatpush1.bf16.msra.mxu1 %v10086_v46  ;;  %v10232_v29 = vld [vmem:[#allocation5 + $0x57c] ss:$24 sps:$4 sm:$0xff]  }
 0xc17   :  { %4769 = vmatprep.subr.bf16.mxu1 %v10089_v12  ;;  %12045 = vst [vmem:[#allocation98_spill] sm:$0xff] %v10232_v29 }
 0xc19   :  { %4687 = vmatpush1.bf16.msra.mxu0 %v11958_v62  ;;  %v10113_v62 = vld [vmem:[#allocation5 + $0x5a4] ss:$24 sps:$4 sm:$0xff]  }
 0xc1a   :  { %4688 = vmatprep.subr.bf16.mxu0 %v11959_v39  ;;  %4770 = vmatpush1.bf16.msra.mxu1 %v10094_v20  ;;  %v10110_v39 = vld [vmem:[#allocation5 + $0x5d0] ss:$24 sps:$4 sm:$0xff]   ;;  %12010 = vst [vmem:[#allocation101_spill] sm:$0xff] %v10113_v62 }
 0xc1b   :  { %4771 = vmatprep.subr.bf16.mxu1 %v10097_v40 }
 0xc1d   :  { %4689 = vmatpush1.bf16.msra.mxu0 %v11960_v50  ;;  %v10121_v50 = vld [vmem:[#allocation5 + $0x574] ss:$24 sps:$4 sm:$0xff]  }
 0xc1e   :  { %4690 = vmatprep.subr.bf16.mxu0 %v11961_v57  ;;  %4772 = vmatpush1.bf16.msra.mxu1 %v10102_v19  ;;  %v10118_v57 = vld [vmem:[#allocation5 + $0x5a0] ss:$24 sps:$4 sm:$0xff]   ;;  %12012 = vst [vmem:[#allocation79_spill] sm:$0xff] %v10121_v50 }
 0xc1f   :  { %4773 = vmatprep.subr.bf16.mxu1 %v10105_v44  ;;  %12011 = vst [vmem:[#allocation19_spill] sm:$0xff] %v10118_v57 }
 0xc21   :  { %4691 = vmatpush2.bf16.msra.mxu0 %v11962_v23  ;;  %v10126_v23 = vld [vmem:[#allocation5 + $0x570] ss:$24 sps:$4 sm:$0xff]  }
 0xc22   :  { %4692 = vmatprep.subr.bf16.mxu0 %v11963_v16  ;;  %4774 = vmatpush2.bf16.msra.mxu1 %v10110_v39  ;;  %12013 = vst [vmem:[#allocation80_spill] sm:$0xff] %v10126_v23  ;;  %v10129_v16 = vld [vmem:[#allocation5 + $0x544] ss:$24 sps:$4 sm:$0xff]  }
 0xc23   :  { %4775 = vmatprep.subr.bf16.mxu1 %v10113_v62  ;;  %12014 = vst [vmem:[#allocation21_spill] sm:$0xff] %v10129_v16 }
 0xc25   :  { %4693 = vmatpush2.bf16.msra.mxu0 %v11964_v59  ;;  %v10134_v59 = vld [vmem:[#allocation5 + $0x540] ss:$24 sps:$4 sm:$0xff]  }
 0xc26   :  { %4694 = vmatprep.subr.bf16.mxu0 %v11965_v45  ;;  %4776 = vmatpush2.bf16.msra.mxu1 %v10118_v57  ;;  %12015 = vst [vmem:[#allocation22_spill] sm:$0xff] %v10134_v59  ;;  %v10137_v45 = vld [vmem:[#allocation5 + $0x514] ss:$24 sps:$4 sm:$0xff]  }
 0xc27   :  { %4777 = vmatprep.subr.bf16.mxu1 %v10121_v50  ;;  %12016 = vst [vmem:[#allocation23_spill] sm:$0xff] %v10137_v45 }
 0xc29   :  { %4695 = vmatpush2.bf16.msra.mxu0 %v11966_v18  ;;  %v10142_v18 = vld [vmem:[#allocation5 + $0x510] ss:$24 sps:$4 sm:$0xff]  }
 0xc2a   :  { %4696 = vmatprep.subr.bf16.mxu0 %v11967_v30  ;;  %4778 = vmatpush2.bf16.msra.mxu1 %v10126_v23  ;;  %12017 = vst [vmem:[#allocation81_spill] sm:$0xff] %v10142_v18  ;;  %v10145_v30 = vld [vmem:[#allocation5 + $0x4e4] ss:$24 sps:$4 sm:$0xff]  }
 0xc2b   :  { %4779 = vmatprep.subr.bf16.mxu1 %v10129_v16  ;;  %12018 = vst [vmem:[#allocation82_spill] sm:$0xff] %v10145_v30 }
 0xc2d   :  { %4697 = vmatpush2.bf16.msra.mxu0 %v11968_v33  ;;  %v10150_v33 = vld [vmem:[#allocation5 + $0x4e0] ss:$24 sps:$4 sm:$0xff]  }
 0xc2e   :  { %4698 = vmatprep.subr.bf16.mxu0 %v11969_v38  ;;  %4780 = vmatpush2.bf16.msra.mxu1 %v10134_v59  ;;  %12019 = vst [vmem:[#allocation83_spill] sm:$0xff] %v10150_v33  ;;  %v10153_v38 = vld [vmem:[#allocation5 + $0x4b4] ss:$24 sps:$4 sm:$0xff]  }
 0xc2f   :  { %4781 = vmatprep.subr.bf16.mxu1 %v10137_v45  ;;  %12020 = vst [vmem:[#allocation84_spill] sm:$0xff] %v10153_v38 }
 0xc31   :  { %4699 = vmatpush2.bf16.msra.mxu0 %v11970_v35  ;;  %v10158_v35 = vld [vmem:[#allocation5 + $0x4b0] ss:$24 sps:$4 sm:$0xff]  }
 0xc32   :  { %4700 = vmatprep.subr.bf16.mxu0 %v11971_v2  ;;  %4782 = vmatpush2.bf16.msra.mxu1 %v10142_v18  ;;  %12021 = vst [vmem:[#allocation85_spill] sm:$0xff] %v10158_v35  ;;  %v10161_v2 = vld [vmem:[#allocation5 + $0x484] ss:$24 sps:$4 sm:$0xff]  }
 0xc33   :  { %4783 = vmatprep.subr.bf16.mxu1 %v10145_v30  ;;  %12022 = vst [vmem:[#allocation86_spill] sm:$0xff] %v10161_v2 }
 0xc35   :  { %4701 = vmatpush2.bf16.msra.mxu0 %v9647_v41  ;;  %v10168_v41 = vld [vmem:[#allocation5 + $0x480] ss:$24 sps:$4 sm:$0xff]  }
 0xc36   :  { %4702 = vmatprep.subr.bf16.mxu0 %v9653_v21  ;;  %4784 = vmatpush2.bf16.msra.mxu1 %v10150_v33  ;;  %v10165_v21 = vld [vmem:[#allocation5 + $0x45c] ss:$24 sps:$4 sm:$0xff]   ;;  %12024 = vst [vmem:[#allocation89_spill] sm:$0xff] %v10168_v41 }
 0xc37   :  { %4785 = vmatprep.subr.bf16.mxu1 %v10153_v38  ;;  %12023 = vst [vmem:[#allocation87_spill] sm:$0xff] %v10165_v21 }
 0xc39   :  { %4703 = vmatpush2.bf16.msra.mxu0 %v9659_v10  ;;  %v10171_v10 = vld [vmem:[#allocation5 + $0x464] ss:$24 sps:$4 sm:$0xff]  }
 0xc3a   :  { %4704 = vmatprep.subr.bf16.mxu0 %v9665_v5  ;;  %4786 = vmatpush2.bf16.msra.mxu1 %v10158_v35  ;;  %12025 = vst [vmem:[#allocation95_spill] sm:$0xff] %v10171_v10  ;;  %v10175_v5 = vld [vmem:[#allocation5 + $0x458] ss:$24 sps:$4 sm:$0xff]  }
 0xc3b   :  { %4787 = vmatprep.subr.bf16.mxu1 %v10161_v2  ;;  %12026 = vst [vmem:[#allocation99_spill] sm:$0xff] %v10175_v5 }
 0xc3d   :  { %4705 = vmatpush2.bf16.msra.mxu0 %v9671_v43  ;;  %v10181_v43 = vld [vmem:[#allocation5 + $0x428] ss:$24 sps:$4 sm:$0xff]  }
 0xc3e   :  { %4798 = vmatprep.subr.bf16.mxu0 %v10165_v21  ;;  %4788 = vmatpush2.bf16.msra.mxu1 %v10168_v41  ;;  %12028 = vst [vmem:[#allocation38_spill] sm:$0xff] %v10181_v43 }
 0xc3f   :  { %4839 = vmatprep.subr.bf16.mxu1 %v10171_v10 }
 0xc40   :  { %4707 = vmatmul.mubr.bf16.vlgmr.msra.gmra.mxu0 %v10056_v52  ;;  %v10223_v52 = vld [vmem:[#allocation5 + $0x5d8] ss:$24 sps:$4 sm:$0xff]  }
 0xc41   :  { %4799 = vmatpush1.bf16.msra.mxu0 %v10175_v5  ;;  %12042 = vst [vmem:[#allocation92_spill] sm:$0xff] %v10223_v52 }
 0xc42   :  { %4800 = vmatprep.subr.bf16.mxu0 %v10178_v32 }
 0xc45   :  { %4801 = vmatpush1.bf16.msra.mxu0 %v10181_v43  ;;  %v12061_v43 = vld [vmem:[#allocation15_spill] sm:$0xff] }
 0xc46   :  { %4802 = vmatprep.subr.bf16.mxu0 %v10184_v27 }
 0xc49   :  { %4803 = vmatpush1.bf16.msra.mxu0 %v10187_v34 }
 0xc4a   :  { %4804 = vmatprep.subr.bf16.mxu0 %v10190_v49 }
 0xc4d   :  { %4805 = vmatpush1.bf16.msra.mxu0 %v10193_v13 }
 0xc4e   :  { %4806 = vmatprep.subr.bf16.mxu0 %v10196_v63  ;;  %v12058_v63 = vld [vmem:[#allocation33_spill] sm:$0xff] }
 0xc51   :  { %4807 = vmatpush1.bf16.msra.mxu0 %v10199_v0 }
 0xc52   :  { %4808 = vmatprep.subr.bf16.mxu0 %v10202_v24 }
 0xc55   :  { %4809 = vmatpush1.bf16.msra.mxu0 %v10205_v54 }
 0xc56   :  { %4810 = vmatprep.subr.bf16.mxu0 %v10208_v31  ;;  %v12056_v31 = vld [vmem:[#allocation34_spill] sm:$0xff] }
 0xc59   :  { %4811 = vmatpush1.bf16.msra.mxu0 %v10211_v48  ;;  %v12054_v48 = vld [vmem:[#allocation58_spill] sm:$0xff] }
 0xc5a   :  { %4812 = vmatprep.subr.bf16.mxu0 %v10214_v14  ;;  %v12052_v14 = vld [vmem:[#allocation63_spill] sm:$0xff] }
 0xc5d   :  { %4813 = vmatpush1.bf16.msra.mxu0 %v10217_v56  ;;  %v12050_v56 = vld [vmem:[#allocation45_spill] sm:$0xff] }
 0xc5e   :  { %4814 = vmatprep.subr.bf16.mxu0 %v10220_v15  ;;  %v12048_v15 = vld [vmem:[#allocation114_spill] sm:$0xff] }
 0xc61   :  { %4815 = vmatpush2.bf16.msra.mxu0 %v10223_v52  ;;  %v12049_v52 = vld [vmem:[#allocation42_spill] sm:$0xff] }
 0xc62   :  { %4816 = vmatprep.subr.bf16.mxu0 %v10226_v47  ;;  %v12051_v47 = vld [vmem:[#allocation56_spill] sm:$0xff] }
 0xc65   :  { %4817 = vmatpush2.bf16.msra.mxu0 %v10229_v11  ;;  %v12053_v11 = vld [vmem:[#allocation57_spill] sm:$0xff] }
 0xc66   :  { %4818 = vmatprep.subr.bf16.mxu0 %v10232_v29  ;;  %v12055_v29 = vld [vmem:[#allocation36_spill] sm:$0xff] }
 0xc69   :  { %4819 = vmatpush2.bf16.msra.mxu0 %v10235_v36  ;;  %v12057_v36 = vld [vmem:[#allocation67_spill] sm:$0xff] }
 0xc6a   :  { %4820 = vmatprep.subr.bf16.mxu0 %v12047_v37 }
 0xc6d   :  { %4821 = vmatpush2.bf16.msra.mxu0 %v12048_v15 }
 0xc6e   :  { %4822 = vmatprep.subr.bf16.mxu0 %v12049_v52 }
 0xc71   :  { %4823 = vmatpush2.bf16.msra.mxu0 %v12050_v56 }
 0xc72   :  { %4824 = vmatprep.subr.bf16.mxu0 %v12051_v47 }
 0xc75   :  { %4825 = vmatpush2.bf16.msra.mxu0 %v12052_v14  ;;  %v12059_v14 = vld [vmem:[#allocation13_spill] sm:$0xff] }
 0xc76   :  { %4826 = vmatprep.subr.bf16.mxu0 %v12053_v11  ;;  %v3498_v13 = vadd.f32 %v12059_v14, %v12058_v63  ;;  %v12060_v11 = vld [vmem:[#allocation71_spill] sm:$0xff] }
 0xc79   :  { %4827 = vmatpush2.bf16.msra.mxu0 %v12054_v48  ;;  %v3500_v48 = vadd.f32 %v12060_v11, %v9858_v42 }
 0xc7a   :  { %4828 = vmatprep.subr.bf16.mxu0 %v12055_v29 }
 0xc7d   :  { %4829 = vmatpush2.bf16.msra.mxu0 %v12056_v31 }
 0xc7e   :  { %4922 = vmatprep.subr.bf16.mxu0 %v12057_v36 }
 0xcc0   :  { %v4626_v37 = vpop.f32.mrf.mxu0  ;;  %v4667_v15 = vpop.f32.mrf.mxu1 }
 0xcc1   :  { %v4715_v49 = vadd.f32 %v4626_v37, %v3498_v13 }
 0xcc2   :  { %v4628_v54 = vpop.f32.mrf.mxu0  ;;  %v4669_v52 = vpop.f32.mrf.mxu1 }
 0xcc3   :  { %v4716_v29 = vadd.f32 %v4628_v54, %v3500_v48  ;;  %v4717_v34 = vsub.f32 0.0, %v4715_v49 }
 0xcc4   :  { %v4630_v24 = vpop.f32.mrf.mxu0  ;;  %v4671_v56 = vpop.f32.mrf.mxu1 }
 0xcc5   :  { %v4718_v31 = vsub.f32 0.0, %v4716_v29  ;;  %v4719_v27 = vmul.f32 1.442695, %v4717_v34  ;;  %v3571_v24 = vadd.f32 %v12061_v43, %v9878_v58 }
 0xcc6   :  { %v4631_v0 = vpop.f32.mrf.mxu0  ;;  %v4672_v47 = vpop.f32.mrf.mxu1 }
 0xcc7   :  { %v4721_v36 = vmul.f32 1.442695, %v4718_v31  ;;  %7074 = vpow2.f32 %v4719_v27  ;;  %v12062_v0 = vld [vmem:[#allocation72_spill] sm:$0xff]  ;;  %v4727_v47 = vadd.f32 %v4667_v15, %v3571_v24 }
 0xcc8   :  { %v3573_v56 = vadd.f32 %v12062_v0, %v9882_v55 }
 0xcc9   :  { %7076 = vpow2.f32 %v4721_v36  ;;  %v4729_v14 = vsub.f32 0.0, %v4727_v47 }
 0xcca   :  { %v4728_v32 = vadd.f32 %v4669_v52, %v3573_v56 }
 0xccb   :  { %v4731_v13 = vmul.f32 1.442695, %v4729_v14  ;;  %v12064_v14 = vld [vmem:[#allocation66_spill] sm:$0xff] }
 0xccc   :  { %v4730_v5 = vsub.f32 0.0, %v4728_v32 }
 0xccd   :  { %7078 = vpow2.f32 %v4731_v13 }
 0xcce   :  { %v4733_v49 = vmul.f32 1.442695, %v4730_v5 }
 0xcd4   :  { %v7075_v63 = vpop.eup %7074 }
 0xcd5   :  { %v4723_v54 = vadd.f32 1.0, %v7075_v63  ;;  %v12063_v63 = vld [vmem:[#allocation65_spill] sm:$0xff] }
 0xcd6   :  { %v7077_v11 = vpop.eup %7076 }
 0xcd7   :  { %v4724_v37 = vadd.f32 1.0, %v7077_v11  ;;  %7080 = vrcp.f32 %v4723_v54 }
 0xcd8   :  { %7082 = vpow2.f32 %v4733_v49 }
 0xcd9   :  { %7084 = vrcp.f32 %v4724_v37 }
 0xcda   :  { %v7079_v27 = vpop.eup %7078 }
 0xcdb   :  { %v4735_v31 = vadd.f32 1.0, %v7079_v27 }
 0xce4   :  { %v7081_v34 = vpop.eup %7080 }
 0xce5   :  { %v7083_v15 = vpop.eup %7082 }
 0xce6   :  { %v7085_v32 = vpop.eup %7084  ;;  %v4736_v47 = vadd.f32 1.0, %v7083_v15 }
 0xd00   :  { %v4708_v36 = vpop.f32.mrf.mxu0 }
 0xd01   :  { %v4739_v43 = vadd.f32 %v4708_v36, %v9892_v7 }
 0xd02   :  { %v4710_v48 = vpop.f32.mrf.mxu0 }
 0xd03   :  { %v4741_v52 = vmul.f32 %v7081_v34, %v4739_v43  ;;  %v4740_v29 = vadd.f32 %v4710_v48, %v9895_v53 }
 0xd04   :  { %v4712_v24 = vpop.f32.mrf.mxu0 }
 0xd05   :  { %v4743_v5 = vadd.f32 %v4741_v52, %v12063_v63  ;;  %v4742_v0 = vmul.f32 %v7085_v32, %v4740_v29  ;;  %v10279_v32 = vld [vmem:[#allocation5 + $0x430] ss:$24 sps:$4 sm:$0xff]   ;;  %v10287_v24 = vld [vmem:[#allocation5 + $0x400] ss:$24 sps:$4 sm:$0xff]   ;;  %v10290_v63 = vld [vmem:[#allocation5 + $0x3d4] ss:$24 sps:$4 sm:$0xff]  }
 0xd06   :  { %v4713_v56 = vpop.f32.mrf.mxu0 }
 0xd07   :  { %7086 = vtanh.f32 %v4743_v5  ;;  %v4744_v11 = vadd.f32 %v4742_v0, %v12064_v14  ;;  %v10295_v5 = vld [vmem:[#allocation5 + $0x3d0] ss:$24 sps:$4 sm:$0xff]   ;;  %v10298_v0 = vld [vmem:[#allocation5 + $0x3a4] ss:$24 sps:$4 sm:$0xff]   ;;  %v10303_v56 = vld [vmem:[#allocation5 + $0x3a0] ss:$24 sps:$4 sm:$0xff]  }
 0xd08   :  { %7088 = vrcp.f32 %v4735_v31  ;;  %v10282_v31 = vld [vmem:[#allocation5 + $0x404] ss:$24 sps:$4 sm:$0xff]   ;;  %v10311_v14 = vld [vmem:[#allocation5 + $0x370] ss:$24 sps:$4 sm:$0xff]  }
 0xd09   :  { %7090 = vtanh.f32 %v4744_v11  ;;  %v10314_v11 = vld [vmem:[#allocation5 + $0x344] ss:$24 sps:$4 sm:$0xff]  }
 0xd0a   :  { %7092 = vrcp.f32 %v4736_v47  ;;  %v10306_v47 = vld [vmem:[#allocation5 + $0x374] ss:$24 sps:$4 sm:$0xff]  }
 0xd14   :  { %v7087_v13 = vpop.eup %7086 }
 0xd15   :  { %v7089_v54 = vpop.eup %7088  ;;  %v4747_v49 = vsub.f32 %v10048_v28, %v7087_v13  ;;  %v10354_v28 = vld [vmem:[#allocation5 + $0x554] ss:$24 sps:$4 sm:$0xff]  }
 0xd16   :  { %v7091_v37 = vpop.eup %7090  ;;  %12070 = vst [vmem:[#allocation108_spill] sm:$0xff] %v10354_v28 }
 0xd17   :  { %v4748_v36 = vsub.f32 %v10050_v8, %v7091_v37  ;;  %v4749_v27 = vmul.f32 %v7089_v54, %v4747_v49  ;;  %v7093_v43 = vpop.eup %7092  ;;  %v10322_v54 = vld [vmem:[#allocation5 + $0x314] ss:$24 sps:$4 sm:$0xff]   ;;  %v10327_v49 = vld [vmem:[#allocation5 + $0x310] ss:$24 sps:$4 sm:$0xff]  }
 0xd18   :  { %v10359_v8 = vld [vmem:[#allocation5 + $0x550] ss:$24 sps:$4 sm:$0xff]  }
 0xd19   :  { %v4750_v34 = vmul.f32 %v7093_v43, %v4748_v36  ;;  %v10263_v48 = vadd.f32 %v7087_v13, %v4749_v27  ;;  %v10319_v13 = vld [vmem:[#allocation5 + $0x340] ss:$24 sps:$4 sm:$0xff]   ;;  %v10338_v27 = vld [vmem:[#allocation5 + $0x5b4] ss:$24 sps:$4 sm:$0xff]   ;;  %v10343_v43 = vld [vmem:[#allocation5 + $0x5b0] ss:$24 sps:$4 sm:$0xff]  }
 0xd1a   :  { %v10335_v36 = vld [vmem:[#allocation5 + $0x5e0] ss:$24 sps:$4 sm:$0xff]   ;;  %12067 = vst [vmem:[#allocation41_spill] sm:$0xff] %v10343_v43  ;;  %12071 = vst [vmem:[#allocation110_spill] sm:$0xff] %v10359_v8 }
 0xd1b   :  { %12065 = vst [vmem:[#allocation104_spill] sm:$0xff] %v10263_v48  ;;  %v10265_v52 = vadd.f32 %v7091_v37, %v4750_v34  ;;  %v10271_v29 = vpack.c.bf16 %v10263_v48, %v10263_v48  ;;  %v10330_v37 = vld [vmem:[#allocation5 + $0x5e4] ss:$24 sps:$4 sm:$0xff]  }
 0xd1c   :  { %v10346_v34 = vld [vmem:[#allocation5 + $0x584] ss:$24 sps:$4 sm:$0xff]  }
 0xd1d   :  { %12066 = vst [vmem:[#allocation40_spill] sm:$0xff] %v10265_v52  ;;  %v4756_v15 = vpack.c.bf16 %v10265_v52, %v10265_v52  ;;  %12068 = vst [vmem:[#allocation62_spill] sm:$0xff] %v10346_v34 }
 0xd1f   :  { %4789 = vmatprep.mubr.bf16.mxu1 %v4756_v15  ;;  %4830 = vmatprep.mubr.bf16.mxu0 %v4756_v15 }
 0xd20   :  { %4790 = vmatmul.mubr.bf16.vlgmr.msra.gmra.mxu1 %v10271_v29  ;;  %4831 = vmatmul.mubr.bf16.vlgmr.msra.gmra.mxu0 %v10271_v29 }
 0xd21   :  { %4840 = vmatpush1.bf16.msra.mxu1 %v10060_v4  ;;  %4871 = vmatprep.mubr.bf16.mxu1 %v4756_v15  ;;  %v10351_v15 = vld [vmem:[#allocation5 + $0x580] ss:$24 sps:$4 sm:$0xff]  }
 0xd22   :  { %4841 = vmatprep.subr.bf16.mxu1 %v10063_v26  ;;  %4923 = vmatpush1.bf16.msra.mxu0 %v9917_v22  ;;  %12069 = vst [vmem:[#allocation106_spill] sm:$0xff] %v10351_v15 }
 0xd23   :  { %4924 = vmatprep.subr.bf16.mxu0 %v9920_v9 }
 0xd25   :  { %4842 = vmatpush1.bf16.msra.mxu1 %v10279_v32 }
 0xd26   :  { %4843 = vmatprep.subr.bf16.mxu1 %v10282_v31  ;;  %4925 = vmatpush1.bf16.msra.mxu0 %v9925_v17 }
 0xd27   :  { %4926 = vmatprep.subr.bf16.mxu0 %v9928_v61 }
 0xd29   :  { %4844 = vmatpush1.bf16.msra.mxu1 %v10287_v24 }
 0xd2a   :  { %4845 = vmatprep.subr.bf16.mxu1 %v10290_v63  ;;  %4927 = vmatpush1.bf16.msra.mxu0 %v9933_v60 }
 0xd2b   :  { %4928 = vmatprep.subr.bf16.mxu0 %v9936_v6 }
 0xd2d   :  { %4846 = vmatpush1.bf16.msra.mxu1 %v10295_v5 }
 0xd2e   :  { %4847 = vmatprep.subr.bf16.mxu1 %v10298_v0  ;;  %4929 = vmatpush1.bf16.msra.mxu0 %v9941_v25 }
 0xd2f   :  { %4930 = vmatprep.subr.bf16.mxu0 %v9944_v51 }
 0xd31   :  { %4848 = vmatpush1.bf16.msra.mxu1 %v10303_v56 }
 0xd32   :  { %4849 = vmatprep.subr.bf16.mxu1 %v10306_v47  ;;  %4931 = vmatpush1.bf16.msra.mxu0 %v12008_v3 }
 0xd33   :  { %4932 = vmatprep.subr.bf16.mxu0 %v9952_v1 }
 0xd35   :  { %4850 = vmatpush1.bf16.msra.mxu1 %v10311_v14 }
 0xd36   :  { %4851 = vmatprep.subr.bf16.mxu1 %v10314_v11  ;;  %4933 = vmatpush1.bf16.msra.mxu0 %v10086_v46 }
 0xd37   :  { %4934 = vmatprep.subr.bf16.mxu0 %v10089_v12 }
 0xd39   :  { %4852 = vmatpush1.bf16.msra.mxu1 %v10319_v13 }
 0xd3a   :  { %4853 = vmatprep.subr.bf16.mxu1 %v10322_v54  ;;  %4935 = vmatpush1.bf16.msra.mxu0 %v10094_v20 }
 0xd3b   :  { %4936 = vmatprep.subr.bf16.mxu0 %v10097_v40 }
 0xd3d   :  { %4854 = vmatpush1.bf16.msra.mxu1 %v10327_v49 }
 0xd3e   :  { %4855 = vmatprep.subr.bf16.mxu1 %v10330_v37  ;;  %4937 = vmatpush1.bf16.msra.mxu0 %v10102_v19 }
 0xd3f   :  { %4938 = vmatprep.subr.bf16.mxu0 %v10105_v44 }
 0xd41   :  { %4856 = vmatpush2.bf16.msra.mxu1 %v10335_v36 }
 0xd42   :  { %4857 = vmatprep.subr.bf16.mxu1 %v10338_v27  ;;  %4939 = vmatpush2.bf16.msra.mxu0 %v10110_v39 }
 0xd43   :  { %4940 = vmatprep.subr.bf16.mxu0 %v10113_v62 }
 0xd45   :  { %4858 = vmatpush2.bf16.msra.mxu1 %v10343_v43 }
 0xd46   :  { %4859 = vmatprep.subr.bf16.mxu1 %v10346_v34  ;;  %4941 = vmatpush2.bf16.msra.mxu0 %v10118_v57  ;;  %v10362_v34 = vld [vmem:[#allocation5 + $0x524] ss:$24 sps:$4 sm:$0xff]   ;;  %v12115_v57 = vld [vmem:[#allocation18_spill] sm:$0xff] }
 0xd47   :  { %4942 = vmatprep.subr.bf16.mxu0 %v10121_v50  ;;  %12072 = vst [vmem:[#allocation37_spill] sm:$0xff] %v10362_v34 }
 0xd49   :  { %4860 = vmatpush2.bf16.msra.mxu1 %v10351_v15  ;;  %v10367_v15 = vld [vmem:[#allocation5 + $0x520] ss:$24 sps:$4 sm:$0xff]  }
 0xd4a   :  { %4861 = vmatprep.subr.bf16.mxu1 %v10354_v28  ;;  %4943 = vmatpush2.bf16.msra.mxu0 %v10126_v23  ;;  %12073 = vst [vmem:[#allocation60_spill] sm:$0xff] %v10367_v15  ;;  %v10370_v28 = vld [vmem:[#allocation5 + $0x4f4] ss:$24 sps:$4 sm:$0xff]  }
 0xd4b   :  { %4944 = vmatprep.subr.bf16.mxu0 %v10129_v16  ;;  %12074 = vst [vmem:[#allocation35_spill] sm:$0xff] %v10370_v28 }
 0xd4d   :  { %4862 = vmatpush2.bf16.msra.mxu1 %v10359_v8  ;;  %v10375_v8 = vld [vmem:[#allocation5 + $0x4f0] ss:$24 sps:$4 sm:$0xff]  }
 0xd4e   :  { %4863 = vmatprep.subr.bf16.mxu1 %v10362_v34  ;;  %4945 = vmatpush2.bf16.msra.mxu0 %v10134_v59  ;;  %12075 = vst [vmem:[#allocation59_spill] sm:$0xff] %v10375_v8  ;;  %v10378_v34 = vld [vmem:[#allocation5 + $0x4c4] ss:$24 sps:$4 sm:$0xff]  }
 0xd4f   :  { %4946 = vmatprep.subr.bf16.mxu0 %v10137_v45  ;;  %12076 = vst [vmem:[#allocation47_spill] sm:$0xff] %v10378_v34  ;;  %v12114_v45 = vld [vmem:[#allocation73_spill] sm:$0xff] }
 0xd51   :  { %4864 = vmatpush2.bf16.msra.mxu1 %v10367_v15  ;;  %v10383_v15 = vld [vmem:[#allocation5 + $0x4c0] ss:$24 sps:$4 sm:$0xff]  }
 0xd52   :  { %4865 = vmatprep.subr.bf16.mxu1 %v10370_v28  ;;  %4947 = vmatpush2.bf16.msra.mxu0 %v10142_v18  ;;  %12077 = vst [vmem:[#allocation49_spill] sm:$0xff] %v10383_v15  ;;  %v10386_v28 = vld [vmem:[#allocation5 + $0x494] ss:$24 sps:$4 sm:$0xff]  }
 0xd53   :  { %4948 = vmatprep.subr.bf16.mxu0 %v10145_v30  ;;  %12078 = vst [vmem:[#allocation91_spill] sm:$0xff] %v10386_v28  ;;  %v12112_v30 = vld [vmem:[#allocation33_spill] sm:$0xff] }
 0xd55   :  { %4866 = vmatpush2.bf16.msra.mxu1 %v10375_v8  ;;  %v10391_v8 = vld [vmem:[#allocation5 + $0x490] ss:$24 sps:$4 sm:$0xff]  }
 0xd56   :  { %4867 = vmatprep.subr.bf16.mxu1 %v10378_v34  ;;  %4949 = vmatpush2.bf16.msra.mxu0 %v10150_v33  ;;  %12079 = vst [vmem:[#allocation93_spill] sm:$0xff] %v10391_v8  ;;  %v12085_v33 = vld [vmem:[#allocation105_spill] sm:$0xff] }
 0xd57   :  { %4950 = vmatprep.subr.bf16.mxu0 %v10153_v38  ;;  %v12081_v38 = vld [vmem:[#allocation103_spill] sm:$0xff] }
 0xd59   :  { %4868 = vmatpush2.bf16.msra.mxu1 %v10383_v15  ;;  %v12080_v15 = vld [vmem:[#allocation99_spill] sm:$0xff] }
 0xd5a   :  { %4869 = vmatprep.subr.bf16.mxu1 %v10386_v28  ;;  %4951 = vmatpush2.bf16.msra.mxu0 %v10158_v35  ;;  %v12082_v28 = vld [vmem:[#allocation38_spill] sm:$0xff]  ;;  %v12083_v35 = vld [vmem:[#allocation39_spill] sm:$0xff] }
 0xd5b   :  { %4952 = vmatprep.subr.bf16.mxu0 %v10161_v2  ;;  %v12084_v2 = vld [vmem:[#allocation61_spill] sm:$0xff] }
 0xd5d   :  { %4870 = vmatpush2.bf16.msra.mxu1 %v10391_v8  ;;  %v12086_v8 = vld [vmem:[#allocation107_spill] sm:$0xff] }
 0xd5e   :  { %4963 = vmatprep.subr.bf16.mxu1 %v10165_v21  ;;  %4953 = vmatpush2.bf16.msra.mxu0 %v10168_v41  ;;  %v12087_v21 = vld [vmem:[#allocation109_spill] sm:$0xff]  ;;  %v12088_v41 = vld [vmem:[#allocation111_spill] sm:$0xff] }
 0xd5f   :  { %5004 = vmatprep.subr.bf16.mxu0 %v10171_v10  ;;  %v12089_v10 = vld [vmem:[#allocation113_spill] sm:$0xff] }
 0xd60   :  { %4872 = vmatmul.mubr.bf16.vlgmr.msra.gmra.mxu1 %v10271_v29  ;;  %v12090_v29 = vld [vmem:[#allocation44_spill] sm:$0xff] }
 0xd61   :  { %4964 = vmatpush1.bf16.msra.mxu1 %v12080_v15  ;;  %v12091_v15 = vld [vmem:[#allocation29_spill] sm:$0xff] }
 0xd62   :  { %4965 = vmatprep.subr.bf16.mxu1 %v12081_v38  ;;  %v12092_v38 = vld [vmem:[#allocation43_spill] sm:$0xff] }
 0xd65   :  { %4966 = vmatpush1.bf16.msra.mxu1 %v12082_v28  ;;  %v12093_v28 = vld [vmem:[#allocation64_spill] sm:$0xff] }
 0xd66   :  { %4967 = vmatprep.subr.bf16.mxu1 %v12083_v35  ;;  %v12094_v35 = vld [vmem:[#allocation88_spill] sm:$0xff] }
 0xd69   :  { %4968 = vmatpush1.bf16.msra.mxu1 %v12084_v2  ;;  %v12095_v2 = vld [vmem:[#allocation90_spill] sm:$0xff] }
 0xd6a   :  { %4969 = vmatprep.subr.bf16.mxu1 %v12085_v33  ;;  %v12096_v33 = vld [vmem:[#allocation92_spill] sm:$0xff] }
 0xd6d   :  { %4970 = vmatpush1.bf16.msra.mxu1 %v12086_v8  ;;  %v12097_v8 = vld [vmem:[#allocation94_spill] sm:$0xff] }
 0xd6e   :  { %4971 = vmatprep.subr.bf16.mxu1 %v12087_v21  ;;  %v12098_v21 = vld [vmem:[#allocation96_spill] sm:$0xff] }
 0xd71   :  { %4972 = vmatpush1.bf16.msra.mxu1 %v12088_v41  ;;  %v12099_v41 = vld [vmem:[#allocation98_spill] sm:$0xff] }
 0xd72   :  { %4973 = vmatprep.subr.bf16.mxu1 %v12089_v10  ;;  %v12100_v10 = vld [vmem:[#allocation102_spill] sm:$0xff] }
 0xd75   :  { %4974 = vmatpush1.bf16.msra.mxu1 %v12090_v29  ;;  %v10419_v29 = vld [vmem:[#allocation5 + $0x54c] ss:$24 sps:$4 sm:$0xff]  }
 0xd76   :  { %4975 = vmatprep.subr.bf16.mxu1 %v12091_v15  ;;  %12101 = vst [vmem:[#allocation68_spill] sm:$0xff] %v10419_v29 }
 0xd79   :  { %4976 = vmatpush1.bf16.msra.mxu1 %v12092_v38  ;;  %v10422_v38 = vld [vmem:[#allocation5 + $0x548] ss:$24 sps:$4 sm:$0xff]  }
 0xd7a   :  { %4977 = vmatprep.subr.bf16.mxu1 %v12093_v28  ;;  %12102 = vst [vmem:[#allocation97_spill] sm:$0xff] %v10422_v38 }
 0xd7d   :  { %4978 = vmatpush1.bf16.msra.mxu1 %v12094_v35  ;;  %v10425_v35 = vld [vmem:[#allocation5 + $0x51c] ss:$24 sps:$4 sm:$0xff]  }
 0xd7e   :  { %4979 = vmatprep.subr.bf16.mxu1 %v12095_v2  ;;  %12103 = vst [vmem:[#allocation112_spill] sm:$0xff] %v10425_v35 }
 0xd81   :  { %4980 = vmatpush2.bf16.msra.mxu1 %v12096_v33  ;;  %v10428_v33 = vld [vmem:[#allocation5 + $0x518] ss:$24 sps:$4 sm:$0xff]  }
 0xd82   :  { %4981 = vmatprep.subr.bf16.mxu1 %v12097_v8  ;;  %12104 = vst [vmem:[#allocation114_spill] sm:$0xff] %v10428_v33 }
 0xd85   :  { %4982 = vmatpush2.bf16.msra.mxu1 %v12098_v21  ;;  %v10431_v21 = vld [vmem:[#allocation5 + $0x4ec] ss:$24 sps:$4 sm:$0xff]  }
 0xd86   :  { %4983 = vmatprep.subr.bf16.mxu1 %v12099_v41  ;;  %12105 = vst [vmem:[#allocation42_spill] sm:$0xff] %v10431_v21 }
 0xd89   :  { %4984 = vmatpush2.bf16.msra.mxu1 %v12100_v10  ;;  %v10434_v10 = vld [vmem:[#allocation5 + $0x4e8] ss:$24 sps:$4 sm:$0xff]  }
 0xd8a   :  { %4985 = vmatprep.subr.bf16.mxu1 %v10419_v29  ;;  %12106 = vst [vmem:[#allocation45_spill] sm:$0xff] %v10434_v10  ;;  %v10437_v29 = vld [vmem:[#allocation5 + $0x4bc] ss:$24 sps:$4 sm:$0xff]  }
 0xd8b   :  { %12107 = vst [vmem:[#allocation56_spill] sm:$0xff] %v10437_v29 }
 0xd8d   :  { %4986 = vmatpush2.bf16.msra.mxu1 %v10422_v38  ;;  %v10440_v38 = vld [vmem:[#allocation5 + $0x4b8] ss:$24 sps:$4 sm:$0xff]  }
 0xd8e   :  { %4987 = vmatprep.subr.bf16.mxu1 %v10425_v35  ;;  %12108 = vst [vmem:[#allocation63_spill] sm:$0xff] %v10440_v38  ;;  %v10443_v35 = vld [vmem:[#allocation5 + $0x48c] ss:$24 sps:$4 sm:$0xff]  }
 0xd8f   :  { %12109 = vst [vmem:[#allocation57_spill] sm:$0xff] %v10443_v35 }
 0xd91   :  { %4988 = vmatpush2.bf16.msra.mxu1 %v10428_v33  ;;  %v10446_v33 = vld [vmem:[#allocation5 + $0x488] ss:$24 sps:$4 sm:$0xff]  }
 0xd92   :  { %4989 = vmatprep.subr.bf16.mxu1 %v10431_v21  ;;  %12110 = vst [vmem:[#allocation58_spill] sm:$0xff] %v10446_v33  ;;  %v12111_v21 = vld [vmem:[#allocation67_spill] sm:$0xff] }
 0xd95   :  { %4990 = vmatpush2.bf16.msra.mxu1 %v10434_v10 }
 0xd96   :  { %4991 = vmatprep.subr.bf16.mxu1 %v10437_v29 }
 0xd99   :  { %4992 = vmatpush2.bf16.msra.mxu1 %v10440_v38  ;;  %v12113_v38 = vld [vmem:[#allocation16_spill] sm:$0xff] }
 0xd9a   :  { %4993 = vmatprep.subr.bf16.mxu1 %v10443_v35  ;;  %v3502_v18 = vadd.f32 %v12113_v38, %v12112_v30  ;;  %v3504_v35 = vadd.f32 %v12114_v45, %v9858_v42 }
 0xd9d   :  { %4994 = vmatpush2.bf16.msra.mxu1 %v10446_v33 }
 0xd9e   :  { %5087 = vmatprep.subr.bf16.mxu1 %v12111_v21 }
 0xde0   :  { %v4791_v41 = vpop.f32.mrf.mxu1  ;;  %v4832_v10 = vpop.f32.mrf.mxu0 }
 0xde1   :  { %v4880_v59 = vadd.f32 %v4791_v41, %v3502_v18 }
 0xde2   :  { %v4793_v8 = vpop.f32.mrf.mxu1  ;;  %v4834_v2 = vpop.f32.mrf.mxu0 }
 0xde3   :  { %v4881_v16 = vadd.f32 %v4793_v8, %v3504_v35  ;;  %v4882_v23 = vsub.f32 0.0, %v4880_v59 }
 0xde4   :  { %v4795_v28 = vpop.f32.mrf.mxu1  ;;  %v4836_v29 = vpop.f32.mrf.mxu0 }
 0xde5   :  { %v4883_v33 = vsub.f32 0.0, %v4881_v16  ;;  %v4884_v50 = vmul.f32 1.442695, %v4882_v23  ;;  %v3575_v28 = vadd.f32 %v12115_v57, %v9878_v58 }
 0xde6   :  { %v4796_v15 = vpop.f32.mrf.mxu1  ;;  %v4837_v34 = vpop.f32.mrf.mxu0 }
 0xde7   :  { %v4886_v21 = vmul.f32 1.442695, %v4883_v33  ;;  %7094 = vpow2.f32 %v4884_v50  ;;  %v12116_v15 = vld [vmem:[#allocation74_spill] sm:$0xff]  ;;  %v4892_v29 = vadd.f32 %v4832_v10, %v3575_v28 }
 0xde8   :  { %v3577_v34 = vadd.f32 %v12116_v15, %v9882_v55 }
 0xde9   :  { %7096 = vpow2.f32 %v4886_v21  ;;  %v4894_v38 = vsub.f32 0.0, %v4892_v29 }
 0xdea   :  { %v4893_v43 = vadd.f32 %v4834_v2, %v3577_v34 }
 0xdeb   :  { %v4896_v18 = vmul.f32 1.442695, %v4894_v38  ;;  %v12118_v38 = vld [vmem:[#allocation11_spill] sm:$0xff] }
 0xdec   :  { %v4895_v62 = vsub.f32 0.0, %v4893_v43 }
 0xded   :  { %7098 = vpow2.f32 %v4896_v18 }
 0xdee   :  { %v4898_v59 = vmul.f32 1.442695, %v4895_v62 }
 0xdf4   :  { %v7095_v30 = vpop.eup %7094 }
 0xdf5   :  { %v4888_v8 = vadd.f32 1.0, %v7095_v30  ;;  %v12117_v30 = vld [vmem:[#allocation70_spill] sm:$0xff] }
 0xdf6   :  { %v7097_v45 = vpop.eup %7096 }
 0xdf7   :  { %v4889_v16 = vadd.f32 1.0, %v7097_v45  ;;  %7100 = vrcp.f32 %v4888_v8 }
 0xdf8   :  { %7102 = vpow2.f32 %v4898_v59 }
 0xdf9   :  { %7104 = vrcp.f32 %v4889_v16 }
 0xdfa   :  { %v7099_v23 = vpop.eup %7098 }
 0xdfb   :  { %v4900_v43 = vadd.f32 1.0, %v7099_v23 }
 0xe04   :  { %v7101_v33 = vpop.eup %7100 }
 0xe05   :  { %v7103_v21 = vpop.eup %7102 }
 0xe06   :  { %v7105_v10 = vpop.eup %7104  ;;  %v4901_v29 = vadd.f32 1.0, %v7103_v21 }
 0xe20   :  { %v4873_v50 = vpop.f32.mrf.mxu1 }
 0xe21   :  { %v4904_v57 = vadd.f32 %v4873_v50, %v9892_v7 }
 0xe22   :  { %v4875_v35 = vpop.f32.mrf.mxu1 }
 0xe23   :  { %v4906_v2 = vmul.f32 %v7101_v33, %v4904_v57  ;;  %v4905_v41 = vadd.f32 %v4875_v35, %v9895_v53 }
 0xe24   :  { %v4877_v28 = vpop.f32.mrf.mxu1 }
 0xe25   :  { %v4908_v62 = vadd.f32 %v4906_v2, %v12117_v30  ;;  %v4907_v15 = vmul.f32 %v7105_v10, %v4905_v41  ;;  %v12131_v10 = vld [vmem:[#allocation37_spill] sm:$0xff]  ;;  %v12133_v28 = vld [vmem:[#allocation23_spill] sm:$0xff]  ;;  %v12134_v30 = vld [vmem:[#allocation60_spill] sm:$0xff] }
 0xe26   :  { %v4878_v34 = vpop.f32.mrf.mxu1 }
 0xe27   :  { %7106 = vtanh.f32 %v4908_v62  ;;  %v4909_v45 = vadd.f32 %v4907_v15, %v12118_v38  ;;  %v12135_v62 = vld [vmem:[#allocation35_spill] sm:$0xff]  ;;  %v12136_v15 = vld [vmem:[#allocation81_spill] sm:$0xff]  ;;  %v12137_v34 = vld [vmem:[#allocation82_spill] sm:$0xff] }
 0xe28   :  { %7108 = vrcp.f32 %v4900_v43  ;;  %v12132_v43 = vld [vmem:[#allocation22_spill] sm:$0xff]  ;;  %v12139_v38 = vld [vmem:[#allocation47_spill] sm:$0xff] }
 0xe29   :  { %7110 = vtanh.f32 %v4909_v45  ;;  %v12140_v45 = vld [vmem:[#allocation83_spill] sm:$0xff] }
 0xe2a   :  { %7112 = vrcp.f32 %v4901_v29  ;;  %v12138_v29 = vld [vmem:[#allocation59_spill] sm:$0xff] }
 0xe34   :  { %v7107_v18 = vpop.eup %7106 }
 0xe35   :  { %v7109_v8 = vpop.eup %7108  ;;  %v4912_v59 = vsub.f32 %v10263_v48, %v7107_v18  ;;  %v12150_v48 = vld [vmem:[#allocation99_spill] sm:$0xff] }
 0xe36   :  { %v7111_v16 = vpop.eup %7110 }
 0xe37   :  { %v4913_v50 = vsub.f32 %v10265_v52, %v7111_v16  ;;  %v4914_v23 = vmul.f32 %v7109_v8, %v4912_v59  ;;  %v7113_v57 = vpop.eup %7112  ;;  %v12142_v8 = vld [vmem:[#allocation49_spill] sm:$0xff]  ;;  %v12143_v59 = vld [vmem:[#allocation91_spill] sm:$0xff] }
 0xe38   :  { %v12151_v52 = vld [vmem:[#allocation103_spill] sm:$0xff] }
 0xe39   :  { %v4915_v33 = vmul.f32 %v7113_v57, %v4913_v50  ;;  %v10464_v35 = vadd.f32 %v7107_v18, %v4914_v23  ;;  %v12141_v18 = vld [vmem:[#allocation84_spill] sm:$0xff]  ;;  %v12145_v50 = vld [vmem:[#allocation86_spill] sm:$0xff]  ;;  %v12146_v23 = vld [vmem:[#allocation93_spill] sm:$0xff] }
 0xe3a   :  { %v12147_v57 = vld [vmem:[#allocation87_spill] sm:$0xff] }
 0xe3b   :  { %12119 = vst [vmem:[#allocation36_spill] sm:$0xff] %v10464_v35  ;;  %v10466_v2 = vadd.f32 %v7111_v16, %v4915_v33  ;;  %v10472_v41 = vpack.c.bf16 %v10464_v35, %v10464_v35  ;;  %v12144_v16 = vld [vmem:[#allocation85_spill] sm:$0xff] }
 0xe3c   :  { %v12148_v33 = vld [vmem:[#allocation89_spill] sm:$0xff] }
 0xe3d   :  { %12120 = vst [vmem:[#allocation34_spill] sm:$0xff] %v10466_v2  ;;  %v4921_v21 = vpack.c.bf16 %v10466_v2, %v10466_v2 }
 0xe3f   :  { %4954 = vmatprep.mubr.bf16.mxu0 %v4921_v21  ;;  %4995 = vmatprep.mubr.bf16.mxu1 %v4921_v21 }
 0xe40   :  { %4955 = vmatmul.mubr.bf16.vlgmr.msra.gmra.mxu0 %v10472_v41  ;;  %4996 = vmatmul.mubr.bf16.vlgmr.msra.gmra.mxu1 %v10472_v41 }
 0xe41   :  { %5005 = vmatpush1.bf16.msra.mxu0 %v10060_v4  ;;  %5036 = vmatprep.mubr.bf16.mxu0 %v4921_v21  ;;  %v12149_v21 = vld [vmem:[#allocation95_spill] sm:$0xff] }
 0xe42   :  { %5006 = vmatprep.subr.bf16.mxu0 %v10063_v26  ;;  %5088 = vmatpush1.bf16.msra.mxu1 %v9917_v22  ;;  %v12121_v22 = vld [vmem:[#allocation101_spill] sm:$0xff] }
 0xe43   :  { %5089 = vmatprep.subr.bf16.mxu1 %v9920_v9  ;;  %v12122_v9 = vld [vmem:[#allocation41_spill] sm:$0xff] }
 0xe45   :  { %5007 = vmatpush1.bf16.msra.mxu0 %v10279_v32 }
 0xe46   :  { %5008 = vmatprep.subr.bf16.mxu0 %v10282_v31  ;;  %5090 = vmatpush1.bf16.msra.mxu1 %v9925_v17  ;;  %v12123_v17 = vld [vmem:[#allocation62_spill] sm:$0xff] }
 0xe47   :  { %5091 = vmatprep.subr.bf16.mxu1 %v9928_v61  ;;  %v12124_v61 = vld [vmem:[#allocation19_spill] sm:$0xff] }
 0xe49   :  { %5009 = vmatpush1.bf16.msra.mxu0 %v10287_v24 }
 0xe4a   :  { %5010 = vmatprep.subr.bf16.mxu0 %v10290_v63  ;;  %5092 = vmatpush1.bf16.msra.mxu1 %v9933_v60  ;;  %v12125_v60 = vld [vmem:[#allocation79_spill] sm:$0xff] }
 0xe4b   :  { %5093 = vmatprep.subr.bf16.mxu1 %v9936_v6  ;;  %v12126_v6 = vld [vmem:[#allocation106_spill] sm:$0xff] }
 0xe4d   :  { %5011 = vmatpush1.bf16.msra.mxu0 %v10295_v5 }
 0xe4e   :  { %5012 = vmatprep.subr.bf16.mxu0 %v10298_v0  ;;  %5094 = vmatpush1.bf16.msra.mxu1 %v9941_v25  ;;  %v12127_v25 = vld [vmem:[#allocation108_spill] sm:$0xff] }
 0xe4f   :  { %5095 = vmatprep.subr.bf16.mxu1 %v9944_v51  ;;  %v12128_v51 = vld [vmem:[#allocation80_spill] sm:$0xff] }
 0xe51   :  { %5013 = vmatpush1.bf16.msra.mxu0 %v10303_v56 }
 0xe52   :  { %5014 = vmatprep.subr.bf16.mxu0 %v10306_v47  ;;  %5096 = vmatpush1.bf16.msra.mxu1 %v12008_v3  ;;  %v12130_v3 = vld [vmem:[#allocation110_spill] sm:$0xff] }
 0xe53   :  { %5097 = vmatprep.subr.bf16.mxu1 %v9952_v1  ;;  %v12129_v1 = vld [vmem:[#allocation21_spill] sm:$0xff] }
 0xe55   :  { %5015 = vmatpush1.bf16.msra.mxu0 %v10311_v14 }
 0xe56   :  { %5016 = vmatprep.subr.bf16.mxu0 %v10314_v11  ;;  %5098 = vmatpush1.bf16.msra.mxu1 %v10086_v46 }
 0xe57   :  { %5099 = vmatprep.subr.bf16.mxu1 %v10089_v12 }
 0xe59   :  { %5017 = vmatpush1.bf16.msra.mxu0 %v10319_v13 }
 0xe5a   :  { %5018 = vmatprep.subr.bf16.mxu0 %v10322_v54  ;;  %5100 = vmatpush1.bf16.msra.mxu1 %v10094_v20 }
 0xe5b   :  { %5101 = vmatprep.subr.bf16.mxu1 %v10097_v40 }
 0xe5d   :  { %5019 = vmatpush1.bf16.msra.mxu0 %v10327_v49 }
 0xe5e   :  { %5020 = vmatprep.subr.bf16.mxu0 %v10330_v37  ;;  %5102 = vmatpush1.bf16.msra.mxu1 %v10102_v19 }
 0xe5f   :  { %5103 = vmatprep.subr.bf16.mxu1 %v10105_v44 }
 0xe61   :  { %5021 = vmatpush2.bf16.msra.mxu0 %v10335_v36 }
 0xe62   :  { %5022 = vmatprep.subr.bf16.mxu0 %v10338_v27  ;;  %5104 = vmatpush2.bf16.msra.mxu1 %v10110_v39 }
 0xe63   :  { %5105 = vmatprep.subr.bf16.mxu1 %v12121_v22 }
 0xe65   :  { %5023 = vmatpush2.bf16.msra.mxu0 %v12122_v9 }
 0xe66   :  { %5024 = vmatprep.subr.bf16.mxu0 %v12123_v17  ;;  %5106 = vmatpush2.bf16.msra.mxu1 %v12124_v61 }
 0xe67   :  { %5107 = vmatprep.subr.bf16.mxu1 %v12125_v60 }
 0xe69   :  { %5025 = vmatpush2.bf16.msra.mxu0 %v12126_v6 }
 0xe6a   :  { %5026 = vmatprep.subr.bf16.mxu0 %v12127_v25  ;;  %5108 = vmatpush2.bf16.msra.mxu1 %v12128_v51 }
 0xe6b   :  { %5109 = vmatprep.subr.bf16.mxu1 %v12129_v1 }
 0xe6d   :  { %5027 = vmatpush2.bf16.msra.mxu0 %v12130_v3 }
 0xe6e   :  { %5028 = vmatprep.subr.bf16.mxu0 %v12131_v10  ;;  %5110 = vmatpush2.bf16.msra.mxu1 %v12132_v43 }
 0xe6f   :  { %5111 = vmatprep.subr.bf16.mxu1 %v12133_v28  ;;  %v12185_v28 = vld [vmem:[#allocation26_spill] sm:$0xff] }
 0xe71   :  { %5029 = vmatpush2.bf16.msra.mxu0 %v12134_v30 }
 0xe72   :  { %5030 = vmatprep.subr.bf16.mxu0 %v12135_v62  ;;  %5112 = vmatpush2.bf16.msra.mxu1 %v12136_v15 }
 0xe73   :  { %5113 = vmatprep.subr.bf16.mxu1 %v12137_v34 }
 0xe75   :  { %5031 = vmatpush2.bf16.msra.mxu0 %v12138_v29  ;;  %v12182_v29 = vld [vmem:[#allocation33_spill] sm:$0xff] }
 0xe76   :  { %5032 = vmatprep.subr.bf16.mxu0 %v12139_v38  ;;  %5114 = vmatpush2.bf16.msra.mxu1 %v12140_v45 }
 0xe77   :  { %5115 = vmatprep.subr.bf16.mxu1 %v12141_v18 }
 0xe79   :  { %5033 = vmatpush2.bf16.msra.mxu0 %v12142_v8  ;;  %v12152_v8 = vld [vmem:[#allocation38_spill] sm:$0xff] }
 0xe7a   :  { %5034 = vmatprep.subr.bf16.mxu0 %v12143_v59  ;;  %5116 = vmatpush2.bf16.msra.mxu1 %v12144_v16  ;;  %v12153_v59 = vld [vmem:[#allocation39_spill] sm:$0xff]  ;;  %v12154_v16 = vld [vmem:[#allocation61_spill] sm:$0xff] }
 0xe7b   :  { %5117 = vmatprep.subr.bf16.mxu1 %v12145_v50  ;;  %v12155_v50 = vld [vmem:[#allocation105_spill] sm:$0xff] }
 0xe7d   :  { %5035 = vmatpush2.bf16.msra.mxu0 %v12146_v23  ;;  %v12156_v23 = vld [vmem:[#allocation107_spill] sm:$0xff] }
 0xe7e   :  { %5128 = vmatprep.subr.bf16.mxu0 %v12147_v57  ;;  %5118 = vmatpush2.bf16.msra.mxu1 %v12148_v33  ;;  %v12157_v57 = vld [vmem:[#allocation109_spill] sm:$0xff]  ;;  %v12158_v33 = vld [vmem:[#allocation111_spill] sm:$0xff] }
 0xe7f   :  { %5169 = vmatprep.subr.bf16.mxu1 %v12149_v21  ;;  %v12159_v21 = vld [vmem:[#allocation113_spill] sm:$0xff] }
 0xe80   :  { %5037 = vmatmul.mubr.bf16.vlgmr.msra.gmra.mxu0 %v10472_v41  ;;  %v12160_v41 = vld [vmem:[#allocation44_spill] sm:$0xff] }
 0xe81   :  { %5129 = vmatpush1.bf16.msra.mxu0 %v12150_v48  ;;  %v12161_v48 = vld [vmem:[#allocation29_spill] sm:$0xff] }
 0xe82   :  { %5130 = vmatprep.subr.bf16.mxu0 %v12151_v52  ;;  %v12162_v52 = vld [vmem:[#allocation43_spill] sm:$0xff] }
 0xe85   :  { %5131 = vmatpush1.bf16.msra.mxu0 %v12152_v8  ;;  %v12163_v8 = vld [vmem:[#allocation64_spill] sm:$0xff] }
 0xe86   :  { %5132 = vmatprep.subr.bf16.mxu0 %v12153_v59  ;;  %v12164_v59 = vld [vmem:[#allocation88_spill] sm:$0xff] }
 0xe89   :  { %5133 = vmatpush1.bf16.msra.mxu0 %v12154_v16  ;;  %v12165_v16 = vld [vmem:[#allocation90_spill] sm:$0xff] }
 0xe8a   :  { %5134 = vmatprep.subr.bf16.mxu0 %v12155_v50  ;;  %v12166_v50 = vld [vmem:[#allocation92_spill] sm:$0xff] }
 0xe8d   :  { %5135 = vmatpush1.bf16.msra.mxu0 %v12156_v23  ;;  %v12167_v23 = vld [vmem:[#allocation94_spill] sm:$0xff] }
 0xe8e   :  { %5136 = vmatprep.subr.bf16.mxu0 %v12157_v57  ;;  %v12168_v57 = vld [vmem:[#allocation96_spill] sm:$0xff] }
 0xe91   :  { %5137 = vmatpush1.bf16.msra.mxu0 %v12158_v33  ;;  %v12169_v33 = vld [vmem:[#allocation98_spill] sm:$0xff] }
 0xe92   :  { %5138 = vmatprep.subr.bf16.mxu0 %v12159_v21  ;;  %v12170_v21 = vld [vmem:[#allocation102_spill] sm:$0xff] }
 0xe95   :  { %5139 = vmatpush1.bf16.msra.mxu0 %v12160_v41  ;;  %v12171_v41 = vld [vmem:[#allocation68_spill] sm:$0xff] }
 0xe96   :  { %5140 = vmatprep.subr.bf16.mxu0 %v12161_v48  ;;  %v12172_v48 = vld [vmem:[#allocation97_spill] sm:$0xff] }
 0xe99   :  { %5141 = vmatpush1.bf16.msra.mxu0 %v12162_v52  ;;  %v12173_v52 = vld [vmem:[#allocation112_spill] sm:$0xff] }
 0xe9a   :  { %5142 = vmatprep.subr.bf16.mxu0 %v12163_v8  ;;  %v12174_v8 = vld [vmem:[#allocation114_spill] sm:$0xff] }
 0xe9d   :  { %5143 = vmatpush1.bf16.msra.mxu0 %v12164_v59  ;;  %v12175_v59 = vld [vmem:[#allocation42_spill] sm:$0xff] }
 0xe9e   :  { %5144 = vmatprep.subr.bf16.mxu0 %v12165_v16  ;;  %v12176_v16 = vld [vmem:[#allocation45_spill] sm:$0xff] }
 0xea1   :  { %5145 = vmatpush2.bf16.msra.mxu0 %v12166_v50  ;;  %v12177_v50 = vld [vmem:[#allocation56_spill] sm:$0xff] }
 0xea2   :  { %5146 = vmatprep.subr.bf16.mxu0 %v12167_v23  ;;  %v12178_v23 = vld [vmem:[#allocation63_spill] sm:$0xff] }
 0xea5   :  { %5147 = vmatpush2.bf16.msra.mxu0 %v12168_v57  ;;  %v12179_v57 = vld [vmem:[#allocation57_spill] sm:$0xff] }
 0xea6   :  { %5148 = vmatprep.subr.bf16.mxu0 %v12169_v33  ;;  %v12180_v33 = vld [vmem:[#allocation58_spill] sm:$0xff] }
 0xea9   :  { %5149 = vmatpush2.bf16.msra.mxu0 %v12170_v21  ;;  %v12181_v21 = vld [vmem:[#allocation67_spill] sm:$0xff] }
 0xeaa   :  { %5150 = vmatprep.subr.bf16.mxu0 %v12171_v41 }
 0xead   :  { %5151 = vmatpush2.bf16.msra.mxu0 %v12172_v48 }
 0xeae   :  { %5152 = vmatprep.subr.bf16.mxu0 %v12173_v52 }
 0xeb1   :  { %5153 = vmatpush2.bf16.msra.mxu0 %v12174_v8 }
 0xeb2   :  { %5154 = vmatprep.subr.bf16.mxu0 %v12175_v59 }
 0xeb5   :  { %5155 = vmatpush2.bf16.msra.mxu0 %v12176_v16  ;;  %v12183_v16 = vld [vmem:[#allocation20_spill] sm:$0xff] }
 0xeb6   :  { %5156 = vmatprep.subr.bf16.mxu0 %v12177_v50  ;;  %v3508_v34 = vadd.f32 %v12183_v16, %v12182_v29  ;;  %v12184_v50 = vld [vmem:[#allocation75_spill] sm:$0xff] }
 0xeb9   :  { %5157 = vmatpush2.bf16.msra.mxu0 %v12178_v23  ;;  %v3510_v23 = vadd.f32 %v12184_v50, %v9858_v42 }
 0xeba   :  { %5158 = vmatprep.subr.bf16.mxu0 %v12179_v57 }
 0xebd   :  { %5159 = vmatpush2.bf16.msra.mxu0 %v12180_v33 }
 0xebe   :  { %5252 = vmatprep.subr.bf16.mxu0 %v12181_v21 }
 0xf00   :  { %v4956_v41 = vpop.f32.mrf.mxu0  ;;  %v4997_v48 = vpop.f32.mrf.mxu1 }
 0xf01   :  { %v5045_v15 = vadd.f32 %v4956_v41, %v3508_v34 }
 0xf02   :  { %v4958_v18 = vpop.f32.mrf.mxu0  ;;  %v4999_v52 = vpop.f32.mrf.mxu1 }
 0xf03   :  { %v5046_v57 = vadd.f32 %v4958_v18, %v3510_v23  ;;  %v5047_v62 = vsub.f32 0.0, %v5045_v15 }
 0xf04   :  { %v4960_v45 = vpop.f32.mrf.mxu0  ;;  %v5001_v8 = vpop.f32.mrf.mxu1 }
 0xf05   :  { %v5048_v33 = vsub.f32 0.0, %v5046_v57  ;;  %v5049_v30 = vmul.f32 1.442695, %v5047_v62  ;;  %v3581_v45 = vadd.f32 %v12185_v28, %v9878_v58 }
 0xf06   :  { %v4961_v38 = vpop.f32.mrf.mxu0  ;;  %v5002_v59 = vpop.f32.mrf.mxu1 }
 0xf07   :  { %v5051_v21 = vmul.f32 1.442695, %v5048_v33  ;;  %7114 = vpow2.f32 %v5049_v30  ;;  %v12186_v38 = vld [vmem:[#allocation76_spill] sm:$0xff]  ;;  %v5057_v59 = vadd.f32 %v4997_v48, %v3581_v45 }
 0xf08   :  { %v3583_v8 = vadd.f32 %v12186_v38, %v9882_v55 }
 0xf09   :  { %7116 = vpow2.f32 %v5051_v21  ;;  %v5059_v16 = vsub.f32 0.0, %v5057_v59 }
 0xf0a   :  { %v5058_v43 = vadd.f32 %v4999_v52, %v3583_v8 }
 0xf0b   :  { %v5061_v34 = vmul.f32 1.442695, %v5059_v16  ;;  %v12188_v16 = vld [vmem:[#allocation9_spill] sm:$0xff] }
 0xf0c   :  { %v5060_v10 = vsub.f32 0.0, %v5058_v43 }
 0xf0d   :  { %7118 = vpow2.f32 %v5061_v34 }
 0xf0e   :  { %v5063_v15 = vmul.f32 1.442695, %v5060_v10 }
 0xf14   :  { %v7115_v29 = vpop.eup %7114 }
 0xf15   :  { %v5053_v18 = vadd.f32 1.0, %v7115_v29  ;;  %v12187_v29 = vld [vmem:[#allocation69_spill] sm:$0xff] }
 0xf16   :  { %v7117_v50 = vpop.eup %7116 }
 0xf17   :  { %v5054_v23 = vadd.f32 1.0, %v7117_v50  ;;  %7120 = vrcp.f32 %v5053_v18 }
 0xf18   :  { %7122 = vpow2.f32 %v5063_v15 }
 0xf19   :  { %7124 = vrcp.f32 %v5054_v23 }
 0xf1a   :  { %v7119_v62 = vpop.eup %7118 }
 0xf1b   :  { %v5065_v21 = vadd.f32 1.0, %v7119_v62 }
 0xf24   :  { %v7121_v57 = vpop.eup %7120 }
 0xf25   :  { %v7123_v48 = vpop.eup %7122 }
 0xf26   :  { %v7125_v43 = vpop.eup %7124  ;;  %v5066_v59 = vadd.f32 1.0, %v7123_v48 }
 0xf40   :  { %v5038_v30 = vpop.f32.mrf.mxu0 }
 0xf41   :  { %v5069_v28 = vadd.f32 %v5038_v30, %v9892_v7 }
 0xf42   :  { %v5040_v33 = vpop.f32.mrf.mxu0 }
 0xf43   :  { %v5071_v52 = vmul.f32 %v7121_v57, %v5069_v28  ;;  %v5070_v41 = vadd.f32 %v5040_v33, %v9895_v53 }
 0xf44   :  { %v5042_v45 = vpop.f32.mrf.mxu0 }
 0xf45   :  { %v5073_v10 = vadd.f32 %v5071_v52, %v12187_v29  ;;  %v5072_v38 = vmul.f32 %v7125_v43, %v5070_v41  ;;  %v10601_v43 = vld [vmem:[#allocation5 + $0x450] ss:$24 sps:$4 sm:$0xff]   ;;  %v10609_v45 = vld [vmem:[#allocation5 + $0x420] ss:$24 sps:$4 sm:$0xff]   ;;  %v10620_v29 = vld [vmem:[#allocation5 + $0x3c4] ss:$24 sps:$4 sm:$0xff]  }
 0xf46   :  { %v5043_v8 = vpop.f32.mrf.mxu0 }
 0xf47   :  { %7126 = vtanh.f32 %v5073_v10  ;;  %v5074_v50 = vadd.f32 %v5072_v38, %v12188_v16  ;;  %v10625_v10 = vld [vmem:[#allocation5 + $0x3c0] ss:$24 sps:$4 sm:$0xff]   ;;  %v10628_v38 = vld [vmem:[#allocation5 + $0x394] ss:$24 sps:$4 sm:$0xff]   ;;  %v10633_v8 = vld [vmem:[#allocation5 + $0x390] ss:$24 sps:$4 sm:$0xff]  }
 0xf48   :  { %7128 = vrcp.f32 %v5065_v21  ;;  %v10604_v21 = vld [vmem:[#allocation5 + $0x424] ss:$24 sps:$4 sm:$0xff]   ;;  %v12201_v16 = vld [vmem:[#allocation91_spill] sm:$0xff] }
 0xf49   :  { %7130 = vtanh.f32 %v5074_v50  ;;  %v12202_v50 = vld [vmem:[#allocation85_spill] sm:$0xff] }
 0xf4a   :  { %7132 = vrcp.f32 %v5066_v59  ;;  %v10636_v59 = vld [vmem:[#allocation5 + $0x364] ss:$24 sps:$4 sm:$0xff]  }
 0xf54   :  { %v7127_v34 = vpop.eup %7126 }
 0xf55   :  { %v7129_v18 = vpop.eup %7128  ;;  %v5077_v15 = vsub.f32 %v10464_v35, %v7127_v34 }
 0xf56   :  { %v7131_v23 = vpop.eup %7130 }
 0xf57   :  { %v5078_v30 = vsub.f32 %v10466_v2, %v7131_v23  ;;  %v5079_v62 = vmul.f32 %v7129_v18, %v5077_v15  ;;  %v7133_v28 = vpop.eup %7132  ;;  %v12204_v18 = vld [vmem:[#allocation93_spill] sm:$0xff]  ;;  %v12205_v15 = vld [vmem:[#allocation87_spill] sm:$0xff] }
 0xf59   :  { %v5080_v57 = vmul.f32 %v7133_v28, %v5078_v30  ;;  %v10587_v33 = vadd.f32 %v7127_v34, %v5079_v62  ;;  %v12203_v34 = vld [vmem:[#allocation86_spill] sm:$0xff]  ;;  %v12207_v30 = vld [vmem:[#allocation95_spill] sm:$0xff] }
 0xf5a   :  { %v12208_v62 = vld [vmem:[#allocation99_spill] sm:$0xff] }
 0xf5b   :  { %v10589_v52 = vadd.f32 %v7131_v23, %v5080_v57  ;;  %v10595_v41 = vpack.c.bf16 %v10587_v33, %v10587_v33  ;;  %v12206_v23 = vld [vmem:[#allocation89_spill] sm:$0xff]  ;;  %v12209_v28 = vld [vmem:[#allocation103_spill] sm:$0xff]  ;;  %v12210_v57 = vld [vmem:[#allocation38_spill] sm:$0xff] }
 0xf5d   :  { %v5086_v48 = vpack.c.bf16 %v10589_v52, %v10589_v52 }
 0xf5f   :  { %5119 = vmatprep.mubr.bf16.mxu1 %v5086_v48  ;;  %5160 = vmatprep.mubr.bf16.mxu0 %v5086_v48 }
 0xf60   :  { %5120 = vmatmul.mubr.bf16.vlgmr.msra.gmra.mxu1 %v10595_v41  ;;  %5161 = vmatmul.mubr.bf16.vlgmr.msra.gmra.mxu0 %v10595_v41 }
 0xf61   :  { %5170 = vmatpush1.bf16.msra.mxu1 %v10060_v4  ;;  %5201 = vmatprep.mubr.bf16.mxu1 %v5086_v48  ;;  %v10612_v4 = vld [vmem:[#allocation5 + $0x3f4] ss:$24 sps:$4 sm:$0xff]  }
 0xf62   :  { %5171 = vmatprep.subr.bf16.mxu1 %v10063_v26  ;;  %5253 = vmatpush1.bf16.msra.mxu0 %v10601_v43  ;;  %v10617_v26 = vld [vmem:[#allocation5 + $0x3f0] ss:$24 sps:$4 sm:$0xff]  }
 0xf63   :  { %5254 = vmatprep.subr.bf16.mxu0 %v10604_v21  ;;  %v12211_v48 = vld [vmem:[#allocation39_spill] sm:$0xff] }
 0xf65   :  { %5172 = vmatpush1.bf16.msra.mxu1 %v10279_v32 }
 0xf66   :  { %5173 = vmatprep.subr.bf16.mxu1 %v10282_v31  ;;  %5255 = vmatpush1.bf16.msra.mxu0 %v10609_v45 }
 0xf67   :  { %5256 = vmatprep.subr.bf16.mxu0 %v10612_v4 }
 0xf69   :  { %5174 = vmatpush1.bf16.msra.mxu1 %v10287_v24 }
 0xf6a   :  { %5175 = vmatprep.subr.bf16.mxu1 %v10290_v63  ;;  %5257 = vmatpush1.bf16.msra.mxu0 %v10617_v26 }
 0xf6b   :  { %5258 = vmatprep.subr.bf16.mxu0 %v10620_v29 }
 0xf6d   :  { %5176 = vmatpush1.bf16.msra.mxu1 %v10295_v5 }
 0xf6e   :  { %5177 = vmatprep.subr.bf16.mxu1 %v10298_v0  ;;  %5259 = vmatpush1.bf16.msra.mxu0 %v10625_v10 }
 0xf6f   :  { %5260 = vmatprep.subr.bf16.mxu0 %v10628_v38 }
 0xf71   :  { %5178 = vmatpush1.bf16.msra.mxu1 %v10303_v56 }
 0xf72   :  { %5179 = vmatprep.subr.bf16.mxu1 %v10306_v47  ;;  %5261 = vmatpush1.bf16.msra.mxu0 %v10633_v8 }
 0xf73   :  { %5262 = vmatprep.subr.bf16.mxu0 %v10636_v59 }
 0xf75   :  { %5180 = vmatpush1.bf16.msra.mxu1 %v10311_v14 }
 0xf76   :  { %5181 = vmatprep.subr.bf16.mxu1 %v10314_v11  ;;  %5263 = vmatpush1.bf16.msra.mxu0 %v10086_v46  ;;  %v12189_v46 = vld [vmem:[#allocation37_spill] sm:$0xff] }
 0xf77   :  { %5264 = vmatprep.subr.bf16.mxu0 %v10089_v12  ;;  %v12190_v12 = vld [vmem:[#allocation22_spill] sm:$0xff] }
 0xf79   :  { %5182 = vmatpush1.bf16.msra.mxu1 %v10319_v13 }
 0xf7a   :  { %5183 = vmatprep.subr.bf16.mxu1 %v10322_v54  ;;  %5265 = vmatpush1.bf16.msra.mxu0 %v10094_v20  ;;  %v12191_v20 = vld [vmem:[#allocation23_spill] sm:$0xff] }
 0xf7b   :  { %5266 = vmatprep.subr.bf16.mxu0 %v10097_v40  ;;  %v12192_v40 = vld [vmem:[#allocation60_spill] sm:$0xff] }
 0xf7d   :  { %5184 = vmatpush1.bf16.msra.mxu1 %v10327_v49 }
 0xf7e   :  { %5185 = vmatprep.subr.bf16.mxu1 %v10330_v37  ;;  %5267 = vmatpush1.bf16.msra.mxu0 %v10102_v19  ;;  %v12193_v19 = vld [vmem:[#allocation35_spill] sm:$0xff] }
 0xf7f   :  { %5268 = vmatprep.subr.bf16.mxu0 %v10105_v44  ;;  %v12194_v44 = vld [vmem:[#allocation81_spill] sm:$0xff] }
 0xf81   :  { %5186 = vmatpush2.bf16.msra.mxu1 %v10335_v36 }
 0xf82   :  { %5187 = vmatprep.subr.bf16.mxu1 %v10338_v27  ;;  %5269 = vmatpush2.bf16.msra.mxu0 %v10110_v39  ;;  %v12195_v39 = vld [vmem:[#allocation82_spill] sm:$0xff] }
 0xf83   :  { %5270 = vmatprep.subr.bf16.mxu0 %v12121_v22  ;;  %v12196_v22 = vld [vmem:[#allocation59_spill] sm:$0xff] }
 0xf85   :  { %5188 = vmatpush2.bf16.msra.mxu1 %v12122_v9 }
 0xf86   :  { %5189 = vmatprep.subr.bf16.mxu1 %v12123_v17  ;;  %5271 = vmatpush2.bf16.msra.mxu0 %v12124_v61  ;;  %v12197_v61 = vld [vmem:[#allocation47_spill] sm:$0xff] }
 0xf87   :  { %5272 = vmatprep.subr.bf16.mxu0 %v12125_v60  ;;  %v12198_v60 = vld [vmem:[#allocation83_spill] sm:$0xff] }
 0xf89   :  { %5190 = vmatpush2.bf16.msra.mxu1 %v12126_v6 }
 0xf8a   :  { %5191 = vmatprep.subr.bf16.mxu1 %v12127_v25  ;;  %5273 = vmatpush2.bf16.msra.mxu0 %v12128_v51  ;;  %v12199_v51 = vld [vmem:[#allocation84_spill] sm:$0xff] }
 0xf8b   :  { %5274 = vmatprep.subr.bf16.mxu0 %v12129_v1  ;;  %v12200_v1 = vld [vmem:[#allocation49_spill] sm:$0xff] }
 0xf8d   :  { %5192 = vmatpush2.bf16.msra.mxu1 %v12130_v3 }
 0xf8e   :  { %5193 = vmatprep.subr.bf16.mxu1 %v12189_v46  ;;  %5275 = vmatpush2.bf16.msra.mxu0 %v12190_v12  ;;  %v12212_v12 = vld [vmem:[#allocation61_spill] sm:$0xff] }
 0xf8f   :  { %5276 = vmatprep.subr.bf16.mxu0 %v12191_v20  ;;  %v12213_v20 = vld [vmem:[#allocation105_spill] sm:$0xff] }
 0xf91   :  { %5194 = vmatpush2.bf16.msra.mxu1 %v12192_v40 }
 0xf92   :  { %5195 = vmatprep.subr.bf16.mxu1 %v12193_v19  ;;  %5277 = vmatpush2.bf16.msra.mxu0 %v12194_v44  ;;  %v12214_v44 = vld [vmem:[#allocation107_spill] sm:$0xff] }
 0xf93   :  { %5278 = vmatprep.subr.bf16.mxu0 %v12195_v39  ;;  %v12215_v39 = vld [vmem:[#allocation109_spill] sm:$0xff] }
 0xf95   :  { %5196 = vmatpush2.bf16.msra.mxu1 %v12196_v22 }
 0xf96   :  { %5197 = vmatprep.subr.bf16.mxu1 %v12197_v61  ;;  %5279 = vmatpush2.bf16.msra.mxu0 %v12198_v60  ;;  %v12216_v60 = vld [vmem:[#allocation111_spill] sm:$0xff] }
 0xf97   :  { %5280 = vmatprep.subr.bf16.mxu0 %v12199_v51  ;;  %v12217_v51 = vld [vmem:[#allocation113_spill] sm:$0xff] }
 0xf99   :  { %5198 = vmatpush2.bf16.msra.mxu1 %v12200_v1 }
 0xf9a   :  { %5199 = vmatprep.subr.bf16.mxu1 %v12201_v16  ;;  %5281 = vmatpush2.bf16.msra.mxu0 %v12202_v50  ;;  %v12219_v50 = vld [vmem:[#allocation29_spill] sm:$0xff]  ;;  %v12242_v16 = vld [vmem:[#allocation27_spill] sm:$0xff] }
 0xf9b   :  { %5282 = vmatprep.subr.bf16.mxu0 %v12203_v34  ;;  %v12220_v34 = vld [vmem:[#allocation43_spill] sm:$0xff] }
 0xf9d   :  { %5200 = vmatpush2.bf16.msra.mxu1 %v12204_v18 }
 0xf9e   :  { %5293 = vmatprep.subr.bf16.mxu1 %v12205_v15  ;;  %5283 = vmatpush2.bf16.msra.mxu0 %v12206_v23  ;;  %v12221_v15 = vld [vmem:[#allocation64_spill] sm:$0xff] }
 0xf9f   :  { %5334 = vmatprep.subr.bf16.mxu0 %v12207_v30  ;;  %v12222_v23 = vld [vmem:[#allocation88_spill] sm:$0xff]  ;;  %v12223_v30 = vld [vmem:[#allocation90_spill] sm:$0xff] }
 0xfa0   :  { %5202 = vmatmul.mubr.bf16.vlgmr.msra.gmra.mxu1 %v10595_v41  ;;  %v12218_v41 = vld [vmem:[#allocation44_spill] sm:$0xff] }
 0xfa1   :  { %5294 = vmatpush1.bf16.msra.mxu1 %v12208_v62  ;;  %v12224_v62 = vld [vmem:[#allocation92_spill] sm:$0xff] }
 0xfa2   :  { %5295 = vmatprep.subr.bf16.mxu1 %v12209_v28  ;;  %v12225_v28 = vld [vmem:[#allocation94_spill] sm:$0xff] }
 0xfa5   :  { %5296 = vmatpush1.bf16.msra.mxu1 %v12210_v57  ;;  %v12226_v57 = vld [vmem:[#allocation96_spill] sm:$0xff] }
 0xfa6   :  { %5297 = vmatprep.subr.bf16.mxu1 %v12211_v48  ;;  %v12227_v48 = vld [vmem:[#allocation98_spill] sm:$0xff] }
 0xfa9   :  { %5298 = vmatpush1.bf16.msra.mxu1 %v12212_v12  ;;  %v12228_v12 = vld [vmem:[#allocation102_spill] sm:$0xff] }
 0xfaa   :  { %5299 = vmatprep.subr.bf16.mxu1 %v12213_v20  ;;  %v12229_v20 = vld [vmem:[#allocation68_spill] sm:$0xff] }
 0xfad   :  { %5300 = vmatpush1.bf16.msra.mxu1 %v12214_v44  ;;  %v12230_v44 = vld [vmem:[#allocation97_spill] sm:$0xff] }
 0xfae   :  { %5301 = vmatprep.subr.bf16.mxu1 %v12215_v39  ;;  %v12231_v39 = vld [vmem:[#allocation112_spill] sm:$0xff] }
 0xfb1   :  { %5302 = vmatpush1.bf16.msra.mxu1 %v12216_v60  ;;  %v12232_v60 = vld [vmem:[#allocation114_spill] sm:$0xff] }
 0xfb2   :  { %5303 = vmatprep.subr.bf16.mxu1 %v12217_v51  ;;  %v12233_v51 = vld [vmem:[#allocation42_spill] sm:$0xff] }
 0xfb5   :  { %5304 = vmatpush1.bf16.msra.mxu1 %v12218_v41  ;;  %v12234_v41 = vld [vmem:[#allocation45_spill] sm:$0xff] }
 0xfb6   :  { %5305 = vmatprep.subr.bf16.mxu1 %v12219_v50  ;;  %v12235_v50 = vld [vmem:[#allocation56_spill] sm:$0xff] }
 0xfb9   :  { %5306 = vmatpush1.bf16.msra.mxu1 %v12220_v34  ;;  %v12236_v34 = vld [vmem:[#allocation63_spill] sm:$0xff] }
 0xfba   :  { %5307 = vmatprep.subr.bf16.mxu1 %v12221_v15  ;;  %v12237_v15 = vld [vmem:[#allocation57_spill] sm:$0xff] }
 0xfbd   :  { %5308 = vmatpush1.bf16.msra.mxu1 %v12222_v23  ;;  %v12238_v23 = vld [vmem:[#allocation58_spill] sm:$0xff] }
 0xfbe   :  { %5309 = vmatprep.subr.bf16.mxu1 %v12223_v30  ;;  %v7492_v30 = vld [vmem:[#allocation5 + $0x454] ss:$24 sps:$4 sm:$0xff]  }
 0xfc1   :  { %5310 = vmatpush2.bf16.msra.mxu1 %v12224_v62 }
 0xfc2   :  { %5311 = vmatprep.subr.bf16.mxu1 %v12225_v28 }
 0xfc5   :  { %5312 = vmatpush2.bf16.msra.mxu1 %v12226_v57 }
 0xfc6   :  { %5313 = vmatprep.subr.bf16.mxu1 %v12227_v48 }
 0xfc9   :  { %5314 = vmatpush2.bf16.msra.mxu1 %v12228_v12 }
 0xfca   :  { %5315 = vmatprep.subr.bf16.mxu1 %v12229_v20 }
 0xfcd   :  { %5316 = vmatpush2.bf16.msra.mxu1 %v12230_v44 }
 0xfce   :  { %5317 = vmatprep.subr.bf16.mxu1 %v12231_v39 }
 0xfd1   :  { %5318 = vmatpush2.bf16.msra.mxu1 %v12232_v60  ;;  %v12239_v60 = vld [vmem:[#allocation33_spill] sm:$0xff] }
 0xfd2   :  { %5319 = vmatprep.subr.bf16.mxu1 %v12233_v51 }
 0xfd5   :  { %5320 = vmatpush2.bf16.msra.mxu1 %v12234_v41  ;;  %v12240_v41 = vld [vmem:[#allocation24_spill] sm:$0xff] }
 0xfd6   :  { %5321 = vmatprep.subr.bf16.mxu1 %v12235_v50  ;;  %v3512_v39 = vadd.f32 %v12240_v41, %v12239_v60  ;;  %v12241_v50 = vld [vmem:[#allocation10_spill] sm:$0xff] }
 0xfd9   :  { %5322 = vmatpush2.bf16.msra.mxu1 %v12236_v34  ;;  %v3514_v34 = vadd.f32 %v12241_v50, %v9858_v42 }
 0xfda   :  { %5323 = vmatprep.subr.bf16.mxu1 %v12237_v15 }
 0xfdd   :  { %5324 = vmatpush2.bf16.msra.mxu1 %v12238_v23 }
 0xfde   :  { %5417 = vmatprep.subr.bf16.mxu1 %v7492_v30 }
0x1020   :  { %v5121_v62 = vpop.f32.mrf.mxu1  ;;  %v5162_v28 = vpop.f32.mrf.mxu0 }
0x1021   :  { %v5210_v44 = vadd.f32 %v5121_v62, %v3512_v39 }
0x1022   :  { %v5123_v57 = vpop.f32.mrf.mxu1  ;;  %v5164_v48 = vpop.f32.mrf.mxu0 }
0x1023   :  { %v5211_v15 = vadd.f32 %v5123_v57, %v3514_v34  ;;  %v5212_v20 = vsub.f32 0.0, %v5210_v44 }
0x1024   :  { %v5125_v12 = vpop.f32.mrf.mxu1  ;;  %v5166_v35 = vpop.f32.mrf.mxu0 }
0x1025   :  { %v5213_v23 = vsub.f32 0.0, %v5211_v15  ;;  %v5214_v18 = vmul.f32 1.442695, %v5212_v20  ;;  %v3585_v12 = vadd.f32 %v12242_v16, %v9878_v58  ;;  %v12243_v35 = vld [vmem:[#allocation77_spill] sm:$0xff] }
0x1026   :  { %v5126_v2 = vpop.f32.mrf.mxu1  ;;  %v5167_v51 = vpop.f32.mrf.mxu0 }
0x1027   :  { %v5216_v30 = vmul.f32 1.442695, %v5213_v23  ;;  %7134 = vpow2.f32 %v5214_v18  ;;  %v3587_v2 = vadd.f32 %v12243_v35, %v9882_v55  ;;  %v5222_v51 = vadd.f32 %v5162_v28, %v3585_v12 }
0x1029   :  { %7136 = vpow2.f32 %v5216_v30  ;;  %v5223_v1 = vadd.f32 %v5164_v48, %v3587_v2  ;;  %v5224_v41 = vsub.f32 0.0, %v5222_v51 }
0x102b   :  { %v5225_v61 = vsub.f32 0.0, %v5223_v1  ;;  %v5226_v39 = vmul.f32 1.442695, %v5224_v41  ;;  %v12245_v41 = vld [vmem:[#allocation30_spill] sm:$0xff] }
0x102d   :  { %v5228_v44 = vmul.f32 1.442695, %v5225_v61  ;;  %7138 = vpow2.f32 %v5226_v39 }
0x1034   :  { %v7135_v60 = vpop.eup %7134 }
0x1035   :  { %v5218_v34 = vadd.f32 1.0, %v7135_v60  ;;  %v12244_v60 = vld [vmem:[#allocation32_spill] sm:$0xff] }
0x1036   :  { %v7137_v50 = vpop.eup %7136 }
0x1037   :  { %v5219_v15 = vadd.f32 1.0, %v7137_v50  ;;  %7140 = vrcp.f32 %v5218_v34 }
0x1038   :  { %7142 = vpow2.f32 %v5228_v44 }
0x1039   :  { %7144 = vrcp.f32 %v5219_v15 }
0x103a   :  { %v7139_v20 = vpop.eup %7138 }
0x103b   :  { %v5230_v30 = vadd.f32 1.0, %v7139_v20 }
0x1044   :  { %v7141_v23 = vpop.eup %7140 }
0x1045   :  { %v7143_v28 = vpop.eup %7142 }
0x1046   :  { %v7145_v1 = vpop.eup %7144  ;;  %v5231_v51 = vadd.f32 1.0, %v7143_v28 }
0x1060   :  { %v5203_v18 = vpop.f32.mrf.mxu1 }
0x1061   :  { %v5234_v16 = vadd.f32 %v5203_v18, %v9892_v7 }
0x1062   :  { %v5205_v62 = vpop.f32.mrf.mxu1 }
0x1063   :  { %v5236_v57 = vmul.f32 %v7141_v23, %v5234_v16  ;;  %v5235_v48 = vadd.f32 %v5205_v62, %v9895_v53 }
0x1064   :  { %v5207_v12 = vpop.f32.mrf.mxu1 }
0x1065   :  { %v5238_v61 = vadd.f32 %v5236_v57, %v12244_v60  ;;  %v5237_v35 = vmul.f32 %v7145_v1, %v5235_v48  ;;  %v10741_v1 = vld [vmem:[#allocation5 + $0x460] ss:$24 sps:$4 sm:$0xff]   ;;  %v7527_v60 = vld [vmem:[#allocation5 + $0x36c] ss:$24 sps:$4 sm:$0xff]  }
0x1066   :  { %v5208_v2 = vpop.f32.mrf.mxu1  ;;  %v7526_v12 = vld [vmem:[#allocation5 + $0x398] ss:$24 sps:$4 sm:$0xff]  }
0x1067   :  { %7146 = vtanh.f32 %v5238_v61  ;;  %v5239_v50 = vadd.f32 %v5237_v35, %v12245_v41  ;;  %v7528_v61 = vld [vmem:[#allocation5 + $0x368] ss:$24 sps:$4 sm:$0xff]   ;;  %v7529_v35 = vld [vmem:[#allocation5 + $0x33c] ss:$24 sps:$4 sm:$0xff]   ;;  %v7530_v2 = vld [vmem:[#allocation5 + $0x338] ss:$24 sps:$4 sm:$0xff]  }
0x1068   :  { %7148 = vrcp.f32 %v5230_v30  ;;  %v10744_v30 = vld [vmem:[#allocation5 + $0x434] ss:$24 sps:$4 sm:$0xff]   ;;  %v7532_v41 = vld [vmem:[#allocation5 + $0x308] ss:$24 sps:$4 sm:$0xff]  }
0x1069   :  { %7150 = vtanh.f32 %v5239_v50  ;;  %v7533_v50 = vld [vmem:[#allocation5 + $0x5dc] ss:$24 sps:$4 sm:$0xff]  }
0x106a   :  { %7152 = vrcp.f32 %v5231_v51  ;;  %v7531_v51 = vld [vmem:[#allocation5 + $0x30c] ss:$24 sps:$4 sm:$0xff]  }
0x1074   :  { %v7147_v39 = vpop.eup %7146 }
0x1075   :  { %v7149_v34 = vpop.eup %7148  ;;  %v5242_v44 = vsub.f32 %v10587_v33, %v7147_v39 }
0x1076   :  { %v7151_v15 = vpop.eup %7150 }
0x1077   :  { %v5243_v18 = vsub.f32 %v10589_v52, %v7151_v15  ;;  %v5244_v20 = vmul.f32 %v7149_v34, %v5242_v44  ;;  %v7153_v16 = vpop.eup %7152  ;;  %v7535_v34 = vld [vmem:[#allocation5 + $0x5ac] ss:$24 sps:$4 sm:$0xff]   ;;  %v7536_v44 = vld [vmem:[#allocation5 + $0x5a8] ss:$24 sps:$4 sm:$0xff]  }
0x1079   :  { %v5245_v23 = vmul.f32 %v7153_v16, %v5243_v18  ;;  %v10729_v62 = vadd.f32 %v7147_v39, %v5244_v20  ;;  %v7534_v39 = vld [vmem:[#allocation5 + $0x5d8] ss:$24 sps:$4 sm:$0xff]   ;;  %v12251_v16 = vld [vmem:[#allocation97_spill] sm:$0xff] }
0x107a   :  { %v7538_v18 = vld [vmem:[#allocation5 + $0x578] ss:$24 sps:$4 sm:$0xff]  }
0x107b   :  { %v10731_v57 = vadd.f32 %v7151_v15, %v5245_v23  ;;  %v10737_v48 = vpack.c.bf16 %v10729_v62, %v10729_v62  ;;  %v7537_v15 = vld [vmem:[#allocation5 + $0x57c] ss:$24 sps:$4 sm:$0xff]  }
0x107c   :  { %v12250_v20 = vld [vmem:[#allocation68_spill] sm:$0xff] }
0x107d   :  { %v5251_v28 = vpack.c.bf16 %v10731_v57, %v10731_v57  ;;  %v12252_v23 = vld [vmem:[#allocation112_spill] sm:$0xff] }
0x107f   :  { %5284 = vmatprep.mubr.bf16.mxu0 %v5251_v28  ;;  %5325 = vmatprep.mubr.bf16.mxu1 %v5251_v28 }
0x1080   :  { %5285 = vmatmul.mubr.bf16.vlgmr.msra.gmra.mxu0 %v10737_v48  ;;  %5326 = vmatmul.mubr.bf16.vlgmr.msra.gmra.mxu1 %v10737_v48 }
0x1081   :  { %5335 = vmatpush1.bf16.msra.mxu0 %v10741_v1  ;;  %5366 = vmatprep.mubr.bf16.mxu0 %v5251_v28  ;;  %v12253_v28 = vld [vmem:[#allocation114_spill] sm:$0xff] }
0x1082   :  { %5336 = vmatprep.subr.bf16.mxu0 %v10744_v30  ;;  %5418 = vmatpush1.bf16.msra.mxu1 %v10601_v43  ;;  %v7513_v43 = vld [vmem:[#allocation5 + $0x4b0] ss:$24 sps:$4 sm:$0xff]  }
0x1083   :  { %5419 = vmatprep.subr.bf16.mxu1 %v10604_v21  ;;  %v7514_v21 = vld [vmem:[#allocation5 + $0x484] ss:$24 sps:$4 sm:$0xff]  }
0x1085   :  { %5337 = vmatpush1.bf16.msra.mxu0 %v10279_v32  ;;  %v7495_v32 = vld [vmem:[#allocation5 + $0x360] ss:$24 sps:$4 sm:$0xff]  }
0x1086   :  { %5338 = vmatprep.subr.bf16.mxu0 %v10282_v31  ;;  %5420 = vmatpush1.bf16.msra.mxu1 %v10609_v45  ;;  %v7496_v31 = vld [vmem:[#allocation5 + $0x334] ss:$24 sps:$4 sm:$0xff]   ;;  %v12249_v45 = vld [vmem:[#allocation93_spill] sm:$0xff] }
0x1087   :  { %5421 = vmatprep.subr.bf16.mxu1 %v10612_v4  ;;  %v7515_v4 = vld [vmem:[#allocation5 + $0x45c] ss:$24 sps:$4 sm:$0xff]  }
0x1089   :  { %5339 = vmatpush1.bf16.msra.mxu0 %v10287_v24  ;;  %v7497_v24 = vld [vmem:[#allocation5 + $0x330] ss:$24 sps:$4 sm:$0xff]  }
0x108a   :  { %5340 = vmatprep.subr.bf16.mxu0 %v10290_v63  ;;  %5422 = vmatpush1.bf16.msra.mxu1 %v10617_v26  ;;  %v7498_v63 = vld [vmem:[#allocation5 + $0x304] ss:$24 sps:$4 sm:$0xff]   ;;  %v7516_v26 = vld [vmem:[#allocation5 + $0x480] ss:$24 sps:$4 sm:$0xff]  }
0x108b   :  { %5423 = vmatprep.subr.bf16.mxu1 %v10620_v29  ;;  %v7517_v29 = vld [vmem:[#allocation5 + $0x464] ss:$24 sps:$4 sm:$0xff]  }
0x108d   :  { %5341 = vmatpush1.bf16.msra.mxu0 %v10295_v5  ;;  %v7499_v5 = vld [vmem:[#allocation5 + $0x300] ss:$24 sps:$4 sm:$0xff]  }
0x108e   :  { %5342 = vmatprep.subr.bf16.mxu0 %v10298_v0  ;;  %5424 = vmatpush1.bf16.msra.mxu1 %v10625_v10  ;;  %v7500_v0 = vld [vmem:[#allocation5 + $0x5d4] ss:$24 sps:$4 sm:$0xff]   ;;  %v7518_v10 = vld [vmem:[#allocation5 + $0x458] ss:$24 sps:$4 sm:$0xff]  }
0x108f   :  { %5425 = vmatprep.subr.bf16.mxu1 %v10628_v38  ;;  %v7519_v38 = vld [vmem:[#allocation5 + $0x42c] ss:$24 sps:$4 sm:$0xff]  }
0x1091   :  { %5343 = vmatpush1.bf16.msra.mxu0 %v10303_v56  ;;  %v7501_v56 = vld [vmem:[#allocation5 + $0x5d0] ss:$24 sps:$4 sm:$0xff]  }
0x1092   :  { %5344 = vmatprep.subr.bf16.mxu0 %v10306_v47  ;;  %5426 = vmatpush1.bf16.msra.mxu1 %v10633_v8  ;;  %v7502_v47 = vld [vmem:[#allocation5 + $0x5a4] ss:$24 sps:$4 sm:$0xff]   ;;  %v7520_v8 = vld [vmem:[#allocation5 + $0x428] ss:$24 sps:$4 sm:$0xff]  }
0x1093   :  { %5427 = vmatprep.subr.bf16.mxu1 %v10636_v59  ;;  %v7521_v59 = vld [vmem:[#allocation5 + $0x3fc] ss:$24 sps:$4 sm:$0xff]  }
0x1095   :  { %5345 = vmatpush1.bf16.msra.mxu0 %v10311_v14  ;;  %v7503_v14 = vld [vmem:[#allocation5 + $0x5a0] ss:$24 sps:$4 sm:$0xff]  }
0x1096   :  { %5346 = vmatprep.subr.bf16.mxu0 %v10314_v11  ;;  %5428 = vmatpush1.bf16.msra.mxu1 %v7495_v32  ;;  %v7504_v11 = vld [vmem:[#allocation5 + $0x574] ss:$24 sps:$4 sm:$0xff]   ;;  %v12255_v32 = vld [vmem:[#allocation45_spill] sm:$0xff] }
0x1097   :  { %5429 = vmatprep.subr.bf16.mxu1 %v7496_v31  ;;  %v12256_v31 = vld [vmem:[#allocation56_spill] sm:$0xff] }
0x1099   :  { %5347 = vmatpush1.bf16.msra.mxu0 %v10319_v13  ;;  %v7505_v13 = vld [vmem:[#allocation5 + $0x570] ss:$24 sps:$4 sm:$0xff]  }
0x109a   :  { %5348 = vmatprep.subr.bf16.mxu0 %v10322_v54  ;;  %5430 = vmatpush1.bf16.msra.mxu1 %v7497_v24  ;;  %v7506_v54 = vld [vmem:[#allocation5 + $0x544] ss:$24 sps:$4 sm:$0xff]   ;;  %v12257_v24 = vld [vmem:[#allocation63_spill] sm:$0xff] }
0x109b   :  { %5431 = vmatprep.subr.bf16.mxu1 %v7498_v63  ;;  %v12258_v63 = vld [vmem:[#allocation57_spill] sm:$0xff] }
0x109d   :  { %5349 = vmatpush1.bf16.msra.mxu0 %v10327_v49  ;;  %v7507_v49 = vld [vmem:[#allocation5 + $0x540] ss:$24 sps:$4 sm:$0xff]  }
0x109e   :  { %5350 = vmatprep.subr.bf16.mxu0 %v10330_v37  ;;  %5432 = vmatpush1.bf16.msra.mxu1 %v7499_v5  ;;  %v7508_v37 = vld [vmem:[#allocation5 + $0x514] ss:$24 sps:$4 sm:$0xff]  }
0x109f   :  { %5433 = vmatprep.subr.bf16.mxu1 %v7500_v0  ;;  %v12259_v5 = vld [vmem:[#allocation58_spill] sm:$0xff]  ;;  %v10800_v0 = vld [vmem:[%s11004_s5 + $0x78] sm:$0xff]  }
0x10a1   :  { %5351 = vmatpush2.bf16.msra.mxu0 %v10335_v36  ;;  %v7509_v36 = vld [vmem:[#allocation5 + $0x510] ss:$24 sps:$4 sm:$0xff]  }
0x10a2   :  { %5352 = vmatprep.subr.bf16.mxu0 %v10338_v27  ;;  %5434 = vmatpush2.bf16.msra.mxu1 %v7501_v56  ;;  %v7510_v27 = vld [vmem:[#allocation5 + $0x4e4] ss:$24 sps:$4 sm:$0xff]  }
0x10a3   :  { %5435 = vmatprep.subr.bf16.mxu1 %v7502_v47 }
0x10a5   :  { %5353 = vmatpush2.bf16.msra.mxu0 %v12122_v9  ;;  %v12246_v9 = vld [vmem:[#allocation47_spill] sm:$0xff] }
0x10a6   :  { %5354 = vmatprep.subr.bf16.mxu0 %v12123_v17  ;;  %5436 = vmatpush2.bf16.msra.mxu1 %v7503_v14  ;;  %v7511_v17 = vld [vmem:[#allocation5 + $0x4e0] ss:$24 sps:$4 sm:$0xff]  }
0x10a7   :  { %5437 = vmatprep.subr.bf16.mxu1 %v7504_v11 }
0x10a9   :  { %5355 = vmatpush2.bf16.msra.mxu0 %v12126_v6  ;;  %v7512_v6 = vld [vmem:[#allocation5 + $0x4b4] ss:$24 sps:$4 sm:$0xff]  }
0x10aa   :  { %5356 = vmatprep.subr.bf16.mxu0 %v12127_v25  ;;  %5438 = vmatpush2.bf16.msra.mxu1 %v7505_v13  ;;  %v12247_v25 = vld [vmem:[#allocation49_spill] sm:$0xff] }
0x10ab   :  { %5439 = vmatprep.subr.bf16.mxu1 %v7506_v54 }
0x10ad   :  { %5357 = vmatpush2.bf16.msra.mxu0 %v12130_v3  ;;  %v12248_v3 = vld [vmem:[#allocation91_spill] sm:$0xff] }
0x10ae   :  { %5358 = vmatprep.subr.bf16.mxu0 %v12189_v46  ;;  %5440 = vmatpush2.bf16.msra.mxu1 %v7507_v49  ;;  %v7522_v46 = vld [vmem:[#allocation5 + $0x3f8] ss:$24 sps:$4 sm:$0xff]  }
0x10af   :  { %5441 = vmatprep.subr.bf16.mxu1 %v7508_v37 }
0x10b1   :  { %5359 = vmatpush2.bf16.msra.mxu0 %v12192_v40  ;;  %v7523_v40 = vld [vmem:[#allocation5 + $0x3cc] ss:$24 sps:$4 sm:$0xff]  }
0x10b2   :  { %5360 = vmatprep.subr.bf16.mxu0 %v12193_v19  ;;  %5442 = vmatpush2.bf16.msra.mxu1 %v7509_v36  ;;  %v7524_v19 = vld [vmem:[#allocation5 + $0x3c8] ss:$24 sps:$4 sm:$0xff]  }
0x10b3   :  { %5443 = vmatprep.subr.bf16.mxu1 %v7510_v27  ;;  %v12260_v36 = vld [vmem:[#allocation33_spill] sm:$0xff] }
0x10b4   :  { %v12261_v27 = vld [vmem:[#allocation25_spill] sm:$0xff] }
0x10b5   :  { %5361 = vmatpush2.bf16.msra.mxu0 %v12196_v22  ;;  %v7525_v22 = vld [vmem:[#allocation5 + $0x39c] ss:$24 sps:$4 sm:$0xff]  }
0x10b6   :  { %5362 = vmatprep.subr.bf16.mxu0 %v12246_v9  ;;  %5444 = vmatpush2.bf16.msra.mxu1 %v7511_v17  ;;  %v3518_v9 = vadd.f32 %v12261_v27, %v12260_v36  ;;  %v12262_v17 = vld [vmem:[#allocation12_spill] sm:$0xff] }
0x10b7   :  { %5445 = vmatprep.subr.bf16.mxu1 %v7512_v6  ;;  %v3520_v6 = vadd.f32 %v12262_v17, %v9858_v42  ;;  %v10826_v17 = vld [vmem:[%s11004_s5 + $0x38] sm:$0xff]  }
0x10b9   :  { %5363 = vmatpush2.bf16.msra.mxu0 %v12247_v25 }
0x10ba   :  { %5364 = vmatprep.subr.bf16.mxu0 %v12248_v3  ;;  %5446 = vmatpush2.bf16.msra.mxu1 %v7513_v43 }
0x10bb   :  { %5447 = vmatprep.subr.bf16.mxu1 %v7514_v21 }
0x10bd   :  { %5365 = vmatpush2.bf16.msra.mxu0 %v12249_v45 }
0x10be   :  { %5458 = vmatprep.subr.bf16.mxu0 %v7515_v4  ;;  %5448 = vmatpush2.bf16.msra.mxu1 %v7516_v26  ;;  %v12263_v26 = vld [vmem:[#allocation55_spill] sm:$0xff] }
0x10bf   :  { %5499 = vmatprep.subr.bf16.mxu1 %v7517_v29  ;;  %v3591_v29 = vadd.f32 %v12263_v26, %v9878_v58  ;;  %v7539_v26 = vld [vmem:[#allocation5 + $0x430] ss:$24 sps:$4 sm:$0xff]  }
0x10c0   :  { %5367 = vmatmul.mubr.bf16.vlgmr.msra.gmra.mxu0 %v10737_v48  ;;  %v12254_v48 = vld [vmem:[#allocation42_spill] sm:$0xff] }
0x10c1   :  { %5459 = vmatpush1.bf16.msra.mxu0 %v7518_v10  ;;  %v12264_v10 = vld [vmem:[#allocation14_spill] sm:$0xff] }
0x10c2   :  { %5460 = vmatprep.subr.bf16.mxu0 %v7519_v38  ;;  %v3593_v38 = vadd.f32 %v12264_v10, %v9882_v55  ;;  %v10865_v10 = vld [vmem:[%s11004_s5 + $0x60] sm:$0xff]  }
0x10c5   :  { %5461 = vmatpush1.bf16.msra.mxu0 %v7520_v8 }
0x10c6   :  { %5462 = vmatprep.subr.bf16.mxu0 %v7521_v59 }
0x10c9   :  { %5463 = vmatpush1.bf16.msra.mxu0 %v7522_v46 }
0x10ca   :  { %5464 = vmatprep.subr.bf16.mxu0 %v7523_v40 }
0x10cd   :  { %5465 = vmatpush1.bf16.msra.mxu0 %v7524_v19 }
0x10ce   :  { %5466 = vmatprep.subr.bf16.mxu0 %v7525_v22 }
0x10d1   :  { %5467 = vmatpush1.bf16.msra.mxu0 %v7526_v12 }
0x10d2   :  { %5468 = vmatprep.subr.bf16.mxu0 %v7527_v60 }
0x10d5   :  { %5469 = vmatpush1.bf16.msra.mxu0 %v7528_v61 }
0x10d6   :  { %5470 = vmatprep.subr.bf16.mxu0 %v7529_v35 }
0x10d9   :  { %5471 = vmatpush1.bf16.msra.mxu0 %v7530_v2 }
0x10da   :  { %5472 = vmatprep.subr.bf16.mxu0 %v7531_v51 }
0x10dd   :  { %5473 = vmatpush1.bf16.msra.mxu0 %v7532_v41 }
0x10de   :  { %5474 = vmatprep.subr.bf16.mxu0 %v7533_v50 }
0x10e1   :  { %5475 = vmatpush2.bf16.msra.mxu0 %v7534_v39 }
0x10e2   :  { %5476 = vmatprep.subr.bf16.mxu0 %v7535_v34 }
0x10e5   :  { %5477 = vmatpush2.bf16.msra.mxu0 %v7536_v44 }
0x10e6   :  { %5478 = vmatprep.subr.bf16.mxu0 %v7537_v15 }
0x10e9   :  { %5479 = vmatpush2.bf16.msra.mxu0 %v7538_v18 }
0x10ea   :  { %5480 = vmatprep.subr.bf16.mxu0 %v12250_v20 }
0x10ed   :  { %5481 = vmatpush2.bf16.msra.mxu0 %v12251_v16 }
0x10ee   :  { %5482 = vmatprep.subr.bf16.mxu0 %v12252_v23  ;;  %v12265_v23 = vld [vmem:[#allocation31_spill] sm:$0xff] }
0x10f1   :  { %5483 = vmatpush2.bf16.msra.mxu0 %v12253_v28 }
0x10f2   :  { %5484 = vmatprep.subr.bf16.mxu0 %v12254_v48 }
0x10f5   :  { %5485 = vmatpush2.bf16.msra.mxu0 %v12255_v32 }
0x10f6   :  { %5486 = vmatprep.subr.bf16.mxu0 %v12256_v31 }
0x10f9   :  { %5487 = vmatpush2.bf16.msra.mxu0 %v12257_v24  ;;  %v12266_v24 = vld [vmem:[#allocation28_spill] sm:$0xff] }
0x10fa   :  { %5488 = vmatprep.subr.bf16.mxu0 %v12258_v63 }
0x10fd   :  { %5489 = vmatpush2.bf16.msra.mxu0 %v12259_v5 }
0x10fe   :  { %6221 = vmatprep.subr.bf16.mxu0 %v10800_v0 }
0x1140   :  { %v5286_v56 = vpop.f32.mrf.mxu0  ;;  %v5327_v47 = vpop.f32.mrf.mxu1 }
0x1141   :  { %v5375_v25 = vadd.f32 %v5286_v56, %v3518_v9  ;;  %v5387_v8 = vadd.f32 %v5327_v47, %v3591_v29  ;;  %v7540_v29 = vld [vmem:[#allocation5 + $0x404] ss:$24 sps:$4 sm:$0xff]  }
0x1142   :  { %v5288_v14 = vpop.f32.mrf.mxu0  ;;  %v5329_v11 = vpop.f32.mrf.mxu1 }
0x1143   :  { %v5376_v3 = vadd.f32 %v5288_v14, %v3520_v6  ;;  %v5377_v43 = vsub.f32 0.0, %v5375_v25  ;;  %v5388_v59 = vadd.f32 %v5329_v11, %v3593_v38  ;;  %v5389_v46 = vsub.f32 0.0, %v5387_v8  ;;  %v10835_v25 = vld [vmem:[%s11004_s5 + $0x70] sm:$0xff]   ;;  %v10871_v38 = vld [vmem:[%s11004_s5 + $0x20] sm:$0xff]  }
0x1144   :  { %v5290_v13 = vpop.f32.mrf.mxu0  ;;  %v5331_v54 = vpop.f32.mrf.mxu1  ;;  %v7542_v8 = vld [vmem:[#allocation5 + $0x3d4] ss:$24 sps:$4 sm:$0xff]  }
0x1145   :  { %v5378_v21 = vsub.f32 0.0, %v5376_v3  ;;  %v5379_v45 = vmul.f32 1.442695, %v5377_v43  ;;  %v5390_v19 = vsub.f32 0.0, %v5388_v59  ;;  %v5391_v12 = vmul.f32 1.442695, %v5389_v46 }
0x1146   :  { %v5291_v49 = vpop.f32.mrf.mxu0  ;;  %v5332_v37 = vpop.f32.mrf.mxu1  ;;  %v12267_v3 = vld [vmem:[#allocation51_spill] sm:$0xff]  ;;  %v12268_v43 = vld [vmem:[#allocation78_spill] sm:$0xff]  ;;  %v10877_v59 = vld [vmem:[%s11004_s5 + $0x58] sm:$0xff]  }
0x1147   :  { %v5381_v4 = vmul.f32 1.442695, %v5378_v21  ;;  %7154 = vpow2.f32 %v5379_v45  ;;  %v5393_v61 = vmul.f32 1.442695, %v5390_v19  ;;  %v5597_v21 = vpack.c.bf16 %v12268_v43, %v12267_v3  ;;  %v10846_v45 = vld [vmem:[%s11004_s5 + $0x30] sm:$0xff]  }
0x1148   :  { %v7543_v46 = vld [vmem:[#allocation5 + $0x3d0] ss:$24 sps:$4 sm:$0xff]   ;;  %v7544_v19 = vld [vmem:[#allocation5 + $0x3a4] ss:$24 sps:$4 sm:$0xff]   ;;  %v7562_v3 = vld [vmem:[#allocation5 + $0x4f4] ss:$24 sps:$4 sm:$0xff]  }
0x1149   :  { %7156 = vpow2.f32 %v5381_v4  ;;  %v10851_v4 = vld [vmem:[%s11004_s5 + $0x68] sm:$0xff]  }
0x114a   :  { %7158 = vpow2.f32 %v5391_v12  ;;  %v7545_v12 = vld [vmem:[#allocation5 + $0x3a0] ss:$24 sps:$4 sm:$0xff]   ;;  %v7563_v43 = vld [vmem:[#allocation5 + $0x4f0] ss:$24 sps:$4 sm:$0xff]  }
0x1154   :  { %v7155_v40 = vpop.eup %7154 }
0x1155   :  { %v5383_v60 = vadd.f32 1.0, %v7155_v40  ;;  %v10883_v40 = vld [vmem:[%s11004_s5 + $0x18] sm:$0xff]  }
0x1156   :  { %v7157_v22 = vpop.eup %7156 }
0x1157   :  { %v5384_v35 = vadd.f32 1.0, %v7157_v22  ;;  %7160 = vrcp.f32 %v5383_v60  ;;  %v7159_v51 = vpop.eup %7158  ;;  %v10889_v22 = vld [vmem:[%s11004_s5 + $0x50] sm:$0xff]  }
0x1158   :  { %7162 = vpow2.f32 %v5393_v61  ;;  %v5395_v20 = vadd.f32 1.0, %v7159_v51  ;;  %v10895_v60 = vld [vmem:[%s11004_s5 + $0x10] sm:$0xff]   ;;  %v10907_v51 = vld [vmem:[%s11004_s5 + $0x8] sm:$0xff]  }
0x1159   :  { %7164 = vrcp.f32 %v5384_v35  ;;  %v7546_v61 = vld [vmem:[#allocation5 + $0x374] ss:$24 sps:$4 sm:$0xff]  }
0x115a   :  { %v10901_v35 = vld [vmem:[%s11004_s5 + $0x48] sm:$0xff]  }
0x1164   :  { %v7161_v50 = vpop.eup %7160 }
0x1165   :  { %v7163_v34 = vpop.eup %7162 }
0x1166   :  { %v7165_v18 = vpop.eup %7164  ;;  %v5396_v31 = vadd.f32 1.0, %v7163_v34  ;;  %v6873_v34 = vld [vmem:[%s11004_s5] sm:$0xff]  }
0x1180   :  { %v5368_v2 = vpop.f32.mrf.mxu0 }
0x1181   :  { %v5399_v41 = vadd.f32 %v5368_v2, %v9892_v7  ;;  %v7547_v2 = vld [vmem:[#allocation5 + $0x370] ss:$24 sps:$4 sm:$0xff]  }
0x1182   :  { %v5370_v39 = vpop.f32.mrf.mxu0 }
0x1183   :  { %v5401_v44 = vmul.f32 %v7161_v50, %v5399_v41  ;;  %v5400_v15 = vadd.f32 %v5370_v39, %v9895_v53  ;;  %v7548_v41 = vld [vmem:[#allocation5 + $0x344] ss:$24 sps:$4 sm:$0xff]   ;;  %v7549_v39 = vld [vmem:[#allocation5 + $0x340] ss:$24 sps:$4 sm:$0xff]  }
0x1184   :  { %v5372_v16 = vpop.f32.mrf.mxu0  ;;  %v10913_v50 = vld [vmem:[%s11004_s5 + $0x40] sm:$0xff]  }
0x1185   :  { %v5403_v28 = vadd.f32 %v5401_v44, %v12265_v23  ;;  %v5402_v48 = vmul.f32 %v7165_v18, %v5400_v15  ;;  %v7550_v44 = vld [vmem:[#allocation5 + $0x314] ss:$24 sps:$4 sm:$0xff]   ;;  %v7551_v15 = vld [vmem:[#allocation5 + $0x310] ss:$24 sps:$4 sm:$0xff]   ;;  %v7552_v18 = vld [vmem:[#allocation5 + $0x5e4] ss:$24 sps:$4 sm:$0xff]  }
0x1186   :  { %v5373_v32 = vpop.f32.mrf.mxu0  ;;  %v12270_v16 = vld [vmem:[#allocation17_spill] sm:$0xff] }
0x1187   :  { %7166 = vtanh.f32 %v5403_v28  ;;  %v5404_v63 = vadd.f32 %v5402_v48, %v12266_v24  ;;  %v12271_v28 = vld [vmem:[#allocation40_spill] sm:$0xff]  ;;  %v12272_v48 = vld [vmem:[#allocation34_spill] sm:$0xff] }
0x1188   :  { %7168 = vrcp.f32 %v5395_v20  ;;  %v12269_v20 = vld [vmem:[#allocation52_spill] sm:$0xff]  ;;  %v5599_v32 = vpack.c.bf16 %v12272_v48, %v12271_v28  ;;  %v7554_v24 = vld [vmem:[#allocation5 + $0x5b4] ss:$24 sps:$4 sm:$0xff]  }
0x1189   :  { %7170 = vtanh.f32 %v5404_v63  ;;  %v5596_v23 = vpack.c.bf16 %v12270_v16, %v12269_v20  ;;  %v7555_v63 = vld [vmem:[#allocation5 + $0x5b0] ss:$24 sps:$4 sm:$0xff]  }
0x118a   :  { %7172 = vrcp.f32 %v5396_v31  ;;  %v7553_v31 = vld [vmem:[#allocation5 + $0x5e0] ss:$24 sps:$4 sm:$0xff]  }
0x1194   :  { %v7167_v5 = vpop.eup %7166 }
0x1195   :  { %v7169_v56 = vpop.eup %7168  ;;  %v5407_v47 = vsub.f32 %v10729_v62, %v7167_v5 }
0x1196   :  { %v7171_v14 = vpop.eup %7170 }
0x1197   :  { %v5408_v11 = vsub.f32 %v10731_v57, %v7171_v14  ;;  %v5409_v13 = vmul.f32 %v7169_v56, %v5407_v47  ;;  %v7173_v54 = vpop.eup %7172  ;;  %v12273_v56 = vld [vmem:[#allocation104_spill] sm:$0xff] }
0x1198   :  { %v12274_v47 = vld [vmem:[#allocation36_spill] sm:$0xff] }
0x1199   :  { %v5410_v49 = vmul.f32 %v7173_v54, %v5408_v11  ;;  %v10817_v37 = vadd.f32 %v7167_v5, %v5409_v13  ;;  %v7556_v5 = vld [vmem:[#allocation5 + $0x584] ss:$24 sps:$4 sm:$0xff]   ;;  %v7557_v11 = vld [vmem:[#allocation5 + $0x580] ss:$24 sps:$4 sm:$0xff]   ;;  %v7558_v13 = vld [vmem:[#allocation5 + $0x554] ss:$24 sps:$4 sm:$0xff]  }
0x119a   :  { %v7559_v54 = vld [vmem:[#allocation5 + $0x550] ss:$24 sps:$4 sm:$0xff]  }
0x119b   :  { %v10819_v27 = vadd.f32 %v7171_v14, %v5410_v49  ;;  %v10830_v6 = vpack.c.bf16 %v10817_v37, %v10817_v37  ;;  %v5598_v14 = vpack.c.bf16 %v12274_v47, %v12273_v56  ;;  %v7560_v49 = vld [vmem:[#allocation5 + $0x524] ss:$24 sps:$4 sm:$0xff]  }
0x119d   :  { %v5416_v9 = vpack.c.bf16 %v10819_v27, %v10819_v27 }
0x119f   :  { %5449 = vmatprep.mubr.bf16.mxu1 %v5416_v9  ;;  %5490 = vmatprep.mubr.bf16.mxu0 %v5416_v9 }
0x11a0   :  { %5450 = vmatmul.mubr.bf16.vlgmr.msra.gmra.mxu1 %v10830_v6  ;;  %5491 = vmatmul.mubr.bf16.vlgmr.msra.gmra.mxu0 %v10830_v6 }
0x11a1   :  { %5500 = vmatpush1.bf16.msra.mxu1 %v10741_v1  ;;  %6222 = vmatpush3.bf16.msra.mxu0 %v10826_v17  ;;  %v10859_v1 = vld [vmem:[%s11004_s5 + $0x28] sm:$0xff]  }
0x11a2   :  { %5531 = vmatprep.mubr.bf16.mxu1 %v5416_v9  ;;  %5771 = vmatprep.mubr.bf16.mxu0 %v5597_v21  ;;  %v7561_v9 = vld [vmem:[#allocation5 + $0x520] ss:$24 sps:$4 sm:$0xff]   ;;  %v7564_v21 = vld [vmem:[#allocation5 + $0x4c4] ss:$24 sps:$4 sm:$0xff]  }
0x11a3   :  { %5501 = vmatprep.subr.bf16.mxu1 %v10744_v30  ;;  %6223 = vmatprep.subr.bf16.mxu0 %v10835_v25  ;;  %v7541_v30 = vld [vmem:[#allocation5 + $0x400] ss:$24 sps:$4 sm:$0xff]  }
0x11a5   :  { %5502 = vmatpush1.bf16.msra.mxu1 %v7539_v26  ;;  %6224 = vmatpush3.bf16.msra.mxu0 %v10846_v45  ;;  %v7565_v26 = vld [vmem:[#allocation5 + $0x4c0] ss:$24 sps:$4 sm:$0xff]  }
0x11a6   :  { %5503 = vmatprep.subr.bf16.mxu1 %v7540_v29  ;;  %6225 = vmatprep.subr.bf16.mxu0 %v10851_v4  ;;  %v7566_v29 = vld [vmem:[#allocation5 + $0x494] ss:$24 sps:$4 sm:$0xff]  }
0x11a9   :  { %5504 = vmatpush1.bf16.msra.mxu1 %v7541_v30  ;;  %6226 = vmatpush3.bf16.msra.mxu0 %v10859_v1  ;;  %v7567_v30 = vld [vmem:[#allocation5 + $0x490] ss:$24 sps:$4 sm:$0xff]  }
0x11aa   :  { %5505 = vmatprep.subr.bf16.mxu1 %v7542_v8  ;;  %6227 = vmatprep.subr.bf16.mxu0 %v10865_v10  ;;  %v5601_v8 = vpack.c.bf16 %v10731_v57, %v10589_v52  ;;  %v5600_v52 = vpack.c.bf16 %v10729_v62, %v10587_v33 }
0x11ad   :  { %5506 = vmatpush1.bf16.msra.mxu1 %v7543_v46  ;;  %6228 = vmatpush3.bf16.msra.mxu0 %v10871_v38 }
0x11ae   :  { %5507 = vmatprep.subr.bf16.mxu1 %v7544_v19  ;;  %6229 = vmatprep.subr.bf16.mxu0 %v10877_v59 }
0x11b1   :  { %5508 = vmatpush1.bf16.msra.mxu1 %v7545_v12  ;;  %6230 = vmatpush3.bf16.msra.mxu0 %v10883_v40 }
0x11b2   :  { %5509 = vmatprep.subr.bf16.mxu1 %v7546_v61  ;;  %6231 = vmatprep.subr.bf16.mxu0 %v10889_v22  ;;  %v10953_v61 = vld [vmem:[%s11005_s6] ss:$0 sm:$0xff] }
0x11b5   :  { %5510 = vmatpush1.bf16.msra.mxu1 %v7547_v2  ;;  %6232 = vmatpush3.bf16.msra.mxu0 %v10895_v60 }
0x11b6   :  { %5511 = vmatprep.subr.bf16.mxu1 %v7548_v41  ;;  %6233 = vmatprep.subr.bf16.mxu0 %v10901_v35 }
0x11b9   :  { %5512 = vmatpush1.bf16.msra.mxu1 %v7549_v39  ;;  %6234 = vmatpush3.bf16.msra.mxu0 %v10907_v51 }
0x11ba   :  { %5513 = vmatprep.subr.bf16.mxu1 %v7550_v44  ;;  %6235 = vmatprep.subr.bf16.mxu0 %v10913_v50 }
0x11bd   :  { %5514 = vmatpush1.bf16.msra.mxu1 %v7551_v15  ;;  %6236 = vmatpush3.bf16.msra.mxu0 %v6873_v34 }
0x11be   :  { %5515 = vmatprep.subr.bf16.mxu1 %v7552_v18 }
0x11c0   :  { %5772 = vmatmul.mubr.bf16.vlgmr.msra.gmra.mxu0 %v5596_v23 }
0x11c1   :  { %5516 = vmatpush2.bf16.msra.mxu1 %v7553_v31  ;;  %5779 = vmatprep.mubr.bf16.mxu0 %v5599_v32 }
0x11c2   :  { %5517 = vmatprep.subr.bf16.mxu1 %v7554_v24 }
0x11c5   :  { %5518 = vmatpush2.bf16.msra.mxu1 %v7555_v63 }
0x11c6   :  { %5519 = vmatprep.subr.bf16.mxu1 %v7556_v5 }
0x11c8   :  { %5780 = vmatmul.mubr.bf16.gmra.mxu0 %v5598_v14 }
0x11c9   :  { %5520 = vmatpush2.bf16.msra.mxu1 %v7557_v11 }
0x11ca   :  { %5521 = vmatprep.subr.bf16.mxu1 %v7558_v13 }
0x11cd   :  { %5522 = vmatpush2.bf16.msra.mxu1 %v7559_v54 }
0x11ce   :  { %5523 = vmatprep.subr.bf16.mxu1 %v7560_v49 }
0x11d1   :  { %5524 = vmatpush2.bf16.msra.mxu1 %v7561_v9 }
0x11d2   :  { %5525 = vmatprep.subr.bf16.mxu1 %v7562_v3 }
0x11d5   :  { %5526 = vmatpush2.bf16.msra.mxu1 %v7563_v43 }
0x11d6   :  { %5527 = vmatprep.subr.bf16.mxu1 %v7564_v21 }
0x11d9   :  { %5528 = vmatpush2.bf16.msra.mxu1 %v7565_v26 }
0x11da   :  { %5529 = vmatprep.subr.bf16.mxu1 %v7566_v29 }
0x11dd   :  { %5530 = vmatpush2.bf16.msra.mxu1 %v7567_v30 }
0x11de   :  { %6261 = vmatprep.subr.bf16.mxu1 %v10800_v0 }
0x11e0   :  { %5532 = vmatmul.mubr.bf16.vlgmr.msra.gmra.mxu1 %v10830_v6 }
0x11e1   :  { %6269 = vmatpush3.bf16.msra.mxu1 %v10826_v17  ;;  %5787 = vmatprep.mubr.bf16.mxu1 %v5601_v8 }
0x11e2   :  { %6262 = vmatprep.subr.bf16.mxu1 %v10835_v25 }
0x11e5   :  { %6270 = vmatpush3.bf16.msra.mxu1 %v10846_v45 }
0x11e6   :  { %6263 = vmatprep.subr.bf16.mxu1 %v10851_v4 }
0x11e9   :  { %6271 = vmatpush3.bf16.msra.mxu1 %v10859_v1 }
0x11ea   :  { %6264 = vmatprep.subr.bf16.mxu1 %v10865_v10  ;;  %v12275_v10 = vld [vmem:[#allocation54_spill] sm:$0xff] }
0x11ed   :  { %6272 = vmatpush3.bf16.msra.mxu1 %v10871_v38  ;;  %v3522_v38 = vadd.f32 %v12275_v10, %v12260_v36 }
0x11ee   :  { %6265 = vmatprep.subr.bf16.mxu1 %v10877_v59  ;;  %v12276_v59 = vld [vmem:[#allocation46_spill] sm:$0xff] }
0x11ef   :  { %v3524_v46 = vadd.f32 %v12276_v59, %v9858_v42  ;;  %v12277_v42 = vld [vmem:[#allocation100_spill] sm:$0xff] }
0x11f0   :  { %v3595_v41 = vadd.f32 %v12277_v42, %v9878_v58 }
0x11f1   :  { %6273 = vmatpush3.bf16.msra.mxu1 %v10883_v40 }
0x11f2   :  { %6266 = vmatprep.subr.bf16.mxu1 %v10889_v22 }
0x11f5   :  { %6274 = vmatpush3.bf16.msra.mxu1 %v10895_v60 }
0x11f6   :  { %6267 = vmatprep.subr.bf16.mxu1 %v10901_v35 }
0x11f9   :  { %6275 = vmatpush3.bf16.msra.mxu1 %v10907_v51 }
0x11fa   :  { %6268 = vmatprep.subr.bf16.mxu1 %v10913_v50 }
0x11fd   :  { %6276 = vmatpush3.bf16.msra.mxu1 %v6873_v34  ;;  %v12278_v34 = vld [vmem:[#allocation48_spill] sm:$0xff] }
0x11fe   :  { %v3597_v44 = vadd.f32 %v12278_v34, %v9882_v55 }
0x1200   :  { %5788 = vmatmul.mubr.bf16.vlgmr.msra.gmra.mxu1 %v5600_v52 }
0x1260   :  { %v5451_v57 = vpop.f32.mrf.mxu1  ;;  %v5492_v0 = vpop.f32.mrf.mxu0 }
0x1261   :  { %v5540_v40 = vadd.f32 %v5451_v57, %v3522_v38  ;;  %v5552_v15 = vadd.f32 %v5492_v0, %v3595_v41  ;;  %v12279_v57 = vld [vmem:[#allocation53_spill] sm:$0xff] }
0x1262   :  { %v5453_v17 = vpop.f32.mrf.mxu1  ;;  %v5494_v6 = vpop.f32.mrf.mxu0 }
0x1263   :  { %v5541_v19 = vadd.f32 %v5453_v17, %v3524_v46  ;;  %v5542_v22 = vsub.f32 0.0, %v5540_v40  ;;  %v5553_v16 = vadd.f32 %v5494_v6, %v3597_v44  ;;  %v5554_v28 = vsub.f32 0.0, %v5552_v15 }
0x1264   :  { %v5455_v25 = vpop.f32.mrf.mxu1  ;;  %v5496_v45 = vpop.f32.mrf.mxu0 }
0x1265   :  { %v5543_v12 = vsub.f32 0.0, %v5541_v19  ;;  %v5544_v33 = vmul.f32 1.442695, %v5542_v22  ;;  %v5555_v24 = vsub.f32 0.0, %v5553_v16  ;;  %v5556_v56 = vmul.f32 1.442695, %v5554_v28 }
0x1266   :  { %v5456_v4 = vpop.f32.mrf.mxu1  ;;  %v5497_v1 = vpop.f32.mrf.mxu0  ;;  %v12280_v45 = vld [vmem:[#allocation50_spill] sm:$0xff] }
0x1267   :  { %v5546_v62 = vmul.f32 1.442695, %v5543_v12  ;;  %7174 = vpow2.f32 %v5544_v33  ;;  %v5558_v11 = vmul.f32 1.442695, %v5555_v24 }
0x1269   :  { %7176 = vpow2.f32 %v5546_v62 }
0x126a   :  { %7178 = vpow2.f32 %v5556_v56 }
0x1274   :  { %v7175_v31 = vpop.eup %7174 }
0x1275   :  { %v5548_v47 = vadd.f32 1.0, %v7175_v31 }
0x1276   :  { %v7177_v5 = vpop.eup %7176 }
0x1277   :  { %v5549_v13 = vadd.f32 1.0, %v7177_v5  ;;  %7180 = vrcp.f32 %v5548_v47  ;;  %v7179_v49 = vpop.eup %7178 }
0x1278   :  { %7182 = vpow2.f32 %v5558_v11  ;;  %v5560_v8 = vadd.f32 1.0, %v7179_v49 }
0x1279   :  { %7184 = vrcp.f32 %v5549_v13 }
0x1280   :  { %v6237_v60 = vpop.f32.mrf.mxu0 }
0x1282   :  { %v6238_v35 = vpop.f32.mrf.mxu0 }
0x1283   :  { %v6239_v2 = vadd.f32 %v6238_v35, %v6237_v60 }
0x1284   :  { %v6240_v36 = vpop.f32.mrf.mxu0  ;;  %v7181_v3 = vpop.eup %7180 }
0x1285   :  { %v5774_v51 = vadd.f32 %v6239_v2, %v10953_v61  ;;  %v7183_v21 = vpop.eup %7182 }
0x1286   :  { %v6241_v50 = vpop.f32.mrf.mxu0  ;;  %v7185_v30 = vpop.eup %7184  ;;  %v5561_v25 = vadd.f32 1.0, %v7183_v21 }
0x1287   :  { %5804 = vst [vmem:[%s11006_s7] sm:$0xff] %v5774_v51  ;;  %v6242_v39 = vadd.f32 %v6241_v50, %v6240_v36 }
0x1288   :  { %v6243_v18 = vpop.f32.mrf.mxu0 }
0x1289   :  { %v5777_v20 = vadd.f32 %v6242_v39, %v10953_v61 }
0x128a   :  { %v6244_v23 = vpop.f32.mrf.mxu0 }
0x128b   :  { %5805 = vst [vmem:[%s11006_s7 + $0x8] sm:$0xff] %v5777_v20  ;;  %v6245_v58 = vadd.f32 %v6244_v23, %v6243_v18 }
0x128c   :  { %v6246_v48 = vpop.f32.mrf.mxu0 }
0x128d   :  { %v5782_v32 = vadd.f32 %v6245_v58, %v10953_v61 }
0x128e   :  { %v6247_v63 = vpop.f32.mrf.mxu0 }
0x128f   :  { %5806 = vst [vmem:[%s11006_s7 + $0x10] sm:$0xff] %v5782_v32  ;;  %v6248_v55 = vadd.f32 %v6247_v63, %v6246_v48 }
0x1291   :  { %v5785_v14 = vadd.f32 %v6248_v55, %v10953_v61 }
0x1293   :  { %5807 = vst [vmem:[%s11006_s7 + $0x18] sm:$0xff] %v5785_v14 }
0x12a0   :  { %v5533_v54 = vpop.f32.mrf.mxu1 }
0x12a1   :  { %v5564_v9 = vadd.f32 %v5533_v54, %v9892_v7 }
0x12a2   :  { %v5535_v43 = vpop.f32.mrf.mxu1 }
0x12a3   :  { %v5566_v26 = vmul.f32 %v7181_v3, %v5564_v9  ;;  %v5565_v29 = vadd.f32 %v5535_v43, %v9895_v53 }
0x12a4   :  { %v5537_v52 = vpop.f32.mrf.mxu1 }
0x12a5   :  { %v5568_v0 = vadd.f32 %v5566_v26, %v12279_v57  ;;  %v5567_v17 = vmul.f32 %v7185_v30, %v5565_v29 }
0x12a6   :  { %v5538_v6 = vpop.f32.mrf.mxu1 }
0x12a7   :  { %7186 = vtanh.f32 %v5568_v0  ;;  %v5569_v4 = vadd.f32 %v5567_v17, %v12280_v45 }
0x12a8   :  { %7188 = vrcp.f32 %v5560_v8 }
0x12a9   :  { %7190 = vtanh.f32 %v5569_v4 }
0x12aa   :  { %7192 = vrcp.f32 %v5561_v25 }
0x12b4   :  { %v7187_v7 = vpop.eup %7186 }
0x12b5   :  { %v7189_v1 = vpop.eup %7188  ;;  %v5572_v10 = vsub.f32 %v10817_v37, %v7187_v7 }
0x12b6   :  { %v7191_v38 = vpop.eup %7190 }
0x12b7   :  { %v5573_v53 = vsub.f32 %v10819_v27, %v7191_v38  ;;  %v5574_v59 = vmul.f32 %v7189_v1, %v5572_v10  ;;  %v7193_v46 = vpop.eup %7192 }
0x12b9   :  { %v5575_v40 = vmul.f32 %v7193_v46, %v5573_v53  ;;  %v5576_v19 = vadd.f32 %v7187_v7, %v5574_v59 }
0x12bb   :  { %v5577_v22 = vadd.f32 %v7191_v38, %v5575_v40  ;;  %v5602_v33 = vpack.c.bf16 %v5576_v19, %v10817_v37 }
0x12bd   :  { %v5603_v12 = vpack.c.bf16 %v5577_v22, %v10819_v27 }
0x12bf   :  { %5795 = vmatprep.mubr.bf16.mxu1 %v5603_v12 }
0x12c0   :  { %v6249_v62 = vpop.f32.mrf.mxu1  ;;  %5796 = vmatmul.mubr.bf16.gmra.mxu1 %v5602_v33 }
0x12c2   :  { %v6250_v60 = vpop.f32.mrf.mxu1 }
0x12c3   :  { %v6251_v35 = vadd.f32 %v6250_v60, %v6249_v62 }
0x12c4   :  { %v6252_v2 = vpop.f32.mrf.mxu1 }
0x12c5   :  { %v5790_v36 = vadd.f32 %v6251_v35, %v10953_v61 }
0x12c6   :  { %v6253_v51 = vpop.f32.mrf.mxu1 }
0x12c7   :  { %5808 = vst [vmem:[%s11006_s7 + $0x20] sm:$0xff] %v5790_v36  ;;  %v6254_v42 = vadd.f32 %v6253_v51, %v6252_v2 }
0x12c9   :  { %v5793_v41 = vadd.f32 %v6254_v42, %v10953_v61 }
0x12cb   :  { %5809 = vst [vmem:[%s11006_s7 + $0x28] sm:$0xff] %v5793_v41 }
0x1380   :  { %v6255_v37 = vpop.f32.mrf.mxu1 }
0x1382   :  { %v6256_v27 = vpop.f32.mrf.mxu1 }
0x1383   :  { %v6257_v50 = vadd.f32 %v6256_v27, %v6255_v37 }
0x1384   :  { %v6258_v39 = vpop.f32.mrf.mxu1 }
0x1385   :  { %v5798_v34 = vadd.f32 %v6257_v50, %v10953_v61 }
0x1386   :  { %v6259_v44 = vpop.f32.mrf.mxu1 }
0x1387   :  { %5810 = vst [vmem:[%s11006_s7 + $0x30] sm:$0xff] %v5798_v34  ;;  %v6260_v15 = vadd.f32 %v6259_v44, %v6258_v39 }
0x1389   :  { %v5801_v18 = vadd.f32 %v6260_v15, %v10953_v61 }
0x138b   :  { %5811 = vst [vmem:[%s11006_s7 + $0x38] sm:$0xff] %v5801_v18 }
0x138c   :  { %5816 = vsyncpa [#allocation4], 1 }
0x138d   :  { %5817 = vsyncpa [#allocation6], 1 }

</bundles_post_ra>
